<compile_context>
chip_gen: v6e
topology: v6e:2x2x1
jax: 0.10.0
libtpu: 0.0.40
codegen_flags: <defaults>
</compile_context>

<pallas_src>
import functools

import jax
import jax.numpy as jnp
from jax.experimental import pallas as pl
from jax.experimental.pallas import tpu as pltpu

_BN_EPS = 1e-5
LANE = 128          # lane-dense padding for output channels / stores
SUBLANE_BF16 = 16   # bf16 sublane multiple -> contraction-dim (cin) padding


def _pad_to(n, m):
    return ((n + m - 1) // m) * m


@functools.lru_cache(maxsize=None)
def _vmem_limit_bytes():
    """Per-generation scoped-VMEM budget.

    ~96 MiB on 128 MiB parts (v5e/v6e), ~48 MiB on 64 MiB parts (v7x)."""
    try:
        cap = int(pltpu.get_tpu_info().vmem_capacity_bytes)
    except Exception:
        cap = 64 * 1024 * 1024
    return int(min(cap * 3 // 4, 96 * 1024 * 1024))


def _pick_row_tile(OH, OW, target_rows=256):
    """Largest divisor TM of OH with TM*OW <= target matmul rows (>= 1)."""
    best = 1
    for tm in range(1, OH + 1):
        if OH % tm == 0 and tm * OW <= target_rows:
            best = tm
    return best


# ----------------------------------------------------------------------------
# Fused 3x3 conv (+ bias + ReLU) kernel: one output row-tile per grid step.
#   phases : n_phases resident blocks (1, PH, PW, C) bf16 (C >= cin_k)
#   weight : (9, cin_k, tn) bf16      bias : (1, tn) f32
#   output : (1, TM, OW, tn) bf16
# The 9 taps are unrolled; each is a unit-stride shifted slice of a phase
# block, restricted to the real cin_k channels, fed to the MXU with an f32
# accumulator initialized from the first tap's dot.
# ----------------------------------------------------------------------------
def _make_conv_kernel(n_phases, taps, TM, OW, apply_relu):
    def kernel(*refs):
        phase_refs = refs[:n_phases]
        w_ref = refs[n_phases]           # (9, cin_k, tn)
        b_ref = refs[n_phases + 1]       # (1, tn)
        o_ref = refs[n_phases + 2]       # (1, TM, OW, tn)
        tn = o_ref.shape[-1]
        cin_k = w_ref.shape[1]
        r0 = pl.program_id(2) * TM       # output-row tile start
        acc = None
        for t, (pi, dh, dw) in enumerate(taps):
            x = phase_refs[pi][0, pl.ds(r0 + dh, TM), dw:dw + OW, :cin_k]
            x = x.reshape(TM * OW, cin_k)
            d = jnp.dot(x, w_ref[t], preferred_element_type=jnp.float32)
            acc = d if acc is None else acc + d   # first tap initializes acc
        acc = acc + b_ref[...]                    # f32 bias
        if apply_relu:
            acc = jnp.maximum(acc, 0.0)
        o_ref[...] = acc.reshape(1, TM, OW, tn).astype(o_ref.dtype)
    return kernel


def conv3x3_block(x, w9, b, stride, *, apply_relu=True, tile_n=None):
    """Fused RepVgg block: 3x3 conv (padding=1, given stride) + bias + ReLU.

    x  : (N, H, W, C) bf16 with C >= w9.shape[1] (extra channels are zeros)
    w9 : (9, cin_k, cout_p) bf16   b : (1, cout_p) f32
    ->   (N, OH, OW, cout_p) bf16
    """
    N, H, W, C = x.shape
    _, cin_k, cout_p = w9.shape
    assert cin_k <= C, (cin_k, C)
    OH = (H + 2 - 3) // stride + 1
    OW = (W + 2 - 3) // stride + 1

    # spatial zero-pad (padding=1) + stride-phase split: inside the kernel all
    # 9 taps are unit-stride slices.
    xp = jnp.pad(x, ((0, 0), (1, 1), (1, 1), (0, 0)))
    PH = OH + (3 - 1) // stride
    PW = OW + (3 - 1) // stride
    phases = []
    for p in range(stride):
        for q in range(stride):
            ph = xp[:, p::stride, q::stride, :][:, :PH, :PW, :]
            pad_h, pad_w = PH - ph.shape[1], PW - ph.shape[2]
            if pad_h or pad_w:
                ph = jnp.pad(ph, ((0, 0), (0, pad_h), (0, pad_w), (0, 0)))
            phases.append(ph)
    n_phases = len(phases)
    # tap (kh,kw) reads phase (kh%s, kw%s) at spatial offset (kh//s, kw//s)
    taps = [((kh % stride) * stride + (kw % stride), kh // stride, kw // stride)
            for kh in range(3) for kw in range(3)]

    if tile_n is None:
        # 256 fills the 256-wide MXU on v6e/v7x; 128 otherwise (v5e is 4x128^2).
        tile_n = 256 if cout_p % 256 == 0 else 128
    tn = min(tile_n, cout_p)
    assert cout_p % tn == 0
    TM = _pick_row_tile(OH, OW)

    # Grid: (batch, cout-tiles, row-tiles).  Phase blocks depend only on batch
    # -> resident across both inner axes; weight tile depends only on the
    # cout-tile axis -> resident across the innermost row sweep.
    grid = (N, cout_p // tn, OH // TM)

    phase_spec = pl.BlockSpec((1, PH, PW, C), lambda n, j, t: (n, 0, 0, 0))
    in_specs = [phase_spec] * n_phases + [
        pl.BlockSpec((9, cin_k, tn), lambda n, j, t: (0, 0, j)),
        pl.BlockSpec((1, tn), lambda n, j, t: (0, j)),
    ]
    out_spec = pl.BlockSpec((1, TM, OW, tn), lambda n, j, t: (n, t, 0, j))

    flops = 2 * N * OH * OW * 9 * cin_k * cout_p
    bytes_accessed = (N * PH * PW * C * n_phases * 2    # bf16 activations in
                      + 9 * cin_k * cout_p * 2          # bf16 weights
                      + N * OH * OW * cout_p * 2        # bf16 activations out
                      + cout_p * 4)                     # f32 bias

    return pl.pallas_call(
        _make_conv_kernel(n_phases, taps, TM, OW, apply_relu),
        out_shape=jax.ShapeDtypeStruct((N, OH, OW, cout_p), jnp.bfloat16),
        grid=grid,
        in_specs=in_specs,
        out_specs=out_spec,
        compiler_params=pltpu.CompilerParams(
            dimension_semantics=("parallel", "parallel", "parallel"),
            vmem_limit_bytes=_vmem_limit_bytes()),
        cost_estimate=pl.CostEstimate(flops=flops, transcendentals=0,
                                      bytes_accessed=bytes_accessed),
    )(*phases, w9, b)


# ----------------------------------------------------------------------------
# Small classifier kernel (batch padded to 8 rows only, lane-dense N).
# ----------------------------------------------------------------------------
def _linear_kernel(x_ref, w_ref, b_ref, o_ref):
    acc = jnp.dot(x_ref[...], w_ref[...], preferred_element_type=jnp.float32)
    o_ref[...] = (acc + b_ref[...]).astype(o_ref.dtype)


def linear_pallas(x, w_t, b):
    """x: (M, K) bf16, w_t: (K, N) bf16 (pre-transposed), b: (1, N) f32."""
    M, K = x.shape
    N = w_t.shape[1]
    Mp = _pad_to(max(M, 8), 8)
    xp = jnp.pad(x, ((0, Mp - M), (0, 0)))
    out = pl.pallas_call(
        _linear_kernel,
        out_shape=jax.ShapeDtypeStruct((Mp, N), jnp.float32),
        grid=(1,),
        in_specs=[pl.BlockSpec((Mp, K), lambda i: (0, 0)),
                  pl.BlockSpec((K, N), lambda i: (0, 0)),
                  pl.BlockSpec((1, N), lambda i: (0, 0))],
        out_specs=pl.BlockSpec((Mp, N), lambda i: (0, 0)),
        compiler_params=pltpu.CompilerParams(
            dimension_semantics=("arbitrary",),
            vmem_limit_bytes=_vmem_limit_bytes()),
        cost_estimate=pl.CostEstimate(
            flops=2 * Mp * K * N, transcendentals=0,
            bytes_accessed=Mp * K * 2 + K * N * 2 + Mp * N * 4 + N * 4),
    )(xp, w_t, b)
    return out[:M]


# ----------------------------------------------------------------------------
# Parameter construction (deterministic synthetic init; mirrors the module's
# shapes).  Eval/init-buffer BN is fused into one 3x3 kernel + bias per block.
# ----------------------------------------------------------------------------
def _fuse_conv_bn(w_oihw, bias, gamma, beta, mean, var):
    t = gamma / jnp.sqrt(var + _BN_EPS)
    return w_oihw * t[:, None, None, None], beta + (bias - mean) * t


def make_block_params(key, cin, cout, stride):
    k3, k1, kb3, kb1 = jax.random.split(key, 4)
    fan3 = cin * 9
    w3 = jax.random.uniform(k3, (cout, cin, 3, 3), jnp.float32, -1.0, 1.0) * jnp.sqrt(6.0 / fan3)
    b3 = jax.random.uniform(kb3, (cout,), jnp.float32, -1.0, 1.0) / jnp.sqrt(fan3)
    fan1 = cin
    w1 = jax.random.uniform(k1, (cout, cin, 1, 1), jnp.float32, -1.0, 1.0) * jnp.sqrt(6.0 / fan1)
    b1 = jax.random.uniform(kb1, (cout,), jnp.float32, -1.0, 1.0) / jnp.sqrt(fan1)

    ones, zeros = jnp.ones((cout,), jnp.float32), jnp.zeros((cout,), jnp.float32)
    w3f, b3f = _fuse_conv_bn(w3, b3, ones, zeros, zeros, ones)
    w1f, b1f = _fuse_conv_bn(w1, b1, ones, zeros, zeros, ones)
    w = w3f + jnp.pad(w1f, ((0, 0), (0, 0), (1, 1), (1, 1)))   # 1x1 -> 3x3
    b = b3f + b1f

    if cin == cout and stride == 1:
        # identity-BN branch (eval, init buffers) = x * (1+eps)^-0.5
        tid = (1.0 + _BN_EPS) ** -0.5
        idk = jnp.zeros((cout, cin, 3, 3), jnp.float32)
        idk = idk.at[jnp.arange(cin), jnp.arange(cin), 1, 1].set(tid)
        w = w + idk

    # cout -> lane-dense 128 (output store / next layer's activation layout);
    # cin  -> bf16 sublane multiple 16 only, so the MXU K dim is ~real width.
    # Invariant: padded cout lanes carry zero weight AND zero bias; with the
    # ReLU epilogue they stay exactly zero, which downstream layers rely on.
    # Do not add non-zero bias / non-ReLU epilogues to padded lanes.
    cin_k = _pad_to(cin, SUBLANE_BF16)
    cout_p = _pad_to(cout, LANE)
    wp = jnp.zeros((cout_p, cin_k, 3, 3), jnp.float32).at[:cout, :cin].set(w)
    bp = jnp.zeros((cout_p,), jnp.float32).at[:cout].set(b)
    # OIHW -> (tap=kh*3+kw, cin_k, cout_p), bf16 for the MXU
    w9 = jnp.transpose(wp, (2, 3, 1, 0)).reshape(9, cin_k, cout_p).astype(jnp.bfloat16)
    return {"w": w9, "b": bp.reshape(1, cout_p), "stride": stride}


def build_repvgg_params(key, num_blocks, num_classes, width_multiplier):
    assert len(width_multiplier) == 4
    keys = list(jax.random.split(key, 64))
    ki = iter(keys)

    blocks = []
    cur_in = min(64, int(64 * width_multiplier[0]))
    blocks.append(make_block_params(next(ki), 3, cur_in, 2))          # stage0

    planes_list = [int(64 * width_multiplier[0]), int(128 * width_multiplier[1]),
                   int(256 * width_multiplier[2]), int(512 * width_multiplier[3])]
    for planes, nb in zip(planes_list, num_blocks):                   # stages 1..4
        for s in [2] + [1] * (nb - 1):
            blocks.append(make_block_params(next(ki), cur_in, planes, s))
            cur_in = planes

    klw, klb = jax.random.split(next(ki))
    cin_real = cur_in
    cin_p = _pad_to(cin_real, LANE)          # matches last block's cout_p
    ncls_p = _pad_to(num_classes, LANE)
    lw = jax.random.uniform(klw, (num_classes, cin_real), jnp.float32, -1.0, 1.0) / jnp.sqrt(cin_real)
    lb = jax.random.uniform(klb, (num_classes,), jnp.float32, -1.0, 1.0) / jnp.sqrt(cin_real)
    lw_t = jnp.zeros((cin_p, ncls_p), jnp.float32).at[:cin_real, :num_classes].set(lw.T)
    lw_t = lw_t.astype(jnp.bfloat16)
    lb_p = jnp.zeros((1, ncls_p), jnp.float32).at[0, :num_classes].set(lb)
    return blocks, (lw_t, lb_p, num_classes)


# ----------------------------------------------------------------------------
# Forward pass (Pallas) and pure-JAX f32 reference for a tolerance check.
# ----------------------------------------------------------------------------
def repvgg_forward(x_nchw, blocks, linear):
    x = jnp.transpose(x_nchw, (0, 2, 3, 1)).astype(jnp.bfloat16)   # NCHW -> NHWC
    cin0_k = blocks[0]["w"].shape[1]
    if cin0_k > x.shape[-1]:                                       # pad RGB -> cin0_k
        x = jnp.pad(x, ((0, 0), (0, 0), (0, 0), (0, cin0_k - x.shape[-1])))
    for p in blocks:
        x = conv3x3_block(x, p["w"], p["b"], p["stride"], apply_relu=True)
    # AdaptiveAvgPool2d(1): mean over spatial (trivial JAX glue), f32 accumulate
    feat = jnp.mean(x.astype(jnp.float32), axis=(1, 2)).astype(jnp.bfloat16)
    lw_t, lb, ncls = linear
    logits = linear_pallas(feat, lw_t, lb)
    return logits[:, :ncls]


def repvgg_reference(x_nchw, blocks, linear):
    """Pure-JAX f32 reference using the same fused (bf16-stored) parameters."""
    x = jnp.transpose(x_nchw, (0, 2, 3, 1)).astype(jnp.bfloat16).astype(jnp.float32)
    for p in blocks:
        cin_k, cout_p = p["w"].shape[1], p["w"].shape[2]
        if x.shape[-1] < cin_k:
            x = jnp.pad(x, ((0, 0), (0, 0), (0, 0), (0, cin_k - x.shape[-1])))
        w_hwio = p["w"].astype(jnp.float32).reshape(3, 3, cin_k, cout_p)
        y = jax.lax.conv_general_dilated(
            x[..., :cin_k], w_hwio,
            window_strides=(p["stride"], p["stride"]),
            padding=((1, 1), (1, 1)),
            dimension_numbers=("NHWC", "HWIO", "NHWC"))
        x = jnp.maximum(y + p["b"][0], 0.0)
    feat = jnp.mean(x, axis=(1, 2))
    lw_t, lb, ncls = linear
    logits = feat @ lw_t.astype(jnp.float32) + lb
    return logits[:, :ncls]


if __name__ == "__main__":
    key = jax.random.PRNGKey(0)
    kx, kp = jax.random.split(key)

    # Small config: width_multiplier=[0.125]*4 -> real channels 8/8/16/32/64
    # (cout lane-padded to 128, cin only to 16); num_blocks=[2,1,1,1] so
    # stage1's second block exercises the identity-BN branch.
    num_blocks = [2, 1, 1, 1]
    width_multiplier = [0.125, 0.125, 0.125, 0.125]
    num_classes = 16

    blocks, linear = build_repvgg_params(kp, num_blocks, num_classes, width_multiplier)

    x = jax.random.normal(kx, (2, 3, 32, 32), jnp.float32)   # NCHW like PyTorch
    fwd = jax.jit(lambda inp: repvgg_forward(inp, blocks, linear))
    out = jax.block_until_ready(fwd(x))
    assert out.shape == (2, num_classes)
    assert bool(jnp.all(jnp.isfinite(out)))

    # Tolerance check vs the pure-JAX f32 reference (the Pallas path also
    # rounds intermediate activations to bf16, so compare with a relative
    # Frobenius tolerance rather than exact equality).
    ref = jax.block_until_ready(
        jax.jit(lambda inp: repvgg_reference(inp, blocks, linear))(x))
    rel = float(jnp.linalg.norm(out - ref) / (jnp.linalg.norm(ref) + 1e-6))
    assert rel < 0.1, f"kernel vs reference relative error too large: {rel}"

    print("KERNEL_OK")
</pallas_src>

<mosaic_0001>
module attributes {stable_mosaic.version = 11 : i64} {
  func.func @kernel(%arg0: i32, %arg1: i32, %arg2: i32, %arg3: memref<1x17x17x16xbf16, #tpu.memory_space<vmem>>, %arg4: memref<1x17x17x16xbf16, #tpu.memory_space<vmem>>, %arg5: memref<1x17x17x16xbf16, #tpu.memory_space<vmem>>, %arg6: memref<1x17x17x16xbf16, #tpu.memory_space<vmem>>, %arg7: memref<9x16x128xbf16, #tpu.memory_space<vmem>>, %arg8: memref<1x128xf32, #tpu.memory_space<vmem>>, %arg9: memref<1x16x16x128xbf16, #tpu.memory_space<vmem>>) attributes {dimension_semantics = [#tpu.dimension_semantics<parallel>, #tpu.dimension_semantics<parallel>, #tpu.dimension_semantics<parallel>], iteration_bounds = array<i64: 2, 1, 1>, scalar_prefetch = 0 : i64, scratch_operands = 0 : i64, tpu.core_type = #tpu.core_type<tc>, window_params = [{transform_indices = @transform_0, window_bounds = array<i64: 1, 17, 17, 16>}, {transform_indices = @transform_1, window_bounds = array<i64: 1, 17, 17, 16>}, {transform_indices = @transform_2, window_bounds = array<i64: 1, 17, 17, 16>}, {transform_indices = @transform_3, window_bounds = array<i64: 1, 17, 17, 16>}, {transform_indices = @transform_4, window_bounds = array<i64: 9, 16, 128>}, {transform_indices = @transform_5, window_bounds = array<i64: 1, 128>}, {transform_indices = @transform_6, window_bounds = array<i64: 1, 16, 16, 128>}]} {
    %c16_i32 = arith.constant 16 : i32
    %0 = arith.muli %arg2, %c16_i32 : i32
    %c0_i32 = arith.constant 0 : i32
    %1 = arith.addi %0, %c0_i32 : i32
    %c0 = arith.constant 0 : index
    %2 = arith.index_cast %1 : i32 to index
    %c0_0 = arith.constant 0 : index
    %c0_1 = arith.constant 0 : index
    %3 = vector.load %arg3[%c0, %2, %c0_0, %c0_1] : memref<1x17x17x16xbf16, #tpu.memory_space<vmem>>, vector<1x16x16x16xbf16>
    %4 = vector.shape_cast %3 : vector<1x16x16x16xbf16> to vector<16x16x16xbf16>
    %5 = vector.shape_cast %4 : vector<16x16x16xbf16> to vector<256x16xbf16>
    %c0_2 = arith.constant 0 : index
    %c0_3 = arith.constant 0 : index
    %c0_4 = arith.constant 0 : index
    %6 = vector.load %arg7[%c0_2, %c0_3, %c0_4] : memref<9x16x128xbf16, #tpu.memory_space<vmem>>, vector<1x16x128xbf16>
    %7 = vector.shape_cast %6 : vector<1x16x128xbf16> to vector<16x128xbf16>
    %cst = arith.constant dense<0.000000e+00> : vector<256x128xf32>
    %8 = tpu.matmul %5, %7, %cst {dimension_numbers = #tpu.dot_dimension_numbers<[1], [0], [0], [1], [0, 0, 1, 1], [], []>} : vector<256x16xbf16>, vector<16x128xbf16>, vector<256x128xf32> -> vector<256x128xf32>
    %c0_i32_5 = arith.constant 0 : i32
    %9 = arith.addi %0, %c0_i32_5 : i32
    %c0_6 = arith.constant 0 : index
    %10 = arith.index_cast %9 : i32 to index
    %c0_7 = arith.constant 0 : index
    %c0_8 = arith.constant 0 : index
    %11 = vector.load %arg4[%c0_6, %10, %c0_7, %c0_8] : memref<1x17x17x16xbf16, #tpu.memory_space<vmem>>, vector<1x16x16x16xbf16>
    %12 = vector.shape_cast %11 : vector<1x16x16x16xbf16> to vector<16x16x16xbf16>
    %13 = vector.shape_cast %12 : vector<16x16x16xbf16> to vector<256x16xbf16>
    %c1 = arith.constant 1 : index
    %c0_9 = arith.constant 0 : index
    %c0_10 = arith.constant 0 : index
    %14 = vector.load %arg7[%c1, %c0_9, %c0_10] : memref<9x16x128xbf16, #tpu.memory_space<vmem>>, vector<1x16x128xbf16>
    %15 = vector.shape_cast %14 : vector<1x16x128xbf16> to vector<16x128xbf16>
    %cst_11 = arith.constant dense<0.000000e+00> : vector<256x128xf32>
    %16 = tpu.matmul %13, %15, %cst_11 {dimension_numbers = #tpu.dot_dimension_numbers<[1], [0], [0], [1], [0, 0, 1, 1], [], []>} : vector<256x16xbf16>, vector<16x128xbf16>, vector<256x128xf32> -> vector<256x128xf32>
    %17 = arith.addf %8, %16 : vector<256x128xf32>
    %c0_i32_12 = arith.constant 0 : i32
    %18 = arith.addi %0, %c0_i32_12 : i32
    %c0_13 = arith.constant 0 : index
    %19 = arith.index_cast %18 : i32 to index
    %c1_14 = arith.constant 1 : index
    %c0_15 = arith.constant 0 : index
    %20 = vector.load %arg3[%c0_13, %19, %c1_14, %c0_15] : memref<1x17x17x16xbf16, #tpu.memory_space<vmem>>, vector<1x16x16x16xbf16>
    %21 = vector.shape_cast %20 : vector<1x16x16x16xbf16> to vector<16x16x16xbf16>
    %22 = vector.shape_cast %21 : vector<16x16x16xbf16> to vector<256x16xbf16>
    %c2 = arith.constant 2 : index
    %c0_16 = arith.constant 0 : index
    %c0_17 = arith.constant 0 : index
    %23 = vector.load %arg7[%c2, %c0_16, %c0_17] : memref<9x16x128xbf16, #tpu.memory_space<vmem>>, vector<1x16x128xbf16>
    %24 = vector.shape_cast %23 : vector<1x16x128xbf16> to vector<16x128xbf16>
    %cst_18 = arith.constant dense<0.000000e+00> : vector<256x128xf32>
    %25 = tpu.matmul %22, %24, %cst_18 {dimension_numbers = #tpu.dot_dimension_numbers<[1], [0], [0], [1], [0, 0, 1, 1], [], []>} : vector<256x16xbf16>, vector<16x128xbf16>, vector<256x128xf32> -> vector<256x128xf32>
    %26 = arith.addf %17, %25 : vector<256x128xf32>
    %c0_i32_19 = arith.constant 0 : i32
    %27 = arith.addi %0, %c0_i32_19 : i32
    %c0_20 = arith.constant 0 : index
    %28 = arith.index_cast %27 : i32 to index
    %c0_21 = arith.constant 0 : index
    %c0_22 = arith.constant 0 : index
    %29 = vector.load %arg5[%c0_20, %28, %c0_21, %c0_22] : memref<1x17x17x16xbf16, #tpu.memory_space<vmem>>, vector<1x16x16x16xbf16>
    %30 = vector.shape_cast %29 : vector<1x16x16x16xbf16> to vector<16x16x16xbf16>
    %31 = vector.shape_cast %30 : vector<16x16x16xbf16> to vector<256x16xbf16>
    %c3 = arith.constant 3 : index
    %c0_23 = arith.constant 0 : index
    %c0_24 = arith.constant 0 : index
    %32 = vector.load %arg7[%c3, %c0_23, %c0_24] : memref<9x16x128xbf16, #tpu.memory_space<vmem>>, vector<1x16x128xbf16>
    %33 = vector.shape_cast %32 : vector<1x16x128xbf16> to vector<16x128xbf16>
    %cst_25 = arith.constant dense<0.000000e+00> : vector<256x128xf32>
    %34 = tpu.matmul %31, %33, %cst_25 {dimension_numbers = #tpu.dot_dimension_numbers<[1], [0], [0], [1], [0, 0, 1, 1], [], []>} : vector<256x16xbf16>, vector<16x128xbf16>, vector<256x128xf32> -> vector<256x128xf32>
    %35 = arith.addf %26, %34 : vector<256x128xf32>
    %c0_i32_26 = arith.constant 0 : i32
    %36 = arith.addi %0, %c0_i32_26 : i32
    %c0_27 = arith.constant 0 : index
    %37 = arith.index_cast %36 : i32 to index
    %c0_28 = arith.constant 0 : index
    %c0_29 = arith.constant 0 : index
    %38 = vector.load %arg6[%c0_27, %37, %c0_28, %c0_29] : memref<1x17x17x16xbf16, #tpu.memory_space<vmem>>, vector<1x16x16x16xbf16>
    %39 = vector.shape_cast %38 : vector<1x16x16x16xbf16> to vector<16x16x16xbf16>
    %40 = vector.shape_cast %39 : vector<16x16x16xbf16> to vector<256x16xbf16>
    %c4 = arith.constant 4 : index
    %c0_30 = arith.constant 0 : index
    %c0_31 = arith.constant 0 : index
    %41 = vector.load %arg7[%c4, %c0_30, %c0_31] : memref<9x16x128xbf16, #tpu.memory_space<vmem>>, vector<1x16x128xbf16>
    %42 = vector.shape_cast %41 : vector<1x16x128xbf16> to vector<16x128xbf16>
    %cst_32 = arith.constant dense<0.000000e+00> : vector<256x128xf32>
    %43 = tpu.matmul %40, %42, %cst_32 {dimension_numbers = #tpu.dot_dimension_numbers<[1], [0], [0], [1], [0, 0, 1, 1], [], []>} : vector<256x16xbf16>, vector<16x128xbf16>, vector<256x128xf32> -> vector<256x128xf32>
    %44 = arith.addf %35, %43 : vector<256x128xf32>
    %c0_i32_33 = arith.constant 0 : i32
    %45 = arith.addi %0, %c0_i32_33 : i32
    %c0_34 = arith.constant 0 : index
    %46 = arith.index_cast %45 : i32 to index
    %c1_35 = arith.constant 1 : index
    %c0_36 = arith.constant 0 : index
    %47 = vector.load %arg5[%c0_34, %46, %c1_35, %c0_36] : memref<1x17x17x16xbf16, #tpu.memory_space<vmem>>, vector<1x16x16x16xbf16>
    %48 = vector.shape_cast %47 : vector<1x16x16x16xbf16> to vector<16x16x16xbf16>
    %49 = vector.shape_cast %48 : vector<16x16x16xbf16> to vector<256x16xbf16>
    %c5 = arith.constant 5 : index
    %c0_37 = arith.constant 0 : index
    %c0_38 = arith.constant 0 : index
    %50 = vector.load %arg7[%c5, %c0_37, %c0_38] : memref<9x16x128xbf16, #tpu.memory_space<vmem>>, vector<1x16x128xbf16>
    %51 = vector.shape_cast %50 : vector<1x16x128xbf16> to vector<16x128xbf16>
    %cst_39 = arith.constant dense<0.000000e+00> : vector<256x128xf32>
    %52 = tpu.matmul %49, %51, %cst_39 {dimension_numbers = #tpu.dot_dimension_numbers<[1], [0], [0], [1], [0, 0, 1, 1], [], []>} : vector<256x16xbf16>, vector<16x128xbf16>, vector<256x128xf32> -> vector<256x128xf32>
    %53 = arith.addf %44, %52 : vector<256x128xf32>
    %c1_i32 = arith.constant 1 : i32
    %54 = arith.addi %0, %c1_i32 : i32
    %c0_40 = arith.constant 0 : index
    %55 = arith.index_cast %54 : i32 to index
    %c0_41 = arith.constant 0 : index
    %c0_42 = arith.constant 0 : index
    %56 = vector.load %arg3[%c0_40, %55, %c0_41, %c0_42] : memref<1x17x17x16xbf16, #tpu.memory_space<vmem>>, vector<1x16x16x16xbf16>
    %57 = vector.shape_cast %56 : vector<1x16x16x16xbf16> to vector<16x16x16xbf16>
    %58 = vector.shape_cast %57 : vector<16x16x16xbf16> to vector<256x16xbf16>
    %c6 = arith.constant 6 : index
    %c0_43 = arith.constant 0 : index
    %c0_44 = arith.constant 0 : index
    %59 = vector.load %arg7[%c6, %c0_43, %c0_44] : memref<9x16x128xbf16, #tpu.memory_space<vmem>>, vector<1x16x128xbf16>
    %60 = vector.shape_cast %59 : vector<1x16x128xbf16> to vector<16x128xbf16>
    %cst_45 = arith.constant dense<0.000000e+00> : vector<256x128xf32>
    %61 = tpu.matmul %58, %60, %cst_45 {dimension_numbers = #tpu.dot_dimension_numbers<[1], [0], [0], [1], [0, 0, 1, 1], [], []>} : vector<256x16xbf16>, vector<16x128xbf16>, vector<256x128xf32> -> vector<256x128xf32>
    %62 = arith.addf %53, %61 : vector<256x128xf32>
    %c1_i32_46 = arith.constant 1 : i32
    %63 = arith.addi %0, %c1_i32_46 : i32
    %c0_47 = arith.constant 0 : index
    %64 = arith.index_cast %63 : i32 to index
    %c0_48 = arith.constant 0 : index
    %c0_49 = arith.constant 0 : index
    %65 = vector.load %arg4[%c0_47, %64, %c0_48, %c0_49] : memref<1x17x17x16xbf16, #tpu.memory_space<vmem>>, vector<1x16x16x16xbf16>
    %66 = vector.shape_cast %65 : vector<1x16x16x16xbf16> to vector<16x16x16xbf16>
    %67 = vector.shape_cast %66 : vector<16x16x16xbf16> to vector<256x16xbf16>
    %c7 = arith.constant 7 : index
    %c0_50 = arith.constant 0 : index
    %c0_51 = arith.constant 0 : index
    %68 = vector.load %arg7[%c7, %c0_50, %c0_51] : memref<9x16x128xbf16, #tpu.memory_space<vmem>>, vector<1x16x128xbf16>
    %69 = vector.shape_cast %68 : vector<1x16x128xbf16> to vector<16x128xbf16>
    %cst_52 = arith.constant dense<0.000000e+00> : vector<256x128xf32>
    %70 = tpu.matmul %67, %69, %cst_52 {dimension_numbers = #tpu.dot_dimension_numbers<[1], [0], [0], [1], [0, 0, 1, 1], [], []>} : vector<256x16xbf16>, vector<16x128xbf16>, vector<256x128xf32> -> vector<256x128xf32>
    %71 = arith.addf %62, %70 : vector<256x128xf32>
    %c1_i32_53 = arith.constant 1 : i32
    %72 = arith.addi %0, %c1_i32_53 : i32
    %c0_54 = arith.constant 0 : index
    %73 = arith.index_cast %72 : i32 to index
    %c1_55 = arith.constant 1 : index
    %c0_56 = arith.constant 0 : index
    %74 = vector.load %arg3[%c0_54, %73, %c1_55, %c0_56] : memref<1x17x17x16xbf16, #tpu.memory_space<vmem>>, vector<1x16x16x16xbf16>
    %75 = vector.shape_cast %74 : vector<1x16x16x16xbf16> to vector<16x16x16xbf16>
    %76 = vector.shape_cast %75 : vector<16x16x16xbf16> to vector<256x16xbf16>
    %c8 = arith.constant 8 : index
    %c0_57 = arith.constant 0 : index
    %c0_58 = arith.constant 0 : index
    %77 = vector.load %arg7[%c8, %c0_57, %c0_58] : memref<9x16x128xbf16, #tpu.memory_space<vmem>>, vector<1x16x128xbf16>
    %78 = vector.shape_cast %77 : vector<1x16x128xbf16> to vector<16x128xbf16>
    %cst_59 = arith.constant dense<0.000000e+00> : vector<256x128xf32>
    %79 = tpu.matmul %76, %78, %cst_59 {dimension_numbers = #tpu.dot_dimension_numbers<[1], [0], [0], [1], [0, 0, 1, 1], [], []>} : vector<256x16xbf16>, vector<16x128xbf16>, vector<256x128xf32> -> vector<256x128xf32>
    %80 = arith.addf %71, %79 : vector<256x128xf32>
    %c0_60 = arith.constant 0 : index
    %c0_61 = arith.constant 0 : index
    %81 = vector.load %arg8[%c0_60, %c0_61] : memref<1x128xf32, #tpu.memory_space<vmem>>, vector<1x128xf32>
    %82 = vector.broadcast %81 : vector<1x128xf32> to vector<256x128xf32>
    %83 = arith.addf %80, %82 : vector<256x128xf32>
    %cst_62 = arith.constant 0.000000e+00 : f32
    %84 = vector.broadcast %cst_62 : f32 to vector<256x128xf32>
    %85 = arith.maximumf %83, %84 : vector<256x128xf32>
    %86 = vector.shape_cast %85 : vector<256x128xf32> to vector<1x16x16x128xf32>
    %87 = arith.truncf %86 : vector<1x16x16x128xf32> to vector<1x16x16x128xbf16>
    %c0_63 = arith.constant 0 : index
    %c0_64 = arith.constant 0 : index
    %c0_65 = arith.constant 0 : index
    %c0_66 = arith.constant 0 : index
    %88 = vector.load %arg9[%c0_63, %c0_64, %c0_65, %c0_66] : memref<1x16x16x128xbf16, #tpu.memory_space<vmem>>, vector<1x16x16x128xbf16>
    tpu.vector_store %arg9[%c0_63, %c0_64, %c0_65, %c0_66], %87 {strides = array<i32>} : memref<1x16x16x128xbf16, #tpu.memory_space<vmem>>, vector<1x16x16x128xbf16>,
    return
  }
  func.func @transform_0(%arg0: i32, %arg1: i32, %arg2: i32) -> (i32, i32, i32, i32) {
    %c0_i32 = arith.constant 0 : i32
    %c0_i32_0 = arith.constant 0 : i32
    %c0_i32_1 = arith.constant 0 : i32
    %c0_i32_2 = arith.constant 0 : i32
    return %arg0, %c0_i32, %c0_i32_0, %c0_i32_1 : i32, i32, i32, i32
  }
  func.func @transform_1(%arg0: i32, %arg1: i32, %arg2: i32) -> (i32, i32, i32, i32) {
    %c0_i32 = arith.constant 0 : i32
    %c0_i32_0 = arith.constant 0 : i32
    %c0_i32_1 = arith.constant 0 : i32
    %c0_i32_2 = arith.constant 0 : i32
    return %arg0, %c0_i32, %c0_i32_0, %c0_i32_1 : i32, i32, i32, i32
  }
  func.func @transform_2(%arg0: i32, %arg1: i32, %arg2: i32) -> (i32, i32, i32, i32) {
    %c0_i32 = arith.constant 0 : i32
    %c0_i32_0 = arith.constant 0 : i32
    %c0_i32_1 = arith.constant 0 : i32
    %c0_i32_2 = arith.constant 0 : i32
    return %arg0, %c0_i32, %c0_i32_0, %c0_i32_1 : i32, i32, i32, i32
  }
  func.func @transform_3(%arg0: i32, %arg1: i32, %arg2: i32) -> (i32, i32, i32, i32) {
    %c0_i32 = arith.constant 0 : i32
    %c0_i32_0 = arith.constant 0 : i32
    %c0_i32_1 = arith.constant 0 : i32
    %c0_i32_2 = arith.constant 0 : i32
    return %arg0, %c0_i32, %c0_i32_0, %c0_i32_1 : i32, i32, i32, i32
  }
  func.func @transform_4(%arg0: i32, %arg1: i32, %arg2: i32) -> (i32, i32, i32) {
    %c0_i32 = arith.constant 0 : i32
    %c0_i32_0 = arith.constant 0 : i32
    %c0_i32_1 = arith.constant 0 : i32
    return %c0_i32, %c0_i32_0, %arg1 : i32, i32, i32
  }
  func.func @transform_5(%arg0: i32, %arg1: i32, %arg2: i32) -> (i32, i32) {
    %c0_i32 = arith.constant 0 : i32
    %c0_i32_0 = arith.constant 0 : i32
    return %c0_i32, %arg1 : i32, i32
  }
  func.func @transform_6(%arg0: i32, %arg1: i32, %arg2: i32) -> (i32, i32, i32, i32) {
    %c0_i32 = arith.constant 0 : i32
    %c0_i32_0 = arith.constant 0 : i32
    return %arg0, %arg2, %c0_i32, %arg1 : i32, i32, i32, i32
  }
}

module attributes {stable_mosaic.version = 11 : i64} {
  func.func @kernel(%arg0: i32, %arg1: i32, %arg2: i32, %arg3: memref<1x10x10x128xbf16, #tpu.memory_space<vmem>>, %arg4: memref<9x16x128xbf16, #tpu.memory_space<vmem>>, %arg5: memref<1x128xf32, #tpu.memory_space<vmem>>, %arg6: memref<1x8x8x128xbf16, #tpu.memory_space<vmem>>) attributes {dimension_semantics = [#tpu.dimension_semantics<parallel>, #tpu.dimension_semantics<parallel>, #tpu.dimension_semantics<parallel>], iteration_bounds = array<i64: 2, 1, 1>, scalar_prefetch = 0 : i64, scratch_operands = 0 : i64, tpu.core_type = #tpu.core_type<tc>, window_params = [{transform_indices = @transform_0, window_bounds = array<i64: 1, 10, 10, 128>}, {transform_indices = @transform_1, window_bounds = array<i64: 9, 16, 128>}, {transform_indices = @transform_2, window_bounds = array<i64: 1, 128>}, {transform_indices = @transform_3, window_bounds = array<i64: 1, 8, 8, 128>}]} {
    %c8_i32 = arith.constant 8 : i32
    %0 = arith.muli %arg2, %c8_i32 : i32
    %c0_i32 = arith.constant 0 : i32
    %1 = arith.addi %0, %c0_i32 : i32
    %c0 = arith.constant 0 : index
    %2 = arith.index_cast %1 : i32 to index
    %c0_0 = arith.constant 0 : index
    %c0_1 = arith.constant 0 : index
    %3 = vector.load %arg3[%c0, %2, %c0_0, %c0_1] : memref<1x10x10x128xbf16, #tpu.memory_space<vmem>>, vector<1x8x8x16xbf16>
    %4 = vector.shape_cast %3 : vector<1x8x8x16xbf16> to vector<8x8x16xbf16>
    %5 = vector.shape_cast %4 : vector<8x8x16xbf16> to vector<64x16xbf16>
    %c0_2 = arith.constant 0 : index
    %c0_3 = arith.constant 0 : index
    %c0_4 = arith.constant 0 : index
    %6 = vector.load %arg4[%c0_2, %c0_3, %c0_4] : memref<9x16x128xbf16, #tpu.memory_space<vmem>>, vector<1x16x128xbf16>
    %7 = vector.shape_cast %6 : vector<1x16x128xbf16> to vector<16x128xbf16>
    %cst = arith.constant dense<0.000000e+00> : vector<64x128xf32>
    %8 = tpu.matmul %5, %7, %cst {dimension_numbers = #tpu.dot_dimension_numbers<[1], [0], [0], [1], [0, 0, 1, 1], [], []>} : vector<64x16xbf16>, vector<16x128xbf16>, vector<64x128xf32> -> vector<64x128xf32>
    %c0_i32_5 = arith.constant 0 : i32
    %9 = arith.addi %0, %c0_i32_5 : i32
    %c0_6 = arith.constant 0 : index
    %10 = arith.index_cast %9 : i32 to index
    %c1 = arith.constant 1 : index
    %c0_7 = arith.constant 0 : index
    %11 = vector.load %arg3[%c0_6, %10, %c1, %c0_7] : memref<1x10x10x128xbf16, #tpu.memory_space<vmem>>, vector<1x8x8x16xbf16>
    %12 = vector.shape_cast %11 : vector<1x8x8x16xbf16> to vector<8x8x16xbf16>
    %13 = vector.shape_cast %12 : vector<8x8x16xbf16> to vector<64x16xbf16>
    %c1_8 = arith.constant 1 : index
    %c0_9 = arith.constant 0 : index
    %c0_10 = arith.constant 0 : index
    %14 = vector.load %arg4[%c1_8, %c0_9, %c0_10] : memref<9x16x128xbf16, #tpu.memory_space<vmem>>, vector<1x16x128xbf16>
    %15 = vector.shape_cast %14 : vector<1x16x128xbf16> to vector<16x128xbf16>
    %cst_11 = arith.constant dense<0.000000e+00> : vector<64x128xf32>
    %16 = tpu.matmul %13, %15, %cst_11 {dimension_numbers = #tpu.dot_dimension_numbers<[1], [0], [0], [1], [0, 0, 1, 1], [], []>} : vector<64x16xbf16>, vector<16x128xbf16>, vector<64x128xf32> -> vector<64x128xf32>
    %17 = arith.addf %8, %16 : vector<64x128xf32>
    %c0_i32_12 = arith.constant 0 : i32
    %18 = arith.addi %0, %c0_i32_12 : i32
    %c0_13 = arith.constant 0 : index
    %19 = arith.index_cast %18 : i32 to index
    %c2 = arith.constant 2 : index
    %c0_14 = arith.constant 0 : index
    %20 = vector.load %arg3[%c0_13, %19, %c2, %c0_14] : memref<1x10x10x128xbf16, #tpu.memory_space<vmem>>, vector<1x8x8x16xbf16>
    %21 = vector.shape_cast %20 : vector<1x8x8x16xbf16> to vector<8x8x16xbf16>
    %22 = vector.shape_cast %21 : vector<8x8x16xbf16> to vector<64x16xbf16>
    %c2_15 = arith.constant 2 : index
    %c0_16 = arith.constant 0 : index
    %c0_17 = arith.constant 0 : index
    %23 = vector.load %arg4[%c2_15, %c0_16, %c0_17] : memref<9x16x128xbf16, #tpu.memory_space<vmem>>, vector<1x16x128xbf16>
    %24 = vector.shape_cast %23 : vector<1x16x128xbf16> to vector<16x128xbf16>
    %cst_18 = arith.constant dense<0.000000e+00> : vector<64x128xf32>
    %25 = tpu.matmul %22, %24, %cst_18 {dimension_numbers = #tpu.dot_dimension_numbers<[1], [0], [0], [1], [0, 0, 1, 1], [], []>} : vector<64x16xbf16>, vector<16x128xbf16>, vector<64x128xf32> -> vector<64x128xf32>
    %26 = arith.addf %17, %25 : vector<64x128xf32>
    %c1_i32 = arith.constant 1 : i32
    %27 = arith.addi %0, %c1_i32 : i32
    %c0_19 = arith.constant 0 : index
    %28 = arith.index_cast %27 : i32 to index
    %c0_20 = arith.constant 0 : index
    %c0_21 = arith.constant 0 : index
    %29 = vector.load %arg3[%c0_19, %28, %c0_20, %c0_21] : memref<1x10x10x128xbf16, #tpu.memory_space<vmem>>, vector<1x8x8x16xbf16>
    %30 = vector.shape_cast %29 : vector<1x8x8x16xbf16> to vector<8x8x16xbf16>
    %31 = vector.shape_cast %30 : vector<8x8x16xbf16> to vector<64x16xbf16>
    %c3 = arith.constant 3 : index
    %c0_22 = arith.constant 0 : index
    %c0_23 = arith.constant 0 : index
    %32 = vector.load %arg4[%c3, %c0_22, %c0_23] : memref<9x16x128xbf16, #tpu.memory_space<vmem>>, vector<1x16x128xbf16>
    %33 = vector.shape_cast %32 : vector<1x16x128xbf16> to vector<16x128xbf16>
    %cst_24 = arith.constant dense<0.000000e+00> : vector<64x128xf32>
    %34 = tpu.matmul %31, %33, %cst_24 {dimension_numbers = #tpu.dot_dimension_numbers<[1], [0], [0], [1], [0, 0, 1, 1], [], []>} : vector<64x16xbf16>, vector<16x128xbf16>, vector<64x128xf32> -> vector<64x128xf32>
    %35 = arith.addf %26, %34 : vector<64x128xf32>
    %c1_i32_25 = arith.constant 1 : i32
    %36 = arith.addi %0, %c1_i32_25 : i32
    %c0_26 = arith.constant 0 : index
    %37 = arith.index_cast %36 : i32 to index
    %c1_27 = arith.constant 1 : index
    %c0_28 = arith.constant 0 : index
    %38 = vector.load %arg3[%c0_26, %37, %c1_27, %c0_28] : memref<1x10x10x128xbf16, #tpu.memory_space<vmem>>, vector<1x8x8x16xbf16>
    %39 = vector.shape_cast %38 : vector<1x8x8x16xbf16> to vector<8x8x16xbf16>
    %40 = vector.shape_cast %39 : vector<8x8x16xbf16> to vector<64x16xbf16>
    %c4 = arith.constant 4 : index
    %c0_29 = arith.constant 0 : index
    %c0_30 = arith.constant 0 : index
    %41 = vector.load %arg4[%c4, %c0_29, %c0_30] : memref<9x16x128xbf16, #tpu.memory_space<vmem>>, vector<1x16x128xbf16>
    %42 = vector.shape_cast %41 : vector<1x16x128xbf16> to vector<16x128xbf16>
    %cst_31 = arith.constant dense<0.000000e+00> : vector<64x128xf32>
    %43 = tpu.matmul %40, %42, %cst_31 {dimension_numbers = #tpu.dot_dimension_numbers<[1], [0], [0], [1], [0, 0, 1, 1], [], []>} : vector<64x16xbf16>, vector<16x128xbf16>, vector<64x128xf32> -> vector<64x128xf32>
    %44 = arith.addf %35, %43 : vector<64x128xf32>
    %c1_i32_32 = arith.constant 1 : i32
    %45 = arith.addi %0, %c1_i32_32 : i32
    %c0_33 = arith.constant 0 : index
    %46 = arith.index_cast %45 : i32 to index
    %c2_34 = arith.constant 2 : index
    %c0_35 = arith.constant 0 : index
    %47 = vector.load %arg3[%c0_33, %46, %c2_34, %c0_35] : memref<1x10x10x128xbf16, #tpu.memory_space<vmem>>, vector<1x8x8x16xbf16>
    %48 = vector.shape_cast %47 : vector<1x8x8x16xbf16> to vector<8x8x16xbf16>
    %49 = vector.shape_cast %48 : vector<8x8x16xbf16> to vector<64x16xbf16>
    %c5 = arith.constant 5 : index
    %c0_36 = arith.constant 0 : index
    %c0_37 = arith.constant 0 : index
    %50 = vector.load %arg4[%c5, %c0_36, %c0_37] : memref<9x16x128xbf16, #tpu.memory_space<vmem>>, vector<1x16x128xbf16>
    %51 = vector.shape_cast %50 : vector<1x16x128xbf16> to vector<16x128xbf16>
    %cst_38 = arith.constant dense<0.000000e+00> : vector<64x128xf32>
    %52 = tpu.matmul %49, %51, %cst_38 {dimension_numbers = #tpu.dot_dimension_numbers<[1], [0], [0], [1], [0, 0, 1, 1], [], []>} : vector<64x16xbf16>, vector<16x128xbf16>, vector<64x128xf32> -> vector<64x128xf32>
    %53 = arith.addf %44, %52 : vector<64x128xf32>
    %c2_i32 = arith.constant 2 : i32
    %54 = arith.addi %0, %c2_i32 : i32
    %c0_39 = arith.constant 0 : index
    %55 = arith.index_cast %54 : i32 to index
    %c0_40 = arith.constant 0 : index
    %c0_41 = arith.constant 0 : index
    %56 = vector.load %arg3[%c0_39, %55, %c0_40, %c0_41] : memref<1x10x10x128xbf16, #tpu.memory_space<vmem>>, vector<1x8x8x16xbf16>
    %57 = vector.shape_cast %56 : vector<1x8x8x16xbf16> to vector<8x8x16xbf16>
    %58 = vector.shape_cast %57 : vector<8x8x16xbf16> to vector<64x16xbf16>
    %c6 = arith.constant 6 : index
    %c0_42 = arith.constant 0 : index
    %c0_43 = arith.constant 0 : index
    %59 = vector.load %arg4[%c6, %c0_42, %c0_43] : memref<9x16x128xbf16, #tpu.memory_space<vmem>>, vector<1x16x128xbf16>
    %60 = vector.shape_cast %59 : vector<1x16x128xbf16> to vector<16x128xbf16>
    %cst_44 = arith.constant dense<0.000000e+00> : vector<64x128xf32>
    %61 = tpu.matmul %58, %60, %cst_44 {dimension_numbers = #tpu.dot_dimension_numbers<[1], [0], [0], [1], [0, 0, 1, 1], [], []>} : vector<64x16xbf16>, vector<16x128xbf16>, vector<64x128xf32> -> vector<64x128xf32>
    %62 = arith.addf %53, %61 : vector<64x128xf32>
    %c2_i32_45 = arith.constant 2 : i32
    %63 = arith.addi %0, %c2_i32_45 : i32
    %c0_46 = arith.constant 0 : index
    %64 = arith.index_cast %63 : i32 to index
    %c1_47 = arith.constant 1 : index
    %c0_48 = arith.constant 0 : index
    %65 = vector.load %arg3[%c0_46, %64, %c1_47, %c0_48] : memref<1x10x10x128xbf16, #tpu.memory_space<vmem>>, vector<1x8x8x16xbf16>
    %66 = vector.shape_cast %65 : vector<1x8x8x16xbf16> to vector<8x8x16xbf16>
    %67 = vector.shape_cast %66 : vector<8x8x16xbf16> to vector<64x16xbf16>
    %c7 = arith.constant 7 : index
    %c0_49 = arith.constant 0 : index
    %c0_50 = arith.constant 0 : index
    %68 = vector.load %arg4[%c7, %c0_49, %c0_50] : memref<9x16x128xbf16, #tpu.memory_space<vmem>>, vector<1x16x128xbf16>
    %69 = vector.shape_cast %68 : vector<1x16x128xbf16> to vector<16x128xbf16>
    %cst_51 = arith.constant dense<0.000000e+00> : vector<64x128xf32>
    %70 = tpu.matmul %67, %69, %cst_51 {dimension_numbers = #tpu.dot_dimension_numbers<[1], [0], [0], [1], [0, 0, 1, 1], [], []>} : vector<64x16xbf16>, vector<16x128xbf16>, vector<64x128xf32> -> vector<64x128xf32>
    %71 = arith.addf %62, %70 : vector<64x128xf32>
    %c2_i32_52 = arith.constant 2 : i32
    %72 = arith.addi %0, %c2_i32_52 : i32
    %c0_53 = arith.constant 0 : index
    %73 = arith.index_cast %72 : i32 to index
    %c2_54 = arith.constant 2 : index
    %c0_55 = arith.constant 0 : index
    %74 = vector.load %arg3[%c0_53, %73, %c2_54, %c0_55] : memref<1x10x10x128xbf16, #tpu.memory_space<vmem>>, vector<1x8x8x16xbf16>
    %75 = vector.shape_cast %74 : vector<1x8x8x16xbf16> to vector<8x8x16xbf16>
    %76 = vector.shape_cast %75 : vector<8x8x16xbf16> to vector<64x16xbf16>
    %c8 = arith.constant 8 : index
    %c0_56 = arith.constant 0 : index
    %c0_57 = arith.constant 0 : index
    %77 = vector.load %arg4[%c8, %c0_56, %c0_57] : memref<9x16x128xbf16, #tpu.memory_space<vmem>>, vector<1x16x128xbf16>
    %78 = vector.shape_cast %77 : vector<1x16x128xbf16> to vector<16x128xbf16>
    %cst_58 = arith.constant dense<0.000000e+00> : vector<64x128xf32>
    %79 = tpu.matmul %76, %78, %cst_58 {dimension_numbers = #tpu.dot_dimension_numbers<[1], [0], [0], [1], [0, 0, 1, 1], [], []>} : vector<64x16xbf16>, vector<16x128xbf16>, vector<64x128xf32> -> vector<64x128xf32>
    %80 = arith.addf %71, %79 : vector<64x128xf32>
    %c0_59 = arith.constant 0 : index
    %c0_60 = arith.constant 0 : index
    %81 = vector.load %arg5[%c0_59, %c0_60] : memref<1x128xf32, #tpu.memory_space<vmem>>, vector<1x128xf32>
    %82 = vector.broadcast %81 : vector<1x128xf32> to vector<64x128xf32>
    %83 = arith.addf %80, %82 : vector<64x128xf32>
    %cst_61 = arith.constant 0.000000e+00 : f32
    %84 = vector.broadcast %cst_61 : f32 to vector<64x128xf32>
    %85 = arith.maximumf %83, %84 : vector<64x128xf32>
    %86 = vector.shape_cast %85 : vector<64x128xf32> to vector<1x8x8x128xf32>
    %87 = arith.truncf %86 : vector<1x8x8x128xf32> to vector<1x8x8x128xbf16>
    %c0_62 = arith.constant 0 : index
    %c0_63 = arith.constant 0 : index
    %c0_64 = arith.constant 0 : index
    %c0_65 = arith.constant 0 : index
    %88 = vector.load %arg6[%c0_62, %c0_63, %c0_64, %c0_65] : memref<1x8x8x128xbf16, #tpu.memory_space<vmem>>, vector<1x8x8x128xbf16>
    tpu.vector_store %arg6[%c0_62, %c0_63, %c0_64, %c0_65], %87 {strides = array<i32>} : memref<1x8x8x128xbf16, #tpu.memory_space<vmem>>, vector<1x8x8x128xbf16>,
    return
  }
  func.func @transform_0(%arg0: i32, %arg1: i32, %arg2: i32) -> (i32, i32, i32, i32) {
    %c0_i32 = arith.constant 0 : i32
    %c0_i32_0 = arith.constant 0 : i32
    %c0_i32_1 = arith.constant 0 : i32
    %c0_i32_2 = arith.constant 0 : i32
    return %arg0, %c0_i32, %c0_i32_0, %c0_i32_1 : i32, i32, i32, i32
  }
  func.func @transform_1(%arg0: i32, %arg1: i32, %arg2: i32) -> (i32, i32, i32) {
    %c0_i32 = arith.constant 0 : i32
    %c0_i32_0 = arith.constant 0 : i32
    %c0_i32_1 = arith.constant 0 : i32
    return %c0_i32, %c0_i32_0, %arg1 : i32, i32, i32
  }
  func.func @transform_2(%arg0: i32, %arg1: i32, %arg2: i32) -> (i32, i32) {
    %c0_i32 = arith.constant 0 : i32
    %c0_i32_0 = arith.constant 0 : i32
    return %c0_i32, %arg1 : i32, i32
  }
  func.func @transform_3(%arg0: i32, %arg1: i32, %arg2: i32) -> (i32, i32, i32, i32) {
    %c0_i32 = arith.constant 0 : i32
    %c0_i32_0 = arith.constant 0 : i32
    return %arg0, %arg2, %c0_i32, %arg1 : i32, i32, i32, i32
  }
}

module attributes {stable_mosaic.version = 11 : i64} {
  func.func @kernel(%arg0: i32, %arg1: i32, %arg2: i32, %arg3: memref<1x9x9x128xbf16, #tpu.memory_space<vmem>>, %arg4: memref<1x9x9x128xbf16, #tpu.memory_space<vmem>>, %arg5: memref<1x9x9x128xbf16, #tpu.memory_space<vmem>>, %arg6: memref<1x9x9x128xbf16, #tpu.memory_space<vmem>>, %arg7: memref<9x16x128xbf16, #tpu.memory_space<vmem>>, %arg8: memref<1x128xf32, #tpu.memory_space<vmem>>, %arg9: memref<1x8x8x128xbf16, #tpu.memory_space<vmem>>) attributes {dimension_semantics = [#tpu.dimension_semantics<parallel>, #tpu.dimension_semantics<parallel>, #tpu.dimension_semantics<parallel>], iteration_bounds = array<i64: 2, 1, 1>, scalar_prefetch = 0 : i64, scratch_operands = 0 : i64, tpu.core_type = #tpu.core_type<tc>, window_params = [{transform_indices = @transform_0, window_bounds = array<i64: 1, 9, 9, 128>}, {transform_indices = @transform_1, window_bounds = array<i64: 1, 9, 9, 128>}, {transform_indices = @transform_2, window_bounds = array<i64: 1, 9, 9, 128>}, {transform_indices = @transform_3, window_bounds = array<i64: 1, 9, 9, 128>}, {transform_indices = @transform_4, window_bounds = array<i64: 9, 16, 128>}, {transform_indices = @transform_5, window_bounds = array<i64: 1, 128>}, {transform_indices = @transform_6, window_bounds = array<i64: 1, 8, 8, 128>}]} {
    %c8_i32 = arith.constant 8 : i32
    %0 = arith.muli %arg2, %c8_i32 : i32
    %c0_i32 = arith.constant 0 : i32
    %1 = arith.addi %0, %c0_i32 : i32
    %c0 = arith.constant 0 : index
    %2 = arith.index_cast %1 : i32 to index
    %c0_0 = arith.constant 0 : index
    %c0_1 = arith.constant 0 : index
    %3 = vector.load %arg3[%c0, %2, %c0_0, %c0_1] : memref<1x9x9x128xbf16, #tpu.memory_space<vmem>>, vector<1x8x8x16xbf16>
    %4 = vector.shape_cast %3 : vector<1x8x8x16xbf16> to vector<8x8x16xbf16>
    %5 = vector.shape_cast %4 : vector<8x8x16xbf16> to vector<64x16xbf16>
    %c0_2 = arith.constant 0 : index
    %c0_3 = arith.constant 0 : index
    %c0_4 = arith.constant 0 : index
    %6 = vector.load %arg7[%c0_2, %c0_3, %c0_4] : memref<9x16x128xbf16, #tpu.memory_space<vmem>>, vector<1x16x128xbf16>
    %7 = vector.shape_cast %6 : vector<1x16x128xbf16> to vector<16x128xbf16>
    %cst = arith.constant dense<0.000000e+00> : vector<64x128xf32>
    %8 = tpu.matmul %5, %7, %cst {dimension_numbers = #tpu.dot_dimension_numbers<[1], [0], [0], [1], [0, 0, 1, 1], [], []>} : vector<64x16xbf16>, vector<16x128xbf16>, vector<64x128xf32> -> vector<64x128xf32>
    %c0_i32_5 = arith.constant 0 : i32
    %9 = arith.addi %0, %c0_i32_5 : i32
    %c0_6 = arith.constant 0 : index
    %10 = arith.index_cast %9 : i32 to index
    %c0_7 = arith.constant 0 : index
    %c0_8 = arith.constant 0 : index
    %11 = vector.load %arg4[%c0_6, %10, %c0_7, %c0_8] : memref<1x9x9x128xbf16, #tpu.memory_space<vmem>>, vector<1x8x8x16xbf16>
    %12 = vector.shape_cast %11 : vector<1x8x8x16xbf16> to vector<8x8x16xbf16>
    %13 = vector.shape_cast %12 : vector<8x8x16xbf16> to vector<64x16xbf16>
    %c1 = arith.constant 1 : index
    %c0_9 = arith.constant 0 : index
    %c0_10 = arith.constant 0 : index
    %14 = vector.load %arg7[%c1, %c0_9, %c0_10] : memref<9x16x128xbf16, #tpu.memory_space<vmem>>, vector<1x16x128xbf16>
    %15 = vector.shape_cast %14 : vector<1x16x128xbf16> to vector<16x128xbf16>
    %cst_11 = arith.constant dense<0.000000e+00> : vector<64x128xf32>
    %16 = tpu.matmul %13, %15, %cst_11 {dimension_numbers = #tpu.dot_dimension_numbers<[1], [0], [0], [1], [0, 0, 1, 1], [], []>} : vector<64x16xbf16>, vector<16x128xbf16>, vector<64x128xf32> -> vector<64x128xf32>
    %17 = arith.addf %8, %16 : vector<64x128xf32>
    %c0_i32_12 = arith.constant 0 : i32
    %18 = arith.addi %0, %c0_i32_12 : i32
    %c0_13 = arith.constant 0 : index
    %19 = arith.index_cast %18 : i32 to index
    %c1_14 = arith.constant 1 : index
    %c0_15 = arith.constant 0 : index
    %20 = vector.load %arg3[%c0_13, %19, %c1_14, %c0_15] : memref<1x9x9x128xbf16, #tpu.memory_space<vmem>>, vector<1x8x8x16xbf16>
    %21 = vector.shape_cast %20 : vector<1x8x8x16xbf16> to vector<8x8x16xbf16>
    %22 = vector.shape_cast %21 : vector<8x8x16xbf16> to vector<64x16xbf16>
    %c2 = arith.constant 2 : index
    %c0_16 = arith.constant 0 : index
    %c0_17 = arith.constant 0 : index
    %23 = vector.load %arg7[%c2, %c0_16, %c0_17] : memref<9x16x128xbf16, #tpu.memory_space<vmem>>, vector<1x16x128xbf16>
    %24 = vector.shape_cast %23 : vector<1x16x128xbf16> to vector<16x128xbf16>
    %cst_18 = arith.constant dense<0.000000e+00> : vector<64x128xf32>
    %25 = tpu.matmul %22, %24, %cst_18 {dimension_numbers = #tpu.dot_dimension_numbers<[1], [0], [0], [1], [0, 0, 1, 1], [], []>} : vector<64x16xbf16>, vector<16x128xbf16>, vector<64x128xf32> -> vector<64x128xf32>
    %26 = arith.addf %17, %25 : vector<64x128xf32>
    %c0_i32_19 = arith.constant 0 : i32
    %27 = arith.addi %0, %c0_i32_19 : i32
    %c0_20 = arith.constant 0 : index
    %28 = arith.index_cast %27 : i32 to index
    %c0_21 = arith.constant 0 : index
    %c0_22 = arith.constant 0 : index
    %29 = vector.load %arg5[%c0_20, %28, %c0_21, %c0_22] : memref<1x9x9x128xbf16, #tpu.memory_space<vmem>>, vector<1x8x8x16xbf16>
    %30 = vector.shape_cast %29 : vector<1x8x8x16xbf16> to vector<8x8x16xbf16>
    %31 = vector.shape_cast %30 : vector<8x8x16xbf16> to vector<64x16xbf16>
    %c3 = arith.constant 3 : index
    %c0_23 = arith.constant 0 : index
    %c0_24 = arith.constant 0 : index
    %32 = vector.load %arg7[%c3, %c0_23, %c0_24] : memref<9x16x128xbf16, #tpu.memory_space<vmem>>, vector<1x16x128xbf16>
    %33 = vector.shape_cast %32 : vector<1x16x128xbf16> to vector<16x128xbf16>
    %cst_25 = arith.constant dense<0.000000e+00> : vector<64x128xf32>
    %34 = tpu.matmul %31, %33, %cst_25 {dimension_numbers = #tpu.dot_dimension_numbers<[1], [0], [0], [1], [0, 0, 1, 1], [], []>} : vector<64x16xbf16>, vector<16x128xbf16>, vector<64x128xf32> -> vector<64x128xf32>
    %35 = arith.addf %26, %34 : vector<64x128xf32>
    %c0_i32_26 = arith.constant 0 : i32
    %36 = arith.addi %0, %c0_i32_26 : i32
    %c0_27 = arith.constant 0 : index
    %37 = arith.index_cast %36 : i32 to index
    %c0_28 = arith.constant 0 : index
    %c0_29 = arith.constant 0 : index
    %38 = vector.load %arg6[%c0_27, %37, %c0_28, %c0_29] : memref<1x9x9x128xbf16, #tpu.memory_space<vmem>>, vector<1x8x8x16xbf16>
    %39 = vector.shape_cast %38 : vector<1x8x8x16xbf16> to vector<8x8x16xbf16>
    %40 = vector.shape_cast %39 : vector<8x8x16xbf16> to vector<64x16xbf16>
    %c4 = arith.constant 4 : index
    %c0_30 = arith.constant 0 : index
    %c0_31 = arith.constant 0 : index
    %41 = vector.load %arg7[%c4, %c0_30, %c0_31] : memref<9x16x128xbf16, #tpu.memory_space<vmem>>, vector<1x16x128xbf16>
    %42 = vector.shape_cast %41 : vector<1x16x128xbf16> to vector<16x128xbf16>
    %cst_32 = arith.constant dense<0.000000e+00> : vector<64x128xf32>
    %43 = tpu.matmul %40, %42, %cst_32 {dimension_numbers = #tpu.dot_dimension_numbers<[1], [0], [0], [1], [0, 0, 1, 1], [], []>} : vector<64x16xbf16>, vector<16x128xbf16>, vector<64x128xf32> -> vector<64x128xf32>
    %44 = arith.addf %35, %43 : vector<64x128xf32>
    %c0_i32_33 = arith.constant 0 : i32
    %45 = arith.addi %0, %c0_i32_33 : i32
    %c0_34 = arith.constant 0 : index
    %46 = arith.index_cast %45 : i32 to index
    %c1_35 = arith.constant 1 : index
    %c0_36 = arith.constant 0 : index
    %47 = vector.load %arg5[%c0_34, %46, %c1_35, %c0_36] : memref<1x9x9x128xbf16, #tpu.memory_space<vmem>>, vector<1x8x8x16xbf16>
    %48 = vector.shape_cast %47 : vector<1x8x8x16xbf16> to vector<8x8x16xbf16>
    %49 = vector.shape_cast %48 : vector<8x8x16xbf16> to vector<64x16xbf16>
    %c5 = arith.constant 5 : index
    %c0_37 = arith.constant 0 : index
    %c0_38 = arith.constant 0 : index
    %50 = vector.load %arg7[%c5, %c0_37, %c0_38] : memref<9x16x128xbf16, #tpu.memory_space<vmem>>, vector<1x16x128xbf16>
    %51 = vector.shape_cast %50 : vector<1x16x128xbf16> to vector<16x128xbf16>
    %cst_39 = arith.constant dense<0.000000e+00> : vector<64x128xf32>
    %52 = tpu.matmul %49, %51, %cst_39 {dimension_numbers = #tpu.dot_dimension_numbers<[1], [0], [0], [1], [0, 0, 1, 1], [], []>} : vector<64x16xbf16>, vector<16x128xbf16>, vector<64x128xf32> -> vector<64x128xf32>
    %53 = arith.addf %44, %52 : vector<64x128xf32>
    %c1_i32 = arith.constant 1 : i32
    %54 = arith.addi %0, %c1_i32 : i32
    %c0_40 = arith.constant 0 : index
    %55 = arith.index_cast %54 : i32 to index
    %c0_41 = arith.constant 0 : index
    %c0_42 = arith.constant 0 : index
    %56 = vector.load %arg3[%c0_40, %55, %c0_41, %c0_42] : memref<1x9x9x128xbf16, #tpu.memory_space<vmem>>, vector<1x8x8x16xbf16>
    %57 = vector.shape_cast %56 : vector<1x8x8x16xbf16> to vector<8x8x16xbf16>
    %58 = vector.shape_cast %57 : vector<8x8x16xbf16> to vector<64x16xbf16>
    %c6 = arith.constant 6 : index
    %c0_43 = arith.constant 0 : index
    %c0_44 = arith.constant 0 : index
    %59 = vector.load %arg7[%c6, %c0_43, %c0_44] : memref<9x16x128xbf16, #tpu.memory_space<vmem>>, vector<1x16x128xbf16>
    %60 = vector.shape_cast %59 : vector<1x16x128xbf16> to vector<16x128xbf16>
    %cst_45 = arith.constant dense<0.000000e+00> : vector<64x128xf32>
    %61 = tpu.matmul %58, %60, %cst_45 {dimension_numbers = #tpu.dot_dimension_numbers<[1], [0], [0], [1], [0, 0, 1, 1], [], []>} : vector<64x16xbf16>, vector<16x128xbf16>, vector<64x128xf32> -> vector<64x128xf32>
    %62 = arith.addf %53, %61 : vector<64x128xf32>
    %c1_i32_46 = arith.constant 1 : i32
    %63 = arith.addi %0, %c1_i32_46 : i32
    %c0_47 = arith.constant 0 : index
    %64 = arith.index_cast %63 : i32 to index
    %c0_48 = arith.constant 0 : index
    %c0_49 = arith.constant 0 : index
    %65 = vector.load %arg4[%c0_47, %64, %c0_48, %c0_49] : memref<1x9x9x128xbf16, #tpu.memory_space<vmem>>, vector<1x8x8x16xbf16>
    %66 = vector.shape_cast %65 : vector<1x8x8x16xbf16> to vector<8x8x16xbf16>
    %67 = vector.shape_cast %66 : vector<8x8x16xbf16> to vector<64x16xbf16>
    %c7 = arith.constant 7 : index
    %c0_50 = arith.constant 0 : index
    %c0_51 = arith.constant 0 : index
    %68 = vector.load %arg7[%c7, %c0_50, %c0_51] : memref<9x16x128xbf16, #tpu.memory_space<vmem>>, vector<1x16x128xbf16>
    %69 = vector.shape_cast %68 : vector<1x16x128xbf16> to vector<16x128xbf16>
    %cst_52 = arith.constant dense<0.000000e+00> : vector<64x128xf32>
    %70 = tpu.matmul %67, %69, %cst_52 {dimension_numbers = #tpu.dot_dimension_numbers<[1], [0], [0], [1], [0, 0, 1, 1], [], []>} : vector<64x16xbf16>, vector<16x128xbf16>, vector<64x128xf32> -> vector<64x128xf32>
    %71 = arith.addf %62, %70 : vector<64x128xf32>
    %c1_i32_53 = arith.constant 1 : i32
    %72 = arith.addi %0, %c1_i32_53 : i32
    %c0_54 = arith.constant 0 : index
    %73 = arith.index_cast %72 : i32 to index
    %c1_55 = arith.constant 1 : index
    %c0_56 = arith.constant 0 : index
    %74 = vector.load %arg3[%c0_54, %73, %c1_55, %c0_56] : memref<1x9x9x128xbf16, #tpu.memory_space<vmem>>, vector<1x8x8x16xbf16>
    %75 = vector.shape_cast %74 : vector<1x8x8x16xbf16> to vector<8x8x16xbf16>
    %76 = vector.shape_cast %75 : vector<8x8x16xbf16> to vector<64x16xbf16>
    %c8 = arith.constant 8 : index
    %c0_57 = arith.constant 0 : index
    %c0_58 = arith.constant 0 : index
    %77 = vector.load %arg7[%c8, %c0_57, %c0_58] : memref<9x16x128xbf16, #tpu.memory_space<vmem>>, vector<1x16x128xbf16>
    %78 = vector.shape_cast %77 : vector<1x16x128xbf16> to vector<16x128xbf16>
    %cst_59 = arith.constant dense<0.000000e+00> : vector<64x128xf32>
    %79 = tpu.matmul %76, %78, %cst_59 {dimension_numbers = #tpu.dot_dimension_numbers<[1], [0], [0], [1], [0, 0, 1, 1], [], []>} : vector<64x16xbf16>, vector<16x128xbf16>, vector<64x128xf32> -> vector<64x128xf32>
    %80 = arith.addf %71, %79 : vector<64x128xf32>
    %c0_60 = arith.constant 0 : index
    %c0_61 = arith.constant 0 : index
    %81 = vector.load %arg8[%c0_60, %c0_61] : memref<1x128xf32, #tpu.memory_space<vmem>>, vector<1x128xf32>
    %82 = vector.broadcast %81 : vector<1x128xf32> to vector<64x128xf32>
    %83 = arith.addf %80, %82 : vector<64x128xf32>
    %cst_62 = arith.constant 0.000000e+00 : f32
    %84 = vector.broadcast %cst_62 : f32 to vector<64x128xf32>
    %85 = arith.maximumf %83, %84 : vector<64x128xf32>
    %86 = vector.shape_cast %85 : vector<64x128xf32> to vector<1x8x8x128xf32>
    %87 = arith.truncf %86 : vector<1x8x8x128xf32> to vector<1x8x8x128xbf16>
    %c0_63 = arith.constant 0 : index
    %c0_64 = arith.constant 0 : index
    %c0_65 = arith.constant 0 : index
    %c0_66 = arith.constant 0 : index
    %88 = vector.load %arg9[%c0_63, %c0_64, %c0_65, %c0_66] : memref<1x8x8x128xbf16, #tpu.memory_space<vmem>>, vector<1x8x8x128xbf16>
    tpu.vector_store %arg9[%c0_63, %c0_64, %c0_65, %c0_66], %87 {strides = array<i32>} : memref<1x8x8x128xbf16, #tpu.memory_space<vmem>>, vector<1x8x8x128xbf16>,
    return
  }
  func.func @transform_0(%arg0: i32, %arg1: i32, %arg2: i32) -> (i32, i32, i32, i32) {
    %c0_i32 = arith.constant 0 : i32
    %c0_i32_0 = arith.constant 0 : i32
    %c0_i32_1 = arith.constant 0 : i32
    %c0_i32_2 = arith.constant 0 : i32
    return %arg0, %c0_i32, %c0_i32_0, %c0_i32_1 : i32, i32, i32, i32
  }
  func.func @transform_1(%arg0: i32, %arg1: i32, %arg2: i32) -> (i32, i32, i32, i32) {
    %c0_i32 = arith.constant 0 : i32
    %c0_i32_0 = arith.constant 0 : i32
    %c0_i32_1 = arith.constant 0 : i32
    %c0_i32_2 = arith.constant 0 : i32
    return %arg0, %c0_i32, %c0_i32_0, %c0_i32_1 : i32, i32, i32, i32
  }
  func.func @transform_2(%arg0: i32, %arg1: i32, %arg2: i32) -> (i32, i32, i32, i32) {
    %c0_i32 = arith.constant 0 : i32
    %c0_i32_0 = arith.constant 0 : i32
    %c0_i32_1 = arith.constant 0 : i32
    %c0_i32_2 = arith.constant 0 : i32
    return %arg0, %c0_i32, %c0_i32_0, %c0_i32_1 : i32, i32, i32, i32
  }
  func.func @transform_3(%arg0: i32, %arg1: i32, %arg2: i32) -> (i32, i32, i32, i32) {
    %c0_i32 = arith.constant 0 : i32
    %c0_i32_0 = arith.constant 0 : i32
    %c0_i32_1 = arith.constant 0 : i32
    %c0_i32_2 = arith.constant 0 : i32
    return %arg0, %c0_i32, %c0_i32_0, %c0_i32_1 : i32, i32, i32, i32
  }
  func.func @transform_4(%arg0: i32, %arg1: i32, %arg2: i32) -> (i32, i32, i32) {
    %c0_i32 = arith.constant 0 : i32
    %c0_i32_0 = arith.constant 0 : i32
    %c0_i32_1 = arith.constant 0 : i32
    return %c0_i32, %c0_i32_0, %arg1 : i32, i32, i32
  }
  func.func @transform_5(%arg0: i32, %arg1: i32, %arg2: i32) -> (i32, i32) {
    %c0_i32 = arith.constant 0 : i32
    %c0_i32_0 = arith.constant 0 : i32
    return %c0_i32, %arg1 : i32, i32
  }
  func.func @transform_6(%arg0: i32, %arg1: i32, %arg2: i32) -> (i32, i32, i32, i32) {
    %c0_i32 = arith.constant 0 : i32
    %c0_i32_0 = arith.constant 0 : i32
    return %arg0, %arg2, %c0_i32, %arg1 : i32, i32, i32, i32
  }
}

module attributes {stable_mosaic.version = 11 : i64} {
  func.func @kernel(%arg0: i32, %arg1: i32, %arg2: i32, %arg3: memref<1x5x5x128xbf16, #tpu.memory_space<vmem>>, %arg4: memref<1x5x5x128xbf16, #tpu.memory_space<vmem>>, %arg5: memref<1x5x5x128xbf16, #tpu.memory_space<vmem>>, %arg6: memref<1x5x5x128xbf16, #tpu.memory_space<vmem>>, %arg7: memref<9x16x128xbf16, #tpu.memory_space<vmem>>, %arg8: memref<1x128xf32, #tpu.memory_space<vmem>>, %arg9: memref<1x4x4x128xbf16, #tpu.memory_space<vmem>>) attributes {dimension_semantics = [#tpu.dimension_semantics<parallel>, #tpu.dimension_semantics<parallel>, #tpu.dimension_semantics<parallel>], iteration_bounds = array<i64: 2, 1, 1>, scalar_prefetch = 0 : i64, scratch_operands = 0 : i64, tpu.core_type = #tpu.core_type<tc>, window_params = [{transform_indices = @transform_0, window_bounds = array<i64: 1, 5, 5, 128>}, {transform_indices = @transform_1, window_bounds = array<i64: 1, 5, 5, 128>}, {transform_indices = @transform_2, window_bounds = array<i64: 1, 5, 5, 128>}, {transform_indices = @transform_3, window_bounds = array<i64: 1, 5, 5, 128>}, {transform_indices = @transform_4, window_bounds = array<i64: 9, 16, 128>}, {transform_indices = @transform_5, window_bounds = array<i64: 1, 128>}, {transform_indices = @transform_6, window_bounds = array<i64: 1, 4, 4, 128>}]} {
    %c4_i32 = arith.constant 4 : i32
    %0 = arith.muli %arg2, %c4_i32 : i32
    %c0_i32 = arith.constant 0 : i32
    %1 = arith.addi %0, %c0_i32 : i32
    %c0 = arith.constant 0 : index
    %2 = arith.index_cast %1 : i32 to index
    %c0_0 = arith.constant 0 : index
    %c0_1 = arith.constant 0 : index
    %3 = vector.load %arg3[%c0, %2, %c0_0, %c0_1] : memref<1x5x5x128xbf16, #tpu.memory_space<vmem>>, vector<1x4x4x16xbf16>
    %4 = vector.shape_cast %3 : vector<1x4x4x16xbf16> to vector<4x4x16xbf16>
    %5 = vector.shape_cast %4 : vector<4x4x16xbf16> to vector<16x16xbf16>
    %c0_2 = arith.constant 0 : index
    %c0_3 = arith.constant 0 : index
    %c0_4 = arith.constant 0 : index
    %6 = vector.load %arg7[%c0_2, %c0_3, %c0_4] : memref<9x16x128xbf16, #tpu.memory_space<vmem>>, vector<1x16x128xbf16>
    %7 = vector.shape_cast %6 : vector<1x16x128xbf16> to vector<16x128xbf16>
    %cst = arith.constant dense<0.000000e+00> : vector<16x128xf32>
    %8 = tpu.matmul %5, %7, %cst {dimension_numbers = #tpu.dot_dimension_numbers<[1], [0], [0], [1], [0, 0, 1, 1], [], []>} : vector<16x16xbf16>, vector<16x128xbf16>, vector<16x128xf32> -> vector<16x128xf32>
    %c0_i32_5 = arith.constant 0 : i32
    %9 = arith.addi %0, %c0_i32_5 : i32
    %c0_6 = arith.constant 0 : index
    %10 = arith.index_cast %9 : i32 to index
    %c0_7 = arith.constant 0 : index
    %c0_8 = arith.constant 0 : index
    %11 = vector.load %arg4[%c0_6, %10, %c0_7, %c0_8] : memref<1x5x5x128xbf16, #tpu.memory_space<vmem>>, vector<1x4x4x16xbf16>
    %12 = vector.shape_cast %11 : vector<1x4x4x16xbf16> to vector<4x4x16xbf16>
    %13 = vector.shape_cast %12 : vector<4x4x16xbf16> to vector<16x16xbf16>
    %c1 = arith.constant 1 : index
    %c0_9 = arith.constant 0 : index
    %c0_10 = arith.constant 0 : index
    %14 = vector.load %arg7[%c1, %c0_9, %c0_10] : memref<9x16x128xbf16, #tpu.memory_space<vmem>>, vector<1x16x128xbf16>
    %15 = vector.shape_cast %14 : vector<1x16x128xbf16> to vector<16x128xbf16>
    %cst_11 = arith.constant dense<0.000000e+00> : vector<16x128xf32>
    %16 = tpu.matmul %13, %15, %cst_11 {dimension_numbers = #tpu.dot_dimension_numbers<[1], [0], [0], [1], [0, 0, 1, 1], [], []>} : vector<16x16xbf16>, vector<16x128xbf16>, vector<16x128xf32> -> vector<16x128xf32>
    %17 = arith.addf %8, %16 : vector<16x128xf32>
    %c0_i32_12 = arith.constant 0 : i32
    %18 = arith.addi %0, %c0_i32_12 : i32
    %c0_13 = arith.constant 0 : index
    %19 = arith.index_cast %18 : i32 to index
    %c1_14 = arith.constant 1 : index
    %c0_15 = arith.constant 0 : index
    %20 = vector.load %arg3[%c0_13, %19, %c1_14, %c0_15] : memref<1x5x5x128xbf16, #tpu.memory_space<vmem>>, vector<1x4x4x16xbf16>
    %21 = vector.shape_cast %20 : vector<1x4x4x16xbf16> to vector<4x4x16xbf16>
    %22 = vector.shape_cast %21 : vector<4x4x16xbf16> to vector<16x16xbf16>
    %c2 = arith.constant 2 : index
    %c0_16 = arith.constant 0 : index
    %c0_17 = arith.constant 0 : index
    %23 = vector.load %arg7[%c2, %c0_16, %c0_17] : memref<9x16x128xbf16, #tpu.memory_space<vmem>>, vector<1x16x128xbf16>
    %24 = vector.shape_cast %23 : vector<1x16x128xbf16> to vector<16x128xbf16>
    %cst_18 = arith.constant dense<0.000000e+00> : vector<16x128xf32>
    %25 = tpu.matmul %22, %24, %cst_18 {dimension_numbers = #tpu.dot_dimension_numbers<[1], [0], [0], [1], [0, 0, 1, 1], [], []>} : vector<16x16xbf16>, vector<16x128xbf16>, vector<16x128xf32> -> vector<16x128xf32>
    %26 = arith.addf %17, %25 : vector<16x128xf32>
    %c0_i32_19 = arith.constant 0 : i32
    %27 = arith.addi %0, %c0_i32_19 : i32
    %c0_20 = arith.constant 0 : index
    %28 = arith.index_cast %27 : i32 to index
    %c0_21 = arith.constant 0 : index
    %c0_22 = arith.constant 0 : index
    %29 = vector.load %arg5[%c0_20, %28, %c0_21, %c0_22] : memref<1x5x5x128xbf16, #tpu.memory_space<vmem>>, vector<1x4x4x16xbf16>
    %30 = vector.shape_cast %29 : vector<1x4x4x16xbf16> to vector<4x4x16xbf16>
    %31 = vector.shape_cast %30 : vector<4x4x16xbf16> to vector<16x16xbf16>
    %c3 = arith.constant 3 : index
    %c0_23 = arith.constant 0 : index
    %c0_24 = arith.constant 0 : index
    %32 = vector.load %arg7[%c3, %c0_23, %c0_24] : memref<9x16x128xbf16, #tpu.memory_space<vmem>>, vector<1x16x128xbf16>
    %33 = vector.shape_cast %32 : vector<1x16x128xbf16> to vector<16x128xbf16>
    %cst_25 = arith.constant dense<0.000000e+00> : vector<16x128xf32>
    %34 = tpu.matmul %31, %33, %cst_25 {dimension_numbers = #tpu.dot_dimension_numbers<[1], [0], [0], [1], [0, 0, 1, 1], [], []>} : vector<16x16xbf16>, vector<16x128xbf16>, vector<16x128xf32> -> vector<16x128xf32>
    %35 = arith.addf %26, %34 : vector<16x128xf32>
    %c0_i32_26 = arith.constant 0 : i32
    %36 = arith.addi %0, %c0_i32_26 : i32
    %c0_27 = arith.constant 0 : index
    %37 = arith.index_cast %36 : i32 to index
    %c0_28 = arith.constant 0 : index
    %c0_29 = arith.constant 0 : index
    %38 = vector.load %arg6[%c0_27, %37, %c0_28, %c0_29] : memref<1x5x5x128xbf16, #tpu.memory_space<vmem>>, vector<1x4x4x16xbf16>
    %39 = vector.shape_cast %38 : vector<1x4x4x16xbf16> to vector<4x4x16xbf16>
    %40 = vector.shape_cast %39 : vector<4x4x16xbf16> to vector<16x16xbf16>
    %c4 = arith.constant 4 : index
    %c0_30 = arith.constant 0 : index
    %c0_31 = arith.constant 0 : index
    %41 = vector.load %arg7[%c4, %c0_30, %c0_31] : memref<9x16x128xbf16, #tpu.memory_space<vmem>>, vector<1x16x128xbf16>
    %42 = vector.shape_cast %41 : vector<1x16x128xbf16> to vector<16x128xbf16>
    %cst_32 = arith.constant dense<0.000000e+00> : vector<16x128xf32>
    %43 = tpu.matmul %40, %42, %cst_32 {dimension_numbers = #tpu.dot_dimension_numbers<[1], [0], [0], [1], [0, 0, 1, 1], [], []>} : vector<16x16xbf16>, vector<16x128xbf16>, vector<16x128xf32> -> vector<16x128xf32>
    %44 = arith.addf %35, %43 : vector<16x128xf32>
    %c0_i32_33 = arith.constant 0 : i32
    %45 = arith.addi %0, %c0_i32_33 : i32
    %c0_34 = arith.constant 0 : index
    %46 = arith.index_cast %45 : i32 to index
    %c1_35 = arith.constant 1 : index
    %c0_36 = arith.constant 0 : index
    %47 = vector.load %arg5[%c0_34, %46, %c1_35, %c0_36] : memref<1x5x5x128xbf16, #tpu.memory_space<vmem>>, vector<1x4x4x16xbf16>
    %48 = vector.shape_cast %47 : vector<1x4x4x16xbf16> to vector<4x4x16xbf16>
    %49 = vector.shape_cast %48 : vector<4x4x16xbf16> to vector<16x16xbf16>
    %c5 = arith.constant 5 : index
    %c0_37 = arith.constant 0 : index
    %c0_38 = arith.constant 0 : index
    %50 = vector.load %arg7[%c5, %c0_37, %c0_38] : memref<9x16x128xbf16, #tpu.memory_space<vmem>>, vector<1x16x128xbf16>
    %51 = vector.shape_cast %50 : vector<1x16x128xbf16> to vector<16x128xbf16>
    %cst_39 = arith.constant dense<0.000000e+00> : vector<16x128xf32>
    %52 = tpu.matmul %49, %51, %cst_39 {dimension_numbers = #tpu.dot_dimension_numbers<[1], [0], [0], [1], [0, 0, 1, 1], [], []>} : vector<16x16xbf16>, vector<16x128xbf16>, vector<16x128xf32> -> vector<16x128xf32>
    %53 = arith.addf %44, %52 : vector<16x128xf32>
    %c1_i32 = arith.constant 1 : i32
    %54 = arith.addi %0, %c1_i32 : i32
    %c0_40 = arith.constant 0 : index
    %55 = arith.index_cast %54 : i32 to index
    %c0_41 = arith.constant 0 : index
    %c0_42 = arith.constant 0 : index
    %56 = vector.load %arg3[%c0_40, %55, %c0_41, %c0_42] : memref<1x5x5x128xbf16, #tpu.memory_space<vmem>>, vector<1x4x4x16xbf16>
    %57 = vector.shape_cast %56 : vector<1x4x4x16xbf16> to vector<4x4x16xbf16>
    %58 = vector.shape_cast %57 : vector<4x4x16xbf16> to vector<16x16xbf16>
    %c6 = arith.constant 6 : index
    %c0_43 = arith.constant 0 : index
    %c0_44 = arith.constant 0 : index
    %59 = vector.load %arg7[%c6, %c0_43, %c0_44] : memref<9x16x128xbf16, #tpu.memory_space<vmem>>, vector<1x16x128xbf16>
    %60 = vector.shape_cast %59 : vector<1x16x128xbf16> to vector<16x128xbf16>
    %cst_45 = arith.constant dense<0.000000e+00> : vector<16x128xf32>
    %61 = tpu.matmul %58, %60, %cst_45 {dimension_numbers = #tpu.dot_dimension_numbers<[1], [0], [0], [1], [0, 0, 1, 1], [], []>} : vector<16x16xbf16>, vector<16x128xbf16>, vector<16x128xf32> -> vector<16x128xf32>
    %62 = arith.addf %53, %61 : vector<16x128xf32>
    %c1_i32_46 = arith.constant 1 : i32
    %63 = arith.addi %0, %c1_i32_46 : i32
    %c0_47 = arith.constant 0 : index
    %64 = arith.index_cast %63 : i32 to index
    %c0_48 = arith.constant 0 : index
    %c0_49 = arith.constant 0 : index
    %65 = vector.load %arg4[%c0_47, %64, %c0_48, %c0_49] : memref<1x5x5x128xbf16, #tpu.memory_space<vmem>>, vector<1x4x4x16xbf16>
    %66 = vector.shape_cast %65 : vector<1x4x4x16xbf16> to vector<4x4x16xbf16>
    %67 = vector.shape_cast %66 : vector<4x4x16xbf16> to vector<16x16xbf16>
    %c7 = arith.constant 7 : index
    %c0_50 = arith.constant 0 : index
    %c0_51 = arith.constant 0 : index
    %68 = vector.load %arg7[%c7, %c0_50, %c0_51] : memref<9x16x128xbf16, #tpu.memory_space<vmem>>, vector<1x16x128xbf16>
    %69 = vector.shape_cast %68 : vector<1x16x128xbf16> to vector<16x128xbf16>
    %cst_52 = arith.constant dense<0.000000e+00> : vector<16x128xf32>
    %70 = tpu.matmul %67, %69, %cst_52 {dimension_numbers = #tpu.dot_dimension_numbers<[1], [0], [0], [1], [0, 0, 1, 1], [], []>} : vector<16x16xbf16>, vector<16x128xbf16>, vector<16x128xf32> -> vector<16x128xf32>
    %71 = arith.addf %62, %70 : vector<16x128xf32>
    %c1_i32_53 = arith.constant 1 : i32
    %72 = arith.addi %0, %c1_i32_53 : i32
    %c0_54 = arith.constant 0 : index
    %73 = arith.index_cast %72 : i32 to index
    %c1_55 = arith.constant 1 : index
    %c0_56 = arith.constant 0 : index
    %74 = vector.load %arg3[%c0_54, %73, %c1_55, %c0_56] : memref<1x5x5x128xbf16, #tpu.memory_space<vmem>>, vector<1x4x4x16xbf16>
    %75 = vector.shape_cast %74 : vector<1x4x4x16xbf16> to vector<4x4x16xbf16>
    %76 = vector.shape_cast %75 : vector<4x4x16xbf16> to vector<16x16xbf16>
    %c8 = arith.constant 8 : index
    %c0_57 = arith.constant 0 : index
    %c0_58 = arith.constant 0 : index
    %77 = vector.load %arg7[%c8, %c0_57, %c0_58] : memref<9x16x128xbf16, #tpu.memory_space<vmem>>, vector<1x16x128xbf16>
    %78 = vector.shape_cast %77 : vector<1x16x128xbf16> to vector<16x128xbf16>
    %cst_59 = arith.constant dense<0.000000e+00> : vector<16x128xf32>
    %79 = tpu.matmul %76, %78, %cst_59 {dimension_numbers = #tpu.dot_dimension_numbers<[1], [0], [0], [1], [0, 0, 1, 1], [], []>} : vector<16x16xbf16>, vector<16x128xbf16>, vector<16x128xf32> -> vector<16x128xf32>
    %80 = arith.addf %71, %79 : vector<16x128xf32>
    %c0_60 = arith.constant 0 : index
    %c0_61 = arith.constant 0 : index
    %81 = vector.load %arg8[%c0_60, %c0_61] : memref<1x128xf32, #tpu.memory_space<vmem>>, vector<1x128xf32>
    %82 = vector.broadcast %81 : vector<1x128xf32> to vector<16x128xf32>
    %83 = arith.addf %80, %82 : vector<16x128xf32>
    %cst_62 = arith.constant 0.000000e+00 : f32
    %84 = vector.broadcast %cst_62 : f32 to vector<16x128xf32>
    %85 = arith.maximumf %83, %84 : vector<16x128xf32>
    %86 = vector.shape_cast %85 : vector<16x128xf32> to vector<1x4x4x128xf32>
    %87 = arith.truncf %86 : vector<1x4x4x128xf32> to vector<1x4x4x128xbf16>
    %c0_63 = arith.constant 0 : index
    %c0_64 = arith.constant 0 : index
    %c0_65 = arith.constant 0 : index
    %c0_66 = arith.constant 0 : index
    %88 = vector.load %arg9[%c0_63, %c0_64, %c0_65, %c0_66] : memref<1x4x4x128xbf16, #tpu.memory_space<vmem>>, vector<1x4x4x128xbf16>
    tpu.vector_store %arg9[%c0_63, %c0_64, %c0_65, %c0_66], %87 {strides = array<i32>} : memref<1x4x4x128xbf16, #tpu.memory_space<vmem>>, vector<1x4x4x128xbf16>,
    return
  }
  func.func @transform_0(%arg0: i32, %arg1: i32, %arg2: i32) -> (i32, i32, i32, i32) {
    %c0_i32 = arith.constant 0 : i32
    %c0_i32_0 = arith.constant 0 : i32
    %c0_i32_1 = arith.constant 0 : i32
    %c0_i32_2 = arith.constant 0 : i32
    return %arg0, %c0_i32, %c0_i32_0, %c0_i32_1 : i32, i32, i32, i32
  }
  func.func @transform_1(%arg0: i32, %arg1: i32, %arg2: i32) -> (i32, i32, i32, i32) {
    %c0_i32 = arith.constant 0 : i32
    %c0_i32_0 = arith.constant 0 : i32
    %c0_i32_1 = arith.constant 0 : i32
    %c0_i32_2 = arith.constant 0 : i32
    return %arg0, %c0_i32, %c0_i32_0, %c0_i32_1 : i32, i32, i32, i32
  }
  func.func @transform_2(%arg0: i32, %arg1: i32, %arg2: i32) -> (i32, i32, i32, i32) {
    %c0_i32 = arith.constant 0 : i32
    %c0_i32_0 = arith.constant 0 : i32
    %c0_i32_1 = arith.constant 0 : i32
    %c0_i32_2 = arith.constant 0 : i32
    return %arg0, %c0_i32, %c0_i32_0, %c0_i32_1 : i32, i32, i32, i32
  }
  func.func @transform_3(%arg0: i32, %arg1: i32, %arg2: i32) -> (i32, i32, i32, i32) {
    %c0_i32 = arith.constant 0 : i32
    %c0_i32_0 = arith.constant 0 : i32
    %c0_i32_1 = arith.constant 0 : i32
    %c0_i32_2 = arith.constant 0 : i32
    return %arg0, %c0_i32, %c0_i32_0, %c0_i32_1 : i32, i32, i32, i32
  }
  func.func @transform_4(%arg0: i32, %arg1: i32, %arg2: i32) -> (i32, i32, i32) {
    %c0_i32 = arith.constant 0 : i32
    %c0_i32_0 = arith.constant 0 : i32
    %c0_i32_1 = arith.constant 0 : i32
    return %c0_i32, %c0_i32_0, %arg1 : i32, i32, i32
  }
  func.func @transform_5(%arg0: i32, %arg1: i32, %arg2: i32) -> (i32, i32) {
    %c0_i32 = arith.constant 0 : i32
    %c0_i32_0 = arith.constant 0 : i32
    return %c0_i32, %arg1 : i32, i32
  }
  func.func @transform_6(%arg0: i32, %arg1: i32, %arg2: i32) -> (i32, i32, i32, i32) {
    %c0_i32 = arith.constant 0 : i32
    %c0_i32_0 = arith.constant 0 : i32
    return %arg0, %arg2, %c0_i32, %arg1 : i32, i32, i32, i32
  }
}

module attributes {stable_mosaic.version = 11 : i64} {
  func.func @kernel(%arg0: i32, %arg1: i32, %arg2: i32, %arg3: memref<1x3x3x128xbf16, #tpu.memory_space<vmem>>, %arg4: memref<1x3x3x128xbf16, #tpu.memory_space<vmem>>, %arg5: memref<1x3x3x128xbf16, #tpu.memory_space<vmem>>, %arg6: memref<1x3x3x128xbf16, #tpu.memory_space<vmem>>, %arg7: memref<9x16x128xbf16, #tpu.memory_space<vmem>>, %arg8: memref<1x128xf32, #tpu.memory_space<vmem>>, %arg9: memref<1x2x2x128xbf16, #tpu.memory_space<vmem>>) attributes {dimension_semantics = [#tpu.dimension_semantics<parallel>, #tpu.dimension_semantics<parallel>, #tpu.dimension_semantics<parallel>], iteration_bounds = array<i64: 2, 1, 1>, scalar_prefetch = 0 : i64, scratch_operands = 0 : i64, tpu.core_type = #tpu.core_type<tc>, window_params = [{transform_indices = @transform_0, window_bounds = array<i64: 1, 3, 3, 128>}, {transform_indices = @transform_1, window_bounds = array<i64: 1, 3, 3, 128>}, {transform_indices = @transform_2, window_bounds = array<i64: 1, 3, 3, 128>}, {transform_indices = @transform_3, window_bounds = array<i64: 1, 3, 3, 128>}, {transform_indices = @transform_4, window_bounds = array<i64: 9, 16, 128>}, {transform_indices = @transform_5, window_bounds = array<i64: 1, 128>}, {transform_indices = @transform_6, window_bounds = array<i64: 1, 2, 2, 128>}]} {
    %c2_i32 = arith.constant 2 : i32
    %0 = arith.muli %arg2, %c2_i32 : i32
    %c0_i32 = arith.constant 0 : i32
    %1 = arith.addi %0, %c0_i32 : i32
    %c0 = arith.constant 0 : index
    %2 = arith.index_cast %1 : i32 to index
    %c0_0 = arith.constant 0 : index
    %c0_1 = arith.constant 0 : index
    %3 = vector.load %arg3[%c0, %2, %c0_0, %c0_1] : memref<1x3x3x128xbf16, #tpu.memory_space<vmem>>, vector<1x2x2x16xbf16>
    %4 = vector.shape_cast %3 : vector<1x2x2x16xbf16> to vector<2x2x16xbf16>
    %5 = vector.shape_cast %4 : vector<2x2x16xbf16> to vector<4x16xbf16>
    %c0_2 = arith.constant 0 : index
    %c0_3 = arith.constant 0 : index
    %c0_4 = arith.constant 0 : index
    %6 = vector.load %arg7[%c0_2, %c0_3, %c0_4] : memref<9x16x128xbf16, #tpu.memory_space<vmem>>, vector<1x16x128xbf16>
    %7 = vector.shape_cast %6 : vector<1x16x128xbf16> to vector<16x128xbf16>
    %cst = arith.constant dense<0.000000e+00> : vector<4x128xf32>
    %8 = tpu.matmul %5, %7, %cst {dimension_numbers = #tpu.dot_dimension_numbers<[1], [0], [0], [1], [0, 0, 1, 1], [], []>} : vector<4x16xbf16>, vector<16x128xbf16>, vector<4x128xf32> -> vector<4x128xf32>
    %c0_i32_5 = arith.constant 0 : i32
    %9 = arith.addi %0, %c0_i32_5 : i32
    %c0_6 = arith.constant 0 : index
    %10 = arith.index_cast %9 : i32 to index
    %c0_7 = arith.constant 0 : index
    %c0_8 = arith.constant 0 : index
    %11 = vector.load %arg4[%c0_6, %10, %c0_7, %c0_8] : memref<1x3x3x128xbf16, #tpu.memory_space<vmem>>, vector<1x2x2x16xbf16>
    %12 = vector.shape_cast %11 : vector<1x2x2x16xbf16> to vector<2x2x16xbf16>
    %13 = vector.shape_cast %12 : vector<2x2x16xbf16> to vector<4x16xbf16>
    %c1 = arith.constant 1 : index
    %c0_9 = arith.constant 0 : index
    %c0_10 = arith.constant 0 : index
    %14 = vector.load %arg7[%c1, %c0_9, %c0_10] : memref<9x16x128xbf16, #tpu.memory_space<vmem>>, vector<1x16x128xbf16>
    %15 = vector.shape_cast %14 : vector<1x16x128xbf16> to vector<16x128xbf16>
    %cst_11 = arith.constant dense<0.000000e+00> : vector<4x128xf32>
    %16 = tpu.matmul %13, %15, %cst_11 {dimension_numbers = #tpu.dot_dimension_numbers<[1], [0], [0], [1], [0, 0, 1, 1], [], []>} : vector<4x16xbf16>, vector<16x128xbf16>, vector<4x128xf32> -> vector<4x128xf32>
    %17 = arith.addf %8, %16 : vector<4x128xf32>
    %c0_i32_12 = arith.constant 0 : i32
    %18 = arith.addi %0, %c0_i32_12 : i32
    %c0_13 = arith.constant 0 : index
    %19 = arith.index_cast %18 : i32 to index
    %c1_14 = arith.constant 1 : index
    %c0_15 = arith.constant 0 : index
    %20 = vector.load %arg3[%c0_13, %19, %c1_14, %c0_15] : memref<1x3x3x128xbf16, #tpu.memory_space<vmem>>, vector<1x2x2x16xbf16>
    %21 = vector.shape_cast %20 : vector<1x2x2x16xbf16> to vector<2x2x16xbf16>
    %22 = vector.shape_cast %21 : vector<2x2x16xbf16> to vector<4x16xbf16>
    %c2 = arith.constant 2 : index
    %c0_16 = arith.constant 0 : index
    %c0_17 = arith.constant 0 : index
    %23 = vector.load %arg7[%c2, %c0_16, %c0_17] : memref<9x16x128xbf16, #tpu.memory_space<vmem>>, vector<1x16x128xbf16>
    %24 = vector.shape_cast %23 : vector<1x16x128xbf16> to vector<16x128xbf16>
    %cst_18 = arith.constant dense<0.000000e+00> : vector<4x128xf32>
    %25 = tpu.matmul %22, %24, %cst_18 {dimension_numbers = #tpu.dot_dimension_numbers<[1], [0], [0], [1], [0, 0, 1, 1], [], []>} : vector<4x16xbf16>, vector<16x128xbf16>, vector<4x128xf32> -> vector<4x128xf32>
    %26 = arith.addf %17, %25 : vector<4x128xf32>
    %c0_i32_19 = arith.constant 0 : i32
    %27 = arith.addi %0, %c0_i32_19 : i32
    %c0_20 = arith.constant 0 : index
    %28 = arith.index_cast %27 : i32 to index
    %c0_21 = arith.constant 0 : index
    %c0_22 = arith.constant 0 : index
    %29 = vector.load %arg5[%c0_20, %28, %c0_21, %c0_22] : memref<1x3x3x128xbf16, #tpu.memory_space<vmem>>, vector<1x2x2x16xbf16>
    %30 = vector.shape_cast %29 : vector<1x2x2x16xbf16> to vector<2x2x16xbf16>
    %31 = vector.shape_cast %30 : vector<2x2x16xbf16> to vector<4x16xbf16>
    %c3 = arith.constant 3 : index
    %c0_23 = arith.constant 0 : index
    %c0_24 = arith.constant 0 : index
    %32 = vector.load %arg7[%c3, %c0_23, %c0_24] : memref<9x16x128xbf16, #tpu.memory_space<vmem>>, vector<1x16x128xbf16>
    %33 = vector.shape_cast %32 : vector<1x16x128xbf16> to vector<16x128xbf16>
    %cst_25 = arith.constant dense<0.000000e+00> : vector<4x128xf32>
    %34 = tpu.matmul %31, %33, %cst_25 {dimension_numbers = #tpu.dot_dimension_numbers<[1], [0], [0], [1], [0, 0, 1, 1], [], []>} : vector<4x16xbf16>, vector<16x128xbf16>, vector<4x128xf32> -> vector<4x128xf32>
    %35 = arith.addf %26, %34 : vector<4x128xf32>
    %c0_i32_26 = arith.constant 0 : i32
    %36 = arith.addi %0, %c0_i32_26 : i32
    %c0_27 = arith.constant 0 : index
    %37 = arith.index_cast %36 : i32 to index
    %c0_28 = arith.constant 0 : index
    %c0_29 = arith.constant 0 : index
    %38 = vector.load %arg6[%c0_27, %37, %c0_28, %c0_29] : memref<1x3x3x128xbf16, #tpu.memory_space<vmem>>, vector<1x2x2x16xbf16>
    %39 = vector.shape_cast %38 : vector<1x2x2x16xbf16> to vector<2x2x16xbf16>
    %40 = vector.shape_cast %39 : vector<2x2x16xbf16> to vector<4x16xbf16>
    %c4 = arith.constant 4 : index
    %c0_30 = arith.constant 0 : index
    %c0_31 = arith.constant 0 : index
    %41 = vector.load %arg7[%c4, %c0_30, %c0_31] : memref<9x16x128xbf16, #tpu.memory_space<vmem>>, vector<1x16x128xbf16>
    %42 = vector.shape_cast %41 : vector<1x16x128xbf16> to vector<16x128xbf16>
    %cst_32 = arith.constant dense<0.000000e+00> : vector<4x128xf32>
    %43 = tpu.matmul %40, %42, %cst_32 {dimension_numbers = #tpu.dot_dimension_numbers<[1], [0], [0], [1], [0, 0, 1, 1], [], []>} : vector<4x16xbf16>, vector<16x128xbf16>, vector<4x128xf32> -> vector<4x128xf32>
    %44 = arith.addf %35, %43 : vector<4x128xf32>
    %c0_i32_33 = arith.constant 0 : i32
    %45 = arith.addi %0, %c0_i32_33 : i32
    %c0_34 = arith.constant 0 : index
    %46 = arith.index_cast %45 : i32 to index
    %c1_35 = arith.constant 1 : index
    %c0_36 = arith.constant 0 : index
    %47 = vector.load %arg5[%c0_34, %46, %c1_35, %c0_36] : memref<1x3x3x128xbf16, #tpu.memory_space<vmem>>, vector<1x2x2x16xbf16>
    %48 = vector.shape_cast %47 : vector<1x2x2x16xbf16> to vector<2x2x16xbf16>
    %49 = vector.shape_cast %48 : vector<2x2x16xbf16> to vector<4x16xbf16>
    %c5 = arith.constant 5 : index
    %c0_37 = arith.constant 0 : index
    %c0_38 = arith.constant 0 : index
    %50 = vector.load %arg7[%c5, %c0_37, %c0_38] : memref<9x16x128xbf16, #tpu.memory_space<vmem>>, vector<1x16x128xbf16>
    %51 = vector.shape_cast %50 : vector<1x16x128xbf16> to vector<16x128xbf16>
    %cst_39 = arith.constant dense<0.000000e+00> : vector<4x128xf32>
    %52 = tpu.matmul %49, %51, %cst_39 {dimension_numbers = #tpu.dot_dimension_numbers<[1], [0], [0], [1], [0, 0, 1, 1], [], []>} : vector<4x16xbf16>, vector<16x128xbf16>, vector<4x128xf32> -> vector<4x128xf32>
    %53 = arith.addf %44, %52 : vector<4x128xf32>
    %c1_i32 = arith.constant 1 : i32
    %54 = arith.addi %0, %c1_i32 : i32
    %c0_40 = arith.constant 0 : index
    %55 = arith.index_cast %54 : i32 to index
    %c0_41 = arith.constant 0 : index
    %c0_42 = arith.constant 0 : index
    %56 = vector.load %arg3[%c0_40, %55, %c0_41, %c0_42] : memref<1x3x3x128xbf16, #tpu.memory_space<vmem>>, vector<1x2x2x16xbf16>
    %57 = vector.shape_cast %56 : vector<1x2x2x16xbf16> to vector<2x2x16xbf16>
    %58 = vector.shape_cast %57 : vector<2x2x16xbf16> to vector<4x16xbf16>
    %c6 = arith.constant 6 : index
    %c0_43 = arith.constant 0 : index
    %c0_44 = arith.constant 0 : index
    %59 = vector.load %arg7[%c6, %c0_43, %c0_44] : memref<9x16x128xbf16, #tpu.memory_space<vmem>>, vector<1x16x128xbf16>
    %60 = vector.shape_cast %59 : vector<1x16x128xbf16> to vector<16x128xbf16>
    %cst_45 = arith.constant dense<0.000000e+00> : vector<4x128xf32>
    %61 = tpu.matmul %58, %60, %cst_45 {dimension_numbers = #tpu.dot_dimension_numbers<[1], [0], [0], [1], [0, 0, 1, 1], [], []>} : vector<4x16xbf16>, vector<16x128xbf16>, vector<4x128xf32> -> vector<4x128xf32>
    %62 = arith.addf %53, %61 : vector<4x128xf32>
    %c1_i32_46 = arith.constant 1 : i32
    %63 = arith.addi %0, %c1_i32_46 : i32
    %c0_47 = arith.constant 0 : index
    %64 = arith.index_cast %63 : i32 to index
    %c0_48 = arith.constant 0 : index
    %c0_49 = arith.constant 0 : index
    %65 = vector.load %arg4[%c0_47, %64, %c0_48, %c0_49] : memref<1x3x3x128xbf16, #tpu.memory_space<vmem>>, vector<1x2x2x16xbf16>
    %66 = vector.shape_cast %65 : vector<1x2x2x16xbf16> to vector<2x2x16xbf16>
    %67 = vector.shape_cast %66 : vector<2x2x16xbf16> to vector<4x16xbf16>
    %c7 = arith.constant 7 : index
    %c0_50 = arith.constant 0 : index
    %c0_51 = arith.constant 0 : index
    %68 = vector.load %arg7[%c7, %c0_50, %c0_51] : memref<9x16x128xbf16, #tpu.memory_space<vmem>>, vector<1x16x128xbf16>
    %69 = vector.shape_cast %68 : vector<1x16x128xbf16> to vector<16x128xbf16>
    %cst_52 = arith.constant dense<0.000000e+00> : vector<4x128xf32>
    %70 = tpu.matmul %67, %69, %cst_52 {dimension_numbers = #tpu.dot_dimension_numbers<[1], [0], [0], [1], [0, 0, 1, 1], [], []>} : vector<4x16xbf16>, vector<16x128xbf16>, vector<4x128xf32> -> vector<4x128xf32>
    %71 = arith.addf %62, %70 : vector<4x128xf32>
    %c1_i32_53 = arith.constant 1 : i32
    %72 = arith.addi %0, %c1_i32_53 : i32
    %c0_54 = arith.constant 0 : index
    %73 = arith.index_cast %72 : i32 to index
    %c1_55 = arith.constant 1 : index
    %c0_56 = arith.constant 0 : index
    %74 = vector.load %arg3[%c0_54, %73, %c1_55, %c0_56] : memref<1x3x3x128xbf16, #tpu.memory_space<vmem>>, vector<1x2x2x16xbf16>
    %75 = vector.shape_cast %74 : vector<1x2x2x16xbf16> to vector<2x2x16xbf16>
    %76 = vector.shape_cast %75 : vector<2x2x16xbf16> to vector<4x16xbf16>
    %c8 = arith.constant 8 : index
    %c0_57 = arith.constant 0 : index
    %c0_58 = arith.constant 0 : index
    %77 = vector.load %arg7[%c8, %c0_57, %c0_58] : memref<9x16x128xbf16, #tpu.memory_space<vmem>>, vector<1x16x128xbf16>
    %78 = vector.shape_cast %77 : vector<1x16x128xbf16> to vector<16x128xbf16>
    %cst_59 = arith.constant dense<0.000000e+00> : vector<4x128xf32>
    %79 = tpu.matmul %76, %78, %cst_59 {dimension_numbers = #tpu.dot_dimension_numbers<[1], [0], [0], [1], [0, 0, 1, 1], [], []>} : vector<4x16xbf16>, vector<16x128xbf16>, vector<4x128xf32> -> vector<4x128xf32>
    %80 = arith.addf %71, %79 : vector<4x128xf32>
    %c0_60 = arith.constant 0 : index
    %c0_61 = arith.constant 0 : index
    %81 = vector.load %arg8[%c0_60, %c0_61] : memref<1x128xf32, #tpu.memory_space<vmem>>, vector<1x128xf32>
    %82 = vector.broadcast %81 : vector<1x128xf32> to vector<4x128xf32>
    %83 = arith.addf %80, %82 : vector<4x128xf32>
    %cst_62 = arith.constant 0.000000e+00 : f32
    %84 = vector.broadcast %cst_62 : f32 to vector<4x128xf32>
    %85 = arith.maximumf %83, %84 : vector<4x128xf32>
    %86 = vector.shape_cast %85 : vector<4x128xf32> to vector<1x2x2x128xf32>
    %87 = arith.truncf %86 : vector<1x2x2x128xf32> to vector<1x2x2x128xbf16>
    %c0_63 = arith.constant 0 : index
    %c0_64 = arith.constant 0 : index
    %c0_65 = arith.constant 0 : index
    %c0_66 = arith.constant 0 : index
    %88 = vector.load %arg9[%c0_63, %c0_64, %c0_65, %c0_66] : memref<1x2x2x128xbf16, #tpu.memory_space<vmem>>, vector<1x2x2x128xbf16>
    tpu.vector_store %arg9[%c0_63, %c0_64, %c0_65, %c0_66], %87 {strides = array<i32>} : memref<1x2x2x128xbf16, #tpu.memory_space<vmem>>, vector<1x2x2x128xbf16>,
    return
  }
  func.func @transform_0(%arg0: i32, %arg1: i32, %arg2: i32) -> (i32, i32, i32, i32) {
    %c0_i32 = arith.constant 0 : i32
    %c0_i32_0 = arith.constant 0 : i32
    %c0_i32_1 = arith.constant 0 : i32
    %c0_i32_2 = arith.constant 0 : i32
    return %arg0, %c0_i32, %c0_i32_0, %c0_i32_1 : i32, i32, i32, i32
  }
  func.func @transform_1(%arg0: i32, %arg1: i32, %arg2: i32) -> (i32, i32, i32, i32) {
    %c0_i32 = arith.constant 0 : i32
    %c0_i32_0 = arith.constant 0 : i32
    %c0_i32_1 = arith.constant 0 : i32
    %c0_i32_2 = arith.constant 0 : i32
    return %arg0, %c0_i32, %c0_i32_0, %c0_i32_1 : i32, i32, i32, i32
  }
  func.func @transform_2(%arg0: i32, %arg1: i32, %arg2: i32) -> (i32, i32, i32, i32) {
    %c0_i32 = arith.constant 0 : i32
    %c0_i32_0 = arith.constant 0 : i32
    %c0_i32_1 = arith.constant 0 : i32
    %c0_i32_2 = arith.constant 0 : i32
    return %arg0, %c0_i32, %c0_i32_0, %c0_i32_1 : i32, i32, i32, i32
  }
  func.func @transform_3(%arg0: i32, %arg1: i32, %arg2: i32) -> (i32, i32, i32, i32) {
    %c0_i32 = arith.constant 0 : i32
    %c0_i32_0 = arith.constant 0 : i32
    %c0_i32_1 = arith.constant 0 : i32
    %c0_i32_2 = arith.constant 0 : i32
    return %arg0, %c0_i32, %c0_i32_0, %c0_i32_1 : i32, i32, i32, i32
  }
  func.func @transform_4(%arg0: i32, %arg1: i32, %arg2: i32) -> (i32, i32, i32) {
    %c0_i32 = arith.constant 0 : i32
    %c0_i32_0 = arith.constant 0 : i32
    %c0_i32_1 = arith.constant 0 : i32
    return %c0_i32, %c0_i32_0, %arg1 : i32, i32, i32
  }
  func.func @transform_5(%arg0: i32, %arg1: i32, %arg2: i32) -> (i32, i32) {
    %c0_i32 = arith.constant 0 : i32
    %c0_i32_0 = arith.constant 0 : i32
    return %c0_i32, %arg1 : i32, i32
  }
  func.func @transform_6(%arg0: i32, %arg1: i32, %arg2: i32) -> (i32, i32, i32, i32) {
    %c0_i32 = arith.constant 0 : i32
    %c0_i32_0 = arith.constant 0 : i32
    return %arg0, %arg2, %c0_i32, %arg1 : i32, i32, i32, i32
  }
}

module attributes {stable_mosaic.version = 11 : i64} {
  func.func @kernel(%arg0: i32, %arg1: i32, %arg2: i32, %arg3: memref<1x2x2x128xbf16, #tpu.memory_space<vmem>>, %arg4: memref<1x2x2x128xbf16, #tpu.memory_space<vmem>>, %arg5: memref<1x2x2x128xbf16, #tpu.memory_space<vmem>>, %arg6: memref<1x2x2x128xbf16, #tpu.memory_space<vmem>>, %arg7: memref<9x32x128xbf16, #tpu.memory_space<vmem>>, %arg8: memref<1x128xf32, #tpu.memory_space<vmem>>, %arg9: memref<1x1x1x128xbf16, #tpu.memory_space<vmem>>) attributes {dimension_semantics = [#tpu.dimension_semantics<parallel>, #tpu.dimension_semantics<parallel>, #tpu.dimension_semantics<parallel>], iteration_bounds = array<i64: 2, 1, 1>, scalar_prefetch = 0 : i64, scratch_operands = 0 : i64, tpu.core_type = #tpu.core_type<tc>, window_params = [{transform_indices = @transform_0, window_bounds = array<i64: 1, 2, 2, 128>}, {transform_indices = @transform_1, window_bounds = array<i64: 1, 2, 2, 128>}, {transform_indices = @transform_2, window_bounds = array<i64: 1, 2, 2, 128>}, {transform_indices = @transform_3, window_bounds = array<i64: 1, 2, 2, 128>}, {transform_indices = @transform_4, window_bounds = array<i64: 9, 32, 128>}, {transform_indices = @transform_5, window_bounds = array<i64: 1, 128>}, {transform_indices = @transform_6, window_bounds = array<i64: 1, 1, 1, 128>}]} {
    %c1_i32 = arith.constant 1 : i32
    %0 = arith.muli %arg2, %c1_i32 : i32
    %c0_i32 = arith.constant 0 : i32
    %1 = arith.addi %0, %c0_i32 : i32
    %c0 = arith.constant 0 : index
    %2 = arith.index_cast %1 : i32 to index
    %c0_0 = arith.constant 0 : index
    %c0_1 = arith.constant 0 : index
    %3 = vector.load %arg3[%c0, %2, %c0_0, %c0_1] : memref<1x2x2x128xbf16, #tpu.memory_space<vmem>>, vector<1x1x1x32xbf16>
    %4 = vector.shape_cast %3 : vector<1x1x1x32xbf16> to vector<1x1x32xbf16>
    %5 = vector.shape_cast %4 : vector<1x1x32xbf16> to vector<1x32xbf16>
    %c0_2 = arith.constant 0 : index
    %c0_3 = arith.constant 0 : index
    %c0_4 = arith.constant 0 : index
    %6 = vector.load %arg7[%c0_2, %c0_3, %c0_4] : memref<9x32x128xbf16, #tpu.memory_space<vmem>>, vector<1x32x128xbf16>
    %7 = vector.shape_cast %6 : vector<1x32x128xbf16> to vector<32x128xbf16>
    %cst = arith.constant dense<0.000000e+00> : vector<1x128xf32>
    %8 = tpu.matmul %5, %7, %cst {dimension_numbers = #tpu.dot_dimension_numbers<[1], [0], [0], [1], [0, 0, 1, 1], [], []>} : vector<1x32xbf16>, vector<32x128xbf16>, vector<1x128xf32> -> vector<1x128xf32>
    %c0_i32_5 = arith.constant 0 : i32
    %9 = arith.addi %0, %c0_i32_5 : i32
    %c0_6 = arith.constant 0 : index
    %10 = arith.index_cast %9 : i32 to index
    %c0_7 = arith.constant 0 : index
    %c0_8 = arith.constant 0 : index
    %11 = vector.load %arg4[%c0_6, %10, %c0_7, %c0_8] : memref<1x2x2x128xbf16, #tpu.memory_space<vmem>>, vector<1x1x1x32xbf16>
    %12 = vector.shape_cast %11 : vector<1x1x1x32xbf16> to vector<1x1x32xbf16>
    %13 = vector.shape_cast %12 : vector<1x1x32xbf16> to vector<1x32xbf16>
    %c1 = arith.constant 1 : index
    %c0_9 = arith.constant 0 : index
    %c0_10 = arith.constant 0 : index
    %14 = vector.load %arg7[%c1, %c0_9, %c0_10] : memref<9x32x128xbf16, #tpu.memory_space<vmem>>, vector<1x32x128xbf16>
    %15 = vector.shape_cast %14 : vector<1x32x128xbf16> to vector<32x128xbf16>
    %cst_11 = arith.constant dense<0.000000e+00> : vector<1x128xf32>
    %16 = tpu.matmul %13, %15, %cst_11 {dimension_numbers = #tpu.dot_dimension_numbers<[1], [0], [0], [1], [0, 0, 1, 1], [], []>} : vector<1x32xbf16>, vector<32x128xbf16>, vector<1x128xf32> -> vector<1x128xf32>
    %17 = arith.addf %8, %16 : vector<1x128xf32>
    %c0_i32_12 = arith.constant 0 : i32
    %18 = arith.addi %0, %c0_i32_12 : i32
    %c0_13 = arith.constant 0 : index
    %19 = arith.index_cast %18 : i32 to index
    %c1_14 = arith.constant 1 : index
    %c0_15 = arith.constant 0 : index
    %20 = vector.load %arg3[%c0_13, %19, %c1_14, %c0_15] : memref<1x2x2x128xbf16, #tpu.memory_space<vmem>>, vector<1x1x1x32xbf16>
    %21 = vector.shape_cast %20 : vector<1x1x1x32xbf16> to vector<1x1x32xbf16>
    %22 = vector.shape_cast %21 : vector<1x1x32xbf16> to vector<1x32xbf16>
    %c2 = arith.constant 2 : index
    %c0_16 = arith.constant 0 : index
    %c0_17 = arith.constant 0 : index
    %23 = vector.load %arg7[%c2, %c0_16, %c0_17] : memref<9x32x128xbf16, #tpu.memory_space<vmem>>, vector<1x32x128xbf16>
    %24 = vector.shape_cast %23 : vector<1x32x128xbf16> to vector<32x128xbf16>
    %cst_18 = arith.constant dense<0.000000e+00> : vector<1x128xf32>
    %25 = tpu.matmul %22, %24, %cst_18 {dimension_numbers = #tpu.dot_dimension_numbers<[1], [0], [0], [1], [0, 0, 1, 1], [], []>} : vector<1x32xbf16>, vector<32x128xbf16>, vector<1x128xf32> -> vector<1x128xf32>
    %26 = arith.addf %17, %25 : vector<1x128xf32>
    %c0_i32_19 = arith.constant 0 : i32
    %27 = arith.addi %0, %c0_i32_19 : i32
    %c0_20 = arith.constant 0 : index
    %28 = arith.index_cast %27 : i32 to index
    %c0_21 = arith.constant 0 : index
    %c0_22 = arith.constant 0 : index
    %29 = vector.load %arg5[%c0_20, %28, %c0_21, %c0_22] : memref<1x2x2x128xbf16, #tpu.memory_space<vmem>>, vector<1x1x1x32xbf16>
    %30 = vector.shape_cast %29 : vector<1x1x1x32xbf16> to vector<1x1x32xbf16>
    %31 = vector.shape_cast %30 : vector<1x1x32xbf16> to vector<1x32xbf16>
    %c3 = arith.constant 3 : index
    %c0_23 = arith.constant 0 : index
    %c0_24 = arith.constant 0 : index
    %32 = vector.load %arg7[%c3, %c0_23, %c0_24] : memref<9x32x128xbf16, #tpu.memory_space<vmem>>, vector<1x32x128xbf16>
    %33 = vector.shape_cast %32 : vector<1x32x128xbf16> to vector<32x128xbf16>
    %cst_25 = arith.constant dense<0.000000e+00> : vector<1x128xf32>
    %34 = tpu.matmul %31, %33, %cst_25 {dimension_numbers = #tpu.dot_dimension_numbers<[1], [0], [0], [1], [0, 0, 1, 1], [], []>} : vector<1x32xbf16>, vector<32x128xbf16>, vector<1x128xf32> -> vector<1x128xf32>
    %35 = arith.addf %26, %34 : vector<1x128xf32>
    %c0_i32_26 = arith.constant 0 : i32
    %36 = arith.addi %0, %c0_i32_26 : i32
    %c0_27 = arith.constant 0 : index
    %37 = arith.index_cast %36 : i32 to index
    %c0_28 = arith.constant 0 : index
    %c0_29 = arith.constant 0 : index
    %38 = vector.load %arg6[%c0_27, %37, %c0_28, %c0_29] : memref<1x2x2x128xbf16, #tpu.memory_space<vmem>>, vector<1x1x1x32xbf16>
    %39 = vector.shape_cast %38 : vector<1x1x1x32xbf16> to vector<1x1x32xbf16>
    %40 = vector.shape_cast %39 : vector<1x1x32xbf16> to vector<1x32xbf16>
    %c4 = arith.constant 4 : index
    %c0_30 = arith.constant 0 : index
    %c0_31 = arith.constant 0 : index
    %41 = vector.load %arg7[%c4, %c0_30, %c0_31] : memref<9x32x128xbf16, #tpu.memory_space<vmem>>, vector<1x32x128xbf16>
    %42 = vector.shape_cast %41 : vector<1x32x128xbf16> to vector<32x128xbf16>
    %cst_32 = arith.constant dense<0.000000e+00> : vector<1x128xf32>
    %43 = tpu.matmul %40, %42, %cst_32 {dimension_numbers = #tpu.dot_dimension_numbers<[1], [0], [0], [1], [0, 0, 1, 1], [], []>} : vector<1x32xbf16>, vector<32x128xbf16>, vector<1x128xf32> -> vector<1x128xf32>
    %44 = arith.addf %35, %43 : vector<1x128xf32>
    %c0_i32_33 = arith.constant 0 : i32
    %45 = arith.addi %0, %c0_i32_33 : i32
    %c0_34 = arith.constant 0 : index
    %46 = arith.index_cast %45 : i32 to index
    %c1_35 = arith.constant 1 : index
    %c0_36 = arith.constant 0 : index
    %47 = vector.load %arg5[%c0_34, %46, %c1_35, %c0_36] : memref<1x2x2x128xbf16, #tpu.memory_space<vmem>>, vector<1x1x1x32xbf16>
    %48 = vector.shape_cast %47 : vector<1x1x1x32xbf16> to vector<1x1x32xbf16>
    %49 = vector.shape_cast %48 : vector<1x1x32xbf16> to vector<1x32xbf16>
    %c5 = arith.constant 5 : index
    %c0_37 = arith.constant 0 : index
    %c0_38 = arith.constant 0 : index
    %50 = vector.load %arg7[%c5, %c0_37, %c0_38] : memref<9x32x128xbf16, #tpu.memory_space<vmem>>, vector<1x32x128xbf16>
    %51 = vector.shape_cast %50 : vector<1x32x128xbf16> to vector<32x128xbf16>
    %cst_39 = arith.constant dense<0.000000e+00> : vector<1x128xf32>
    %52 = tpu.matmul %49, %51, %cst_39 {dimension_numbers = #tpu.dot_dimension_numbers<[1], [0], [0], [1], [0, 0, 1, 1], [], []>} : vector<1x32xbf16>, vector<32x128xbf16>, vector<1x128xf32> -> vector<1x128xf32>
    %53 = arith.addf %44, %52 : vector<1x128xf32>
    %c1_i32_40 = arith.constant 1 : i32
    %54 = arith.addi %0, %c1_i32_40 : i32
    %c0_41 = arith.constant 0 : index
    %55 = arith.index_cast %54 : i32 to index
    %c0_42 = arith.constant 0 : index
    %c0_43 = arith.constant 0 : index
    %56 = vector.load %arg3[%c0_41, %55, %c0_42, %c0_43] : memref<1x2x2x128xbf16, #tpu.memory_space<vmem>>, vector<1x1x1x32xbf16>
    %57 = vector.shape_cast %56 : vector<1x1x1x32xbf16> to vector<1x1x32xbf16>
    %58 = vector.shape_cast %57 : vector<1x1x32xbf16> to vector<1x32xbf16>
    %c6 = arith.constant 6 : index
    %c0_44 = arith.constant 0 : index
    %c0_45 = arith.constant 0 : index
    %59 = vector.load %arg7[%c6, %c0_44, %c0_45] : memref<9x32x128xbf16, #tpu.memory_space<vmem>>, vector<1x32x128xbf16>
    %60 = vector.shape_cast %59 : vector<1x32x128xbf16> to vector<32x128xbf16>
    %cst_46 = arith.constant dense<0.000000e+00> : vector<1x128xf32>
    %61 = tpu.matmul %58, %60, %cst_46 {dimension_numbers = #tpu.dot_dimension_numbers<[1], [0], [0], [1], [0, 0, 1, 1], [], []>} : vector<1x32xbf16>, vector<32x128xbf16>, vector<1x128xf32> -> vector<1x128xf32>
    %62 = arith.addf %53, %61 : vector<1x128xf32>
    %c1_i32_47 = arith.constant 1 : i32
    %63 = arith.addi %0, %c1_i32_47 : i32
    %c0_48 = arith.constant 0 : index
    %64 = arith.index_cast %63 : i32 to index
    %c0_49 = arith.constant 0 : index
    %c0_50 = arith.constant 0 : index
    %65 = vector.load %arg4[%c0_48, %64, %c0_49, %c0_50] : memref<1x2x2x128xbf16, #tpu.memory_space<vmem>>, vector<1x1x1x32xbf16>
    %66 = vector.shape_cast %65 : vector<1x1x1x32xbf16> to vector<1x1x32xbf16>
    %67 = vector.shape_cast %66 : vector<1x1x32xbf16> to vector<1x32xbf16>
    %c7 = arith.constant 7 : index
    %c0_51 = arith.constant 0 : index
    %c0_52 = arith.constant 0 : index
    %68 = vector.load %arg7[%c7, %c0_51, %c0_52] : memref<9x32x128xbf16, #tpu.memory_space<vmem>>, vector<1x32x128xbf16>
    %69 = vector.shape_cast %68 : vector<1x32x128xbf16> to vector<32x128xbf16>
    %cst_53 = arith.constant dense<0.000000e+00> : vector<1x128xf32>
    %70 = tpu.matmul %67, %69, %cst_53 {dimension_numbers = #tpu.dot_dimension_numbers<[1], [0], [0], [1], [0, 0, 1, 1], [], []>} : vector<1x32xbf16>, vector<32x128xbf16>, vector<1x128xf32> -> vector<1x128xf32>
    %71 = arith.addf %62, %70 : vector<1x128xf32>
    %c1_i32_54 = arith.constant 1 : i32
    %72 = arith.addi %0, %c1_i32_54 : i32
    %c0_55 = arith.constant 0 : index
    %73 = arith.index_cast %72 : i32 to index
    %c1_56 = arith.constant 1 : index
    %c0_57 = arith.constant 0 : index
    %74 = vector.load %arg3[%c0_55, %73, %c1_56, %c0_57] : memref<1x2x2x128xbf16, #tpu.memory_space<vmem>>, vector<1x1x1x32xbf16>
    %75 = vector.shape_cast %74 : vector<1x1x1x32xbf16> to vector<1x1x32xbf16>
    %76 = vector.shape_cast %75 : vector<1x1x32xbf16> to vector<1x32xbf16>
    %c8 = arith.constant 8 : index
    %c0_58 = arith.constant 0 : index
    %c0_59 = arith.constant 0 : index
    %77 = vector.load %arg7[%c8, %c0_58, %c0_59] : memref<9x32x128xbf16, #tpu.memory_space<vmem>>, vector<1x32x128xbf16>
    %78 = vector.shape_cast %77 : vector<1x32x128xbf16> to vector<32x128xbf16>
    %cst_60 = arith.constant dense<0.000000e+00> : vector<1x128xf32>
    %79 = tpu.matmul %76, %78, %cst_60 {dimension_numbers = #tpu.dot_dimension_numbers<[1], [0], [0], [1], [0, 0, 1, 1], [], []>} : vector<1x32xbf16>, vector<32x128xbf16>, vector<1x128xf32> -> vector<1x128xf32>
    %80 = arith.addf %71, %79 : vector<1x128xf32>
    %c0_61 = arith.constant 0 : index
    %c0_62 = arith.constant 0 : index
    %81 = vector.load %arg8[%c0_61, %c0_62] : memref<1x128xf32, #tpu.memory_space<vmem>>, vector<1x128xf32>
    %82 = arith.addf %80, %81 : vector<1x128xf32>
    %cst_63 = arith.constant 0.000000e+00 : f32
    %83 = vector.broadcast %cst_63 : f32 to vector<1x128xf32>
    %84 = arith.maximumf %82, %83 : vector<1x128xf32>
    %85 = vector.shape_cast %84 : vector<1x128xf32> to vector<1x1x1x128xf32>
    %86 = arith.truncf %85 : vector<1x1x1x128xf32> to vector<1x1x1x128xbf16>
    %c0_64 = arith.constant 0 : index
    %c0_65 = arith.constant 0 : index
    %c0_66 = arith.constant 0 : index
    %c0_67 = arith.constant 0 : index
    %87 = vector.load %arg9[%c0_64, %c0_65, %c0_66, %c0_67] : memref<1x1x1x128xbf16, #tpu.memory_space<vmem>>, vector<1x1x1x128xbf16>
    tpu.vector_store %arg9[%c0_64, %c0_65, %c0_66, %c0_67], %86 {strides = array<i32>} : memref<1x1x1x128xbf16, #tpu.memory_space<vmem>>, vector<1x1x1x128xbf16>,
    return
  }
  func.func @transform_0(%arg0: i32, %arg1: i32, %arg2: i32) -> (i32, i32, i32, i32) {
    %c0_i32 = arith.constant 0 : i32
    %c0_i32_0 = arith.constant 0 : i32
    %c0_i32_1 = arith.constant 0 : i32
    %c0_i32_2 = arith.constant 0 : i32
    return %arg0, %c0_i32, %c0_i32_0, %c0_i32_1 : i32, i32, i32, i32
  }
  func.func @transform_1(%arg0: i32, %arg1: i32, %arg2: i32) -> (i32, i32, i32, i32) {
    %c0_i32 = arith.constant 0 : i32
    %c0_i32_0 = arith.constant 0 : i32
    %c0_i32_1 = arith.constant 0 : i32
    %c0_i32_2 = arith.constant 0 : i32
    return %arg0, %c0_i32, %c0_i32_0, %c0_i32_1 : i32, i32, i32, i32
  }
  func.func @transform_2(%arg0: i32, %arg1: i32, %arg2: i32) -> (i32, i32, i32, i32) {
    %c0_i32 = arith.constant 0 : i32
    %c0_i32_0 = arith.constant 0 : i32
    %c0_i32_1 = arith.constant 0 : i32
    %c0_i32_2 = arith.constant 0 : i32
    return %arg0, %c0_i32, %c0_i32_0, %c0_i32_1 : i32, i32, i32, i32
  }
  func.func @transform_3(%arg0: i32, %arg1: i32, %arg2: i32) -> (i32, i32, i32, i32) {
    %c0_i32 = arith.constant 0 : i32
    %c0_i32_0 = arith.constant 0 : i32
    %c0_i32_1 = arith.constant 0 : i32
    %c0_i32_2 = arith.constant 0 : i32
    return %arg0, %c0_i32, %c0_i32_0, %c0_i32_1 : i32, i32, i32, i32
  }
  func.func @transform_4(%arg0: i32, %arg1: i32, %arg2: i32) -> (i32, i32, i32) {
    %c0_i32 = arith.constant 0 : i32
    %c0_i32_0 = arith.constant 0 : i32
    %c0_i32_1 = arith.constant 0 : i32
    return %c0_i32, %c0_i32_0, %arg1 : i32, i32, i32
  }
  func.func @transform_5(%arg0: i32, %arg1: i32, %arg2: i32) -> (i32, i32) {
    %c0_i32 = arith.constant 0 : i32
    %c0_i32_0 = arith.constant 0 : i32
    return %c0_i32, %arg1 : i32, i32
  }
  func.func @transform_6(%arg0: i32, %arg1: i32, %arg2: i32) -> (i32, i32, i32, i32) {
    %c0_i32 = arith.constant 0 : i32
    %c0_i32_0 = arith.constant 0 : i32
    return %arg0, %arg2, %c0_i32, %arg1 : i32, i32, i32, i32
  }
}

module attributes {stable_mosaic.version = 11 : i64} {
  func.func @_linear_kernel(%arg0: i32, %arg1: memref<8x128xbf16, #tpu.memory_space<vmem>>, %arg2: memref<128x128xbf16, #tpu.memory_space<vmem>>, %arg3: memref<1x128xf32, #tpu.memory_space<vmem>>, %arg4: memref<8x128xf32, #tpu.memory_space<vmem>>) attributes {dimension_semantics = [#tpu.dimension_semantics<arbitrary>], iteration_bounds = array<i64: 1>, scalar_prefetch = 0 : i64, scratch_operands = 0 : i64, tpu.core_type = #tpu.core_type<tc>, window_params = [{pipeline_mode = #tpu.pipeline_mode<synchronous>, transform_indices = @transform_0, window_bounds = array<i64: 8, 128>}, {pipeline_mode = #tpu.pipeline_mode<synchronous>, transform_indices = @transform_1, window_bounds = array<i64: 128, 128>}, {pipeline_mode = #tpu.pipeline_mode<synchronous>, transform_indices = @transform_2, window_bounds = array<i64: 1, 128>}, {pipeline_mode = #tpu.pipeline_mode<synchronous>, transform_indices = @transform_3, window_bounds = array<i64: 8, 128>}]} {
    %c0 = arith.constant 0 : index
    %c0_0 = arith.constant 0 : index
    %0 = vector.load %arg1[%c0, %c0_0] : memref<8x128xbf16, #tpu.memory_space<vmem>>, vector<8x128xbf16>
    %c0_1 = arith.constant 0 : index
    %c0_2 = arith.constant 0 : index
    %1 = vector.load %arg2[%c0_1, %c0_2] : memref<128x128xbf16, #tpu.memory_space<vmem>>, vector<128x128xbf16>
    %cst = arith.constant dense<0.000000e+00> : vector<8x128xf32>
    %2 = tpu.matmul %0, %1, %cst {dimension_numbers = #tpu.dot_dimension_numbers<[1], [0], [0], [1], [0, 0, 1, 1], [], []>} : vector<8x128xbf16>, vector<128x128xbf16>, vector<8x128xf32> -> vector<8x128xf32>
    %c0_3 = arith.constant 0 : index
    %c0_4 = arith.constant 0 : index
    %3 = vector.load %arg3[%c0_3, %c0_4] : memref<1x128xf32, #tpu.memory_space<vmem>>, vector<1x128xf32>
    %4 = vector.broadcast %3 : vector<1x128xf32> to vector<8x128xf32>
    %5 = arith.addf %2, %4 : vector<8x128xf32>
    %c0_5 = arith.constant 0 : index
    %c0_6 = arith.constant 0 : index
    %6 = vector.load %arg4[%c0_5, %c0_6] : memref<8x128xf32, #tpu.memory_space<vmem>>, vector<8x128xf32>
    tpu.vector_store %arg4[%c0_5, %c0_6], %5 {strides = array<i32>} : memref<8x128xf32, #tpu.memory_space<vmem>>, vector<8x128xf32>,
    return
  }
  func.func @transform_0(%arg0: i32) -> (i32, i32) {
    %c0_i32 = arith.constant 0 : i32
    %c0_i32_0 = arith.constant 0 : i32
    %c0_i32_1 = arith.constant 0 : i32
    return %c0_i32, %c0_i32_0 : i32, i32
  }
  func.func @transform_1(%arg0: i32) -> (i32, i32) {
    %c0_i32 = arith.constant 0 : i32
    %c0_i32_0 = arith.constant 0 : i32
    %c0_i32_1 = arith.constant 0 : i32
    return %c0_i32, %c0_i32_0 : i32, i32
  }
  func.func @transform_2(%arg0: i32) -> (i32, i32) {
    %c0_i32 = arith.constant 0 : i32
    %c0_i32_0 = arith.constant 0 : i32
    %c0_i32_1 = arith.constant 0 : i32
    return %c0_i32, %c0_i32_0 : i32, i32
  }
  func.func @transform_3(%arg0: i32) -> (i32, i32) {
    %c0_i32 = arith.constant 0 : i32
    %c0_i32_0 = arith.constant 0 : i32
    %c0_i32_1 = arith.constant 0 : i32
    return %c0_i32, %c0_i32_0 : i32, i32
  }
}

</mosaic_0001>

<bundles_post_ra>
// kernel: _lambda_.8
= control target key start
LH: loop header
LB: loop body
LE: loop exit
PB: predicated region body
PF: predicated region fallthrough
CT: control target
= control target key end

     0   :  { %s2454_s21 = smov 0   ;;  %s2456_s22 = smov 0   ;;  %s2762_s0 = inlined_call_operand.vmem [shape: bf16[2,9,9,128], index: 0, kind: input, shape index: {}]   ;;  %s2763_s1 = inlined_call_operand.vmem [shape: bf16[2,9,9,128], index: 1, kind: input, shape index: {}]   ;;  %s2764_s2 = inlined_call_operand.vmem [shape: bf16[2,9,9,128], index: 2, kind: input, shape index: {}]   ;;  %s2765_s3 = inlined_call_operand.vmem [shape: bf16[2,9,9,128], index: 3, kind: input, shape index: {}]   ;;  %s2766_s4 = inlined_call_operand.vmem [shape: bf16[9,16,128], index: 4, kind: input, shape index: {}]   ;;  %s2767_s5 = inlined_call_operand.vmem [shape: f32[1,128], index: 5, kind: input, shape index: {}]   ;;  %s2768_s6 = inlined_call_operand.vmem [shape: bf16[2,8,8,128], index: 6, kind: output, shape index: {}]  }
   0x1   :  { %s2458_s23 = smov 0  }
   0x2 LB: > { %s35_s24 = sadd.s32 1, %s2413_s22  ;;  %p2037_p0 = scmp.ge.s32.totalorder %s2417_s23, 1  ;;  %s2417_s23 = sphi %s2458_s23, %s16_s23   ;;  %s2413_s22 = sphi %s2456_s22, %s2772_s22   ;;  %s2409_s21 = sphi %s2454_s21, %s2771_s21  }
   0x3   : > { %p37_p1 = scmp.ge.s32.totalorder %s35_s24, 2  ;;  %p282_p2 = scmp.lt.s32.totalorder %s2417_s23, 3 }
   0x5   : > { %s2774_s24 = smov (%p37_p1, %s35_s24), 0  ;;  %p283_p3 = pnand %p2037_p0, %p282_p2 }
   0x6   : > { %p341_p4 = scmp.lt.s32.totalorder (!%p283_p3), %s2409_s21, 1 }
   0x7   : > { %286 = sbr.rel (%p283_p3) target bundleno = 301 (0x12d), region = 44 }
   0xc   : > { %v2362_v0 = vld [vmem:[%s2766_s4 + $0x8] sm:$0xff]   ;;  %v2365_v1 = vld [vmem:[%s2766_s4] sm:$0xff]   ;;  %s2776_s21 = smov (!%p341_p4, %s2409_s21), 1  ;;  %v2368_v2 = vld [vmem:[%s2766_s4 + $0x10] sm:$0xff]   ;;  %vm435_vm0 = vcmask 130048  }
   0xd   : > { %2335 = vmatprep.subr.bf16.mxu1 %v2362_v0  ;;  %2245 = vmatprep.subr.bf16.mxu0 %v2362_v0  ;;  %s2484_s7 = smul.u32 72, %s2776_s21  ;;  %v2370_v5 = vld [vmem:[%s2766_s4 + $0x18] sm:$0xff]   ;;  %vm632_vm1 = vsmask.f32 3328  ;;  %v2500_v6 = vld [vmem:[%s2766_s4 + $0x20] sm:$0xff]   ;;  %v2529_v37 = vld [vmem:[%s2766_s4 + $0x28] sm:$0xff]  }
   0xe   : > { %2336 = vmatpush3.bf16.msra.mxu1 %v2362_v0  ;;  %2246 = vmatpush3.bf16.msra.mxu0 %v2362_v0  ;;  %vm633_vm2 = vsmask.f32 7440  ;;  %s2176_s14 = sshll.u32 %s2776_s21, 5 }
   0xf   : > { %2255 = vmatprep.subr.bf16.mxu1 %v2365_v1  ;;  %2265 = vmatprep.subr.bf16.mxu0 %v2368_v2  ;;  %s2490_s10 = scalar_lea.vmem %s2763_s1, %s2484_s7  ;;  %s2508_s17 = scalar_lea.vmem %s2762_s0, %s2484_s7  ;;  %vm2533_vm3 = vmor %vm632_vm1, %vm633_vm2 }
  0x10   : > { %v2363_v3 = vld [vmem:[%s2490_s10] ss:$8 sps:$4 sm:$0xff]   ;;  %v2366_v7 = vld [vmem:[%s2490_s10 + $0x10] ss:$8 sps:$4 sm:$0xff]   ;;  %v617_v11 = vld [vmem:[%s2508_s17 + $0x4] sm:$0x1]  ;;  %s2562_s26 = scalar_lea.vmem %s2764_s2, %s2484_s7  ;;  %s2583_s8 = scalar_lea.vmem %s2765_s3, %s2484_s7 }
  0x11   : > { %v2364_v4 = vld [vmem:[%s2490_s10 + $0x20] ss:$8 sps:$4 sm:$0xff]   ;;  %2247 = vmatprep.mubr.msk.bf16.mxu0 %vm435_vm0, %v2363_v3  ;;  %v2367_v8 = vld [vmem:[%s2490_s10 + $0x30] ss:$8 sps:$4 sm:$0xff]   ;;  %v619_v14 = vld [vmem:[%s2508_s17 + $0xc] sm:$0x1] }
  0x12   : > { %2251 = vmatprep.mubr.msk.bf16.mxu1 %vm435_vm0, %v2364_v4  ;;  %2248 = vmatmul.mubr.msk.bf16.vlgmr.msra.gmra.mxu0 %vm435_vm0, %v2366_v7  ;;  %v2369_v9 = vld [vmem:[%s2508_s17] ss:$8 sps:$4 sm:$0xff]   ;;  %v2371_v13 = vld [vmem:[%s2508_s17 + $0x10] ss:$8 sps:$4 sm:$0xff]   ;;  %v645_v17 = vshll.u32 %v617_v11, 16  ;;  %v659_v20 = vshll.u32 %v619_v14, 16 }
  0x13   : > { %2252 = vmatmul.mubr.msk.bf16.vlgmr.msra.gmra.mxu1 %vm435_vm0, %v2367_v8  ;;  %2266 = vmatpush3.bf16.msra.mxu0 %v2368_v2  ;;  %v616_v10 = vld [vmem:[%s2508_s17] sm:$0xf]  ;;  %v618_v12 = vld [vmem:[%s2508_s17 + $0x8] sm:$0xf]  ;;  %v620_v21 = vld [vmem:[%s2508_s17 + $0x10] sm:$0xf] }
  0x14   : > { %2256 = vmatpush3.bf16.msra.mxu1 %v2365_v1  ;;  %2257 = vmatprep.mubr.msk.bf16.mxu1 %vm435_vm0, %v2369_v9  ;;  %v636_v15 = vshrl.u32 %v616_v10, 16  ;;  %v639_v16 = vshll.u32 %v616_v10, 16  ;;  %v650_v18 = vshrl.u32 %v618_v12, 16  ;;  %v653_v19 = vshll.u32 %v618_v12, 16  ;;  %v621_v22 = vld [vmem:[%s2508_s17 + $0x14] sm:$0x1] }
  0x15   : > { %2275 = vmatprep.subr.bf16.mxu1 %v2370_v5  ;;  %2285 = vmatprep.subr.bf16.mxu0 %v2500_v6  ;;  %v647_v25 = vrot.slane %v645_v17, 5  ;;  %v622_v27 = vld [vmem:[%s2508_s17 + $0x18] sm:$0xf]  ;;  %v661_v29 = vrot.slane %v659_v20, 5  ;;  %v623_v30 = vld [vmem:[%s2508_s17 + $0x1c] sm:$0x1] }
  0x16   : > { %v638_v23 = vrot.slane %v636_v15, 4  ;;  %v641_v24 = vrot.slane %v639_v16, 5  ;;  %v652_v26 = vrot.slane %v650_v18, 4  ;;  %v655_v28 = vrot.slane %v653_v19, 5  ;;  %v2373_v47 = vld [vmem:[%s2508_s17 + $0x20] ss:$8 sps:$4 sm:$0xff]  }
  0x17   : > { %v664_v31 = vshrl.u32 %v620_v21, 16  ;;  %v667_v32 = vshll.u32 %v620_v21, 16  ;;  %v673_v34 = vshll.u32 %v621_v22, 16  ;;  %v678_v35 = vshrl.u32 %v622_v27, 16  ;;  %v2374_v53 = vld [vmem:[%s2508_s17 + $0x30] ss:$8 sps:$4 sm:$0xff]  }
  0x18   : > { %v642_v33 = vor.u32 %v641_v24, %v638_v23  ;;  %v681_v36 = vshll.u32 %v622_v27, 16  ;;  %v656_v39 = vor.u32 %v655_v28, %v652_v26  ;;  %v687_v42 = vshll.u32 %v623_v30, 16  ;;  %v624_v54 = vld [vmem:[%s2508_s17 + $0x20] sm:$0xf]  ;;  %v625_v55 = vld [vmem:[%s2508_s17 + $0x24] sm:$0x1] }
  0x19   : > { %v666_v40 = vrot.slane %v664_v31, 4  ;;  %v669_v41 = vrot.slane %v667_v32, 5  ;;  %v675_v44 = vrot.slane %v673_v34, 5  ;;  %v680_v45 = vrot.slane %v678_v35, 4  ;;  %v626_v58 = vld [vmem:[%s2508_s17 + $0x28] sm:$0xf] }
  0x1a   : > { %v643_v43 = vrot.slane %v642_v33, 4  ;;  %v683_v46 = vrot.slane %v681_v36, 5  ;;  %v657_v48 = vrot.slane %v656_v39, 4  ;;  %v689_v50 = vrot.slane %v687_v42, 5  ;;  %v627_v59 = vld [vmem:[%s2508_s17 + $0x2c] sm:$0x1] }
  0x1b   : > { %2258 = vmatmul.mubr.msk.bf16.vlgmr.msra.gmra.mxu1 %vm435_vm0, %v2371_v13  ;;  %v670_v49 = vor.u32 %v669_v41, %v666_v40  ;;  %v692_v60 = vshrl.u32 %v624_v54, 16  ;;  %v695_v63 = vshll.u32 %v624_v54, 16  ;;  %v701_v0 = vshll.u32 %v625_v55, 16  ;;  %v628_v1 = vld [vmem:[%s2508_s17 + $0x30] sm:$0xf] }
  0x1c   : > { %2276 = vmatpush3.bf16.msra.mxu1 %v2370_v5  ;;  %v648_v51 = vsel %vm2533_vm3, %v643_v43, %v647_v25  ;;  %v684_v52 = vor.u32 %v683_v46, %v680_v45  ;;  %2261 = vmatprep.mubr.msk.bf16.mxu1 %vm435_vm0, %v2373_v47  ;;  %v662_v56 = vsel %vm2533_vm3, %v657_v48, %v661_v29  ;;  %v706_v4 = vshrl.u32 %v626_v58, 16  ;;  %v629_v7 = vld [vmem:[%s2508_s17 + $0x34] sm:$0x1]  ;;  %v630_v12 = vld [vmem:[%s2508_s17 + $0x38] sm:$0xf] }
  0x1d   : > { %2295 = vmatprep.subr.bf16.mxu1 %v2529_v37  ;;  %v671_v57 = vrot.slane %v670_v49, 4  ;;  %v2066_v61 = vcombine.low %v648_v51, %v662_v56  ;;  %v694_v3 = vrot.slane %v692_v60, 4  ;;  %v709_v5 = vshll.u32 %v626_v58, 16  ;;  %v631_v16 = vld [vmem:[%s2508_s17 + $0x3c] sm:$0x1]  ;;  %v2568_v18 = vld [vmem:[%s2766_s4 + $0x30] sm:$0xff]  }
  0x1e   : > { %v685_v62 = vrot.slane %v684_v52, 4  ;;  %v697_v9 = vrot.slane %v695_v63, 5  ;;  %v703_v10 = vrot.slane %v701_v0, 5  ;;  %v715_v11 = vshll.u32 %v627_v59, 16  ;;  %v2375_v30 = vld [vmem:[%s2562_s26] ss:$8 sps:$4 sm:$0xff]  }
  0x1f   : > { %v676_v2 = vsel %vm2533_vm3, %v671_v57, %v675_v44  ;;  %2267 = vmatprep.mubr.msk.bf16.mxu0 %vm435_vm0, %v2066_v61  ;;  %v708_v14 = vrot.slane %v706_v4, 4  ;;  %v711_v15 = vrot.slane %v709_v5, 5  ;;  %v720_v17 = vshrl.u32 %v628_v1, 16  ;;  %v2377_v39 = vld [vmem:[%s2562_s26 + $0x10] ss:$8 sps:$4 sm:$0xff]  }
  0x20   : > { %v690_v8 = vsel %vm2533_vm3, %v685_v62, %v689_v50  ;;  %v698_v19 = vor.u32 %v697_v9, %v694_v3  ;;  %v717_v20 = vrot.slane %v715_v11, 5  ;;  %v723_v21 = vshll.u32 %v628_v1, 16  ;;  %v2590_v44 = vld [vmem:[%s2766_s4 + $0x38] sm:$0xff]   ;;  %v2378_v46 = vld [vmem:[%s2583_s8] ss:$8 sps:$4 sm:$0xff]  }
  0x21   : > { %v2067_v13 = vcombine.low %v676_v2, %v690_v8  ;;  %v729_v22 = vshll.u32 %v629_v7, 16  ;;  %v712_v23 = vor.u32 %v711_v15, %v708_v14  ;;  %v722_v24 = vrot.slane %v720_v17, 4  ;;  %v2381_v49 = vld [vmem:[%s2562_s26 + $0x20] ss:$8 sps:$4 sm:$0xff]   ;;  %v2382_v51 = vld [vmem:[%s2562_s26 + $0x30] ss:$8 sps:$4 sm:$0xff]  }
  0x22   : > { %v734_v25 = vshrl.u32 %v630_v12, 16  ;;  %v737_v26 = vshll.u32 %v630_v12, 16  ;;  %v699_v27 = vrot.slane %v698_v19, 4  ;;  %v725_v28 = vrot.slane %v723_v21, 5  ;;  %v1101_v52 = vld [vmem:[%s2562_s26] sm:$0xf] }
  0x23   : > { %2262 = vmatmul.mubr.msk.bf16.gmra.mxu1 %vm435_vm0, %v2374_v53  ;;  %2268 = vmatmul.mubr.msk.bf16.vlgmr.msra.gmra.mxu0 %vm435_vm0, %v2067_v13  ;;  %v743_v29 = vshll.u32 %v631_v16, 16  ;;  %v713_v31 = vrot.slane %v712_v23, 4  ;;  %v731_v36 = vrot.slane %v729_v22, 5  ;;  %v1102_v53 = vld [vmem:[%s2562_s26 + $0x4] sm:$0x1]  ;;  %v1118_v56 = vshrl.u32 %v1101_v52, 16 }
  0x24   : > { %2286 = vmatpush3.bf16.msra.mxu0 %v2500_v6  ;;  %v736_v32 = vrot.slane %v734_v25, 4  ;;  %v739_v33 = vrot.slane %v737_v26, 5  ;;  %v704_v34 = vsel %vm2533_vm3, %v699_v27, %v703_v10  ;;  %v726_v35 = vor.u32 %v725_v28, %v722_v24  ;;  %2277 = vmatprep.mubr.msk.bf16.mxu1 %vm435_vm0, %v2375_v30  ;;  %v1103_v54 = vld [vmem:[%s2562_s26 + $0x8] sm:$0xf]  ;;  %v1104_v55 = vld [vmem:[%s2562_s26 + $0xc] sm:$0x1] }
  0x25   : > { %2305 = vmatprep.subr.bf16.mxu0 %v2568_v18  ;;  %v718_v6 = vsel %vm2533_vm3, %v713_v31, %v717_v20  ;;  %v745_v41 = vrot.slane %v743_v29, 5  ;;  %v2379_v57 = vld [vmem:[%s2583_s8 + $0x10] ss:$8 sps:$4 sm:$0xff]   ;;  %v1127_v58 = vshll.u32 %v1102_v53, 16  ;;  %v1132_v59 = vshrl.u32 %v1103_v54, 16  ;;  %v2620_v17 = vld [vmem:[%s2766_s4 + $0x40] sm:$0xff]  }
  0x26   : > { %v740_v40 = vor.u32 %v739_v33, %v736_v32  ;;  %v2068_v42 = vcombine.low %v704_v34, %v718_v6  ;;  %v727_v43 = vrot.slane %v726_v35, 4  ;;  %v1135_v60 = vshll.u32 %v1103_v54, 16  ;;  %v2383_v62 = vld [vmem:[%s2583_s8 + $0x20] ss:$8 sps:$4 sm:$0xff]   ;;  %v1105_v1 = vld [vmem:[%s2562_s26 + $0x10] sm:$0xf] }
  0x27   : > { %v1141_v61 = vshll.u32 %v1104_v55, 16  ;;  %v1120_v63 = vrot.slane %v1118_v56, 4  ;;  %v1129_v2 = vrot.slane %v1127_v58, 5  ;;  %v1134_v3 = vrot.slane %v1132_v59, 4  ;;  %v1106_v7 = vld [vmem:[%s2562_s26 + $0x14] sm:$0x1] }
  0x28   : > { %v741_v45 = vrot.slane %v740_v40, 4  ;;  %2271 = vmatprep.mubr.msk.bf16.mxu0 %vm435_vm0, %v2068_v42  ;;  %v732_v47 = vsel %vm2533_vm3, %v727_v43, %v731_v36  ;;  %v1137_v4 = vrot.slane %v1135_v60, 5  ;;  %v1107_v9 = vld [vmem:[%s2562_s26 + $0x18] sm:$0xf]  ;;  %v1108_v10 = vld [vmem:[%s2562_s26 + $0x1c] sm:$0x1] }
  0x29   : > { %v1143_v5 = vrot.slane %v1141_v61, 5  ;;  %v1146_v11 = vshrl.u32 %v1105_v1, 16  ;;  %v1149_v12 = vshll.u32 %v1105_v1, 16  ;;  %v1155_v14 = vshll.u32 %v1106_v7, 16  ;;  %v2384_v29 = vld [vmem:[%s2583_s8 + $0x30] ss:$8 sps:$4 sm:$0xff]  }
  0x2a   : > { %v746_v48 = vsel %vm2533_vm3, %v741_v45, %v745_v41  ;;  %v1138_v13 = vor.u32 %v1137_v4, %v1134_v3  ;;  %v1160_v15 = vshrl.u32 %v1107_v9, 16  ;;  %v1163_v16 = vshll.u32 %v1107_v9, 16  ;;  %v2386_v34 = vld [vmem:[%s2508_s17 + $0x8] ss:$8 sps:$4 sm:$0xff]   ;;  %v1109_v35 = vld [vmem:[%s2562_s26 + $0x20] sm:$0xf] }
  0x2b   : > { %2278 = vmatmul.mubr.msk.bf16.vlgmr.msra.gmra.mxu1 %vm435_vm0, %v2377_v39  ;;  %v2069_v50 = vcombine.low %v732_v47, %v746_v48  ;;  %v1148_v20 = vrot.slane %v1146_v11, 4  ;;  %v1151_v21 = vrot.slane %v1149_v12, 5  ;;  %v1169_v22 = vshll.u32 %v1108_v10, 16  ;;  %v1110_v36 = vld [vmem:[%s2562_s26 + $0x24] sm:$0x1] }
  0x2c   : > { %2296 = vmatpush3.bf16.msra.mxu1 %v2529_v37  ;;  %2281 = vmatprep.mubr.msk.bf16.mxu1 %vm435_vm0, %v2381_v49  ;;  %v1121_v37 = vshll.u32 %v1101_v52, 16  ;;  %v1139_v23 = vrot.slane %v1138_v13, 4  ;;  %v1162_v24 = vrot.slane %v1160_v15, 4  ;;  %v1165_v25 = vrot.slane %v1163_v16, 5  ;;  %v1111_v6 = vld [vmem:[%s2562_s26 + $0x28] sm:$0xf] }
  0x2d   : > { %2315 = vmatprep.subr.bf16.mxu1 %v2590_v44  ;;  %2272 = vmatmul.mubr.msk.bf16.gmra.mxu0 %vm435_vm0, %v2069_v50  ;;  %v1152_v27 = vor.u32 %v1151_v21, %v1148_v20  ;;  %v1157_v28 = vrot.slane %v1155_v14, 5  ;;  %v1171_v32 = vrot.slane %v1169_v22, 5  ;;  %v1112_v40 = vld [vmem:[%s2562_s26 + $0x2c] sm:$0x1]  ;;  %v1174_v41 = vshrl.u32 %v1109_v35, 16 }
  0x2e   : > { %2287 = vmatprep.mubr.msk.bf16.mxu0 %vm435_vm0, %v2378_v46  ;;  %v1123_v0 = vrot.slane %v1121_v37, 5  ;;  %v1144_v30 = vsel %vm2533_vm3, %v1139_v23, %v1143_v5  ;;  %v1166_v31 = vor.u32 %v1165_v25, %v1162_v24  ;;  %v1177_v43 = vshll.u32 %v1109_v35, 16  ;;  %v1113_v47 = vld [vmem:[%s2562_s26 + $0x30] sm:$0xf]  ;;  %v1114_v52 = vld [vmem:[%s2562_s26 + $0x34] sm:$0x1] }
  0x2f   : > { %v1183_v45 = vshll.u32 %v1110_v36, 16  ;;  %v1188_v46 = vshrl.u32 %v1111_v6, 16  ;;  %v1176_v49 = vrot.slane %v1174_v41, 4  ;;  %v1191_v50 = vshll.u32 %v1111_v6, 16  ;;  %v1115_v37 = vld [vmem:[%s2562_s26 + $0x38] sm:$0xf] }
  0x30   : > { %v1124_v8 = vor.u32 %v1123_v0, %v1120_v63  ;;  %v1167_v39 = vrot.slane %v1166_v31, 4  ;;  %v1179_v54 = vrot.slane %v1177_v43, 5  ;;  %v1116_v59 = vld [vmem:[%s2562_s26 + $0x3c] sm:$0x1]  ;;  %v1202_v60 = vshrl.u32 %v1113_v47, 16 }
  0x31   : > { %v1185_v55 = vrot.slane %v1183_v45, 5  ;;  %v1190_v56 = vrot.slane %v1188_v46, 4  ;;  %v1205_v61 = vshll.u32 %v1113_v47, 16  ;;  %v1211_v63 = vshll.u32 %v1114_v52, 16  ;;  %v2387_v7 = vld [vmem:[%s2508_s17 + $0x18] ss:$8 sps:$4 sm:$0xff]  }
  0x32   : > { %v1125_v19 = vrot.slane %v1124_v8, 4  ;;  %v1172_v48 = vsel %vm2533_vm3, %v1167_v39, %v1171_v32  ;;  %v1216_v0 = vshrl.u32 %v1115_v37, 16  ;;  %v1219_v1 = vshll.u32 %v1115_v37, 16  ;;  %v2389_v20 = vld [vmem:[%s2508_s17 + $0x28] ss:$8 sps:$4 sm:$0xff]  }
  0x33   : > { %2282 = vmatmul.mubr.msk.bf16.gmra.mxu1 %vm435_vm0, %v2382_v51  ;;  %v1197_v51 = vshll.u32 %v1112_v40, 16  ;;  %v1204_v3 = vrot.slane %v1202_v60, 4  ;;  %v1207_v4 = vrot.slane %v1205_v61, 5  ;;  %v1225_v5 = vshll.u32 %v1116_v59, 16  ;;  %v2391_v23 = vld [vmem:[%s2490_s10 + $0x8] ss:$8 sps:$4 sm:$0xff]  }
  0x34   : > { %v1130_v26 = vsel %vm2533_vm3, %v1125_v19, %v1129_v2  ;;  %v1218_v9 = vrot.slane %v1216_v0, 4  ;;  %v1221_v10 = vrot.slane %v1219_v1, 5  ;;  %v1213_v13 = vrot.slane %v1211_v63, 5  ;;  %v2146_v25 = vld [vmem:[%s2508_s17 + $0x8] sm:$0xf] }
  0x35   : > { %2288 = vmatmul.mubr.msk.bf16.vlgmr.msra.gmra.mxu0 %vm435_vm0, %v2379_v57  ;;  %v2099_v33 = vcombine.low %v1130_v26, %v1144_v30  ;;  %v1193_v57 = vrot.slane %v1191_v50, 5  ;;  %v1199_v58 = vrot.slane %v1197_v51, 5  ;;  %v1208_v12 = vor.u32 %v1207_v4, %v1204_v3  ;;  %v2147_v26 = vld [vmem:[%s2508_s17 + $0xc] sm:$0x1]  ;;  %v2151_v41 = vld [vmem:[%s2508_s17 + $0x1c] sm:$0x1] }
  0x36   : > { %2306 = vmatpush3.bf16.msra.mxu0 %v2568_v18  ;;  %2291 = vmatprep.mubr.msk.bf16.mxu0 %vm435_vm0, %v2383_v62  ;;  %v1153_v18 = vrot.slane %v1152_v27, 4  ;;  %v1180_v62 = vor.u32 %v1179_v54, %v1176_v49  ;;  %v1227_v15 = vrot.slane %v1225_v5, 5  ;;  %v2148_v27 = vld [vmem:[%s2508_s17 + $0x10] sm:$0xf]  ;;  %v1602_v30 = vshrl.u32 %v2146_v25, 16 }
  0x37   : > { %2325 = vmatprep.subr.bf16.mxu0 %v2620_v17  ;;  %2297 = vmatprep.mubr.msk.bf16.mxu1 %vm435_vm0, %v2099_v33  ;;  %v1194_v2 = vor.u32 %v1193_v57, %v1190_v56  ;;  %v1209_v19 = vrot.slane %v1208_v12, 4  ;;  %v1605_v31 = vshll.u32 %v2146_v25, 16  ;;  %v1611_v32 = vshll.u32 %v2147_v26, 16  ;;  %v2152_v47 = vld [vmem:[%s2508_s17 + $0x20] sm:$0xf] }
  0x38   : > { %v1158_v42 = vsel %vm2533_vm3, %v1153_v18, %v1157_v28  ;;  %v1181_v8 = vrot.slane %v1180_v62, 4  ;;  %v2390_v18 = vld [vmem:[%s2508_s17 + $0x38] ss:$8 sps:$4 sm:$0xff]   ;;  %v1619_v35 = vshll.u32 %v2148_v27, 16  ;;  %v1604_v39 = vrot.slane %v1602_v30, 4 }
  0x39   : > { %v2100_v53 = vcombine.low %v1158_v42, %v1172_v48  ;;  %v1195_v11 = vrot.slane %v1194_v2, 4  ;;  %v1214_v24 = vsel %vm2533_vm3, %v1209_v19, %v1213_v13  ;;  %v1607_v6 = vrot.slane %v1605_v31, 5  ;;  %v2153_v50 = vld [vmem:[%s2508_s17 + $0x24] sm:$0x1]  ;;  %v2392_v59 = vld [vmem:[%s2490_s10 + $0x18] ss:$8 sps:$4 sm:$0xff]  }
  0x3a   : > { %v1186_v14 = vsel %vm2533_vm3, %v1181_v8, %v1185_v55  ;;  %v1613_v40 = vrot.slane %v1611_v32, 5  ;;  %v1621_v45 = vrot.slane %v1619_v35, 5  ;;  %v1639_v52 = vshll.u32 %v2151_v41, 16  ;;  %v2393_v1 = vld [vmem:[%s2490_s10 + $0x28] ss:$8 sps:$4 sm:$0xff]  }
  0x3b   : > { %2298 = vmatmul.mubr.msk.bf16.vlgmr.msra.gmra.mxu1 %vm435_vm0, %v2100_v53  ;;  %v1200_v16 = vsel %vm2533_vm3, %v1195_v11, %v1199_v58  ;;  %v1608_v49 = vor.u32 %v1607_v6, %v1604_v39  ;;  %v1644_v53 = vshrl.u32 %v2152_v47, 16  ;;  %v1647_v56 = vshll.u32 %v2152_v47, 16  ;;  %v2155_v8 = vld [vmem:[%s2508_s17 + $0x2c] sm:$0x1]  ;;  %v2157_v11 = vld [vmem:[%s2508_s17 + $0x34] sm:$0x1] }
  0x3c   : > { %2316 = vmatpush3.bf16.msra.mxu1 %v2590_v44  ;;  %v1222_v44 = vor.u32 %v1221_v10, %v1218_v9  ;;  %v2101_v21 = vcombine.low %v1186_v14, %v1200_v16  ;;  %v1653_v37 = vshll.u32 %v2153_v50, 16  ;;  %v1641_v62 = vrot.slane %v1639_v52, 5  ;;  %v2156_v10 = vld [vmem:[%s2508_s17 + $0x30] sm:$0xf]  ;;  %v2158_v19 = vld [vmem:[%s2508_s17 + $0x38] sm:$0xf] }
  0x3d   : > { %2292 = vmatmul.mubr.msk.bf16.gmra.mxu0 %vm435_vm0, %v2384_v29  ;;  %v2149_v29 = vld [vmem:[%s2508_s17 + $0x14] sm:$0x1]  ;;  %v1609_v57 = vrot.slane %v1608_v49, 4  ;;  %v1646_v58 = vrot.slane %v1644_v53, 4  ;;  %v1649_v63 = vrot.slane %v1647_v56, 5  ;;  %v1672_v16 = vshrl.u32 %v2156_v10, 16 }
  0x3e   : > { %2307 = vmatprep.mubr.msk.bf16.mxu0 %vm435_vm0, %v2386_v34  ;;  %v1223_v22 = vrot.slane %v1222_v44, 4  ;;  %2301 = vmatprep.mubr.msk.bf16.mxu1 %vm435_vm0, %v2101_v21  ;;  %v1616_v34 = vshrl.u32 %v2148_v27, 16  ;;  %v1625_v36 = vshll.u32 %v2149_v29, 16  ;;  %v1655_v5 = vrot.slane %v1653_v37, 5  ;;  %v2161_v29 = vld [vmem:[%s2508_s17 + $0x44] sm:$0x1] }
  0x3f   : > { %v1614_v0 = vsel %vm2533_vm3, %v1609_v57, %v1613_v40  ;;  %v1650_v4 = vor.u32 %v1649_v63, %v1646_v58  ;;  %v1674_v27 = vrot.slane %v1672_v16, 4  ;;  %v1689_v35 = vshll.u32 %v2158_v19, 16 }
  0x40   : > { %v1228_v28 = vsel %vm2533_vm3, %v1223_v22, %v1227_v15  ;;  %v1618_v43 = vrot.slane %v1616_v34, 4  ;;  %v1627_v46 = vrot.slane %v1625_v36, 5  ;;  %v1667_v15 = vshll.u32 %v2155_v8, 16 }
  0x41   : > { %v2102_v33 = vcombine.low %v1214_v24, %v1228_v28  ;;  %v1651_v44 = vrot.slane %v1650_v4, 4  ;;  %v1675_v22 = vshll.u32 %v2156_v10, 16  ;;  %v2159_v24 = vld [vmem:[%s2508_s17 + $0x3c] sm:$0x1]  ;;  %v2160_v28 = vld [vmem:[%s2508_s17 + $0x40] sm:$0xf] }
  0x42   : > { %v1622_v54 = vor.u32 %v1621_v45, %v1618_v43  ;;  %v1669_v26 = vrot.slane %v1667_v15, 5  ;;  %v1686_v34 = vshrl.u32 %v2158_v19, 16  ;;  %v1695_v36 = vshll.u32 %v2159_v24, 16 }
  0x43   : > { %2302 = vmatmul.mubr.msk.bf16.gmra.mxu1 %vm435_vm0, %v2102_v33  ;;  %v1656_v25 = vsel %vm2533_vm3, %v1651_v44, %v1655_v5  ;;  %v1677_v32 = vrot.slane %v1675_v22, 5  ;;  %v1703_v40 = vshll.u32 %v2160_v28, 16  ;;  %v1709_v41 = vshll.u32 %v2161_v29, 16 }
  0x44   : > { %2317 = vmatprep.mubr.msk.bf16.mxu1 %vm435_vm0, %v2391_v23  ;;  %v1623_v60 = vrot.slane %v1622_v54, 4  ;;  %v1681_v23 = vshll.u32 %v2157_v11, 16  ;;  %v1691_v43 = vrot.slane %v1689_v35, 5  ;;  %v1697_v50 = vrot.slane %v1695_v36, 5 }
  0x45   : > { %2308 = vmatmul.mubr.msk.bf16.vlgmr.msra.gmra.mxu0 %vm435_vm0, %v2387_v7  ;;  %v2154_v7 = vld [vmem:[%s2508_s17 + $0x28] sm:$0xf]  ;;  %v1678_v6 = vor.u32 %v1677_v32, %v1674_v27  ;;  %v1711_v53 = vrot.slane %v1709_v41, 5 }
  0x46   : > { %2326 = vmatpush3.bf16.msra.mxu0 %v2620_v17  ;;  %2311 = vmatprep.mubr.msk.bf16.mxu0 %vm435_vm0, %v2389_v20  ;;  %v2150_v17 = vld [vmem:[%s2508_s17 + $0x18] sm:$0xf]  ;;  %v1628_v2 = vsel %vm2533_vm3, %v1623_v60, %v1627_v46  ;;  %v1658_v12 = vshrl.u32 %v2154_v7, 16  ;;  %v1661_v13 = vshll.u32 %v2154_v7, 16  ;;  %v1683_v33 = vrot.slane %v1681_v23, 5  ;;  %s2747_s17 = scalar_lea.vmem %s2768_s6, %s2176_s14 }
  0x47   : > { %v1630_v42 = vshrl.u32 %v2150_v17, 16  ;;  %v1633_v48 = vshll.u32 %v2150_v17, 16  ;;  %v2164_v9 = vcombine.low %v1614_v0, %v1628_v2  ;;  %v1700_v17 = vshrl.u32 %v2160_v28, 16 }
  0x48   : > { %v1660_v20 = vrot.slane %v1658_v12, 4  ;;  %v1663_v21 = vrot.slane %v1661_v13, 5  ;;  %v1679_v47 = vrot.slane %v1678_v6, 4 }
  0x49   : > { %v1632_v51 = vrot.slane %v1630_v42, 4  ;;  %v1635_v55 = vrot.slane %v1633_v48, 5  ;;  %v1688_v42 = vrot.slane %v1686_v34, 4  ;;  %v1702_v45 = vrot.slane %v1700_v17, 4 }
  0x4a   : > { %v1664_v31 = vor.u32 %v1663_v21, %v1660_v20  ;;  %v1705_v48 = vrot.slane %v1703_v40, 5 }
  0x4b   : > { %v1636_v61 = vor.u32 %v1635_v55, %v1632_v51  ;;  %2318 = vmatmul.mubr.msk.bf16.vlgmr.msra.gmra.mxu1 %vm435_vm0, %v2392_v59  ;;  %v1692_v49 = vor.u32 %v1691_v43, %v1688_v42  ;;  %v1684_v51 = vsel %vm2533_vm3, %v1679_v47, %v1683_v33 }
  0x4c   : > { %2321 = vmatprep.mubr.msk.bf16.mxu1 %vm435_vm0, %v2393_v1  ;;  %v1665_v39 = vrot.slane %v1664_v31, 4  ;;  %v1706_v52 = vor.u32 %v1705_v48, %v1702_v45 }
  0x4d   : > { %2312 = vmatmul.mubr.msk.bf16.gmra.mxu0 %vm435_vm0, %v2390_v18  ;;  %v1637_v3 = vrot.slane %v1636_v61, 4  ;;  %v2394_v18 = vld [vmem:[%s2490_s10 + $0x38] ss:$8 sps:$4 sm:$0xff]   ;;  %v1693_v55 = vrot.slane %v1692_v49, 4 }
  0x4e   : > { %2327 = vmatprep.mubr.msk.bf16.mxu0 %vm435_vm0, %v2164_v9  ;;  %v1670_v46 = vsel %vm2533_vm3, %v1665_v39, %v1669_v26  ;;  %v1707_v56 = vrot.slane %v1706_v52, 4 }
  0x4f   : > { %v1642_v14 = vsel %vm2533_vm3, %v1637_v3, %v1641_v62  ;;  %v2166_v54 = vcombine.low %v1670_v46, %v1684_v51  ;;  %v1698_v37 = vsel %vm2533_vm3, %v1693_v55, %v1697_v50 }
  0x50   : > { %v2165_v30 = vcombine.low %v1642_v14, %v1656_v25  ;;  %v1712_v57 = vsel %vm2533_vm3, %v1707_v56, %v1711_v53 }
  0x51   : > { %v2167_v58 = vcombine.low %v1698_v37, %v1712_v57 }
  0x53   : > { %2322 = vmatmul.mubr.msk.bf16.gmra.mxu1 %vm435_vm0, %v2394_v18 }
  0x55   : > { %2328 = vmatmul.mubr.msk.bf16.vlgmr.msra.gmra.mxu0 %vm435_vm0, %v2165_v30 }
  0x56   : > { %2331 = vmatprep.mubr.msk.bf16.mxu0 %vm435_vm0, %v2166_v54 }
  0x5d   : > { %2332 = vmatmul.mubr.msk.bf16.gmra.mxu0 %vm435_vm0, %v2167_v58 }
  0xd2   : > { %v2249_v61 = vpop.f32.mrf.mxu0 }
  0xd3   : > { %v2253_v59 = vpop.f32.mrf.mxu1 }
  0xd4   : > { %v482_v0 = vpop.f32.mrf.mxu0 }
  0xd5   : > { %v2710_v60 = vpop.f32.mrf.mxu1 }
  0xd6   : > { %v2250_v3 = vpop.f32.mrf.mxu0 }
  0xd7   : > { %v2712_v62 = vpop.f32.mrf.mxu1 }
  0xd8   : > { %v485_v7 = vpop.f32.mrf.mxu0 }
  0xd9   : > { %v2714_v63 = vpop.f32.mrf.mxu1 }
  0xdb   : > { %v2259_v1 = vpop.f32.mrf.mxu1 }
  0xdc   : > { %v594_v35 = vadd.f32 %v2259_v1, %v2249_v61 }
  0xdd   : > { %v585_v2 = vpop.f32.mrf.mxu1 }
  0xde   : > { %v586_v39 = vadd.f32 %v585_v2, %v482_v0 }
  0xdf   : > { %v2260_v4 = vpop.f32.mrf.mxu1 }
  0xe0   : > { %v597_v41 = vadd.f32 %v2260_v4, %v2250_v3 }
  0xe1   : > { %v588_v5 = vpop.f32.mrf.mxu1 }
  0xe2   : > { %v589_v46 = vadd.f32 %v588_v5, %v485_v7 }
  0xe3   : > { %v2263_v38 = vpop.f32.mrf.mxu1  ;;  %v2269_v8 = vpop.f32.mrf.mxu0 }
  0xe4   : > { %v847_v40 = vadd.f32 %v2269_v8, %v594_v35  ;;  %v610_v57 = vadd.f32 %v2263_v38, %v2253_v59 }
  0xe5   : > { %v601_v9 = vpop.f32.mrf.mxu1  ;;  %v814_v10 = vpop.f32.mrf.mxu0 }
  0xe6   : > { %v845_v45 = vadd.f32 %v814_v10, %v586_v39  ;;  %v602_v3 = vadd.f32 %v601_v9, %v2710_v60 }
  0xe7   : > { %v2264_v11 = vpop.f32.mrf.mxu1  ;;  %v2270_v12 = vpop.f32.mrf.mxu0 }
  0xe8   : > { %v848_v49 = vadd.f32 %v2270_v12, %v597_v41  ;;  %v613_v12 = vadd.f32 %v2264_v11, %v2712_v62 }
  0xe9   : > { %v2716_v13 = vpop.f32.mrf.mxu1  ;;  %v817_v14 = vpop.f32.mrf.mxu0 }
  0xea   : > { %v846_v53 = vadd.f32 %v817_v14, %v589_v46  ;;  %v605_v38 = vadd.f32 %v2716_v13, %v2714_v63 }
  0xeb   : > { %v2279_v44 = vpop.f32.mrf.mxu1 }
  0xec   : > { %v971_v47 = vadd.f32 %v2279_v44, %v847_v40 }
  0xed   : > { %v938_v15 = vpop.f32.mrf.mxu1  ;;  %v2273_v16 = vpop.f32.mrf.mxu0 }
  0xee   : > { %v969_v50 = vadd.f32 %v938_v15, %v845_v45  ;;  %v851_v10 = vadd.f32 %v2273_v16, %v610_v57 }
  0xef   : > { %v2280_v19 = vpop.f32.mrf.mxu1  ;;  %v830_v20 = vpop.f32.mrf.mxu0 }
  0xf0   : > { %v972_v55 = vadd.f32 %v2280_v19, %v848_v49  ;;  %v849_v59 = vadd.f32 %v830_v20, %v602_v3 }
  0xf1   : > { %v941_v21 = vpop.f32.mrf.mxu1  ;;  %v2274_v22 = vpop.f32.mrf.mxu0 }
  0xf2   : > { %v970_v61 = vadd.f32 %v941_v21, %v846_v53 }
  0xf3   : > { %v2283_v23 = vpop.f32.mrf.mxu1  ;;  %v2718_v24 = vpop.f32.mrf.mxu0 }
  0xf4   : > { %v975_v21 = vadd.f32 %v2283_v23, %v851_v10  ;;  %v850_v11 = vadd.f32 %v2718_v24, %v605_v38 }
  0xf5   : > { %v954_v25 = vpop.f32.mrf.mxu1  ;;  %v2289_v26 = vpop.f32.mrf.mxu0 }
  0xf6   : > { %v1095_v54 = vadd.f32 %v2289_v26, %v971_v47  ;;  %v973_v35 = vadd.f32 %v954_v25, %v849_v59 }
  0xf7   : > { %v2720_v27 = vpop.f32.mrf.mxu1  ;;  %v1062_v28 = vpop.f32.mrf.mxu0 }
  0xf8   : > { %v1093_v58 = vadd.f32 %v1062_v28, %v969_v50 }
  0xf9   : > { %v2290_v29 = vpop.f32.mrf.mxu0  ;;  %v2722_v30 = vpop.f32.mrf.mxu1 }
  0xfa   : > { %v1096_v4 = vadd.f32 %v2290_v29, %v972_v55 }
  0xfb   : > { %v1065_v31 = vpop.f32.mrf.mxu0  ;;  %v2299_v33 = vpop.f32.mrf.mxu1 }
  0xfc   : > { %v1329_v0 = vadd.f32 %v2299_v33, %v1095_v54  ;;  %v1094_v14 = vadd.f32 %v1065_v31, %v970_v61 }
  0xfd   : > { %v2293_v32 = vpop.f32.mrf.mxu0  ;;  %v1296_v34 = vpop.f32.mrf.mxu1 }
  0xfe   : > { %v1327_v5 = vadd.f32 %v1296_v34, %v1093_v58  ;;  %v852_v34 = vadd.f32 %v2274_v22, %v613_v12  ;;  %v1099_v31 = vadd.f32 %v2293_v32, %v975_v21  ;;  %v2173_v22 = vld [vmem:[%s2767_s5] ss:$0 sm:$0xff] }
  0xff   : > { %v2724_v18 = vpop.f32.mrf.mxu0  ;;  %v2300_v17 = vpop.f32.mrf.mxu1 }
 0x100   : > { %v1330_v15 = vadd.f32 %v2300_v17, %v1096_v4  ;;  %v976_v17 = vadd.f32 %v2720_v27, %v852_v34  ;;  %v1097_v23 = vadd.f32 %v2724_v18, %v973_v35 }
 0x101   : > { %v2726_v36 = vpop.f32.mrf.mxu0  ;;  %v1299_v43 = vpop.f32.mrf.mxu1 }
 0x102   : > { %v1328_v33 = vadd.f32 %v1299_v43, %v1094_v14  ;;  %v1100_v27 = vadd.f32 %v2726_v36, %v976_v17 }
 0x103   : > { %v2728_v6 = vpop.f32.mrf.mxu0  ;;  %v2303_v52 = vpop.f32.mrf.mxu1 }
 0x104   : > { %v1333_v43 = vadd.f32 %v2303_v52, %v1099_v31 }
 0x105   : > { %v2309_v42 = vpop.f32.mrf.mxu0  ;;  %v1312_v37 = vpop.f32.mrf.mxu1 }
 0x106   : > { %v1455_v44 = vadd.f32 %v2309_v42, %v1329_v0  ;;  %v974_v42 = vadd.f32 %v2722_v30, %v850_v11  ;;  %v1331_v46 = vadd.f32 %v1312_v37, %v1097_v23 }
 0x107   : > { %v1422_v48 = vpop.f32.mrf.mxu0  ;;  %v2304_v2 = vpop.f32.mrf.mxu1 }
 0x108   : > { %v1453_v28 = vadd.f32 %v1422_v48, %v1327_v5  ;;  %v1098_v18 = vadd.f32 %v2728_v6, %v974_v42 }
 0x109   : > { %v2310_v51 = vpop.f32.mrf.mxu0  ;;  %v1315_v8 = vpop.f32.mrf.mxu1 }
 0x10a   : > { %v1456_v16 = vadd.f32 %v2310_v51, %v1330_v15  ;;  %v1334_v51 = vadd.f32 %v2304_v2, %v1100_v27  ;;  %v1332_v58 = vadd.f32 %v1315_v8, %v1098_v18 }
 0x10b   : > { %v1425_v56 = vpop.f32.mrf.mxu0  ;;  %v2319_v26 = vpop.f32.mrf.mxu1 }
 0x10c   : > { %v1579_v9 = vadd.f32 %v2319_v26, %v1455_v44  ;;  %v1454_v40 = vadd.f32 %v1425_v56, %v1328_v33 }
 0x10d   : > { %v2313_v1 = vpop.f32.mrf.mxu0  ;;  %v1546_v29 = vpop.f32.mrf.mxu1 }
 0x10e   : > { %v1577_v39 = vadd.f32 %v1546_v29, %v1453_v28  ;;  %v1459_v30 = vadd.f32 %v2313_v1, %v1333_v43 }
 0x10f   : > { %v1438_v7 = vpop.f32.mrf.mxu0  ;;  %v2320_v62 = vpop.f32.mrf.mxu1 }
 0x110   : > { %v1580_v63 = vadd.f32 %v2320_v62, %v1456_v16  ;;  %v1457_v57 = vadd.f32 %v1438_v7, %v1331_v46 }
 0x111   : > { %v2314_v19 = vpop.f32.mrf.mxu0  ;;  %v1549_v13 = vpop.f32.mrf.mxu1 }
 0x112   : > { %v1578_v32 = vadd.f32 %v1549_v13, %v1454_v40  ;;  %v1460_v3 = vadd.f32 %v2314_v19, %v1334_v51 }
 0x113   : > { %v1441_v60 = vpop.f32.mrf.mxu0  ;;  %v2323_v45 = vpop.f32.mrf.mxu1 }
 0x114   : > { %v1583_v61 = vadd.f32 %v2323_v45, %v1459_v30  ;;  %v1458_v7 = vadd.f32 %v1441_v60, %v1332_v58 }
 0x115   : > { %v2329_v20 = vpop.f32.mrf.mxu0  ;;  %v1562_v50 = vpop.f32.mrf.mxu1 }
 0x116   : > { %v1813_v41 = vadd.f32 %v2329_v20, %v1579_v9  ;;  %v1581_v6 = vadd.f32 %v1562_v50, %v1457_v57 }
 0x117   : > { %v1780_v25 = vpop.f32.mrf.mxu0  ;;  %v2324_v56 = vpop.f32.mrf.mxu1 }
 0x118   : > { %v1811_v24 = vadd.f32 %v1780_v25, %v1577_v39  ;;  %v1828_v48 = vadd.f32 %v2173_v22, %v1813_v41  ;;  %v1584_v12 = vadd.f32 %v2324_v56, %v1460_v3 }
 0x119   : > { %v2330_v47 = vpop.f32.mrf.mxu0  ;;  %v1565_v10 = vpop.f32.mrf.mxu1 }
 0x11a   : > { %v1814_v49 = vadd.f32 %v2330_v47, %v1580_v63  ;;  %v1826_v53 = vadd.f32 %v2173_v22, %v1811_v24  ;;  %v1836_v0 = vmax.f32 %v1828_v48, 0.0  ;;  %v1582_v19 = vadd.f32 %v1565_v10, %v1458_v7 }
 0x11b   : > { %v1783_v52 = vpop.f32.mrf.mxu0 }
 0x11c   : > { %v1829_v54 = vadd.f32 %v2173_v22, %v1814_v49  ;;  %v1812_v55 = vadd.f32 %v1783_v52, %v1578_v32  ;;  %v1834_v1 = vmax.f32 %v1826_v53, 0.0 }
 0x11d   : > { %v2333_v5 = vpop.f32.mrf.mxu0 }
 0x11e   : > { %v1837_v36 = vmax.f32 %v1829_v54, 0.0  ;;  %v1827_v37 = vadd.f32 %v2173_v22, %v1812_v55  ;;  %v1817_v8 = vadd.f32 %v2333_v5, %v1583_v61 }
 0x11f   : > { %v1796_v44 = vpop.f32.mrf.mxu0 }
 0x120   : > { %v2185_v2 = vpack.c.bf16 %v1837_v36, %v1836_v0  ;;  %v1835_v4 = vmax.f32 %v1827_v37, 0.0  ;;  %v1815_v15 = vadd.f32 %v1796_v44, %v1581_v6  ;;  %v1832_v59 = vadd.f32 %v2173_v22, %v1817_v8 }
 0x121   : > { %v2334_v26 = vpop.f32.mrf.mxu0 }
 0x122   : > { %2197 = vst [vmem:[%s2747_s17 + $0x8] sm:$0xff] %v2185_v2   ;;  %v2180_v14 = vpack.c.bf16 %v1835_v4, %v1834_v1  ;;  %v1818_v38 = vadd.f32 %v2334_v26, %v1584_v12  ;;  %v1830_v28 = vadd.f32 %v2173_v22, %v1815_v15  ;;  %v1840_v29 = vmax.f32 %v1832_v59, 0.0 }
 0x123   : > { %v1799_v21 = vpop.f32.mrf.mxu0 }
 0x124   : > { %2181 = vst [vmem:[%s2747_s17] sm:$0xff] %v2180_v14   ;;  %v1833_v33 = vadd.f32 %v2173_v22, %v1818_v38  ;;  %v1816_v9 = vadd.f32 %v1799_v21, %v1582_v19  ;;  %v1838_v35 = vmax.f32 %v1830_v28, 0.0 }
 0x126   : > { %v1841_v34 = vmax.f32 %v1833_v33, 0.0  ;;  %v1831_v60 = vadd.f32 %v2173_v22, %v1816_v9 }
 0x128   : > { %v2195_v16 = vpack.c.bf16 %v1841_v34, %v1840_v29  ;;  %v1839_v39 = vmax.f32 %v1831_v60, 0.0 }
 0x12a   : > { %2199 = vst [vmem:[%s2747_s17 + $0x18] sm:$0xff] %v2195_v16   ;;  %v2190_v62 = vpack.c.bf16 %v1839_v39, %v1838_v35 }
 0x12c   : > { %2198 = vst [vmem:[%s2747_s17 + $0x10] sm:$0xff] %v2190_v62  }
 0x12d PF: > { %s16_s23 = sadd.s32 1, %s2417_s23   ;;  %s2771_s21 = smov %s2413_s22 }
 0x12e   : > { %p13_p5 = scmp.ge.s32.totalorder %s16_s23, 4   ;;  %s2772_s22 = smov %s2774_s24 }
 0x130   :  { %15 = sbr.rel (!%p13_p5) target bundleno = 2 (0x2), region = 103 }

// kernel: _lambda_.9
= control target key start
LH: loop header
LB: loop body
LE: loop exit
PB: predicated region body
PF: predicated region fallthrough
CT: control target
= control target key end

     0   :  { %s2408_s12 = smov 0   ;;  %s2410_s13 = smov 0   ;;  %s2922_s0 = inlined_call_operand.vmem [shape: bf16[2,10,10,128], index: 0, kind: input, shape index: {}]   ;;  %s2923_s1 = inlined_call_operand.vmem [shape: bf16[9,16,128], index: 1, kind: input, shape index: {}]   ;;  %s2924_s2 = inlined_call_operand.vmem [shape: f32[1,128], index: 2, kind: input, shape index: {}]   ;;  %s2925_s3 = inlined_call_operand.vmem [shape: bf16[2,8,8,128], index: 3, kind: output, shape index: {}]  }
   0x1   :  { %s2412_s14 = smov 0  }
   0x2 LB: > { %s32_s15 = sadd.s32 1, %s2382_s13  ;;  %p1965_p0 = scmp.ge.s32.totalorder %s2386_s14, 1  ;;  %s2386_s14 = sphi %s2412_s14, %s13_s14   ;;  %s2382_s13 = sphi %s2410_s13, %s2931_s13   ;;  %s2378_s12 = sphi %s2408_s12, %s2930_s12  }
   0x3   : > { %p34_p1 = scmp.ge.s32.totalorder %s32_s15, 2  ;;  %p177_p2 = scmp.lt.s32.totalorder %s2386_s14, 3 }
   0x5   : > { %s2933_s15 = smov (%p34_p1, %s32_s15), 0  ;;  %p178_p3 = pnand %p1965_p0, %p177_p2 }
   0x6   : > { %p215_p4 = scmp.lt.s32.totalorder (!%p178_p3), %s2378_s12, 1 }
   0x7   : > { %181 = sbr.rel (%p178_p3) target bundleno = 318 (0x13e), region = 32 }
   0xc   : > { %v2343_v0 = vld [vmem:[%s2923_s1 + $0x8] sm:$0xff]   ;;  %v2432_v1 = vld [vmem:[%s2923_s1] sm:$0xff]   ;;  %s2935_s12 = smov (!%p215_p4, %s2378_s12), 1  ;;  %v2439_v2 = vld [vmem:[%s2923_s1 + $0x10] sm:$0xff]   ;;  %vm263_vm0 = vsmask.f32 3328 }
   0xd   : > { %2316 = vmatprep.subr.bf16.mxu1 %v2343_v0  ;;  %2226 = vmatprep.subr.bf16.mxu0 %v2343_v0  ;;  %s2318_s22 = smul.u32 80, %s2935_s12  ;;  %vm264_vm1 = vsmask.f32 7440  ;;  %vm399_vm2 = vcmask 130048   ;;  %vm604_vm4 = vcmask 1042432   ;;  %vm605_vm5 = vcmask 1046532  }
   0xe   : > { %2317 = vmatpush3.bf16.msra.mxu1 %v2343_v0  ;;  %2227 = vmatpush3.bf16.msra.mxu0 %v2343_v0  ;;  %vm2490_vm3 = vmor %vm263_vm0, %vm264_vm1  ;;  %s2157_s17 = sshll.u32 %s2935_s12, 5 }
   0xf   : > { %2236 = vmatprep.subr.bf16.mxu1 %v2432_v1  ;;  %2246 = vmatprep.subr.bf16.mxu0 %v2439_v2  ;;  %s2447_s25 = scalar_lea.vmem %s2922_s0, %s2318_s22  ;;  %vm2556_vm6 = vmor %vm604_vm4, %vm605_vm5  ;;  %s238_s20 = scalar_lea.vmem %s2925_s3, %s2157_s17 }
  0x10   : > { %v2450_v3 = vld [vmem:[%s2447_s25] sm:$0xf]  ;;  %v2453_v4 = vld [vmem:[%s2447_s25 + $0x8] sm:$0xf]  ;;  %v2456_v5 = vld [vmem:[%s2447_s25 + $0x4] sm:$0x1] }
  0x11   : > { %v2459_v6 = vld [vmem:[%s2447_s25 + $0xc] sm:$0x1]  ;;  %v267_v7 = vshrl.u32 %v2450_v3, 16  ;;  %v270_v8 = vshll.u32 %v2450_v3, 16  ;;  %v276_v9 = vshll.u32 %v2456_v5, 16  ;;  %v281_v10 = vshrl.u32 %v2453_v4, 16 }
  0x12   : > { %v284_v11 = vshll.u32 %v2453_v4, 16  ;;  %v290_v12 = vshll.u32 %v2459_v6, 16  ;;  %v609_v13 = vrot.slane %v2456_v5, 5  ;;  %v613_v14 = vrot.slane %v2459_v6, 5  ;;  %v2470_v15 = vld [vmem:[%s2447_s25 + $0x20] sm:$0xf] }
  0x13   : > { %v269_v16 = vrot.slane %v267_v7, 4  ;;  %v272_v17 = vrot.slane %v270_v8, 5  ;;  %v278_v18 = vrot.slane %v276_v9, 5  ;;  %v283_v19 = vrot.slane %v281_v10, 4  ;;  %v2473_v20 = vld [vmem:[%s2447_s25 + $0x28] sm:$0xf] }
  0x14   : > { %v286_v21 = vrot.slane %v284_v11, 5  ;;  %v292_v22 = vrot.slane %v290_v12, 5  ;;  %v2476_v23 = vld [vmem:[%s2447_s25 + $0x24] sm:$0x1]  ;;  %v2479_v24 = vld [vmem:[%s2447_s25 + $0x2c] sm:$0x1]  ;;  %v1980_v25 = vcombine.low %v2450_v3, %v2453_v4  ;;  %v1982_v26 = vcombine.low %v2470_v15, %v2473_v20 }
  0x15   : > { %v273_v27 = vor.u32 %v272_v17, %v269_v16  ;;  %v323_v28 = vshrl.u32 %v2470_v15, 16  ;;  %v326_v29 = vshll.u32 %v2470_v15, 16  ;;  %v332_v30 = vshll.u32 %v2476_v23, 16  ;;  %v2498_v36 = vld [vmem:[%s2447_s25 + $0x10] sm:$0xf] }
  0x16   : > { %v287_v32 = vor.u32 %v286_v21, %v283_v19  ;;  %v337_v33 = vshrl.u32 %v2473_v20, 16  ;;  %v340_v34 = vshll.u32 %v2473_v20, 16  ;;  %v346_v35 = vshll.u32 %v2479_v24, 16  ;;  %v2501_v41 = vld [vmem:[%s2447_s25 + $0x18] sm:$0xf] }
  0x17   : > { %v274_v37 = vrot.slane %v273_v27, 4  ;;  %v325_v38 = vrot.slane %v323_v28, 4  ;;  %v328_v39 = vrot.slane %v326_v29, 5  ;;  %v334_v40 = vrot.slane %v332_v30, 5  ;;  %v2504_v46 = vld [vmem:[%s2447_s25 + $0x14] sm:$0x1] }
  0x18   : > { %v288_v42 = vrot.slane %v287_v32, 4  ;;  %v339_v43 = vrot.slane %v337_v33, 4  ;;  %v342_v44 = vrot.slane %v340_v34, 5  ;;  %v348_v45 = vrot.slane %v346_v35, 5  ;;  %v2513_v53 = vld [vmem:[%s2447_s25 + $0x1c] sm:$0x1] }
  0x19   : > { %v279_v47 = vsel %vm2490_vm3, %v274_v37, %v278_v18  ;;  %v329_v48 = vor.u32 %v328_v39, %v325_v38  ;;  %v625_v49 = vrot.slane %v2476_v23, 5  ;;  %v629_v50 = vrot.slane %v2479_v24, 5  ;;  %v2520_v60 = vld [vmem:[%s2447_s25 + $0x30] sm:$0xf]  ;;  %v2524_v7 = vld [vmem:[%s2447_s25 + $0x38] sm:$0xf] }
  0x1a   : > { %v293_v51 = vsel %vm2490_vm3, %v288_v42, %v292_v22  ;;  %v343_v52 = vor.u32 %v342_v44, %v339_v43  ;;  %v295_v54 = vshrl.u32 %v2498_v36, 16  ;;  %v298_v55 = vshll.u32 %v2498_v36, 16  ;;  %v2531_v12 = vld [vmem:[%s2447_s25 + $0x34] sm:$0x1]  ;;  %v2537_v21 = vld [vmem:[%s2447_s25 + $0x3c] sm:$0x1] }
  0x1b   : > { %v1971_v56 = vcombine.low %v279_v47, %v293_v51  ;;  %v330_v57 = vrot.slane %v329_v48, 4  ;;  %v304_v58 = vshll.u32 %v2504_v46, 16  ;;  %v309_v59 = vshrl.u32 %v2501_v41, 16  ;;  %v580_v22 = vld [vmem:[%s2447_s25] sm:$0xe] }
  0x1c   : > { %v344_v61 = vrot.slane %v343_v52, 4  ;;  %v297_v62 = vrot.slane %v295_v54, 4  ;;  %v300_v63 = vrot.slane %v298_v55, 5  ;;  %v312_v0 = vshll.u32 %v2501_v41, 16  ;;  %v581_v32 = vld [vmem:[%s2447_s25 + $0x8] sm:$0xe] }
  0x1d   : > { %2228 = vmatprep.mubr.msk.bf16.mxu0 %vm399_vm2, %v1971_v56  ;;  %v335_v8 = vsel %vm2490_vm3, %v330_v57, %v334_v40  ;;  %v306_v9 = vrot.slane %v304_v58, 5  ;;  %v311_v10 = vrot.slane %v309_v59, 4  ;;  %v318_v11 = vshll.u32 %v2513_v53, 16  ;;  %v582_v38 = vld [vmem:[%s2447_s25 + $0x10] sm:$0xe] }
  0x1e   : > { %v349_v16 = vsel %vm2490_vm3, %v344_v61, %v348_v45  ;;  %v301_v17 = vor.u32 %v300_v63, %v297_v62  ;;  %v314_v18 = vrot.slane %v312_v0, 5  ;;  %v617_v19 = vrot.slane %v2504_v46, 5  ;;  %v583_v44 = vld [vmem:[%s2447_s25 + $0x18] sm:$0xe]  ;;  %v584_v45 = vld [vmem:[%s2447_s25 + $0x20] sm:$0xe] }
  0x1f   : > { %v1973_v27 = vcombine.low %v335_v8, %v349_v16  ;;  %v320_v28 = vrot.slane %v318_v11, 5  ;;  %v621_v29 = vrot.slane %v2513_v53, 5  ;;  %v351_v30 = vshrl.u32 %v2520_v60, 16  ;;  %v585_v62 = vld [vmem:[%s2447_s25 + $0x28] sm:$0xe] }
  0x20   : > { %v302_v33 = vrot.slane %v301_v17, 4  ;;  %v315_v34 = vor.u32 %v314_v18, %v311_v10  ;;  %v354_v35 = vshll.u32 %v2520_v60, 16  ;;  %v360_v37 = vshll.u32 %v2531_v12, 16  ;;  %v2349_v10 = vld [vmem:[%s2923_s1 + $0x20] sm:$0xff]   ;;  %v586_v11 = vld [vmem:[%s2447_s25 + $0x30] sm:$0xe] }
  0x21   : > { %2232 = vmatprep.mubr.msk.bf16.mxu1 %vm399_vm2, %v1973_v27  ;;  %v353_v39 = vrot.slane %v351_v30, 4  ;;  %v365_v40 = vshrl.u32 %v2524_v7, 16  ;;  %v368_v42 = vshll.u32 %v2524_v7, 16  ;;  %v374_v43 = vshll.u32 %v2537_v21, 16  ;;  %v587_v5 = vld [vmem:[%s2447_s25 + $0x38] sm:$0xe] }
  0x22   : > { %v307_v46 = vsel %vm2490_vm3, %v302_v33, %v306_v9  ;;  %v316_v47 = vrot.slane %v315_v34, 4  ;;  %v356_v48 = vrot.slane %v354_v35, 5  ;;  %v362_v51 = vrot.slane %v360_v37, 5  ;;  %v2594_v34 = vld [vmem:[%s2447_s25 + $0xc] sm:$0x1] }
  0x23   : > { %v367_v53 = vrot.slane %v365_v40, 4  ;;  %v370_v54 = vrot.slane %v368_v42, 5  ;;  %v376_v55 = vrot.slane %v374_v43, 5  ;;  %v1989_v56 = vrot.slane %v580_v22, 9  ;;  %v2029_v37 = vld [vmem:[%s2447_s25 + $0x10] sm:$0xf] }
  0x24   : > { %v321_v57 = vsel %vm2490_vm3, %v316_v47, %v320_v28  ;;  %v357_v58 = vor.u32 %v356_v48, %v353_v39  ;;  %v1990_v59 = vrot.slane %v581_v32, 9  ;;  %v1981_v61 = vcombine.low %v2498_v36, %v2501_v41  ;;  %v2352_v15 = vld [vmem:[%s2447_s25 + $0x8] ss:$8 sps:$4 sm:$0xff]  }
  0x25   : > { %v1972_v63 = vcombine.low %v307_v46, %v321_v57  ;;  %v371_v0 = vor.u32 %v370_v54, %v367_v53  ;;  %v610_v8 = vsel %vm2556_vm6, %v1989_v56, %v609_v13  ;;  %v1991_v9 = vrot.slane %v582_v38, 9  ;;  %v2610_v38 = vld [vmem:[%s2447_s25 + $0x14] sm:$0x1] }
  0x26   : > { %v358_v16 = vrot.slane %v357_v58, 4  ;;  %v614_v17 = vsel %vm2556_vm6, %v1990_v59, %v613_v14  ;;  %v1992_v18 = vrot.slane %v583_v44, 9  ;;  %v1993_v22 = vrot.slane %v584_v45, 9  ;;  %v2031_v44 = vld [vmem:[%s2447_s25 + $0x18] sm:$0xf]  ;;  %v2639_v59 = vld [vmem:[%s2923_s1 + $0x30] sm:$0xff]  }
  0x27   : > { %2229 = vmatmul.mubr.msk.bf16.vlgmr.msra.gmra.mxu0 %vm399_vm2, %v1972_v63  ;;  %v372_v13 = vrot.slane %v371_v0, 4  ;;  %v1999_v27 = vcombine.low %v610_v8, %v614_v17  ;;  %v618_v28 = vsel %vm2556_vm6, %v1991_v9, %v617_v19  ;;  %v1994_v30 = vrot.slane %v585_v62, 9  ;;  %v2027_v19 = vld [vmem:[%s2447_s25 + $0x8] sm:$0xf]  ;;  %v2615_v45 = vld [vmem:[%s2447_s25 + $0x1c] sm:$0x1] }
  0x28   : > { %v363_v6 = vsel %vm2490_vm3, %v358_v16, %v362_v51  ;;  %2247 = vmatpush3.bf16.msra.mxu0 %v2439_v2  ;;  %v622_v14 = vsel %vm2556_vm6, %v1992_v18, %v621_v29  ;;  %v626_v32 = vsel %vm2556_vm6, %v1993_v22, %v625_v49  ;;  %v1983_v33 = vcombine.low %v2520_v60, %v2524_v7  ;;  %v2602_v2 = vld [vmem:[%s2923_s1 + $0x18] sm:$0xff]   ;;  %v2634_v58 = vld [vmem:[%s2447_s25 + $0x24] sm:$0x1]  ;;  %v2035_v9 = vld [vmem:[%s2447_s25 + $0x28] sm:$0xf] }
  0x29   : > { %v377_v35 = vsel %vm2490_vm3, %v372_v13, %v376_v55  ;;  %2248 = vmatprep.mubr.msk.bf16.mxu0 %vm399_vm2, %v1999_v27  ;;  %v2000_v23 = vcombine.low %v618_v28, %v622_v14  ;;  %2266 = vmatprep.subr.bf16.mxu0 %v2349_v10  ;;  %v630_v49 = vsel %vm2556_vm6, %v1994_v30, %v629_v50  ;;  %v1995_v29 = vrot.slane %v586_v11, 9  ;;  %v2033_v50 = vld [vmem:[%s2447_s25 + $0x20] sm:$0xf]  ;;  %v2650_v16 = vld [vmem:[%s2923_s1 + $0x28] sm:$0xff]   ;;  %v2056_v7 = vld [vmem:[%s2447_s25 + $0x18] sm:$0xe] }
  0x2a   : > { %v1974_v39 = vcombine.low %v363_v6, %v377_v35  ;;  %v2001_v40 = vcombine.low %v626_v32, %v630_v49  ;;  %v633_v42 = vrot.slane %v2531_v12, 5  ;;  %v1996_v43 = vrot.slane %v587_v5, 9  ;;  %v2654_v5 = vld [vmem:[%s2447_s25 + $0x2c] sm:$0x1] }
  0x2b   : > { %v637_v46 = vrot.slane %v2537_v21, 5  ;;  %v888_v47 = vshrl.u32 %v2027_v19, 16  ;;  %v891_v24 = vshll.u32 %v2027_v19, 16  ;;  %v897_v48 = vshll.u32 %v2594_v34, 16 }
  0x2c   : > { %2233 = vmatmul.mubr.msk.bf16.vlgmr.msra.gmra.mxu1 %vm399_vm2, %v1974_v39  ;;  %v2623_v51 = vsel %vm2556_vm6, %v1995_v29, %v633_v42  ;;  %v902_v53 = vshrl.u32 %v2029_v37, 16  ;;  %v905_v12 = vshll.u32 %v2029_v37, 16  ;;  %v911_v54 = vshll.u32 %v2610_v38, 16 }
  0x2d   : > { %2237 = vmatpush3.bf16.msra.mxu1 %v2432_v1  ;;  %2238 = vmatprep.mubr.msk.bf16.mxu1 %vm399_vm2, %v1980_v25  ;;  %v638_v21 = vsel %vm2556_vm6, %v1996_v43, %v637_v46  ;;  %v890_v55 = vrot.slane %v888_v47, 4  ;;  %v893_v56 = vrot.slane %v891_v24, 5  ;;  %v899_v57 = vrot.slane %v897_v48, 5  ;;  %v2677_v47 = vld [vmem:[%s2447_s25 + $0x3c] sm:$0x1] }
  0x2e   : > { %2256 = vmatprep.subr.bf16.mxu1 %v2602_v2  ;;  %v2002_v1 = vcombine.low %v2623_v51, %v638_v21  ;;  %v904_v3 = vrot.slane %v902_v53, 4  ;;  %v907_v4 = vrot.slane %v905_v12, 5  ;;  %v913_v25 = vrot.slane %v911_v54, 5  ;;  %v2041_v53 = vld [vmem:[%s2447_s25 + $0x40] sm:$0xf] }
  0x2f   : > { %2249 = vmatmul.mubr.msk.bf16.vlgmr.msra.gmra.mxu0 %vm399_vm2, %v2000_v23  ;;  %v894_v62 = vor.u32 %v893_v56, %v890_v55  ;;  %v916_v63 = vshrl.u32 %v2031_v44, 16  ;;  %v919_v0 = vshll.u32 %v2031_v44, 16  ;;  %v925_v8 = vshll.u32 %v2615_v45, 16  ;;  %v2039_v44 = vld [vmem:[%s2447_s25 + $0x38] sm:$0xf] }
  0x30   : > { %2267 = vmatpush3.bf16.msra.mxu0 %v2349_v10  ;;  %2252 = vmatprep.mubr.msk.bf16.mxu0 %vm399_vm2, %v2001_v40  ;;  %v908_v11 = vor.u32 %v907_v4, %v904_v3  ;;  %v930_v17 = vshrl.u32 %v2033_v50, 16  ;;  %v933_v18 = vshll.u32 %v2033_v50, 16  ;;  %v939_v22 = vshll.u32 %v2634_v58, 16  ;;  %v2037_v10 = vld [vmem:[%s2447_s25 + $0x30] sm:$0xf] }
  0x31   : > { %v895_v13 = vrot.slane %v894_v62, 4  ;;  %v918_v27 = vrot.slane %v916_v63, 4  ;;  %v921_v28 = vrot.slane %v919_v0, 5  ;;  %v927_v30 = vrot.slane %v925_v8, 5  ;;  %2286 = vmatprep.subr.bf16.mxu0 %v2639_v59  ;;  %v2667_v40 = vld [vmem:[%s2447_s25 + $0x34] sm:$0x1] }
  0x32   : > { %v909_v6 = vrot.slane %v908_v11, 4  ;;  %v932_v14 = vrot.slane %v930_v17, 4  ;;  %v935_v32 = vrot.slane %v933_v18, 5  ;;  %v941_v19 = vrot.slane %v939_v22, 5  ;;  %v2687_v12 = vld [vmem:[%s2447_s25 + $0x44] sm:$0x1] }
  0x33   : > { %v900_v35 = vsel %vm2490_vm3, %v895_v13, %v899_v57  ;;  %v922_v23 = vor.u32 %v921_v28, %v918_v27  ;;  %v944_v49 = vshrl.u32 %v2035_v9, 16  ;;  %v947_v29 = vshll.u32 %v2035_v9, 16  ;;  %v2055_v9 = vld [vmem:[%s2447_s25 + $0x10] sm:$0xe] }
  0x34   : > { %2239 = vmatmul.mubr.msk.bf16.vlgmr.msra.gmra.mxu1 %vm399_vm2, %v1981_v61  ;;  %v914_v37 = vsel %vm2490_vm3, %v909_v6, %v913_v25  ;;  %v936_v39 = vor.u32 %v935_v32, %v932_v14  ;;  %v953_v42 = vshll.u32 %v2654_v5, 16  ;;  %v958_v43 = vshrl.u32 %v2037_v10, 16  ;;  %v2054_v25 = vld [vmem:[%s2447_s25 + $0x8] sm:$0xe] }
  0x35   : > { %2257 = vmatpush3.bf16.msra.mxu1 %v2602_v2  ;;  %2242 = vmatprep.mubr.msk.bf16.mxu1 %vm399_vm2, %v1982_v26  ;;  %v2045_v36 = vcombine.low %v900_v35, %v914_v37  ;;  %v923_v41 = vrot.slane %v922_v23, 4  ;;  %v946_v61 = vrot.slane %v944_v49, 4  ;;  %v949_v46 = vrot.slane %v947_v29, 5  ;;  %v2057_v23 = vld [vmem:[%s2447_s25 + $0x20] sm:$0xe] }
  0x36   : > { %2276 = vmatprep.subr.bf16.mxu1 %v2650_v16  ;;  %v937_v24 = vrot.slane %v936_v39, 4  ;;  %v955_v48 = vrot.slane %v953_v42, 5  ;;  %v960_v50 = vrot.slane %v958_v43, 4  ;;  %v961_v51 = vshll.u32 %v2037_v10, 16  ;;  %v2705_v10 = vld [vmem:[%s2923_s1 + $0x40] sm:$0xff]  }
  0x37   : > { %2253 = vmatmul.mubr.msk.bf16.gmra.mxu0 %vm399_vm2, %v2002_v1  ;;  %v928_v20 = vsel %vm2490_vm3, %v923_v41, %v927_v30  ;;  %v950_v26 = vor.u32 %v949_v46, %v946_v61  ;;  %v967_v2 = vshll.u32 %v2667_v40, 16  ;;  %v972_v54 = vshrl.u32 %v2039_v44, 16  ;;  %v2356_v29 = vld [vmem:[%s2447_s25 + $0x28] ss:$8 sps:$4 sm:$0xff]  }
  0x38   : > { %2268 = vmatprep.mubr.msk.bf16.mxu0 %vm399_vm2, %v2045_v36  ;;  %v942_v21 = vsel %vm2490_vm3, %v937_v24, %v941_v19  ;;  %v963_v55 = vrot.slane %v961_v51, 5  ;;  %v975_v56 = vshll.u32 %v2039_v44, 16  ;;  %v981_v57 = vshll.u32 %v2677_v47, 16  ;;  %v2358_v46 = vld [vmem:[%s2447_s25 + $0x10] ss:$8 sps:$4 sm:$0xff]  }
  0x39   : > { %v2046_v1 = vcombine.low %v928_v20, %v942_v21  ;;  %v951_v3 = vrot.slane %v950_v26, 4  ;;  %v974_v4 = vrot.slane %v972_v54, 4  ;;  %v969_v63 = vrot.slane %v967_v2, 5  ;;  %v2060_v2 = vld [vmem:[%s2447_s25 + $0x38] sm:$0xe] }
  0x3a   : > { %v964_v62 = vor.u32 %v963_v55, %v960_v50  ;;  %v977_v0 = vrot.slane %v975_v56, 5  ;;  %v986_v8 = vshrl.u32 %v2041_v53, 16  ;;  %v983_v17 = vrot.slane %v981_v57, 5  ;;  %v2061_v54 = vld [vmem:[%s2447_s25 + $0x40] sm:$0xe] }
  0x3b   : > { %v956_v11 = vsel %vm2490_vm3, %v951_v3, %v955_v48  ;;  %v989_v18 = vshll.u32 %v2041_v53, 16  ;;  %v995_v22 = vshll.u32 %v2687_v12, 16  ;;  %v2062_v30 = vrot.slane %v2054_v25, 9  ;;  %v2100_v3 = vld [vmem:[%s2447_s25 + $0x10] sm:$0xf] }
  0x3c   : > { %2243 = vmatmul.mubr.msk.bf16.gmra.mxu1 %vm399_vm2, %v1983_v33  ;;  %v965_v13 = vrot.slane %v964_v62, 4  ;;  %v978_v27 = vor.u32 %v977_v0, %v974_v4  ;;  %v988_v28 = vrot.slane %v986_v8, 4  ;;  %v1131_v14 = vrot.slane %v2594_v34, 5  ;;  %v2354_v33 = vld [vmem:[%s2447_s25 + $0x18] ss:$8 sps:$4 sm:$0xff]  }
  0x3d   : > { %2258 = vmatprep.mubr.msk.bf16.mxu1 %vm399_vm2, %v2352_v15  ;;  %v991_v6 = vrot.slane %v989_v18, 5  ;;  %v2063_v32 = vrot.slane %v2055_v9, 9  ;;  %v1135_v60 = vrot.slane %v2610_v38, 5  ;;  %v2064_v49 = vrot.slane %v2056_v7, 9  ;;  %v2102_v25 = vld [vmem:[%s2447_s25 + $0x18] sm:$0xf] }
  0x3e   : > { %v970_v19 = vsel %vm2490_vm3, %v965_v13, %v969_v63  ;;  %v979_v35 = vrot.slane %v978_v27, 4  ;;  %v997_v34 = vrot.slane %v995_v22, 5  ;;  %v1139_v42 = vrot.slane %v2615_v45, 5  ;;  %v2730_v45 = vld [vmem:[%s2923_s1 + $0x38] sm:$0xff]   ;;  %v2127_v18 = vld [vmem:[%s2447_s25 + $0x10] sm:$0xe] }
  0x3f   : > { %2269 = vmatmul.mubr.msk.bf16.vlgmr.msra.gmra.mxu0 %vm399_vm2, %v2046_v1  ;;  %v2047_v37 = vcombine.low %v956_v11, %v970_v19  ;;  %v992_v39 = vor.u32 %v991_v6, %v988_v28  ;;  %v2065_v38 = vrot.slane %v2057_v23, 9  ;;  %v1143_v43 = vrot.slane %v2634_v58, 5  ;;  %v2058_v58 = vld [vmem:[%s2447_s25 + $0x28] sm:$0xe]  ;;  %v2103_v62 = vld [vmem:[%s2447_s25 + $0x1c] sm:$0x1] }
  0x40   : > { %2287 = vmatpush3.bf16.msra.mxu0 %v2639_v59  ;;  %v984_v44 = vsel %vm2490_vm3, %v979_v35, %v983_v17  ;;  %v2725_v41 = vsel %vm2556_vm6, %v2062_v30, %v1131_v14  ;;  %v2059_v59 = vld [vmem:[%s2447_s25 + $0x30] sm:$0xe]  ;;  %v2737_v61 = vsel %vm2556_vm6, %v2063_v32, %v1135_v60  ;;  %v2742_v24 = vsel %vm2556_vm6, %v2064_v49, %v1139_v42  ;;  %v2360_v22 = vld [vmem:[%s2447_s25 + $0x20] ss:$8 sps:$4 sm:$0xff]   ;;  %v2128_v30 = vld [vmem:[%s2447_s25 + $0x18] sm:$0xe] }
  0x41   : > { %2272 = vmatprep.mubr.msk.bf16.mxu0 %vm399_vm2, %v2047_v37  ;;  %v993_v36 = vrot.slane %v992_v39, 4  ;;  %2306 = vmatprep.subr.bf16.mxu0 %v2705_v10  ;;  %v2066_v48 = vrot.slane %v2058_v58, 9  ;;  %v1147_v50 = vrot.slane %v2654_v5, 5  ;;  %v2749_v15 = vsel %vm2556_vm6, %v2065_v38, %v1143_v43  ;;  %v2362_v14 = vld [vmem:[%s2447_s25 + $0x30] ss:$8 sps:$4 sm:$0xff]  }
  0x42   : > { %v2067_v20 = vrot.slane %v2059_v59, 9  ;;  %v1151_v26 = vrot.slane %v2667_v40, 5  ;;  %v2068_v21 = vrot.slane %v2060_v2, 9  ;;  %v1155_v5 = vrot.slane %v2677_v47, 5  ;;  %v2357_v40 = vld [vmem:[%s2447_s25 + $0x38] ss:$8 sps:$4 sm:$0xff]  }
  0x43   : > { %v998_v51 = vsel %vm2490_vm3, %v993_v36, %v997_v34  ;;  %v2069_v55 = vrot.slane %v2061_v54, 9  ;;  %v1159_v56 = vrot.slane %v2687_v12, 5  ;;  %v2072_v57 = vcombine.low %v2725_v41, %v2737_v61  ;;  %v2101_v47 = vld [vmem:[%s2447_s25 + $0x14] sm:$0x1]  ;;  %v2104_v19 = vld [vmem:[%s2447_s25 + $0x20] sm:$0xf] }
  0x44   : > { %2259 = vmatmul.mubr.msk.bf16.vlgmr.msra.gmra.mxu1 %vm399_vm2, %v2354_v33  ;;  %v2048_v53 = vcombine.low %v984_v44, %v998_v51  ;;  %v2073_v1 = vcombine.low %v2742_v24, %v2749_v15  ;;  %v2774_v12 = vsel %vm2556_vm6, %v2067_v20, %v1151_v26  ;;  %v2778_v4 = vsel %vm2556_vm6, %v2068_v21, %v1155_v5  ;;  %v2105_v37 = vld [vmem:[%s2447_s25 + $0x24] sm:$0x1]  ;;  %v2106_v42 = vld [vmem:[%s2447_s25 + $0x28] sm:$0xf]  ;;  %v2107_v38 = vld [vmem:[%s2447_s25 + $0x2c] sm:$0x1] }
  0x45   : > { %2277 = vmatpush3.bf16.msra.mxu1 %v2650_v16  ;;  %2262 = vmatprep.mubr.msk.bf16.mxu1 %vm399_vm2, %v2356_v29  ;;  %v2767_v16 = vsel %vm2556_vm6, %v2066_v48, %v1147_v50  ;;  %v1410_v63 = vshrl.u32 %v2100_v3, 16  ;;  %v1413_v0 = vshll.u32 %v2100_v3, 16  ;;  %v2785_v8 = vsel %vm2556_vm6, %v2069_v55, %v1159_v56  ;;  %v2129_v61 = vld [vmem:[%s2447_s25 + $0x20] sm:$0xe]  ;;  %v2130_v20 = vld [vmem:[%s2447_s25 + $0x28] sm:$0xe] }
  0x46   : > { %2296 = vmatprep.subr.bf16.mxu1 %v2730_v45  ;;  %v1419_v9 = vshll.u32 %v2101_v47, 16  ;;  %v1424_v11 = vshrl.u32 %v2102_v25, 16  ;;  %v1427_v17 = vshll.u32 %v2102_v25, 16  ;;  %v1433_v28 = vshll.u32 %v2103_v62, 16  ;;  %v2108_v21 = vld [vmem:[%s2447_s25 + $0x30] sm:$0xf] }
  0x47   : > { %2273 = vmatmul.mubr.msk.bf16.gmra.mxu0 %vm399_vm2, %v2048_v53  ;;  %v1412_v13 = vrot.slane %v1410_v63, 4  ;;  %v1415_v27 = vrot.slane %v1413_v0, 5  ;;  %v2135_v6 = vrot.slane %v2127_v18, 9  ;;  %v1653_v33 = vrot.slane %v2101_v47, 5  ;;  %v2110_v25 = vld [vmem:[%s2447_s25 + $0x38] sm:$0xf] }
  0x48   : > { %2288 = vmatprep.mubr.msk.bf16.mxu0 %vm399_vm2, %v2358_v46  ;;  %v1421_v32 = vrot.slane %v1419_v9, 5  ;;  %v1426_v60 = vrot.slane %v1424_v11, 4  ;;  %v1429_v7 = vrot.slane %v1427_v17, 5  ;;  %v1435_v23 = vrot.slane %v1433_v28, 5  ;;  %v2111_v18 = vld [vmem:[%s2447_s25 + $0x3c] sm:$0x1] }
  0x49   : > { %v1416_v35 = vor.u32 %v1415_v27, %v1412_v13  ;;  %v2136_v49 = vrot.slane %v2128_v30, 9  ;;  %v1657_v29 = vrot.slane %v2103_v62, 5  ;;  %v2074_v39 = vcombine.low %v2767_v16, %v2774_v12  ;;  %v2363_v62 = vld [vmem:[%s2447_s25 + $0x40] ss:$8 sps:$4 sm:$0xff]   ;;  %v2131_v27 = vld [vmem:[%s2447_s25 + $0x30] sm:$0xe] }
  0x4a   : > { %v1430_v34 = vor.u32 %v1429_v7, %v1426_v60  ;;  %v1438_v43 = vshrl.u32 %v2104_v19, 16  ;;  %v1441_v44 = vshll.u32 %v2104_v19, 16  ;;  %v2075_v36 = vcombine.low %v2778_v4, %v2785_v8 }
  0x4b   : > { %v1417_v41 = vrot.slane %v1416_v35, 4  ;;  %v1447_v58 = vshll.u32 %v2105_v37, 16  ;;  %v1452_v59 = vshrl.u32 %v2106_v42, 16  ;;  %v1654_v48 = vsel %vm2556_vm6, %v2135_v6, %v1653_v33 }
  0x4c   : > { %2263 = vmatmul.mubr.msk.bf16.gmra.mxu1 %vm399_vm2, %v2357_v40  ;;  %v1431_v46 = vrot.slane %v1430_v34, 4  ;;  %v1440_v50 = vrot.slane %v1438_v43, 4  ;;  %v1443_v51 = vrot.slane %v1441_v44, 5  ;;  %v1658_v2 = vsel %vm2556_vm6, %v2136_v49, %v1657_v29  ;;  %v2113_v44 = vld [vmem:[%s2447_s25 + $0x44] sm:$0x1] }
  0x4d   : > { %2278 = vmatprep.mubr.msk.bf16.mxu1 %vm399_vm2, %v2072_v57  ;;  %v1422_v26 = vsel %vm2490_vm3, %v1417_v41, %v1421_v32  ;;  %v1454_v53 = vrot.slane %v1452_v59, 4  ;;  %v1455_v54 = vshll.u32 %v2106_v42, 16  ;;  %v1461_v56 = vshll.u32 %v2107_v38, 16  ;;  %v2109_v57 = vld [vmem:[%s2447_s25 + $0x34] sm:$0x1] }
  0x4e   : > { %v1436_v5 = vsel %vm2490_vm3, %v1431_v46, %v1435_v23  ;;  %v1444_v55 = vor.u32 %v1443_v51, %v1440_v50  ;;  %v2137_v40 = vrot.slane %v2129_v61, 9  ;;  %v2816_v16 = vrot.slane %v1447_v58, 5  ;;  %v2132_v32 = vld [vmem:[%s2447_s25 + $0x38] sm:$0xe]  ;;  %v2112_v23 = vld [vmem:[%s2447_s25 + $0x40] sm:$0xf] }
  0x4f   : > { %2289 = vmatmul.mubr.msk.bf16.vlgmr.msra.gmra.mxu0 %vm399_vm2, %v2360_v22  ;;  %v1457_v3 = vrot.slane %v1455_v54, 5  ;;  %v1661_v47 = vrot.slane %v2105_v37, 5  ;;  %v2138_v12 = vrot.slane %v2130_v20, 9  ;;  %v1665_v0 = vrot.slane %v2107_v38, 5  ;;  %v2115_v51 = vld [vmem:[%s2447_s25 + $0x4c] sm:$0x1] }
  0x50   : > { %2307 = vmatpush3.bf16.msra.mxu0 %v2705_v10  ;;  %2292 = vmatprep.mubr.msk.bf16.mxu0 %vm399_vm2, %v2362_v14  ;;  %v2145_v10 = vcombine.low %v1654_v48, %v1658_v2  ;;  %v2820_v63 = vrot.slane %v1444_v55, 4  ;;  %v1466_v9 = vshrl.u32 %v2108_v21, 16  ;;  %v2118_v11 = vcombine.low %v1422_v26, %v1436_v5  ;;  %v2133_v26 = vld [vmem:[%s2447_s25 + $0x40] sm:$0xe]  ;;  %v2134_v5 = vld [vmem:[%s2447_s25 + $0x48] sm:$0xe] }
  0x51   : > { %v1458_v17 = vor.u32 %v1457_v3, %v1454_v53  ;;  %v1469_v22 = vshll.u32 %v2108_v21, 16  ;;  %v1475_v13 = vshll.u32 %v2109_v57, 16  ;;  %v1463_v28 = vrot.slane %v1461_v56, 5 }
  0x52   : > { %v1662_v30 = vsel %vm2556_vm6, %v2137_v40, %v1661_v47  ;;  %v1468_v6 = vrot.slane %v1466_v9, 4  ;;  %v1480_v14 = vshrl.u32 %v2110_v25, 16  ;;  %v1450_v24 = vsel %vm2490_vm3, %v2820_v63, %v2816_v16 }
  0x53   : > { %v1459_v15 = vrot.slane %v1458_v17, 4  ;;  %v1471_v60 = vrot.slane %v1469_v22, 5  ;;  %v1483_v33 = vshll.u32 %v2110_v25, 16  ;;  %v1489_v19 = vshll.u32 %v2111_v18, 16 }
  0x54   : > { %2279 = vmatmul.mubr.msk.bf16.vlgmr.msra.gmra.mxu1 %vm399_vm2, %v2073_v1  ;;  %v1666_v1 = vsel %vm2556_vm6, %v2138_v12, %v1665_v0  ;;  %v1482_v7 = vrot.slane %v1480_v14, 4  ;;  %v2139_v35 = vrot.slane %v2131_v27, 9  ;;  %v1477_v49 = vrot.slane %v1475_v13, 5 }
  0x55   : > { %2297 = vmatpush3.bf16.msra.mxu1 %v2730_v45  ;;  %2282 = vmatprep.mubr.msk.bf16.mxu1 %vm399_vm2, %v2074_v39  ;;  %v1472_v45 = vor.u32 %v1471_v60, %v1468_v6  ;;  %v1669_v29 = vrot.slane %v2109_v57, 5  ;;  %v2140_v37 = vrot.slane %v2132_v32, 9  ;;  %v2114_v39 = vld [vmem:[%s2447_s25 + $0x48] sm:$0xf]  ;;  %v1464_v34 = vsel %vm2490_vm3, %v1459_v15, %v1463_v28 }
  0x56   : > { %v2146_v42 = vcombine.low %v1662_v30, %v1666_v1  ;;  %v1485_v38 = vrot.slane %v1483_v33, 5  ;;  %v1673_v43 = vrot.slane %v2111_v18, 5  ;;  %v1494_v59 = vshrl.u32 %v2112_v23, 16 }
  0x57   : > { %2293 = vmatmul.mubr.msk.bf16.gmra.mxu0 %vm399_vm2, %v2363_v62  ;;  %v1473_v41 = vrot.slane %v1472_v45, 4  ;;  %v1670_v58 = vsel %vm2556_vm6, %v2139_v35, %v1669_v29  ;;  %v1497_v61 = vshll.u32 %v2112_v23, 16  ;;  %v1491_v48 = vrot.slane %v1489_v19, 5 }
  0x58   : > { %2308 = vmatprep.mubr.msk.bf16.mxu0 %vm399_vm2, %v2145_v10  ;;  %v1486_v46 = vor.u32 %v1485_v38, %v1482_v7  ;;  %v1674_v50 = vsel %vm2556_vm6, %v2140_v37, %v1673_v43  ;;  %v1508_v20 = vshrl.u32 %v2114_v39, 16  ;;  %v1496_v53 = vrot.slane %v1494_v59, 4 }
  0x59   : > { %v1478_v2 = vsel %vm2490_vm3, %v1473_v41, %v1477_v49  ;;  %v1499_v54 = vrot.slane %v1497_v61, 5  ;;  %v1503_v21 = vshll.u32 %v2113_v44, 16  ;;  %v2147_v56 = vcombine.low %v1670_v58, %v1674_v50 }
  0x5a   : > { %v1487_v55 = vrot.slane %v1486_v46, 4  ;;  %v1510_v40 = vrot.slane %v1508_v20, 4  ;;  %v1511_v57 = vshll.u32 %v2114_v39, 16  ;;  %v1517_v3 = vshll.u32 %v2115_v51, 16 }
  0x5b   : > { %v1500_v16 = vor.u32 %v1499_v54, %v1496_v53  ;;  %v2141_v47 = vrot.slane %v2133_v26, 9  ;;  %v1677_v12 = vrot.slane %v2113_v44, 5  ;;  %v2142_v10 = vrot.slane %v2134_v5, 9 }
  0x5c   : > { %2283 = vmatmul.mubr.msk.bf16.gmra.mxu1 %vm399_vm2, %v2075_v36  ;;  %v1492_v25 = vsel %vm2490_vm3, %v1487_v55, %v1491_v48  ;;  %v1513_v62 = vrot.slane %v1511_v57, 5  ;;  %v1681_v63 = vrot.slane %v2115_v51, 5  ;;  %v2119_v4 = vcombine.low %v1450_v24, %v1464_v34 }
  0x5d   : > { %2298 = vmatprep.mubr.msk.bf16.mxu1 %vm399_vm2, %v2118_v11  ;;  %v1678_v36 = vsel %vm2556_vm6, %v2141_v47, %v1677_v12  ;;  %v2120_v9 = vcombine.low %v1478_v2, %v1492_v25  ;;  %v1501_v11 = vrot.slane %v1500_v16, 4  ;;  %v1505_v17 = vrot.slane %v1503_v21, 5 }
  0x5e   : > { %v1514_v8 = vor.u32 %v1513_v62, %v1510_v40  ;;  %v1682_v0 = vsel %vm2556_vm6, %v2142_v10, %v1681_v63  ;;  %v1519_v18 = vrot.slane %v1517_v3, 5 }
  0x5f   : > { %2309 = vmatmul.mubr.msk.bf16.vlgmr.msra.gmra.mxu0 %vm399_vm2, %v2146_v42  ;;  %v2148_v13 = vcombine.low %v1678_v36, %v1682_v0  ;;  %v1506_v27 = vsel %vm2490_vm3, %v1501_v11, %v1505_v17 }
  0x60   : > { %2312 = vmatprep.mubr.msk.bf16.mxu0 %vm399_vm2, %v2147_v56  ;;  %v1515_v22 = vrot.slane %v1514_v8, 4 }
  0x62   : > { %v1520_v28 = vsel %vm2490_vm3, %v1515_v22, %v1519_v18 }
  0x63   : > { %v2121_v52 = vcombine.low %v1506_v27, %v1520_v28 }
  0x64   : > { %2299 = vmatmul.mubr.msk.bf16.vlgmr.msra.gmra.mxu1 %vm399_vm2, %v2119_v4 }
  0x65   : > { %2302 = vmatprep.mubr.msk.bf16.mxu1 %vm399_vm2, %v2120_v9 }
  0x67   : > { %2313 = vmatmul.mubr.msk.bf16.gmra.mxu0 %vm399_vm2, %v2148_v13 }
  0x6c   : > { %2303 = vmatmul.mubr.msk.bf16.gmra.mxu1 %vm399_vm2, %v2121_v52 }
  0xe7   : > { %v2230_v30 = vpop.f32.mrf.mxu0 }
  0xe9   : > { %v446_v6 = vpop.f32.mrf.mxu0 }
  0xeb   : > { %v2231_v14 = vpop.f32.mrf.mxu0 }
  0xec   : > { %v2234_v32 = vpop.f32.mrf.mxu1 }
  0xed   : > { %v449_v24 = vpop.f32.mrf.mxu0 }
  0xee   : > { %v462_v15 = vpop.f32.mrf.mxu1 }
  0xef   : > { %v2250_v1 = vpop.f32.mrf.mxu0 }
  0xf0   : > { %v2876_v60 = vpop.f32.mrf.mxu1 }
  0xf1   : > { %v706_v7 = vpop.f32.mrf.mxu0 }
  0xf2   : > { %v2878_v33 = vpop.f32.mrf.mxu1 }
  0xf3   : > { %v2251_v19 = vpop.f32.mrf.mxu0 }
  0xf4   : > { %v2240_v31 = vpop.f32.mrf.mxu1 }
  0xf5   : > { %v709_v35 = vpop.f32.mrf.mxu0  ;;  %v558_v57 = vadd.f32 %v2240_v31, %v2230_v30 }
  0xf6   : > { %v549_v23 = vpop.f32.mrf.mxu1 }
  0xf7   : > { %v2254_v45 = vpop.f32.mrf.mxu0  ;;  %v550_v47 = vadd.f32 %v549_v23, %v446_v6  ;;  %v739_v62 = vadd.f32 %v2250_v1, %v558_v57 }
  0xf8   : > { %v2241_v49 = vpop.f32.mrf.mxu1 }
  0xf9   : > { %v722_v29 = vpop.f32.mrf.mxu0  ;;  %v561_v10 = vadd.f32 %v2241_v49, %v2231_v14  ;;  %v737_v8 = vadd.f32 %v706_v7, %v550_v47 }
  0xfa   : > { %v552_v37 = vpop.f32.mrf.mxu1 }
  0xfb   : > { %v2880_v39 = vpop.f32.mrf.mxu0  ;;  %v553_v36 = vadd.f32 %v552_v37, %v449_v24  ;;  %v740_v17 = vadd.f32 %v2251_v19, %v561_v10 }
  0xfc   : > { %v2244_v34 = vpop.f32.mrf.mxu1 }
  0xfd   : > { %v2882_v42 = vpop.f32.mrf.mxu0  ;;  %v574_v18 = vadd.f32 %v2244_v34, %v2234_v32  ;;  %v738_v52 = vadd.f32 %v709_v35, %v553_v36 }
  0xfe   : > { %v565_v38 = vpop.f32.mrf.mxu1 }
  0xff   : > { %v2270_v43 = vpop.f32.mrf.mxu0  ;;  %v566_v27 = vadd.f32 %v565_v38, %v462_v15  ;;  %v743_v31 = vadd.f32 %v2254_v45, %v574_v18 }
 0x100   : > { %v2245_v44 = vpop.f32.mrf.mxu1 }
 0x101   : > { %v1066_v41 = vpop.f32.mrf.mxu0  ;;  %v741_v37 = vadd.f32 %v722_v29, %v566_v27  ;;  %v577_v19 = vadd.f32 %v2245_v44, %v2876_v60 }
 0x102   : > { %v568_v58 = vpop.f32.mrf.mxu1 }
 0x103   : > { %v2271_v59 = vpop.f32.mrf.mxu0  ;;  %v569_v32 = vadd.f32 %v568_v58, %v2878_v33 }
 0x104   : > { %v2260_v61 = vpop.f32.mrf.mxu1 }
 0x105   : > { %v1069_v46 = vpop.f32.mrf.mxu0  ;;  %v865_v0 = vadd.f32 %v2260_v61, %v739_v62 }
 0x106   : > { %v832_v48 = vpop.f32.mrf.mxu1 }
 0x107   : > { %v2274_v50 = vpop.f32.mrf.mxu0  ;;  %v863_v22 = vadd.f32 %v832_v48, %v737_v8  ;;  %v1099_v30 = vadd.f32 %v2270_v43, %v865_v0 }
 0x108   : > { %v2261_v51 = vpop.f32.mrf.mxu1 }
 0x109   : > { %v2884_v20 = vpop.f32.mrf.mxu0  ;;  %v866_v6 = vadd.f32 %v2261_v51, %v740_v17  ;;  %v1097_v23 = vadd.f32 %v1066_v41, %v863_v22  ;;  %v744_v41 = vadd.f32 %v2880_v39, %v577_v19  ;;  %v2154_v39 = vld [vmem:[%s2924_s2] ss:$0 sm:$0xff] }
 0x10a   : > { %v835_v26 = vpop.f32.mrf.mxu1 }
 0x10b   : > { %v2886_v2 = vpop.f32.mrf.mxu0  ;;  %v864_v7 = vadd.f32 %v835_v26, %v738_v52  ;;  %v1100_v61 = vadd.f32 %v2271_v59, %v866_v6  ;;  %v742_v26 = vadd.f32 %v2882_v42, %v569_v32 }
 0x10c   : > { %v2264_v53 = vpop.f32.mrf.mxu1 }
 0x10d   : > { %v2888_v54 = vpop.f32.mrf.mxu0  ;;  %v869_v15 = vadd.f32 %v2264_v53, %v743_v31  ;;  %v1098_v51 = vadd.f32 %v1069_v46, %v864_v7 }
 0x10e   : > { %v848_v21 = vpop.f32.mrf.mxu1 }
 0x10f   : > { %v2290_v5 = vpop.f32.mrf.mxu0  ;;  %v867_v43 = vadd.f32 %v848_v21, %v741_v37 }
 0x110   : > { %v2265_v55 = vpop.f32.mrf.mxu1 }
 0x111   : > { %v1354_v56 = vpop.f32.mrf.mxu0  ;;  %v1101_v59 = vadd.f32 %v2884_v20, %v867_v43  ;;  %v870_v53 = vadd.f32 %v2265_v55, %v744_v41 }
 0x112   : > { %v851_v40 = vpop.f32.mrf.mxu1 }
 0x113   : > { %v2291_v16 = vpop.f32.mrf.mxu0  ;;  %v1104_v20 = vadd.f32 %v2886_v2, %v870_v53 }
 0x114   : > { %v2280_v3 = vpop.f32.mrf.mxu1 }
 0x115   : > { %v1357_v12 = vpop.f32.mrf.mxu0  ;;  %v1261_v24 = vadd.f32 %v2280_v3, %v1099_v30  ;;  %v1103_v3 = vadd.f32 %v2274_v50, %v869_v15 }
 0x116   : > { %v1228_v25 = vpop.f32.mrf.mxu1 }
 0x117   : > { %v2890_v63 = vpop.f32.mrf.mxu0  ;;  %v1259_v38 = vadd.f32 %v1228_v25, %v1097_v23  ;;  %v1387_v57 = vadd.f32 %v2290_v5, %v1261_v24  ;;  %v868_v25 = vadd.f32 %v851_v40, %v742_v26 }
 0x118   : > { %v2281_v4 = vpop.f32.mrf.mxu1 }
 0x119   : > { %v1370_v9 = vpop.f32.mrf.mxu0  ;;  %v1262_v47 = vadd.f32 %v2281_v4, %v1100_v61  ;;  %v1385_v60 = vadd.f32 %v1354_v56, %v1259_v38  ;;  %v1102_v55 = vadd.f32 %v2888_v54, %v868_v25 }
 0x11a   : > { %v1231_v11 = vpop.f32.mrf.mxu1 }
 0x11b   : > { %v2892_v13 = vpop.f32.mrf.mxu0  ;;  %v1260_v44 = vadd.f32 %v1231_v11, %v1098_v51  ;;  %v1388_v62 = vadd.f32 %v2291_v16, %v1262_v47 }
 0x11c   : > { %v2284_v28 = vpop.f32.mrf.mxu1 }
 0x11d   : > { %v2894_v1 = vpop.f32.mrf.mxu0  ;;  %v1265_v46 = vadd.f32 %v2284_v28, %v1103_v3  ;;  %v1386_v56 = vadd.f32 %v1357_v12, %v1260_v44 }
 0x11e   : > { %v1244_v14 = vpop.f32.mrf.mxu1 }
 0x11f   : > { %v2310_v49 = vpop.f32.mrf.mxu0  ;;  %v1263_v4 = vadd.f32 %v1244_v14, %v1101_v59  ;;  %v1391_v16 = vadd.f32 %v2890_v63, %v1265_v46 }
 0x120   : > { %v2285_v34 = vpop.f32.mrf.mxu1 }
 0x121   : > { %v1750_v35 = vpop.f32.mrf.mxu0  ;;  %v1389_v18 = vadd.f32 %v1370_v9, %v1263_v4  ;;  %v1266_v22 = vadd.f32 %v2285_v34, %v1104_v20 }
 0x122   : > { %v1247_v48 = vpop.f32.mrf.mxu1 }
 0x123   : > { %v2311_v45 = vpop.f32.mrf.mxu0  ;;  %v1264_v27 = vadd.f32 %v1247_v48, %v1102_v55  ;;  %v1392_v63 = vadd.f32 %v2892_v13, %v1266_v22 }
 0x124   : > { %v2300_v29 = vpop.f32.mrf.mxu1 }
 0x125   : > { %v1621_v33 = vadd.f32 %v2300_v29, %v1387_v57  ;;  %v1753_v58 = vpop.f32.mrf.mxu0  ;;  %v1390_v24 = vadd.f32 %v2894_v1, %v1264_v27 }
 0x126   : > { %v1588_v21 = vpop.f32.mrf.mxu1 }
 0x127   : > { %v1783_v5 = vadd.f32 %v2310_v49, %v1621_v33  ;;  %v1619_v10 = vadd.f32 %v1588_v21, %v1385_v60  ;;  %v2314_v50 = vpop.f32.mrf.mxu0 }
 0x128   : > { %v2301_v42 = vpop.f32.mrf.mxu1 }
 0x129   : > { %v1781_v8 = vadd.f32 %v1750_v35, %v1619_v10  ;;  %v1622_v36 = vadd.f32 %v2301_v42, %v1388_v62  ;;  %v1798_v0 = vadd.f32 %v2154_v39, %v1783_v5  ;;  %v1766_v52 = vpop.f32.mrf.mxu0 }
 0x12a   : > { %v1591_v40 = vpop.f32.mrf.mxu1 }
 0x12b   : > { %v1784_v11 = vadd.f32 %v2311_v45, %v1622_v36  ;;  %v1620_v17 = vadd.f32 %v1591_v40, %v1386_v56  ;;  %v1796_v30 = vadd.f32 %v2154_v39, %v1781_v8  ;;  %v1806_v2 = vmax.f32 %v1798_v0, 0.0  ;;  %v2315_v37 = vpop.f32.mrf.mxu0 }
 0x12c   : > { %v2304_v28 = vpop.f32.mrf.mxu1 }
 0x12d   : > { %v1799_v12 = vadd.f32 %v2154_v39, %v1784_v11  ;;  %v1782_v6 = vadd.f32 %v1753_v58, %v1620_v17  ;;  %v1625_v14 = vadd.f32 %v2304_v28, %v1391_v16  ;;  %v1804_v19 = vmax.f32 %v1796_v30, 0.0  ;;  %v1769_v51 = vpop.f32.mrf.mxu0 }
 0x12e   : > { %v1604_v31 = vpop.f32.mrf.mxu1 }
 0x12f   : > { %v1807_v23 = vmax.f32 %v1799_v12, 0.0  ;;  %v1797_v54 = vadd.f32 %v2154_v39, %v1782_v6  ;;  %v1623_v7 = vadd.f32 %v1604_v31, %v1389_v18  ;;  %v1787_v9 = vadd.f32 %v2314_v50, %v1625_v14 }
 0x130   : > { %v2305_v49 = vpop.f32.mrf.mxu1 }
 0x131   : > { %v2166_v32 = vpack.c.bf16 %v1807_v23, %v1806_v2  ;;  %v1805_v34 = vmax.f32 %v1797_v54, 0.0  ;;  %v1785_v61 = vadd.f32 %v1766_v52, %v1623_v7  ;;  %v1626_v15 = vadd.f32 %v2305_v49, %v1392_v63 }
 0x132   : > { %v1607_v38 = vpop.f32.mrf.mxu1  ;;  %v1802_v48 = vadd.f32 %v2154_v39, %v1787_v9 }
 0x133   : > { %2178 = vst [vmem:[%s238_s20 + $0x8] sm:$0xff] %v2166_v32   ;;  %v2161_v35 = vpack.c.bf16 %v1805_v34, %v1804_v19  ;;  %v1624_v43 = vadd.f32 %v1607_v38, %v1390_v24  ;;  %v1788_v13 = vadd.f32 %v2315_v37, %v1626_v15  ;;  %v1800_v1 = vadd.f32 %v2154_v39, %v1785_v61 }
 0x134   : > { %v1810_v41 = vmax.f32 %v1802_v48, 0.0 }
 0x135   : > { %2162 = vst [vmem:[%s238_s20] sm:$0xff] %v2161_v35   ;;  %v1786_v57 = vadd.f32 %v1769_v51, %v1624_v43  ;;  %v1803_v47 = vadd.f32 %v2154_v39, %v1788_v13  ;;  %v1808_v29 = vmax.f32 %v1800_v1, 0.0 }
 0x137   : > { %v1801_v45 = vadd.f32 %v2154_v39, %v1786_v57  ;;  %v1811_v26 = vmax.f32 %v1803_v47, 0.0 }
 0x139   : > { %v1809_v3 = vmax.f32 %v1801_v45, 0.0  ;;  %v2176_v60 = vpack.c.bf16 %v1811_v26, %v1810_v41 }
 0x13b   : > { %v2171_v44 = vpack.c.bf16 %v1809_v3, %v1808_v29  ;;  %2180 = vst [vmem:[%s238_s20 + $0x18] sm:$0xff] %v2176_v60  }
 0x13d   : > { %2179 = vst [vmem:[%s238_s20 + $0x10] sm:$0xff] %v2171_v44  }
 0x13e PF: > { %s13_s14 = sadd.s32 1, %s2386_s14   ;;  %s2930_s12 = smov %s2382_s13 }
 0x13f   : > { %p10_p5 = scmp.ge.s32.totalorder %s13_s14, 4   ;;  %s2931_s13 = smov %s2933_s15 }
 0x141   :  { %12 = sbr.rel (!%p10_p5) target bundleno = 2 (0x2), region = 79 }

// kernel: _lambda_.10
= control target key start
LH: loop header
LB: loop body
LE: loop exit
PB: predicated region body
PF: predicated region fallthrough
CT: control target
= control target key end

     0   :  { %s1851_s21 = smov 0   ;;  %s1853_s22 = smov 0   ;;  %s2053_s0 = inlined_call_operand.vmem [shape: bf16[2,5,5,128], index: 0, kind: input, shape index: {}]   ;;  %s2054_s1 = inlined_call_operand.vmem [shape: bf16[2,5,5,128], index: 1, kind: input, shape index: {}]   ;;  %s2055_s2 = inlined_call_operand.vmem [shape: bf16[2,5,5,128], index: 2, kind: input, shape index: {}]   ;;  %s2056_s3 = inlined_call_operand.vmem [shape: bf16[2,5,5,128], index: 3, kind: input, shape index: {}]   ;;  %s2057_s4 = inlined_call_operand.vmem [shape: bf16[9,16,128], index: 4, kind: input, shape index: {}]   ;;  %s2058_s5 = inlined_call_operand.vmem [shape: f32[1,128], index: 5, kind: input, shape index: {}]   ;;  %s2059_s6 = inlined_call_operand.vmem [shape: bf16[2,4,4,128], index: 6, kind: output, shape index: {}]  }
   0x1   :  { %s1855_s23 = smov 0  }
   0x2 LB: > { %s35_s24 = sadd.s32 1, %s1807_s22  ;;  %p1587_p0 = scmp.ge.s32.totalorder %s1811_s23, 1  ;;  %s1811_s23 = sphi %s1855_s23, %s16_s23   ;;  %s1807_s22 = sphi %s1853_s22, %s2065_s22   ;;  %s1803_s21 = sphi %s1851_s21, %s2064_s21  }
   0x3   : > { %p37_p1 = scmp.ge.s32.totalorder %s35_s24, 2  ;;  %p282_p2 = scmp.lt.s32.totalorder %s1811_s23, 3 }
   0x5   : > { %s2067_s24 = smov (%p37_p1, %s35_s24), 0  ;;  %p283_p3 = pnand %p1587_p0, %p282_p2 }
   0x6   : > { %p341_p4 = scmp.lt.s32.totalorder (!%p283_p3), %s1803_s21, 1 }
   0x7   : > { %286 = sbr.rel (%p283_p3) target bundleno = 275 (0x113), region = 44 }
   0xc   : > { %v1756_v0 = vld [vmem:[%s2057_s4 + $0x8] sm:$0xff]   ;;  %v409_v1 = vlaneseq  ;;  %v1813_v2 = vmov 0.0   ;;  %v1757_v3 = vld [vmem:[%s2057_s4] sm:$0xff]   ;;  %vm1814_vm0 = vmmov 0   ;;  %v1815_v4 = vmov 1983009808  }
   0xd   : > { %1674 = vmatprep.subr.bf16.mxu0 %v1813_v2  ;;  %1680 = vmatprep.subr.bf16.mxu1 %v1813_v2  ;;  %v407_v5 = vunpack.c.l.s4 %v1815_v4  ;;  %s2069_s21 = smov (!%p341_p4, %s1803_s21), 1  ;;  %vm427_vm1 = vcmask 130048   ;;  %vm583_vm2 = vsmask.f32 1280  ;;  %vm584_vm3 = vsmask.f32 3336 }
   0xe   : > { %1675 = vmatpush3.bf16.msra.mxu0 %v1756_v0  ;;  %1676 = vmatprep.mubr.msk.bf16.mxu0 %vm1814_vm0, %v1813_v2  ;;  %v410_v6 = vshrl.u32 %v409_v1, 7  ;;  %s1886_s29 = smul.u32 20, %s2069_s21  ;;  %vm586_vm4 = vsmask.f32 5392  ;;  %vm588_vm5 = vsmask.f32 7448  ;;  %vm585_vm6 = vmor %vm583_vm2, %vm584_vm3 }
   0xf   : > { %1681 = vmatpush3.bf16.msra.mxu1 %v1757_v3  ;;  %1682 = vmatprep.mubr.msk.bf16.mxu1 %vm1814_vm0, %v1813_v2  ;;  %v408_v7 = vunpack.c.0.s8 %v407_v5  ;;  %v1762_v11 = vld [vmem:[%s2057_s4 + $0x10] sm:$0xff]   ;;  %v1763_v14 = vld [vmem:[%s2057_s4 + $0x18] sm:$0xff]   ;;  %vm1928_vm7 = vmor %vm585_vm6, %vm586_vm4  ;;  %s1655_s14 = sshll.u32 %s2069_s21, 3 }
  0x10   : > { %1686 = vmatprep.subr.bf16.mxu0 %v1813_v2  ;;  %1692 = vmatprep.subr.bf16.mxu1 %v1813_v2  ;;  %s1892_s8 = scalar_lea.vmem %s2054_s1, %s1886_s29  ;;  %s1900_s11 = scalar_lea.vmem %s2053_s0, %s1886_s29  ;;  %vm1940_vm8 = vmor %vm1928_vm7, %vm588_vm5  ;;  %v1767_v60 = vld [vmem:[%s2057_s4 + $0x28] sm:$0xff]   ;;  %v1766_v29 = vld [vmem:[%s2057_s4 + $0x20] sm:$0xff]  }
  0x11   : > { %v1894_v8 = vsub.s32 %v408_v7, %v410_v6  ;;  %v1777_v9 = vld.sshfl [vmem:[%s1892_s8] sm:$0xf pattern:$0x76325410]  ;;  %s1913_s16 = scalar_lea.vmem %s2055_s2, %s1886_s29  ;;  %s1950_s25 = scalar_lea.vmem %s2056_s3, %s1886_s29 }
  0x12   : > { %v1778_v10 = vld.sshfl [vmem:[%s1892_s8 + $0x8] sm:$0xf pattern:$0x76325410]  ;;  %s379_s17 = scalar_lea.vmem %s2059_s6, %s1655_s14 }
  0x13   : > { %v1779_v12 = vld.sshfl [vmem:[%s1900_s11] sm:$0xf pattern:$0x76325410]  ;;  %v420_v16 = vcombine.low %v1777_v9, %v1778_v10 }
  0x14   : > { %v1780_v13 = vld.sshfl [vmem:[%s1900_s11 + $0x8] sm:$0xf pattern:$0x76325410] }
  0x15   : > { %v1600_v15 = vld.sshfl [vmem:[%s1900_s11] sm:$0x13 pattern:$0x76325410]  ;;  %1677 = vmatmul.mubr.msk.bf16.vlgmr.msra.gmra.mxu0 %vm427_vm1, %v420_v16  ;;  %v492_v23 = vcombine.low %v1779_v12, %v1780_v13 }
  0x16   : > { %v1601_v17 = vld.sshfl [vmem:[%s1900_s11 + $0x4] sm:$0x13 pattern:$0x76325410]  ;;  %v558_v18 = vcombine.high %v1600_v15, %v1600_v15  ;;  %v591_v21 = vshrl.u32 %v1600_v15, 16  ;;  %v594_v22 = vshll.u32 %v1600_v15, 16  ;;  %1687 = vmatpush3.bf16.msra.mxu0 %v1762_v11  ;;  %1688 = vmatprep.mubr.msk.bf16.mxu0 %vm1814_vm0, %v1813_v2 }
  0x17   : > { %v1602_v19 = vld.sshfl [vmem:[%s1900_s11 + $0x8] sm:$0x13 pattern:$0x76325410]  ;;  %v566_v20 = vcombine.high %v1601_v17, %v1601_v17  ;;  %v605_v27 = vshrl.u32 %v1601_v17, 16  ;;  %v608_v32 = vshll.u32 %v1601_v17, 16  ;;  %1683 = vmatmul.mubr.msk.bf16.vlgmr.msra.gmra.mxu1 %vm427_vm1, %v492_v23  ;;  %1698 = vmatprep.subr.bf16.mxu0 %v1813_v2 }
  0x18   : > { %v1603_v24 = vld.sshfl [vmem:[%s1900_s11 + $0xc] sm:$0x13 pattern:$0x76325410]  ;;  %v574_v25 = vcombine.high %v1602_v19, %v1602_v19  ;;  %v600_v26 = vshll.u32 %v558_v18, 16  ;;  %v593_v30 = vrot.slane %v591_v21, 6  ;;  %1693 = vmatpush3.bf16.msra.mxu1 %v1763_v14  ;;  %1694 = vmatprep.mubr.msk.bf16.mxu1 %vm1814_vm0, %v1813_v2 }
  0x19   : > { %v582_v28 = vcombine.high %v1603_v24, %v1603_v24  ;;  %v596_v31 = vrot.slane %v594_v22, 7  ;;  %v607_v34 = vrot.slane %v605_v27, 6  ;;  %v614_v35 = vshll.u32 %v566_v20, 16  ;;  %1704 = vmatprep.subr.bf16.mxu1 %v1813_v2 }
  0x1a   : > { %v602_v33 = vrot.slane %v600_v26, 7  ;;  %v619_v36 = vshrl.u32 %v1602_v19, 16  ;;  %v610_v38 = vrot.slane %v608_v32, 7  ;;  %v622_v39 = vshll.u32 %v1602_v19, 16 }
  0x1b   : > { %v597_v37 = vor.u32 %v596_v31, %v593_v30  ;;  %v628_v40 = vshll.u32 %v574_v25, 16  ;;  %v1781_v41 = vld.sshfl [vmem:[%s1913_s16] sm:$0xf pattern:$0x76325410]  ;;  %v616_v43 = vrot.slane %v614_v35, 7 }
  0x1c   : > { %v621_v44 = vrot.slane %v619_v36, 6  ;;  %v633_v45 = vshrl.u32 %v1603_v24, 16  ;;  %v636_v46 = vshll.u32 %v1603_v24, 16  ;;  %v611_v49 = vor.u32 %v610_v38, %v607_v34 }
  0x1d   : > { %v1782_v47 = vld.sshfl [vmem:[%s1913_s16 + $0x8] sm:$0xf pattern:$0x76325410]  ;;  %v598_v48 = vrot.slane %v597_v37, 2  ;;  %v624_v50 = vrot.slane %v622_v39, 7 }
  0x1e   : > { %v630_v51 = vrot.slane %v628_v40, 7  ;;  %v635_v52 = vrot.slane %v633_v45, 6  ;;  %v638_v53 = vrot.slane %v636_v46, 7  ;;  %v642_v54 = vshll.u32 %v582_v28, 16 }
  0x1f   : > { %v603_v55 = vsel %vm1940_vm8, %v598_v48, %v602_v33  ;;  %v612_v56 = vrot.slane %v611_v49, 2  ;;  %v625_v57 = vor.u32 %v624_v50, %v621_v44  ;;  %v1958_v61 = vld.sshfl [vmem:[%s1950_s25] sm:$0xf pattern:$0x76325410]  ;;  %v747_v0 = vcombine.low %v1781_v41, %v1782_v47 }
  0x20   : > { %v639_v58 = vor.u32 %v638_v53, %v635_v52  ;;  %v644_v59 = vrot.slane %v642_v54, 7  ;;  %v1616_v1 = vld.sshfl [vmem:[%s1913_s16] sm:$0x13 pattern:$0x76325410] }
  0x21   : > { %v1962_v62 = vsel %vm1940_vm8, %v612_v56, %v616_v43  ;;  %v626_v63 = vrot.slane %v625_v57, 2  ;;  %v1617_v5 = vld.sshfl [vmem:[%s1913_s16 + $0x4] sm:$0x13 pattern:$0x76325410]  ;;  %1695 = vmatmul.mubr.msk.bf16.vlgmr.msra.gmra.mxu1 %vm427_vm1, %v747_v0  ;;  %v897_v9 = vcombine.high %v1616_v1, %v1616_v1  ;;  %v923_v11 = vshrl.u32 %v1616_v1, 16 }
  0x22   : > { %v640_v3 = vrot.slane %v639_v58, 2  ;;  %v649_v4 = vcombine.low %v603_v55, %v1962_v62  ;;  %v1618_v7 = vld.sshfl [vmem:[%s1913_s16 + $0x8] sm:$0x13 pattern:$0x76325410]  ;;  %v905_v10 = vcombine.high %v1617_v5, %v1617_v5  ;;  %1705 = vmatpush3.bf16.msra.mxu1 %v1767_v60  ;;  %1706 = vmatprep.mubr.msk.bf16.mxu1 %vm1814_vm0, %v1813_v2  ;;  %v926_v15 = vshll.u32 %v1616_v1, 16 }
  0x23   : > { %v1969_v6 = vsel %vm1940_vm8, %v626_v63, %v630_v51  ;;  %v1619_v14 = vld.sshfl [vmem:[%s1913_s16 + $0xc] sm:$0x13 pattern:$0x76325410]  ;;  %v913_v18 = vcombine.high %v1618_v7, %v1618_v7  ;;  %v925_v20 = vrot.slane %v923_v11, 6  ;;  %1716 = vmatprep.subr.bf16.mxu1 %v1813_v2  ;;  %v932_v22 = vshll.u32 %v897_v9, 16 }
  0x24   : > { %v1975_v12 = vsel %vm1940_vm8, %v640_v3, %v644_v59  ;;  %v657_v13 = vrot.slane %v649_v4, %v1894_v8  ;;  %v1784_v17 = vld.sshfl [vmem:[%s1950_s25 + $0x8] sm:$0xf pattern:$0x76325410]  ;;  %v921_v19 = vcombine.high %v1619_v14, %v1619_v14  ;;  %v928_v21 = vrot.slane %v926_v15, 7  ;;  %v1770_v58 = vld [vmem:[%s2057_s4 + $0x30] sm:$0xff]  }
  0x25   : > { %v650_v16 = vcombine.low %v1969_v6, %v1975_v12  ;;  %v937_v23 = vshrl.u32 %v1617_v5, 16  ;;  %v940_v24 = vshll.u32 %v1617_v5, 16  ;;  %v946_v26 = vshll.u32 %v905_v10, 16 }
  0x26   : > { %v951_v27 = vshrl.u32 %v1618_v7, 16  ;;  %v954_v28 = vshll.u32 %v1618_v7, 16  ;;  %v929_v30 = vor.u32 %v928_v21, %v925_v20  ;;  %v934_v31 = vrot.slane %v932_v22, 7 }
  0x27   : > { %v664_v25 = vrot.slane %v650_v16, %v1894_v8  ;;  %v939_v32 = vrot.slane %v937_v23, 6  ;;  %v942_v33 = vrot.slane %v940_v24, 7  ;;  %v948_v35 = vrot.slane %v946_v26, 7  ;;  %v1776_v23 = vld [vmem:[%s2057_s4 + $0x40] sm:$0xff]  }
  0x28   : > { %v953_v36 = vrot.slane %v951_v27, 6  ;;  %v956_v37 = vrot.slane %v954_v28, 7  ;;  %v930_v38 = vrot.slane %v929_v30, 2  ;;  %v960_v40 = vshll.u32 %v913_v18, 16  ;;  %v1771_v18 = vld [vmem:[%s2057_s4 + $0x38] sm:$0xff]  }
  0x29   : > { %v665_v34 = vcombine.low %v657_v13, %v664_v25  ;;  %v943_v39 = vor.u32 %v942_v33, %v939_v32  ;;  %v965_v41 = vshrl.u32 %v1619_v14, 16  ;;  %v968_v44 = vshll.u32 %v1619_v14, 16  ;;  %v1785_v52 = vld.sshfl [vmem:[%s1900_s11 + $0x4] sm:$0xf pattern:$0x76325410] }
  0x2a   : > { %v957_v43 = vor.u32 %v956_v37, %v953_v36  ;;  %v974_v45 = vshll.u32 %v921_v19, 16  ;;  %v935_v46 = vsel %vm1940_vm8, %v930_v38, %v934_v31  ;;  %v962_v50 = vrot.slane %v960_v40, 7  ;;  %v1786_v59 = vld.sshfl [vmem:[%s1900_s11 + $0xc] sm:$0xf pattern:$0x76325410] }
  0x2b   : > { %1689 = vmatmul.mubr.msk.bf16.vlgmr.msra.gmra.mxu0 %vm427_vm1, %v665_v34  ;;  %v944_v47 = vrot.slane %v943_v39, 2  ;;  %v967_v48 = vrot.slane %v965_v41, 6  ;;  %v970_v51 = vrot.slane %v968_v44, 7  ;;  %v829_v54 = vcombine.low %v1958_v61, %v1784_v17 }
  0x2c   : > { %1699 = vmatpush3.bf16.msra.mxu0 %v1766_v29  ;;  %1700 = vmatprep.mubr.msk.bf16.mxu0 %vm1814_vm0, %v1813_v2  ;;  %v958_v49 = vrot.slane %v957_v43, 2  ;;  %v976_v56 = vrot.slane %v974_v45, 7  ;;  %v1647_v60 = vld.sshfl [vmem:[%s1900_s11 + $0x10] sm:$0x13 pattern:$0x76325410]  ;;  %v1080_v20 = vcombine.low %v1785_v52, %v1786_v59  ;;  %v1314_v22 = vcombine.low %v1962_v62, %v1969_v6 }
  0x2d   : > { %1710 = vmatprep.subr.bf16.mxu0 %v1813_v2  ;;  %v949_v53 = vsel %vm1940_vm8, %v944_v47, %v948_v35  ;;  %v971_v55 = vor.u32 %v970_v51, %v967_v48  ;;  %v1254_v1 = vcombine.high %v1647_v60, %v1647_v60  ;;  %v1298_v3 = vshrl.u32 %v1647_v60, 16  ;;  %v1787_v14 = vld.sshfl [vmem:[%s1892_s8 + $0x4] sm:$0xf pattern:$0x76325410] }
  0x2e   : > { %v981_v57 = vcombine.low %v935_v46, %v949_v53  ;;  %v963_v63 = vsel %vm1940_vm8, %v958_v49, %v962_v50  ;;  %v1301_v4 = vshll.u32 %v1647_v60, 16  ;;  %v1788_v15 = vld.sshfl [vmem:[%s1892_s8 + $0xc] sm:$0xf pattern:$0x76325410]  ;;  %v1322_v26 = vrot.slane %v1314_v22, %v1894_v8 }
  0x2f   : > { %v972_v0 = vrot.slane %v971_v55, 2  ;;  %v1300_v9 = vrot.slane %v1298_v3, 6  ;;  %v1307_v11 = vshll.u32 %v1254_v1, 16  ;;  %v1162_v6 = vcombine.low %v1787_v14, %v1788_v15 }
  0x30   : > { %v989_v5 = vrot.slane %v981_v57, %v1894_v8  ;;  %v1303_v10 = vrot.slane %v1301_v4, 7 }
  0x31   : > { %v977_v61 = vsel %vm1940_vm8, %v972_v0, %v976_v56  ;;  %v1309_v17 = vrot.slane %v1307_v11, 7 }
  0x32   : > { %v982_v7 = vcombine.low %v963_v63, %v977_v61  ;;  %v1304_v16 = vor.u32 %v1303_v10, %v1300_v9  ;;  %v1652_v9 = vld [vmem:[%s2058_s5] ss:$0 sm:$0xff] }
  0x33   : > { %1701 = vmatmul.mubr.msk.bf16.vlgmr.msra.gmra.mxu0 %vm427_vm1, %v829_v54 }
  0x34   : > { %1711 = vmatpush3.bf16.msra.mxu0 %v1770_v58  ;;  %1712 = vmatprep.mubr.msk.bf16.mxu0 %vm1814_vm0, %v1813_v2  ;;  %v996_v13 = vrot.slane %v982_v7, %v1894_v8  ;;  %v1305_v21 = vrot.slane %v1304_v16, 2 }
  0x35   : > { %1722 = vmatprep.subr.bf16.mxu0 %v1813_v2 }
  0x36   : > { %v997_v19 = vcombine.low %v989_v5, %v996_v13  ;;  %v1310_v24 = vsel %vm1940_vm8, %v1305_v21, %v1309_v17 }
  0x37   : > { %v1315_v25 = vcombine.low %v1975_v12, %v1310_v24 }
  0x38   : > { %1707 = vmatmul.mubr.msk.bf16.vlgmr.msra.gmra.mxu1 %vm427_vm1, %v997_v19 }
  0x39   : > { %1717 = vmatpush3.bf16.msra.mxu1 %v1771_v18  ;;  %1718 = vmatprep.mubr.msk.bf16.mxu1 %vm1814_vm0, %v1813_v2  ;;  %v1329_v62 = vrot.slane %v1315_v25, %v1894_v8 }
  0x3b   : > { %1713 = vmatmul.mubr.msk.bf16.vlgmr.msra.gmra.mxu0 %vm427_vm1, %v1080_v20  ;;  %v1330_v27 = vcombine.low %v1322_v26, %v1329_v62 }
  0x3c   : > { %1723 = vmatpush3.bf16.msra.mxu0 %v1776_v23  ;;  %1724 = vmatprep.mubr.msk.bf16.mxu0 %vm1814_vm0, %v1813_v2 }
  0x40   : > { %1719 = vmatmul.mubr.msk.bf16.vlgmr.msra.gmra.mxu1 %vm427_vm1, %v1162_v6 }
  0x43   : > { %1725 = vmatmul.mubr.msk.bf16.vlgmr.msra.gmra.mxu0 %vm427_vm1, %v1330_v27 }
  0xd5   : > { %v465_v42 = vpop.f32.mrf.mxu0 }
  0xd7   : > { %v536_v28 = vpop.f32.mrf.mxu1  ;;  %v1678_v29 = vpop.f32.mrf.mxu0 }
  0xd8   : > { %v537_v39 = vadd.f32 %v536_v28, %v465_v42 }
  0xd9   : > { %v1684_v12 = vpop.f32.mrf.mxu1  ;;  %v468_v30 = vpop.f32.mrf.mxu0 }
  0xdb   : > { %v539_v31 = vpop.f32.mrf.mxu1  ;;  %v1679_v32 = vpop.f32.mrf.mxu0 }
  0xdc   : > { %v540_v44 = vadd.f32 %v539_v31, %v468_v30 }
  0xdd   : > { %v1685_v33 = vpop.f32.mrf.mxu1 }
  0xe1   : > { %v791_v34 = vpop.f32.mrf.mxu1 }
  0xe3   : > { %v1696_v35 = vpop.f32.mrf.mxu1 }
  0xe5   : > { %v794_v36 = vpop.f32.mrf.mxu1 }
  0xe7   : > { %v1697_v2 = vpop.f32.mrf.mxu1 }
  0xeb   : > { %v709_v37 = vpop.f32.mrf.mxu0 }
  0xec   : > { %v716_v41 = vadd.f32 %v709_v37, %v537_v39 }
  0xed   : > { %v1690_v8 = vpop.f32.mrf.mxu0 }
  0xee   : > { %v798_v46 = vadd.f32 %v791_v34, %v716_v41 }
  0xef   : > { %v712_v38 = vpop.f32.mrf.mxu0 }
  0xf0   : > { %v717_v47 = vadd.f32 %v712_v38, %v540_v44 }
  0xf1   : > { %v1691_v40 = vpop.f32.mrf.mxu0 }
  0xf2   : > { %v799_v52 = vadd.f32 %v794_v36, %v717_v47 }
  0xf3   : > { %v873_v43 = vpop.f32.mrf.mxu0 }
  0xf4   : > { %v880_v49 = vadd.f32 %v873_v43, %v798_v46 }
  0xf5   : > { %v1702_v45 = vpop.f32.mrf.mxu0 }
  0xf7   : > { %v876_v48 = vpop.f32.mrf.mxu0 }
  0xf8   : > { %v1041_v51 = vpop.f32.mrf.mxu1  ;;  %v881_v56 = vadd.f32 %v876_v48, %v799_v52 }
  0xf9   : > { %v1703_v50 = vpop.f32.mrf.mxu0  ;;  %v1048_v55 = vadd.f32 %v1041_v51, %v880_v49 }
  0xfa   : > { %v1708_v53 = vpop.f32.mrf.mxu1 }
  0xfb   : > { %v1124_v54 = vpop.f32.mrf.mxu0 }
  0xfc   : > { %v1044_v57 = vpop.f32.mrf.mxu1  ;;  %v1131_v59 = vadd.f32 %v1124_v54, %v1048_v55 }
  0xfd   : > { %v1714_v58 = vpop.f32.mrf.mxu0  ;;  %v1049_v0 = vadd.f32 %v1044_v57, %v881_v56 }
  0xfe   : > { %v1709_v60 = vpop.f32.mrf.mxu1 }
  0xff   : > { %v1127_v63 = vpop.f32.mrf.mxu0 }
 0x100   : > { %v1206_v1 = vpop.f32.mrf.mxu1  ;;  %v1132_v61 = vadd.f32 %v1127_v63, %v1049_v0 }
 0x101   : > { %v1715_v3 = vpop.f32.mrf.mxu0  ;;  %v1213_v4 = vadd.f32 %v1206_v1, %v1131_v59 }
 0x102   : > { %v1720_v5 = vpop.f32.mrf.mxu1 }
 0x103   : > { %v1374_v7 = vpop.f32.mrf.mxu0 }
 0x104   : > { %v1381_v10 = vadd.f32 %v1374_v7, %v1213_v4  ;;  %v1209_v11 = vpop.f32.mrf.mxu1 }
 0x105   : > { %v1726_v13 = vpop.f32.mrf.mxu0  ;;  %v1214_v14 = vadd.f32 %v1209_v11, %v1132_v61 }
 0x106   : > { %v1390_v15 = vadd.f32 %v1652_v9, %v1381_v10  ;;  %v1721_v16 = vpop.f32.mrf.mxu1 }
 0x107   : > { %v1377_v17 = vpop.f32.mrf.mxu0 }
 0x108   : > { %v1392_v18 = vmax.f32 %v1390_v15, 0.0  ;;  %v1382_v19 = vadd.f32 %v1377_v17, %v1214_v14 }
 0x109   : > { %v1727_v20 = vpop.f32.mrf.mxu0 }
 0x10a   : > { %v1396_v21 = vcombine.high %v1392_v18, %v1392_v18  ;;  %v1400_v22 = vpack.c.bf16 %v1392_v18, %v1392_v18  ;;  %v1391_v23 = vadd.f32 %v1652_v9, %v1382_v19 }
 0x10c   : > { %v1401_v24 = vpack.c.bf16 %v1396_v21, %v1396_v21  ;;  %1404 = vst [vmem:[%s379_s17] sm:$0x3] %v1400_v22  ;;  %v1393_v25 = vmax.f32 %v1391_v23, 0.0 }
 0x10e   : > { %1405 = vst [vmem:[%s379_s17 + $0x2] sm:$0x3] %v1401_v24  ;;  %v1397_v26 = vcombine.high %v1393_v25, %v1393_v25  ;;  %v1402_v62 = vpack.c.bf16 %v1393_v25, %v1393_v25 }
 0x110   : > { %v1403_v6 = vpack.c.bf16 %v1397_v26, %v1397_v26  ;;  %1406 = vst [vmem:[%s379_s17 + $0x4] sm:$0x3] %v1402_v62 }
 0x112   : > { %1407 = vst [vmem:[%s379_s17 + $0x6] sm:$0x3] %v1403_v6 }
 0x113 PF: > { %s16_s23 = sadd.s32 1, %s1811_s23   ;;  %s2064_s21 = smov %s1807_s22 }
 0x114   : > { %p13_p5 = scmp.ge.s32.totalorder %s16_s23, 4   ;;  %s2065_s22 = smov %s2067_s24 }
 0x116   :  { %15 = sbr.rel (!%p13_p5) target bundleno = 2 (0x2), region = 103 }

// kernel: _lambda_.11
= control target key start
LH: loop header
LB: loop body
LE: loop exit
PB: predicated region body
PF: predicated region fallthrough
CT: control target
= control target key end

     0   :  { %s1588_s21 = smov 0   ;;  %s1590_s22 = smov 0   ;;  %s1773_s0 = inlined_call_operand.vmem [shape: bf16[2,3,3,128], index: 0, kind: input, shape index: {}]   ;;  %s1774_s1 = inlined_call_operand.vmem [shape: bf16[2,3,3,128], index: 1, kind: input, shape index: {}]   ;;  %s1775_s2 = inlined_call_operand.vmem [shape: bf16[2,3,3,128], index: 2, kind: input, shape index: {}]   ;;  %s1776_s3 = inlined_call_operand.vmem [shape: bf16[2,3,3,128], index: 3, kind: input, shape index: {}]   ;;  %s1777_s4 = inlined_call_operand.vmem [shape: bf16[9,16,128], index: 4, kind: input, shape index: {}]   ;;  %s1778_s5 = inlined_call_operand.vmem [shape: f32[1,128], index: 5, kind: input, shape index: {}]   ;;  %s1779_s6 = inlined_call_operand.vmem [shape: bf16[2,2,2,128], index: 6, kind: output, shape index: {}]  }
   0x1   :  { %s1592_s23 = smov 0  }
   0x2 LB: > { %s35_s24 = sadd.s32 1, %s1543_s22  ;;  %p1354_p0 = scmp.ge.s32.totalorder %s1547_s23, 1  ;;  %s1547_s23 = sphi %s1592_s23, %s16_s23   ;;  %s1543_s22 = sphi %s1590_s22, %s1783_s22   ;;  %s1539_s21 = sphi %s1588_s21, %s1782_s21  }
   0x3   : > { %p37_p1 = scmp.ge.s32.totalorder %s35_s24, 2  ;;  %p282_p2 = scmp.lt.s32.totalorder %s1547_s23, 3 }
   0x5   : > { %s1785_s24 = smov (%p37_p1, %s35_s24), 0  ;;  %p283_p3 = pnand %p1354_p0, %p282_p2 }
   0x6   : > { %p340_p4 = scmp.lt.s32.totalorder (!%p283_p3), %s1539_s21, 1 }
   0x7   : > { %286 = sbr.rel (%p283_p3) target bundleno = 262 (0x106), region = 44 }
   0xc   : > { %v1516_v0 = vld [vmem:[%s1777_s4 + $0x8] sm:$0xff]   ;;  %v400_v1 = vlaneseq  ;;  %v1549_v2 = vmov 0.0   ;;  %v1517_v3 = vld [vmem:[%s1777_s4] sm:$0xff]   ;;  %vm1550_vm0 = vmmov 0   ;;  %v1551_v4 = vmov 1966171168  }
   0xd   : > { %1433 = vmatprep.subr.bf16.mxu0 %v1549_v2  ;;  %1439 = vmatprep.subr.bf16.mxu1 %v1549_v2  ;;  %v398_v5 = vunpack.c.l.s4 %v1551_v4  ;;  %s1787_s21 = smov (!%p340_p4, %s1539_s21), 1  ;;  %vm547_vm1 = vsmask.f32 256  ;;  %vm548_vm2 = vsmask.f32 1284  ;;  %vm417_vm15 = vcmask 130048  }
   0xe   : > { %1434 = vmatpush3.bf16.msra.mxu0 %v1516_v0  ;;  %1435 = vmatprep.mubr.msk.bf16.mxu0 %vm1550_vm0, %v1549_v2  ;;  %v1621_v6 = vshrl.u32 %v400_v1, 7  ;;  %vm550_vm3 = vsmask.f32 2312  ;;  %vm552_vm4 = vsmask.f32 3340  ;;  %s1625_s29 = smul.u32 6, %s1787_s21  ;;  %vm549_vm5 = vmor %vm547_vm1, %vm548_vm2 }
   0xf   : > { %1440 = vmatpush3.bf16.msra.mxu1 %v1517_v3  ;;  %1441 = vmatprep.mubr.msk.bf16.mxu1 %vm1550_vm0, %v1549_v2  ;;  %v399_v7 = vunpack.c.0.s8 %v398_v5  ;;  %vm554_vm6 = vsmask.f32 4368  ;;  %vm551_vm7 = vmor %vm549_vm5, %vm550_vm3  ;;  %vm556_vm8 = vsmask.f32 5396  ;;  %vm558_vm9 = vsmask.f32 6424 }
  0x10   : > { %1445 = vmatprep.subr.bf16.mxu0 %v1549_v2  ;;  %1451 = vmatprep.subr.bf16.mxu1 %v1549_v2  ;;  %s1631_s8 = scalar_lea.vmem %s1774_s1, %s1625_s29  ;;  %s1640_s11 = scalar_lea.vmem %s1773_s0, %s1625_s29  ;;  %vm553_vm10 = vmor %vm551_vm7, %vm552_vm4  ;;  %vm560_vm11 = vsmask.f32 7452  ;;  %v1518_v25 = vld [vmem:[%s1777_s4 + $0x10] sm:$0xff]   ;;  %v1519_v30 = vld [vmem:[%s1777_s4 + $0x18] sm:$0xff]  }
  0x11   : > { %v1634_v8 = vsub.s32 %v399_v7, %v1621_v6  ;;  %v389_v9 = vld [vmem:[%s1631_s8] sm:$0x1]  ;;  %v390_v10 = vld [vmem:[%s1631_s8 + $0x2] sm:$0x1]  ;;  %s1649_s14 = scalar_lea.vmem %s1775_s2, %s1625_s29  ;;  %vm555_vm12 = vmor %vm553_vm10, %vm554_vm6  ;;  %s359_s17 = scalar_lea.vmem %s1776_s3, %s1625_s29 }
  0x12   : > { %v383_v11 = vld [vmem:[%s1640_s11] sm:$0x1]  ;;  %v396_v12 = vcombine.low %v389_v9, %v390_v10  ;;  %v384_v13 = vld [vmem:[%s1640_s11 + $0x2] sm:$0x1]  ;;  %vm557_vm13 = vmor %vm555_vm12, %vm556_vm8 }
  0x13   : > { %v1366_v14 = vld.sshfl [vmem:[%s1640_s11] sm:$0x11 pattern:$0x75316420]  ;;  %v463_v15 = vcombine.low %v383_v11, %v384_v13  ;;  %vm559_vm14 = vmor %vm557_vm13, %vm558_vm9  ;;  %v651_v23 = vld [vmem:[%s1649_s14 + $0x2] sm:$0x1] }
  0x14   : > { %v1367_v16 = vld.sshfl [vmem:[%s1640_s11 + $0x2] sm:$0x11 pattern:$0x75316420]  ;;  %v538_v17 = vcombine.high %v1366_v14, %v1366_v14  ;;  %v563_v18 = vshrl.u32 %v1366_v14, 16  ;;  %v403_v19 = vrot.slane %v396_v12, %v1634_v8  ;;  %vm1669_vm1 = vmor %vm559_vm14, %vm560_vm11  ;;  %v1521_v53 = vld [vmem:[%s1777_s4 + $0x28] sm:$0xff]  }
  0x15   : > { %v546_v20 = vcombine.high %v1367_v16, %v1367_v16  ;;  %v572_v21 = vshrl.u32 %v1367_v16, 16  ;;  %v650_v22 = vld [vmem:[%s1649_s14] sm:$0x1]  ;;  %v470_v24 = vrot.slane %v463_v15, %v1634_v8  ;;  %v725_v42 = vld [vmem:[%s359_s17 + $0x2] sm:$0x1]  ;;  %v1522_v4 = vld [vmem:[%s1777_s4 + $0x30] sm:$0xff]  }
  0x16   : > { %v568_v27 = vshll.u32 %v538_v17, 16  ;;  %v657_v28 = vcombine.low %v650_v22, %v651_v23  ;;  %v410_v29 = vrot.slane %v403_v19, %v1634_v8  ;;  %v724_v34 = vld [vmem:[%s359_s17] sm:$0x1]  ;;  %v1390_v59 = vld [vmem:[%s1640_s11 + $0x2] sm:$0x1]  ;;  %v1523_v10 = vld [vmem:[%s1777_s4 + $0x38] sm:$0xff]  }
  0x17   : > { %v577_v31 = vshll.u32 %v546_v20, 16  ;;  %v477_v32 = vrot.slane %v470_v24, %v1634_v8  ;;  %v1382_v35 = vld.sshfl [vmem:[%s1649_s14] sm:$0x11 pattern:$0x75316420]  ;;  %v731_v47 = vcombine.low %v724_v34, %v725_v42 }
  0x18   : > { %v570_v33 = vsel %vm1669_vm1, %v563_v18, %v568_v27  ;;  %1436 = vmatmul.mubr.msk.bf16.vlgmr.msra.gmra.mxu0 %vm417_vm15, %v410_v29  ;;  %v1383_v37 = vld.sshfl [vmem:[%s1649_s14 + $0x2] sm:$0x11 pattern:$0x75316420]  ;;  %v807_v38 = vcombine.high %v1382_v35, %v1382_v35  ;;  %v817_v39 = vshrl.u32 %v1382_v35, 16  ;;  %v664_v41 = vrot.slane %v657_v28, %v1634_v8  ;;  %s1359_s14 = sshll.u32 %s1787_s21, 1 }
  0x19   : > { %v1684_v36 = vsel %vm1669_vm1, %v572_v21, %v577_v31  ;;  %1442 = vmatmul.mubr.msk.bf16.vlgmr.msra.gmra.mxu1 %vm417_vm15, %v477_v32  ;;  %1446 = vmatpush3.bf16.msra.mxu0 %v1518_v25  ;;  %v815_v43 = vcombine.high %v1383_v37, %v1383_v37  ;;  %v826_v45 = vshrl.u32 %v1383_v37, 16  ;;  %v1520_v52 = vld [vmem:[%s1777_s4 + $0x20] sm:$0xff]   ;;  %v738_v57 = vrot.slane %v731_v47, %v1634_v8  ;;  %s377_s17 = scalar_lea.vmem %s1779_s6, %s1359_s14 }
  0x1a   : > { %v583_v40 = vcombine.low %v570_v33, %v1684_v36  ;;  %1452 = vmatpush3.bf16.msra.mxu1 %v1519_v30  ;;  %1447 = vmatprep.mubr.msk.bf16.mxu0 %vm1550_vm0, %v1549_v2  ;;  %v822_v44 = vshll.u32 %v807_v38, 16  ;;  %v671_v51 = vrot.slane %v664_v41, %v1634_v8  ;;  %v1405_v55 = vld.sshfl [vmem:[%s1640_s11 + $0x4] sm:$0x11 pattern:$0x75316420] }
  0x1b   : > { %1453 = vmatprep.mubr.msk.bf16.mxu1 %vm1550_vm0, %v1549_v2  ;;  %1457 = vmatprep.subr.bf16.mxu0 %v1549_v2  ;;  %v831_v49 = vshll.u32 %v815_v43, 16  ;;  %v1391_v60 = vld [vmem:[%s1640_s11 + $0x4] sm:$0x1]  ;;  %v1070_v61 = vcombine.high %v1405_v55, %v1405_v55  ;;  %v1396_v62 = vld [vmem:[%s1631_s8 + $0x2] sm:$0x1]  ;;  %v745_v0 = vrot.slane %v738_v57, %v1634_v8  ;;  %v1081_v7 = vshrl.u32 %v1405_v55, 16 }
  0x1c   : > { %v590_v46 = vrot.slane %v583_v40, %v1634_v8  ;;  %1463 = vmatprep.subr.bf16.mxu1 %v1549_v2  ;;  %v824_v48 = vsel %vm1669_vm1, %v817_v39, %v822_v44  ;;  %v1397_v63 = vld [vmem:[%s1631_s8 + $0x4] sm:$0x1]  ;;  %v912_v1 = vcombine.low %v1390_v59, %v1391_v60 }
  0x1d   : > { %v833_v54 = vsel %vm1669_vm1, %v826_v45, %v831_v49  ;;  %v986_v5 = vcombine.low %v1396_v62, %v1397_v63  ;;  %v1086_v9 = vshll.u32 %v1070_v61, 16  ;;  %v1524_v17 = vld [vmem:[%s1777_s4 + $0x40] sm:$0xff]  }
  0x1e   : > { %v597_v50 = vrot.slane %v590_v46, %v1634_v8  ;;  %v837_v56 = vcombine.low %v824_v48, %v833_v54  ;;  %v919_v11 = vrot.slane %v912_v1, %v1634_v8  ;;  %v1412_v61 = vld [vmem:[%s1778_s5] ss:$0 sm:$0xff] }
  0x1f   : > { %v993_v12 = vrot.slane %v986_v5, %v1634_v8  ;;  %v1088_v13 = vsel %vm1669_vm1, %v1081_v7, %v1086_v9 }
  0x20   : > { %1448 = vmatmul.mubr.msk.bf16.vlgmr.msra.gmra.mxu0 %vm417_vm15, %v597_v50  ;;  %v844_v58 = vrot.slane %v837_v56, %v1634_v8  ;;  %v926_v14 = vrot.slane %v919_v11, %v1634_v8  ;;  %v1092_v15 = vcombine.low %v1684_v36, %v1088_v13 }
  0x21   : > { %1454 = vmatmul.mubr.msk.bf16.vlgmr.msra.gmra.mxu1 %vm417_vm15, %v671_v51  ;;  %1458 = vmatpush3.bf16.msra.mxu0 %v1520_v52  ;;  %v1000_v16 = vrot.slane %v993_v12, %v1634_v8  ;;  %v1552_v52 = vmov 1983009808  }
  0x22   : > { %1464 = vmatpush3.bf16.msra.mxu1 %v1521_v53  ;;  %1459 = vmatprep.mubr.msk.bf16.mxu0 %vm1550_vm0, %v1549_v2  ;;  %v851_v3 = vrot.slane %v844_v58, %v1634_v8  ;;  %v1099_v18 = vrot.slane %v1092_v15, %v1634_v8  ;;  %v1168_v53 = vunpack.c.l.s4 %v1552_v52 }
  0x23   : > { %1465 = vmatprep.mubr.msk.bf16.mxu1 %vm1550_vm0, %v1549_v2  ;;  %1469 = vmatprep.subr.bf16.mxu0 %v1549_v2 }
  0x24   : > { %1475 = vmatprep.subr.bf16.mxu1 %v1549_v2  ;;  %v1106_v19 = vrot.slane %v1099_v18, %v1634_v8  ;;  %v1169_v59 = vunpack.c.0.s8 %v1168_v53 }
  0x26   : > { %v1172_v1 = vsub.s32 %v1169_v59, %v1621_v6 }
  0x28   : > { %1460 = vmatmul.mubr.msk.bf16.vlgmr.msra.gmra.mxu0 %vm417_vm15, %v745_v0 }
  0x29   : > { %1466 = vmatmul.mubr.msk.bf16.vlgmr.msra.gmra.mxu1 %vm417_vm15, %v851_v3  ;;  %1470 = vmatpush3.bf16.msra.mxu0 %v1522_v4 }
  0x2a   : > { %1476 = vmatpush3.bf16.msra.mxu1 %v1523_v10  ;;  %1471 = vmatprep.mubr.msk.bf16.mxu0 %vm1550_vm0, %v1549_v2 }
  0x2b   : > { %1477 = vmatprep.mubr.msk.bf16.mxu1 %vm1550_vm0, %v1549_v2  ;;  %1481 = vmatprep.subr.bf16.mxu0 %v1549_v2 }
  0x30   : > { %1472 = vmatmul.mubr.msk.bf16.vlgmr.msra.gmra.mxu0 %vm417_vm15, %v926_v14 }
  0x31   : > { %1478 = vmatmul.mubr.msk.bf16.vlgmr.msra.gmra.mxu1 %vm417_vm15, %v1000_v16  ;;  %1482 = vmatpush3.bf16.msra.mxu0 %v1524_v17 }
  0x32   : > { %1483 = vmatprep.mubr.msk.bf16.mxu0 %vm1550_vm0, %v1549_v2 }
  0x38   : > { %1484 = vmatmul.mubr.msk.bf16.vlgmr.msra.gmra.mxu0 %vm417_vm15, %v1106_v19 }
  0xd8   : > { %v455_v20 = vpop.f32.mrf.mxu0 }
  0xd9   : > { %v521_v21 = vpop.f32.mrf.mxu1 }
  0xda   : > { %v1437_v22 = vpop.f32.mrf.mxu0  ;;  %v522_v33 = vadd.f32 %v521_v21, %v455_v20 }
  0xdb   : > { %v1443_v23 = vpop.f32.mrf.mxu1 }
  0xdc   : > { %v458_v24 = vpop.f32.mrf.mxu0 }
  0xdd   : > { %v524_v25 = vpop.f32.mrf.mxu1 }
  0xde   : > { %v1438_v26 = vpop.f32.mrf.mxu0 }
  0xdf   : > { %v1444_v27 = vpop.f32.mrf.mxu1 }
  0xe0   : > { %v641_v28 = vpop.f32.mrf.mxu0 }
  0xe1   : > { %v715_v29 = vpop.f32.mrf.mxu1  ;;  %v647_v35 = vadd.f32 %v641_v28, %v522_v33 }
  0xe2   : > { %v1449_v30 = vpop.f32.mrf.mxu0 }
  0xe3   : > { %v1455_v31 = vpop.f32.mrf.mxu1  ;;  %v721_v39 = vadd.f32 %v715_v29, %v647_v35 }
  0xe4   : > { %v644_v32 = vpop.f32.mrf.mxu0 }
  0xe5   : > { %v718_v34 = vpop.f32.mrf.mxu1 }
  0xe6   : > { %v1450_v2 = vpop.f32.mrf.mxu0 }
  0xe7   : > { %v1456_v8 = vpop.f32.mrf.mxu1 }
  0xe8   : > { %v789_v36 = vpop.f32.mrf.mxu0 }
  0xe9   : > { %v895_v37 = vpop.f32.mrf.mxu1  ;;  %v795_v42 = vadd.f32 %v789_v36, %v721_v39 }
  0xea   : > { %v1461_v38 = vpop.f32.mrf.mxu0 }
  0xeb   : > { %v1467_v40 = vpop.f32.mrf.mxu1  ;;  %v901_v47 = vadd.f32 %v895_v37, %v795_v42 }
  0xec   : > { %v792_v41 = vpop.f32.mrf.mxu0 }
  0xed   : > { %v898_v43 = vpop.f32.mrf.mxu1 }
  0xee   : > { %v1462_v44 = vpop.f32.mrf.mxu0 }
  0xef   : > { %v1468_v45 = vpop.f32.mrf.mxu1 }
  0xf0   : > { %v970_v46 = vpop.f32.mrf.mxu0 }
  0xf1   : > { %v1044_v48 = vpop.f32.mrf.mxu1  ;;  %v976_v50 = vadd.f32 %v970_v46, %v901_v47 }
  0xf2   : > { %v1473_v49 = vpop.f32.mrf.mxu0 }
  0xf3   : > { %v1479_v51 = vpop.f32.mrf.mxu1  ;;  %v1050_v57 = vadd.f32 %v1044_v48, %v976_v50 }
  0xf4   : > { %v973_v54 = vpop.f32.mrf.mxu0 }
  0xf5   : > { %v1047_v55 = vpop.f32.mrf.mxu1 }
  0xf6   : > { %v1474_v56 = vpop.f32.mrf.mxu0 }
  0xf7   : > { %v1480_v58 = vpop.f32.mrf.mxu1 }
  0xf8   : > { %v1150_v60 = vpop.f32.mrf.mxu0 }
  0xf9   : > { %v1156_v62 = vadd.f32 %v1150_v60, %v1050_v57 }
  0xfa   : > { %v1485_v63 = vpop.f32.mrf.mxu0 }
  0xfb   : > { %v1164_v0 = vadd.f32 %v1412_v61, %v1156_v62 }
  0xfc   : > { %v1153_v3 = vpop.f32.mrf.mxu0 }
  0xfd   : > { %v1165_v4 = vmax.f32 %v1164_v0, 0.0 }
  0xfe   : > { %v1486_v5 = vpop.f32.mrf.mxu0 }
  0xff   : > { %v1173_v7 = vrot.slane %v1165_v4, %v1172_v1 }
 0x101   : > { %v1174_v9 = vcombine.high %v1173_v7, %v1173_v7  ;;  %v1177_v10 = vpack.c.bf16 %v1173_v7, %v1173_v7 }
 0x103   : > { %v1178_v11 = vpack.c.bf16 %v1174_v9, %v1174_v9  ;;  %1179 = vst [vmem:[%s377_s17] sm:$0x1] %v1177_v10 }
 0x105   : > { %1180 = vst [vmem:[%s377_s17 + $0x1] sm:$0x1] %v1178_v11 }
 0x106 PF: > { %s16_s23 = sadd.s32 1, %s1547_s23   ;;  %s1782_s21 = smov %s1543_s22 }
 0x107   : > { %p13_p5 = scmp.ge.s32.totalorder %s16_s23, 4   ;;  %s1783_s22 = smov %s1785_s24 }
 0x109   :  { %15 = sbr.rel (!%p13_p5) target bundleno = 2 (0x2), region = 103 }

// kernel: _lambda_.12
= control target key start
LH: loop header
LB: loop body
LE: loop exit
PB: predicated region body
PF: predicated region fallthrough
CT: control target
= control target key end

     0   :  { %s1417_s21 = smov 0   ;;  %s1419_s22 = smov 0   ;;  %s1579_s0 = inlined_call_operand.vmem [shape: bf16[2,2,2,128], index: 0, kind: input, shape index: {}]   ;;  %s1580_s1 = inlined_call_operand.vmem [shape: bf16[2,2,2,128], index: 1, kind: input, shape index: {}]   ;;  %s1581_s2 = inlined_call_operand.vmem [shape: bf16[2,2,2,128], index: 2, kind: input, shape index: {}]   ;;  %s1582_s3 = inlined_call_operand.vmem [shape: bf16[2,2,2,128], index: 3, kind: input, shape index: {}]   ;;  %s1583_s4 = inlined_call_operand.vmem [shape: bf16[9,32,128], index: 4, kind: input, shape index: {}]   ;;  %s1584_s5 = inlined_call_operand.vmem [shape: f32[1,128], index: 5, kind: input, shape index: {}]   ;;  %s1585_s6 = inlined_call_operand.vmem [shape: bf16[2,1,1,128], index: 6, kind: output, shape index: {}]  }
   0x1   :  { %s1421_s23 = smov 0  }
   0x2 LB: > { %s35_s24 = sadd.s32 1, %s1373_s22  ;;  %p1143_p0 = scmp.ge.s32.totalorder %s1377_s23, 1  ;;  %s1377_s23 = sphi %s1421_s23, %s16_s23   ;;  %s1373_s22 = sphi %s1419_s22, %s1587_s22   ;;  %s1369_s21 = sphi %s1417_s21, %s1586_s21  }
   0x3   : > { %p37_p1 = scmp.ge.s32.totalorder %s35_s24, 2  ;;  %p278_p2 = scmp.lt.s32.totalorder %s1377_s23, 3 }
   0x5   : > { %s1589_s24 = smov (%p37_p1, %s35_s24), 0  ;;  %p279_p3 = pnand %p1143_p0, %p278_p2 }
   0x6   : > { %p330_p4 = scmp.lt.s32.totalorder (!%p279_p3), %s1369_s21, 1 }
   0x7   : > { %282 = sbr.rel (%p279_p3) target bundleno = 256 (0x100), region = 44 }
   0xc   : > { %v1337_v0 = vld [vmem:[%s1583_s4 + $0x18] sm:$0xff]   ;;  %v1379_v1 = vmov 0.0   ;;  %v1338_v2 = vld [vmem:[%s1583_s4 + $0x8] sm:$0xff]   ;;  %v496_v3 = vlaneseq  ;;  %v1339_v4 = vld [vmem:[%s1583_s4 + $0x10] sm:$0xff]   ;;  %vm1380_vm0 = vmmov 0   ;;  %s1591_s21 = smov (!%p330_p4, %s1369_s21), 1 }
   0xd   : > { %1238 = vmatprep.subr.bf16.mxu0 %v1379_v1  ;;  %1246 = vmatprep.subr.bf16.mxu1 %v1379_v1  ;;  %v1340_v5 = vld [vmem:[%s1583_s4] sm:$0xff]   ;;  %vm388_vm1 = vcmask 261120   ;;  %v1381_v6 = vmov 1966171168   ;;  %s1458_s9 = sshll.u32 %s1591_s21, 1  ;;  %v1341_v9 = vld [vmem:[%s1583_s4 + $0x28] sm:$0xff]   ;;  %s361_s16 = scalar_lea.vmem %s1585_s6, %s1591_s21 }
   0xe   : > { %1239 = vmatpush3.bf16.msra.mxu0 %v1337_v0  ;;  %1242 = vmatprep.mubr.msk.bf16.mxu0 %vm1380_vm0, %v1379_v1  ;;  %v494_v7 = vunpack.c.l.s4 %v1381_v6  ;;  %v497_v8 = vshrl.u32 %v496_v3, 7  ;;  %s1467_s14 = scalar_lea.vmem %s1580_s1, %s1458_s9  ;;  %s1474_s17 = scalar_lea.vmem %s1579_s0, %s1458_s9  ;;  %v1342_v11 = vld [vmem:[%s1583_s4 + $0x38] sm:$0xff]   ;;  %v1343_v15 = vld [vmem:[%s1583_s4 + $0x20] sm:$0xff]   ;;  %v1344_v17 = vld [vmem:[%s1583_s4 + $0x30] sm:$0xff]   ;;  %vm981_vm2 = vcmask 1040384  }
   0xf   : > { %1247 = vmatpush3.bf16.msra.mxu1 %v1338_v2  ;;  %1240 = vmatprep.subr.bf16.mxu0 %v1379_v1  ;;  %v370_v12 = vld [vmem:[%s1467_s14] sm:$0x1]  ;;  %s341_s28 = scalar_lea.vmem %s1581_s2, %s1458_s9  ;;  %v1345_v21 = vld [vmem:[%s1583_s4 + $0x48] sm:$0xff]   ;;  %v1346_v23 = vld [vmem:[%s1583_s4 + $0x58] sm:$0xff]   ;;  %s345_s20 = scalar_lea.vmem %s1582_s3, %s1458_s9  ;;  %vm982_vm3 = vsmask.f32 256 }
  0x10   : > { %1248 = vmatprep.subr.bf16.mxu1 %v1379_v1  ;;  %1250 = vmatprep.mubr.msk.bf16.mxu1 %vm1380_vm0, %v1379_v1  ;;  %v495_v10 = vunpack.c.0.s8 %v494_v7  ;;  %v364_v13 = vld [vmem:[%s1474_s17] sm:$0x1]  ;;  %v1348_v26 = vld [vmem:[%s1583_s4 + $0x50] sm:$0xff]   ;;  %v1349_v29 = vld [vmem:[%s1583_s4 + $0x68] sm:$0xff]  }
  0x11   : > { %v567_v19 = vld [vmem:[%s341_s28] sm:$0x1]  ;;  %v1350_v30 = vld [vmem:[%s1583_s4 + $0x78] sm:$0xff]   ;;  %v1352_v32 = vld [vmem:[%s1583_s4 + $0x70] sm:$0xff]  }
  0x12   : > { %1241 = vmatpush3.bf16.msra.mxu0 %v1339_v4  ;;  %v498_v14 = vsub.s32 %v495_v10, %v497_v8  ;;  %v1347_v25 = vld [vmem:[%s1583_s4 + $0x40] sm:$0xff]   ;;  %v1353_v35 = vld [vmem:[%s1583_s4 + $0x88] sm:$0xff]   ;;  %vm983_vm4 = vmand %vm981_vm2, %vm982_vm3 }
  0x13   : > { %1249 = vmatpush3.bf16.msra.mxu1 %v1340_v5  ;;  %1254 = vmatprep.subr.bf16.mxu0 %v1379_v1  ;;  %v630_v28 = vld [vmem:[%s345_s20] sm:$0x1]  ;;  %v1186_v33 = vld [vmem:[%s1474_s17 + $0x1] sm:$0x1] }
  0x14   : > { %1262 = vmatprep.subr.bf16.mxu1 %v1379_v1  ;;  %v499_v16 = vrot.slane %v364_v13, %v498_v14  ;;  %v704_v20 = vrot.slane %v567_v19, %v498_v14  ;;  %v1351_v31 = vld [vmem:[%s1583_s4 + $0x60] sm:$0xff]   ;;  %v910_v34 = vrot.slane %v1186_v33, %v498_v14 }
  0x15   : > { %1243 = vmatmul.mubr.msk.bf16.vlgmr.msra.gmra.mxu0 %vm388_vm1, %v370_v12  ;;  %v1194_v36 = vld [vmem:[%s1467_s14 + $0x1] sm:$0x1] }
  0x16   : > { %1251 = vmatmul.mubr.msk.bf16.vlgmr.msra.gmra.mxu1 %vm388_vm1, %v364_v13  ;;  %1255 = vmatpush3.bf16.msra.mxu0 %v1341_v9  ;;  %v506_v18 = vrot.slane %v499_v16, %v498_v14  ;;  %v711_v24 = vrot.slane %v704_v20, %v498_v14  ;;  %v917_v37 = vrot.slane %v910_v34, %v498_v14  ;;  %v1354_v38 = vld [vmem:[%s1583_s4 + $0x80] sm:$0xff]  }
  0x17   : > { %1263 = vmatpush3.bf16.msra.mxu1 %v1342_v11  ;;  %1256 = vmatprep.subr.bf16.mxu0 %v1379_v1  ;;  %v977_v16 = vld [vmem:[%s1584_s5] sm:$0x1] }
  0x18   : > { %1264 = vmatprep.subr.bf16.mxu1 %v1379_v1  ;;  %1258 = vmatprep.mubr.msk.bf16.mxu0 %vm1380_vm0, %v1379_v1  ;;  %v508_v22 = vshrl.u32 %v506_v18, 16  ;;  %v713_v27 = vshrl.u32 %v711_v24, 16  ;;  %v919_v39 = vshrl.u32 %v917_v37, 16 }
  0x19   : > { %1266 = vmatprep.mubr.msk.bf16.mxu1 %vm1380_vm0, %v1379_v1 }
  0x1a   : > { %1257 = vmatpush3.bf16.msra.mxu0 %v1343_v15 }
  0x1b   : > { %1265 = vmatpush3.bf16.msra.mxu1 %v1344_v17  ;;  %1270 = vmatprep.subr.bf16.mxu0 %v1379_v1 }
  0x1c   : > { %1278 = vmatprep.subr.bf16.mxu1 %v1379_v1 }
  0x1d   : > { %1259 = vmatmul.mubr.msk.bf16.vlgmr.msra.gmra.mxu0 %vm388_vm1, %v508_v22  ;;  %v984_v22 = vld [vmem:[%s361_s16] sm:$0x1] }
  0x1e   : > { %1267 = vmatmul.mubr.msk.bf16.vlgmr.msra.gmra.mxu1 %vm388_vm1, %v567_v19  ;;  %1271 = vmatpush3.bf16.msra.mxu0 %v1345_v21 }
  0x1f   : > { %1279 = vmatpush3.bf16.msra.mxu1 %v1346_v23  ;;  %1272 = vmatprep.subr.bf16.mxu0 %v1379_v1 }
  0x20   : > { %1280 = vmatprep.subr.bf16.mxu1 %v1379_v1  ;;  %1274 = vmatprep.mubr.msk.bf16.mxu0 %vm1380_vm0, %v1379_v1 }
  0x21   : > { %1282 = vmatprep.mubr.msk.bf16.mxu1 %vm1380_vm0, %v1379_v1 }
  0x22   : > { %1273 = vmatpush3.bf16.msra.mxu0 %v1347_v25 }
  0x23   : > { %1281 = vmatpush3.bf16.msra.mxu1 %v1348_v26  ;;  %1286 = vmatprep.subr.bf16.mxu0 %v1379_v1 }
  0x24   : > { %1294 = vmatprep.subr.bf16.mxu1 %v1379_v1 }
  0x25   : > { %1275 = vmatmul.mubr.msk.bf16.vlgmr.msra.gmra.mxu0 %vm388_vm1, %v630_v28 }
  0x26   : > { %1283 = vmatmul.mubr.msk.bf16.vlgmr.msra.gmra.mxu1 %vm388_vm1, %v713_v27  ;;  %1287 = vmatpush3.bf16.msra.mxu0 %v1349_v29 }
  0x27   : > { %1295 = vmatpush3.bf16.msra.mxu1 %v1350_v30  ;;  %1288 = vmatprep.subr.bf16.mxu0 %v1379_v1 }
  0x28   : > { %1296 = vmatprep.subr.bf16.mxu1 %v1379_v1  ;;  %1290 = vmatprep.mubr.msk.bf16.mxu0 %vm1380_vm0, %v1379_v1 }
  0x29   : > { %1298 = vmatprep.mubr.msk.bf16.mxu1 %vm1380_vm0, %v1379_v1 }
  0x2a   : > { %1289 = vmatpush3.bf16.msra.mxu0 %v1351_v31 }
  0x2b   : > { %1297 = vmatpush3.bf16.msra.mxu1 %v1352_v32  ;;  %1302 = vmatprep.subr.bf16.mxu0 %v1379_v1 }
  0x2d   : > { %1291 = vmatmul.mubr.msk.bf16.vlgmr.msra.gmra.mxu0 %vm388_vm1, %v1186_v33 }
  0x2e   : > { %1299 = vmatmul.mubr.msk.bf16.vlgmr.msra.gmra.mxu1 %vm388_vm1, %v1194_v36  ;;  %1303 = vmatpush3.bf16.msra.mxu0 %v1353_v35 }
  0x2f   : > { %1304 = vmatprep.subr.bf16.mxu0 %v1379_v1  ;;  %1306 = vmatprep.mubr.msk.bf16.mxu0 %vm1380_vm0, %v1379_v1 }
  0x32   : > { %1305 = vmatpush3.bf16.msra.mxu0 %v1354_v38 }
  0x35   : > { %1307 = vmatmul.mubr.msk.bf16.vlgmr.msra.gmra.mxu0 %vm388_vm1, %v919_v39 }
  0xd5   : > { %v426_v40 = vpop.f32.mrf.mxu0 }
  0xd6   : > { %v481_v41 = vpop.f32.mrf.mxu1 }
  0xd7   : > { %v1244_v42 = vpop.f32.mrf.mxu0  ;;  %v482_v53 = vadd.f32 %v481_v41, %v426_v40 }
  0xd8   : > { %v1252_v43 = vpop.f32.mrf.mxu1 }
  0xd9   : > { %v429_v44 = vpop.f32.mrf.mxu0 }
  0xda   : > { %v484_v45 = vpop.f32.mrf.mxu1 }
  0xdb   : > { %v1245_v46 = vpop.f32.mrf.mxu0 }
  0xdc   : > { %v1253_v47 = vpop.f32.mrf.mxu1 }
  0xdd   : > { %v559_v48 = vpop.f32.mrf.mxu0 }
  0xde   : > { %v622_v49 = vpop.f32.mrf.mxu1  ;;  %v565_v56 = vadd.f32 %v559_v48, %v482_v53 }
  0xdf   : > { %v1260_v50 = vpop.f32.mrf.mxu0 }
  0xe0   : > { %v1268_v51 = vpop.f32.mrf.mxu1  ;;  %v628_v61 = vadd.f32 %v622_v49, %v565_v56 }
  0xe1   : > { %v562_v52 = vpop.f32.mrf.mxu0 }
  0xe2   : > { %v625_v54 = vpop.f32.mrf.mxu1 }
  0xe3   : > { %v1261_v55 = vpop.f32.mrf.mxu0 }
  0xe4   : > { %v1269_v57 = vpop.f32.mrf.mxu1 }
  0xe5   : > { %v685_v58 = vpop.f32.mrf.mxu0 }
  0xe6   : > { %v764_v59 = vpop.f32.mrf.mxu1  ;;  %v691_v0 = vadd.f32 %v685_v58, %v628_v61 }
  0xe7   : > { %v1276_v60 = vpop.f32.mrf.mxu0 }
  0xe8   : > { %v1284_v62 = vpop.f32.mrf.mxu1  ;;  %v770_v5 = vadd.f32 %v764_v59, %v691_v0 }
  0xe9   : > { %v688_v63 = vpop.f32.mrf.mxu0 }
  0xea   : > { %v767_v1 = vpop.f32.mrf.mxu1 }
  0xeb   : > { %v1277_v2 = vpop.f32.mrf.mxu0 }
  0xec   : > { %v1285_v3 = vpop.f32.mrf.mxu1 }
  0xed   : > { %v828_v4 = vpop.f32.mrf.mxu0 }
  0xee   : > { %v891_v6 = vpop.f32.mrf.mxu1  ;;  %v834_v8 = vadd.f32 %v828_v4, %v770_v5 }
  0xef   : > { %v1292_v7 = vpop.f32.mrf.mxu0 }
  0xf0   : > { %v1300_v9 = vpop.f32.mrf.mxu1  ;;  %v897_v13 = vadd.f32 %v891_v6, %v834_v8 }
  0xf1   : > { %v831_v10 = vpop.f32.mrf.mxu0 }
  0xf2   : > { %v894_v11 = vpop.f32.mrf.mxu1 }
  0xf3   : > { %v1293_v12 = vpop.f32.mrf.mxu0 }
  0xf4   : > { %v1301_v14 = vpop.f32.mrf.mxu1 }
  0xf5   : > { %v970_v15 = vpop.f32.mrf.mxu0 }
  0xf6   : > { %v976_v17 = vadd.f32 %v970_v15, %v897_v13 }
  0xf7   : > { %v1308_v18 = vpop.f32.mrf.mxu0 }
  0xf8   : > { %v978_v19 = vadd.f32 %v977_v16, %v976_v17 }
  0xf9   : > { %v973_v20 = vpop.f32.mrf.mxu0 }
  0xfa   : > { %v979_v21 = vmax.f32 %v978_v19, 0.0 }
  0xfb   : > { %v1309_v23 = vpop.f32.mrf.mxu0 }
  0xfc   : > { %v980_v24 = vpack.c.bf16 %v979_v21, %v979_v21 }
  0xfe   : > { %v985_v25 = vsel %vm983_vm4, %v980_v24, %v984_v22 }
  0xff   : > { %986 = vst [vmem:[%s361_s16] sm:$0x1] %v985_v25 }
 0x100 PF: > { %s16_s23 = sadd.s32 1, %s1377_s23   ;;  %s1586_s21 = smov %s1373_s22 }
 0x101   : > { %p13_p5 = scmp.ge.s32.totalorder %s16_s23, 4   ;;  %s1587_s22 = smov %s1589_s24 }
 0x103   :  { %15 = sbr.rel (!%p13_p5) target bundleno = 2 (0x2), region = 103 }

// kernel: _lambda_.13
= control target key start
LH: loop header
LB: loop body
LE: loop exit
PB: predicated region body
PF: predicated region fallthrough
CT: control target
= control target key end

     0   :  { %v180_v0 = vmov 0.0   ;;  %vm181_vm0 = vmmov 0   ;;  %s235_s1 = inlined_call_operand.vmem [shape: bf16[128,128], index: 1, kind: input, shape index: {}]   ;;  %s236_s0 = inlined_call_operand.vmem [shape: bf16[8,128], index: 0, kind: input, shape index: {}]   ;;  %s237_s2 = inlined_call_operand.vmem [shape: f32[1,128], index: 2, kind: input, shape index: {}]   ;;  %s238_s3 = inlined_call_operand.vmem [shape: f32[8,128], index: 3, kind: output, shape index: {}]  }
   0x1   :  { %150 = vmatprep.subr.bf16.mxu0 %v180_v0  ;;  %v172_v1 = vld [vmem:[%s235_s1 + $0x38] sm:$0xff]   ;;  %166 = vmatprep.mubr.msk.bf16.mxu0 %vm181_vm0, %v180_v0  ;;  %v173_v2 = vld [vmem:[%s235_s1 + $0x30] sm:$0xff]   ;;  %v174_v3 = vld [vmem:[%s235_s1 + $0x28] sm:$0xff]  }
   0x2   :  { %151 = vmatpush3.bf16.msra.mxu0 %v172_v1  ;;  %v175_v4 = vld [vmem:[%s235_s1 + $0x20] sm:$0xff]   ;;  %v176_v5 = vld [vmem:[%s235_s1 + $0x18] sm:$0xff]   ;;  %v177_v6 = vld [vmem:[%s235_s1 + $0x10] sm:$0xff]  }
   0x3   :  { %152 = vmatprep.subr.bf16.mxu0 %v180_v0  ;;  %v178_v7 = vld [vmem:[%s235_s1 + $0x8] sm:$0xff]   ;;  %v179_v8 = vld [vmem:[%s235_s1] sm:$0xff]  }
   0x4   :  { %v15_v9 = vld [vmem:[%s236_s0] sm:$0xf] }
   0x5   :  { %v132_v10 = vld [vmem:[%s237_s2] ss:$0 sm:$0xff] }
   0x6   :  { %153 = vmatpush3.bf16.msra.mxu0 %v173_v2 }
   0x7   :  { %154 = vmatprep.subr.bf16.mxu0 %v180_v0 }
   0xa   :  { %155 = vmatpush3.bf16.msra.mxu0 %v174_v3 }
   0xb   :  { %156 = vmatprep.subr.bf16.mxu0 %v180_v0 }
   0xe   :  { %157 = vmatpush3.bf16.msra.mxu0 %v175_v4 }
   0xf   :  { %158 = vmatprep.subr.bf16.mxu0 %v180_v0 }
  0x12   :  { %159 = vmatpush3.bf16.msra.mxu0 %v176_v5 }
  0x13   :  { %160 = vmatprep.subr.bf16.mxu0 %v180_v0 }
  0x16   :  { %161 = vmatpush3.bf16.msra.mxu0 %v177_v6 }
  0x17   :  { %162 = vmatprep.subr.bf16.mxu0 %v180_v0 }
  0x1a   :  { %163 = vmatpush3.bf16.msra.mxu0 %v178_v7 }
  0x1b   :  { %164 = vmatprep.subr.bf16.mxu0 %v180_v0 }
  0x1e   :  { %165 = vmatpush3.bf16.msra.mxu0 %v179_v8 }
  0x21   :  { %167 = vmatmul.mubr.bf16.vlgmr.msra.gmra.mxu0 %v15_v9 }
  0xe1   :  { %v121_v11 = vpop.f32.mrf.mxu0 }
  0xe2   :  { %v122_v12 = vadd.f32 %v132_v10, %v121_v11 }
  0xe3   :  { %v168_v13 = vpop.f32.mrf.mxu0 }
  0xe4   :  { %127 = vst [vmem:[%s238_s3] sm:$0xff] %v122_v12 }
  0xe5   :  { %v124_v14 = vpop.f32.mrf.mxu0 }
  0xe7   :  { %v169_v15 = vpop.f32.mrf.mxu0 }

// kernel: _lambda_.7
= control target key start
LH: loop header
LB: loop body
LE: loop exit
PB: predicated region body
PF: predicated region fallthrough
CT: control target
= control target key end

     0   :  { %s6362_s21 = smov 0   ;;  %s6364_s22 = smov 0   ;;  %s7873_s0 = inlined_call_operand.vmem [shape: bf16[2,17,17,16], index: 0, kind: input, shape index: {}]   ;;  %s7874_s1 = inlined_call_operand.vmem [shape: bf16[2,17,17,16], index: 1, kind: input, shape index: {}]   ;;  %s7875_s2 = inlined_call_operand.vmem [shape: bf16[2,17,17,16], index: 2, kind: input, shape index: {}]   ;;  %s7876_s3 = inlined_call_operand.vmem [shape: bf16[2,17,17,16], index: 3, kind: input, shape index: {}]   ;;  %s7877_s4 = inlined_call_operand.vmem [shape: bf16[9,16,128], index: 4, kind: input, shape index: {}]   ;;  %s7878_s5 = inlined_call_operand.vmem [shape: f32[1,128], index: 5, kind: input, shape index: {}]   ;;  %s7879_s6 = inlined_call_operand.vmem [shape: bf16[2,16,16,128], index: 6, kind: output, shape index: {}]  }
   0x1   :  { %s6366_s23 = smov 0  }
   0x2 LB: > { %s35_s24 = sadd.s32 1, %s6321_s22  ;;  %p5117_p0 = scmp.ge.s32.totalorder %s6325_s23, 1  ;;  %s6325_s23 = sphi %s6366_s23, %s16_s23   ;;  %s6321_s22 = sphi %s6364_s22, %s7943_s22   ;;  %s6317_s21 = sphi %s6362_s21, %s7942_s21  }
   0x3   : > { %p37_p1 = scmp.ge.s32.totalorder %s35_s24, 2  ;;  %p282_p2 = scmp.lt.s32.totalorder %s6325_s23, 3 }
   0x5   : > { %s7945_s24 = smov (%p37_p1, %s35_s24), 0  ;;  %p283_p3 = pnand %p5117_p0, %p282_p2 }
   0x7   : > { %286 = sbr.rel (%p283_p3) target bundleno = 511 (0x1ff), region = 44 }
   0xc   : > { %v6198_v0 = vld [vmem:[%s7877_s4 + $0x8] sm:$0xff]   ;;  %p342_p4 = scmp.lt.s32.totalorder %s6317_s21, 1  ;;  %v6201_v1 = vld [vmem:[%s7877_s4] sm:$0xff]   ;;  %v6204_v2 = vld [vmem:[%s7877_s4 + $0x10] sm:$0xff]   ;;  %vm545_vm0 = vcmask 130048  }
   0xd   : > { %6171 = vmatprep.subr.bf16.mxu1 %v6198_v0  ;;  %5865 = vmatprep.subr.bf16.mxu0 %v6198_v0  ;;  %v6405_v5 = vld [vmem:[%s7877_s4 + $0x18] sm:$0xff]   ;;  %v6412_v7 = vld [vmem:[%s7877_s4 + $0x20] sm:$0xff]   ;;  %vm1098_vm1 = vsmask.f32 3328  ;;  %vm1099_vm2 = vsmask.f32 7440 }
   0xe   : > { %s7947_s21 = smov (!%p342_p4, %s6317_s21), 1  ;;  %6172 = vmatpush3.bf16.msra.mxu1 %v6198_v0  ;;  %5866 = vmatpush3.bf16.msra.mxu0 %v6198_v0  ;;  %vm6455_vm3 = vmor %vm1098_vm1, %vm1099_vm2 }
   0xf   : > { %s6392_s7 = smul.u32 204, %s7947_s21  ;;  %5899 = vmatprep.subr.bf16.mxu1 %v6201_v1  ;;  %5933 = vmatprep.subr.bf16.mxu0 %v6204_v2  ;;  %s5584_s14 = sshll.u32 %s7947_s21, 7 }
  0x10   : > { %s7770_s16 = scalar_lea.vmem %s7879_s6, %s5584_s14 }
  0x11   : > { %s6398_s10 = scalar_lea.vmem %s7874_s1, %s6392_s7  ;;  %s6435_s17 = scalar_lea.vmem %s7873_s0, %s6392_s7 }
  0x12   : > { %v6199_v3 = vld [vmem:[%s6398_s10] sm:$0xff]   ;;  %v6202_v6 = vld [vmem:[%s6398_s10 + $0xc] sm:$0xff]   ;;  %v6205_v9 = vld [vmem:[%s6398_s10 + $0x18] sm:$0xff]   ;;  %s6597_s28 = scalar_lea.vmem %s7875_s2, %s6392_s7  ;;  %s6609_s8 = scalar_lea.vmem %s7876_s3, %s6392_s7 }
  0x13   : > { %v6200_v4 = vld [vmem:[%s6398_s10 + $0x60] sm:$0xff]   ;;  %5867 = vmatprep.mubr.msk.bf16.mxu0 %vm545_vm0, %v6199_v3  ;;  %v6203_v8 = vld [vmem:[%s6398_s10 + $0x6c] sm:$0xff]   ;;  %v6206_v10 = vld [vmem:[%s6398_s10 + $0x78] sm:$0xff]  }
  0x14   : > { %5883 = vmatprep.mubr.msk.bf16.mxu1 %vm545_vm0, %v6200_v4  ;;  %5868 = vmatmul.mubr.msk.bf16.vlgmr.msra.gmra.mxu0 %vm545_vm0, %v6202_v6  ;;  %v6207_v11 = vld [vmem:[%s6398_s10 + $0x24] sm:$0xff]   ;;  %v6209_v13 = vld [vmem:[%s6398_s10 + $0x30] sm:$0xff]   ;;  %v6211_v15 = vld [vmem:[%s6398_s10 + $0x3c] sm:$0xff]  }
  0x15   : > { %5884 = vmatmul.mubr.msk.bf16.vlgmr.msra.gmra.mxu1 %vm545_vm0, %v6203_v8  ;;  %5934 = vmatpush3.bf16.msra.mxu0 %v6204_v2  ;;  %v6208_v12 = vld [vmem:[%s6398_s10 + $0x84] sm:$0xff]   ;;  %v6210_v14 = vld [vmem:[%s6398_s10 + $0x90] sm:$0xff]   ;;  %v6212_v16 = vld [vmem:[%s6398_s10 + $0x9c] sm:$0xff]  }
  0x16   : > { %5900 = vmatpush3.bf16.msra.mxu1 %v6201_v1  ;;  %5871 = vmatprep.mubr.msk.bf16.mxu0 %vm545_vm0, %v6205_v9  ;;  %v6213_v17 = vld [vmem:[%s6398_s10 + $0x48] sm:$0xff]   ;;  %v1050_v19 = vld [vmem:[%s6435_s17] sm:$0xf]  ;;  %v1051_v20 = vld [vmem:[%s6435_s17 + $0x4] sm:$0xf] }
  0x17   : > { %5887 = vmatprep.mubr.msk.bf16.mxu1 %vm545_vm0, %v6206_v10  ;;  %5967 = vmatprep.subr.bf16.mxu1 %v6405_v5  ;;  %v6214_v18 = vld [vmem:[%s6398_s10 + $0xa8] sm:$0xff]   ;;  %v1102_v22 = vshrl.u32 %v1050_v19, 16  ;;  %v1105_v23 = vshll.u32 %v1050_v19, 16  ;;  %v1111_v24 = vshll.u32 %v1051_v20, 16  ;;  %v1115_v25 = vshrl.u32 %v1051_v20, 16  ;;  %v6215_v42 = vld [vmem:[%s6398_s10 + $0x54] sm:$0xff]  }
  0x18   : > { %6001 = vmatprep.subr.bf16.mxu0 %v6412_v7  ;;  %v1052_v21 = vld [vmem:[%s6435_s17 + $0x8] sm:$0x1]  ;;  %v1053_v27 = vld [vmem:[%s6435_s17 + $0xc] sm:$0xf]  ;;  %v1054_v32 = vld [vmem:[%s6435_s17 + $0x10] sm:$0xf] }
  0x19   : > { %v1121_v26 = vshll.u32 %v1052_v21, 16  ;;  %v1104_v28 = vrot.slane %v1102_v22, 4  ;;  %v1107_v29 = vrot.slane %v1105_v23, 5  ;;  %v1113_v30 = vrot.slane %v1111_v24, 5  ;;  %v1055_v34 = vld [vmem:[%s6435_s17 + $0x14] sm:$0x1] }
  0x1a   : > { %v1117_v31 = vrot.slane %v1115_v25, 4  ;;  %v1126_v35 = vshrl.u32 %v1053_v27, 16  ;;  %v1129_v36 = vshll.u32 %v1053_v27, 16  ;;  %v1135_v37 = vshll.u32 %v1054_v32, 16  ;;  %v1056_v47 = vld [vmem:[%s6435_s17 + $0x18] sm:$0xf] }
  0x1b   : > { %v1123_v33 = vrot.slane %v1121_v26, 5  ;;  %v1108_v38 = vor.u32 %v1107_v29, %v1104_v28  ;;  %v1139_v40 = vshrl.u32 %v1054_v32, 16  ;;  %v1145_v41 = vshll.u32 %v1055_v34, 16  ;;  %v1057_v52 = vld [vmem:[%s6435_s17 + $0x1c] sm:$0xf]  ;;  %v6216_v53 = vld [vmem:[%s6398_s10 + $0xb4] sm:$0xff]  }
  0x1c   : > { %5872 = vmatmul.mubr.msk.bf16.gmra.mxu0 %vm545_vm0, %v6207_v11  ;;  %v1118_v39 = vor.u32 %v1117_v31, %v1113_v30  ;;  %v1128_v44 = vrot.slane %v1126_v35, 4  ;;  %v1131_v45 = vrot.slane %v1129_v36, 5  ;;  %v1137_v46 = vrot.slane %v1135_v37, 5  ;;  %v1058_v55 = vld [vmem:[%s6435_s17 + $0x20] sm:$0x1]  ;;  %v6219_v22 = vld [vmem:[%s6435_s17 + $0xc] sm:$0xff]  }
  0x1d   : > { %5888 = vmatmul.mubr.msk.bf16.gmra.mxu1 %vm545_vm0, %v6208_v12  ;;  %5875 = vmatprep.mubr.msk.bf16.mxu0 %vm545_vm0, %v6209_v13  ;;  %v1109_v48 = vrot.slane %v1108_v38, 4  ;;  %v1141_v50 = vrot.slane %v1139_v40, 4  ;;  %v1147_v51 = vrot.slane %v1145_v41, 5  ;;  %v1150_v56 = vshrl.u32 %v1056_v47, 16  ;;  %v6217_v59 = vld [vmem:[%s6435_s17] sm:$0xff]   ;;  %v6221_v37 = vld [vmem:[%s6435_s17 + $0x18] sm:$0xff]  }
  0x1e   : > { %5891 = vmatprep.mubr.msk.bf16.mxu1 %vm545_vm0, %v6210_v14  ;;  %v1119_v49 = vrot.slane %v1118_v39, 4  ;;  %v1132_v54 = vor.u32 %v1131_v45, %v1128_v44  ;;  %v1153_v57 = vshll.u32 %v1056_v47, 16  ;;  %v1159_v58 = vshll.u32 %v1057_v52, 16  ;;  %v1059_v4 = vld [vmem:[%s6435_s17 + $0x24] sm:$0xf] }
  0x1f   : > { %v1114_v60 = vsel %vm6455_vm3, %v1109_v48, %v1113_v30  ;;  %v1142_v62 = vor.u32 %v1141_v50, %v1137_v46  ;;  %v1163_v63 = vshrl.u32 %v1057_v52, 16  ;;  %v1152_v2 = vrot.slane %v1150_v56, 4  ;;  %v1060_v11 = vld [vmem:[%s6435_s17 + $0x28] sm:$0xf]  ;;  %v1061_v14 = vld [vmem:[%s6435_s17 + $0x2c] sm:$0x1] }
  0x20   : > { %v1124_v61 = vsel %vm6455_vm3, %v1119_v49, %v1123_v33  ;;  %v1133_v1 = vrot.slane %v1132_v54, 4  ;;  %v1155_v3 = vrot.slane %v1153_v57, 5  ;;  %v1161_v8 = vrot.slane %v1159_v58, 5  ;;  %v1062_v21 = vld [vmem:[%s6435_s17 + $0x30] sm:$0xf]  ;;  %v6493_v49 = vld [vmem:[%s7877_s4 + $0x28] sm:$0xff]  }
  0x21   : > { %v5194_v0 = vcombine.low %v1114_v60, %v1124_v61  ;;  %v1143_v6 = vrot.slane %v1142_v62, 4  ;;  %v1165_v9 = vrot.slane %v1163_v63, 4  ;;  %v1169_v10 = vshll.u32 %v1058_v55, 16  ;;  %v1063_v27 = vld [vmem:[%s6435_s17 + $0x34] sm:$0xf] }
  0x22   : > { %v1138_v12 = vsel %vm6455_vm3, %v1133_v1, %v1137_v46  ;;  %v1156_v13 = vor.u32 %v1155_v3, %v1152_v2  ;;  %v1183_v20 = vshll.u32 %v1060_v11, 16  ;;  %v1187_v30 = vshrl.u32 %v1060_v11, 16  ;;  %v1064_v32 = vld [vmem:[%s6435_s17 + $0x38] sm:$0x1]  ;;  %v1066_v48 = vld [vmem:[%s6435_s17 + $0x40] sm:$0xf] }
  0x23   : > { %v1171_v19 = vrot.slane %v1169_v10, 5  ;;  %v1193_v31 = vshll.u32 %v1061_v14, 16  ;;  %v1198_v35 = vshrl.u32 %v1062_v21, 16  ;;  %v1201_v36 = vshll.u32 %v1062_v21, 16  ;;  %v1067_v54 = vld [vmem:[%s6435_s17 + $0x44] sm:$0x1] }
  0x24   : > { %5876 = vmatmul.mubr.msk.bf16.gmra.mxu0 %vm545_vm0, %v6211_v15  ;;  %v1174_v15 = vshrl.u32 %v1059_v4, 16  ;;  %v1157_v24 = vrot.slane %v1156_v13, 4  ;;  %v1185_v29 = vrot.slane %v1183_v20, 5  ;;  %v1189_v39 = vrot.slane %v1187_v30, 4  ;;  %v1068_v3 = vld [vmem:[%s6435_s17 + $0x48] sm:$0xf] }
  0x25   : > { %5892 = vmatmul.mubr.msk.bf16.gmra.mxu1 %vm545_vm0, %v6212_v16  ;;  %5879 = vmatprep.mubr.msk.bf16.mxu0 %vm545_vm0, %v6213_v17  ;;  %v1177_v16 = vshll.u32 %v1059_v4, 16  ;;  %v1148_v17 = vsel %vm6455_vm3, %v1143_v6, %v1147_v51  ;;  %v1195_v40 = vrot.slane %v1193_v31, 5  ;;  %v1207_v41 = vshll.u32 %v1063_v27, 16  ;;  %v6223_v11 = vld [vmem:[%s6435_s17 + $0x30] sm:$0xff]  }
  0x26   : > { %5895 = vmatprep.mubr.msk.bf16.mxu1 %vm545_vm0, %v6214_v18  ;;  %v1166_v18 = vor.u32 %v1165_v9, %v1161_v8  ;;  %v5195_v23 = vcombine.low %v1138_v12, %v1148_v17  ;;  %v1176_v25 = vrot.slane %v1174_v15, 4  ;;  %v1162_v33 = vsel %vm6455_vm3, %v1157_v24, %v1161_v8  ;;  %v1069_v9 = vld [vmem:[%s6435_s17 + $0x4c] sm:$0xf]  ;;  %v1070_v15 = vld [vmem:[%s6435_s17 + $0x50] sm:$0x1] }
  0x27   : > { %v1179_v26 = vrot.slane %v1177_v16, 5  ;;  %v1200_v46 = vrot.slane %v1198_v35, 4  ;;  %v1203_v47 = vrot.slane %v1201_v36, 5  ;;  %v1190_v50 = vor.u32 %v1189_v39, %v1185_v29  ;;  %v1071_v20 = vld [vmem:[%s6435_s17 + $0x54] sm:$0xf] }
  0x28   : > { %v1167_v28 = vrot.slane %v1166_v18, 4  ;;  %v1209_v51 = vrot.slane %v1207_v41, 5  ;;  %v1211_v52 = vshrl.u32 %v1063_v27, 16  ;;  %v1231_v62 = vshll.u32 %v1066_v48, 16  ;;  %v1074_v39 = vld [vmem:[%s6435_s17 + $0x60] sm:$0xf] }
  0x29   : > { %v1180_v34 = vor.u32 %v1179_v26, %v1176_v25  ;;  %v1204_v56 = vor.u32 %v1203_v47, %v1200_v46  ;;  %v1235_v2 = vshrl.u32 %v1066_v48, 16  ;;  %v1241_v8 = vshll.u32 %v1067_v54, 16  ;;  %v1072_v25 = vld [vmem:[%s6435_s17 + $0x58] sm:$0xf]  ;;  %v1075_v46 = vld [vmem:[%s6435_s17 + $0x64] sm:$0xf] }
  0x2a   : > { %v1172_v38 = vsel %vm6455_vm3, %v1167_v28, %v1171_v19  ;;  %v1213_v60 = vrot.slane %v1211_v52, 4  ;;  %v1233_v6 = vrot.slane %v1231_v62, 5  ;;  %v1246_v18 = vshrl.u32 %v1068_v3, 16  ;;  %v1077_v62 = vld [vmem:[%s6435_s17 + $0x6c] sm:$0xf] }
  0x2b   : > { %v5196_v44 = vcombine.low %v1162_v33, %v1172_v38  ;;  %v1181_v45 = vrot.slane %v1180_v34, 4  ;;  %v1205_v63 = vrot.slane %v1204_v56, 4  ;;  %v1237_v14 = vrot.slane %v1235_v2, 4  ;;  %v1073_v34 = vld [vmem:[%s6435_s17 + $0x5c] sm:$0x1] }
  0x2c   : > { %5880 = vmatmul.mubr.msk.bf16.gmra.mxu0 %vm545_vm0, %v6215_v42  ;;  %v1065_v42 = vld [vmem:[%s6435_s17 + $0x3c] sm:$0xf]  ;;  %v1214_v4 = vor.u32 %v1213_v60, %v1209_v51  ;;  %v1243_v17 = vrot.slane %v1241_v8, 5  ;;  %v1249_v19 = vshll.u32 %v1068_v3, 16  ;;  %v1259_v24 = vshrl.u32 %v1069_v9, 16 }
  0x2d   : > { %5896 = vmatmul.mubr.msk.bf16.gmra.mxu1 %vm545_vm0, %v6216_v53  ;;  %5935 = vmatprep.mubr.msk.bf16.mxu0 %vm545_vm0, %v5194_v0  ;;  %v1217_v53 = vshll.u32 %v1064_v32, 16  ;;  %v1186_v55 = vsel %vm6455_vm3, %v1181_v45, %v1185_v29  ;;  %v1222_v57 = vshrl.u32 %v1065_v42, 16  ;;  %v1225_v58 = vshll.u32 %v1065_v42, 16  ;;  %v1076_v56 = vld [vmem:[%s6435_s17 + $0x68] sm:$0x1] }
  0x2e   : > { %5901 = vmatprep.mubr.msk.bf16.mxu1 %vm545_vm0, %v6217_v59  ;;  %v1191_v59 = vrot.slane %v1190_v50, 4  ;;  %v1210_v12 = vsel %vm6455_vm3, %v1205_v63, %v1209_v51  ;;  %v1215_v16 = vrot.slane %v1214_v4, 4  ;;  %v1248_v27 = vrot.slane %v1246_v18, 4  ;;  %v1078_v2 = vld [vmem:[%s6435_s17 + $0x70] sm:$0xf] }
  0x2f   : > { %v1219_v61 = vrot.slane %v1217_v53, 5  ;;  %v1224_v0 = vrot.slane %v1222_v57, 4  ;;  %v1227_v1 = vrot.slane %v1225_v58, 5  ;;  %v1251_v28 = vrot.slane %v1249_v19, 5  ;;  %v6225_v57 = vld [vmem:[%s6435_s17 + $0x48] sm:$0xff]  }
  0x30   : > { %v1265_v29 = vshll.u32 %v1070_v15, 16  ;;  %v1261_v36 = vrot.slane %v1259_v24, 4  ;;  %v1270_v38 = vshrl.u32 %v1071_v20, 16  ;;  %v1273_v42 = vshll.u32 %v1071_v20, 16  ;;  %v1079_v15 = vld [vmem:[%s6435_s17 + $0x74] sm:$0x1] }
  0x31   : > { %v1228_v13 = vor.u32 %v1227_v1, %v1224_v0  ;;  %v1220_v26 = vsel %vm6455_vm3, %v1215_v16, %v1219_v61  ;;  %v1252_v35 = vor.u32 %v1251_v28, %v1248_v27  ;;  %v1283_v45 = vshrl.u32 %v1072_v25, 16  ;;  %v1081_v27 = vld [vmem:[%s6435_s17 + $0x7c] sm:$0xf] }
  0x32   : > { %v5198_v30 = vcombine.low %v1210_v12, %v1220_v26  ;;  %v1272_v51 = vrot.slane %v1270_v38, 4  ;;  %v1275_v52 = vrot.slane %v1273_v42, 5  ;;  %v1294_v60 = vshrl.u32 %v1074_v39, 16  ;;  %v1083_v38 = vld [vmem:[%s6435_s17 + $0x84] sm:$0xf] }
  0x33   : > { %v1229_v21 = vrot.slane %v1228_v13, 4  ;;  %v1253_v48 = vrot.slane %v1252_v35, 4  ;;  %v1285_v54 = vrot.slane %v1283_v45, 4  ;;  %v1297_v61 = vshll.u32 %v1074_v39, 16 }
  0x34   : > { %5936 = vmatmul.mubr.msk.bf16.vlgmr.msra.gmra.mxu0 %vm545_vm0, %v5195_v23  ;;  %v1255_v23 = vshll.u32 %v1069_v9, 16  ;;  %v1303_v1 = vshll.u32 %v1075_v46, 16  ;;  %v1318_v16 = vshrl.u32 %v1077_v62, 16  ;;  %v1321_v20 = vshll.u32 %v1077_v62, 16 }
  0x35   : > { %5902 = vmatmul.mubr.msk.bf16.vlgmr.msra.gmra.mxu1 %vm545_vm0, %v6219_v22  ;;  %6002 = vmatpush3.bf16.msra.mxu0 %v6412_v7  ;;  %v6222_v7 = vld [vmem:[%s6435_s17 + $0x24] sm:$0xff]   ;;  %v1238_v22 = vor.u32 %v1237_v14, %v1233_v6  ;;  %v1234_v31 = vsel %vm6455_vm3, %v1229_v21, %v1233_v6  ;;  %v1299_v4 = vrot.slane %v1297_v61, 5  ;;  %v1307_v6 = vshrl.u32 %v1075_v46, 16 }
  0x36   : > { %5968 = vmatpush3.bf16.msra.mxu1 %v6405_v5  ;;  %5905 = vmatprep.mubr.msk.bf16.mxu1 %vm545_vm0, %v6221_v37  ;;  %v1196_v5 = vsel %vm6455_vm3, %v1191_v59, %v1195_v40  ;;  %v1257_v33 = vrot.slane %v1255_v23, 5  ;;  %v1267_v37 = vrot.slane %v1265_v29, 5  ;;  %v6224_v40 = vld [vmem:[%s6435_s17 + $0x3c] sm:$0xff]   ;;  %v1313_v14 = vshll.u32 %v1076_v56, 16 }
  0x37   : > { %5939 = vmatprep.mubr.msk.bf16.mxu0 %vm545_vm0, %v5196_v44  ;;  %6035 = vmatprep.subr.bf16.mxu1 %v6493_v49  ;;  %v5197_v10 = vcombine.low %v1186_v55, %v1196_v5  ;;  %v1239_v32 = vrot.slane %v1238_v22, 4  ;;  %v1279_v44 = vshll.u32 %v1072_v25, 16  ;;  %v1289_v55 = vshll.u32 %v1073_v34, 16  ;;  %v1080_v22 = vld [vmem:[%s6435_s17 + $0x78] sm:$0xf] }
  0x38   : > { %v1262_v50 = vor.u32 %v1261_v36, %v1257_v33  ;;  %v1258_v58 = vsel %vm6455_vm3, %v1253_v48, %v1257_v33  ;;  %v1296_v5 = vrot.slane %v1294_v60, 4  ;;  %v1309_v13 = vrot.slane %v1307_v6, 4  ;;  %v6227_v33 = vld [vmem:[%s6435_s17 + $0x60] sm:$0xff]  }
  0x39   : > { %v1244_v41 = vsel %vm6455_vm3, %v1239_v32, %v1243_v17  ;;  %v1281_v53 = vrot.slane %v1279_v44, 5  ;;  %v1291_v0 = vrot.slane %v1289_v55, 5  ;;  %v6226_v17 = vld [vmem:[%s6435_s17 + $0x54] sm:$0xff]   ;;  %v1327_v21 = vshll.u32 %v1078_v2, 16  ;;  %v1082_v32 = vld [vmem:[%s6435_s17 + $0x80] sm:$0x1] }
  0x3a   : > { %v5199_v47 = vcombine.low %v1234_v31, %v1244_v41  ;;  %v1263_v59 = vrot.slane %v1262_v50, 4  ;;  %v1300_v12 = vor.u32 %v1299_v4, %v1296_v5  ;;  %v1315_v26 = vrot.slane %v1313_v14, 5  ;;  %v6558_v44 = vld [vmem:[%s7877_s4 + $0x30] sm:$0xff]  }
  0x3b   : > { %v1286_v63 = vor.u32 %v1285_v54, %v1281_v53  ;;  %v1320_v28 = vrot.slane %v1318_v16, 4  ;;  %v1323_v29 = vrot.slane %v1321_v20, 5  ;;  %v1331_v31 = vshrl.u32 %v1078_v2, 16  ;;  %v1084_v54 = vld [vmem:[%s6435_s17 + $0x88] sm:$0xf]  ;;  %6069 = vmatprep.subr.bf16.mxu0 %v6558_v44  ;;  %v6228_v5 = vld [vmem:[%s6435_s17 + $0x6c] sm:$0xff]  }
  0x3c   : > { %5940 = vmatmul.mubr.msk.bf16.gmra.mxu0 %vm545_vm0, %v5197_v10  ;;  %v1268_v3 = vsel %vm6455_vm3, %v1263_v59, %v1267_v37  ;;  %v1301_v24 = vrot.slane %v1300_v12, 4  ;;  %v1337_v36 = vshll.u32 %v1079_v15, 16  ;;  %v1342_v37 = vshrl.u32 %v1080_v22, 16  ;;  %v6229_v12 = vld [vmem:[%s6435_s17 + $0x78] sm:$0xff]  }
  0x3d   : > { %5906 = vmatmul.mubr.msk.bf16.gmra.mxu1 %vm545_vm0, %v6222_v7  ;;  %5943 = vmatprep.mubr.msk.bf16.mxu0 %vm545_vm0, %v5198_v30  ;;  %v1276_v7 = vor.u32 %v1275_v52, %v1272_v51  ;;  %v5200_v8 = vcombine.low %v1258_v58, %v1268_v3  ;;  %v1287_v10 = vrot.slane %v1286_v63, 4  ;;  %v1329_v30 = vrot.slane %v1327_v21, 5  ;;  %v1085_v58 = vld [vmem:[%s6435_s17 + $0x8c] sm:$0x1]  ;;  %v1086_v3 = vld [vmem:[%s6435_s17 + $0x90] sm:$0xf] }
  0x3e   : > { %5909 = vmatprep.mubr.msk.bf16.mxu1 %vm545_vm0, %v6223_v11  ;;  %v1305_v11 = vrot.slane %v1303_v1, 5  ;;  %v1324_v39 = vor.u32 %v1323_v29, %v1320_v28  ;;  %v1345_v41 = vshll.u32 %v1080_v22, 16  ;;  %v1351_v42 = vshll.u32 %v1081_v27, 16  ;;  %v1088_v16 = vld [vmem:[%s6435_s17 + $0x98] sm:$0x1] }
  0x3f   : > { %v1277_v9 = vrot.slane %v1276_v7, 4  ;;  %v1292_v19 = vsel %vm6455_vm3, %v1287_v10, %v1291_v0  ;;  %v1339_v46 = vrot.slane %v1337_v36, 5  ;;  %v1355_v48 = vshrl.u32 %v1081_v27, 16  ;;  %v1087_v10 = vld [vmem:[%s6435_s17 + $0x94] sm:$0xf] }
  0x40   : > { %v1310_v25 = vor.u32 %v1309_v13, %v1305_v11  ;;  %v1306_v34 = vsel %vm6455_vm3, %v1301_v24, %v1305_v11  ;;  %v1325_v51 = vrot.slane %v1324_v39, 4  ;;  %v1353_v55 = vrot.slane %v1351_v42, 5 }
  0x41   : > { %v1282_v18 = vsel %vm6455_vm3, %v1277_v9, %v1281_v53  ;;  %v1347_v53 = vrot.slane %v1345_v41, 5  ;;  %v1357_v56 = vrot.slane %v1355_v48, 4  ;;  %v1366_v59 = vshrl.u32 %v1083_v38, 16 }
  0x42   : > { %v5201_v23 = vcombine.low %v1282_v18, %v1292_v19  ;;  %v1311_v35 = vrot.slane %v1310_v25, 4  ;;  %v1330_v60 = vsel %vm6455_vm3, %v1325_v51, %v1329_v30  ;;  %v1369_v7 = vshll.u32 %v1083_v38, 16  ;;  %v1089_v25 = vld [vmem:[%s6435_s17 + $0x9c] sm:$0xf] }
  0x43   : > { %v1358_v63 = vor.u32 %v1357_v56, %v1353_v55  ;;  %v1368_v1 = vrot.slane %v1366_v59, 4  ;;  %v1375_v2 = vshll.u32 %v1084_v54, 16  ;;  %v1379_v9 = vshrl.u32 %v1084_v54, 16  ;;  %v1093_v54 = vld [vmem:[%s6435_s17 + $0xac] sm:$0xf] }
  0x44   : > { %5944 = vmatmul.mubr.msk.bf16.gmra.mxu0 %vm545_vm0, %v5199_v47  ;;  %v1316_v45 = vsel %vm6455_vm3, %v1311_v35, %v1315_v26  ;;  %v1344_v47 = vrot.slane %v1342_v37, 4  ;;  %v1385_v15 = vshll.u32 %v1085_v58, 16  ;;  %v1390_v20 = vshrl.u32 %v1086_v3, 16  ;;  %v1091_v35 = vld [vmem:[%s6435_s17 + $0xa4] sm:$0x1] }
  0x45   : > { %5910 = vmatmul.mubr.msk.bf16.gmra.mxu1 %vm545_vm0, %v6224_v40  ;;  %5947 = vmatprep.mubr.msk.bf16.mxu0 %vm545_vm0, %v5200_v8  ;;  %v1333_v40 = vrot.slane %v1331_v31, 4  ;;  %v5202_v50 = vcombine.low %v1306_v34, %v1316_v45  ;;  %v1371_v8 = vrot.slane %v1369_v7, 5  ;;  %v1359_v13 = vrot.slane %v1358_v63, 4  ;;  %v1094_v59 = vld [vmem:[%s6435_s17 + $0xb0] sm:$0x1] }
  0x46   : > { %5913 = vmatprep.mubr.msk.bf16.mxu1 %vm545_vm0, %v6225_v57  ;;  %v1361_v57 = vshll.u32 %v1082_v32, 16  ;;  %v1348_v62 = vor.u32 %v1347_v53, %v1344_v47  ;;  %v1377_v14 = vrot.slane %v1375_v2, 5  ;;  %v1381_v19 = vrot.slane %v1379_v9, 4  ;;  %v1092_v47 = vld [vmem:[%s6435_s17 + $0xa8] sm:$0xf] }
  0x47   : > { %v1334_v52 = vor.u32 %v1333_v40, %v1329_v30  ;;  %v1372_v18 = vor.u32 %v1371_v8, %v1368_v1  ;;  %v1387_v22 = vrot.slane %v1385_v15, 5  ;;  %v1399_v24 = vshll.u32 %v1087_v10, 16  ;;  %v1090_v30 = vld [vmem:[%s6435_s17 + $0xa0] sm:$0xf]  ;;  %v6230_v40 = vld [vmem:[%s6435_s17 + $0x84] sm:$0xff]  }
  0x48   : > { %v1363_v0 = vrot.slane %v1361_v57, 5  ;;  %v1349_v6 = vrot.slane %v1348_v62, 4  ;;  %v1382_v28 = vor.u32 %v1381_v19, %v1377_v14  ;;  %v1392_v29 = vrot.slane %v1390_v20, 4  ;;  %v1095_v63 = vld [vmem:[%s6435_s17 + $0xb4] sm:$0xf]  ;;  %v6232_v19 = vld [vmem:[%s6435_s17 + $0x9c] sm:$0xff]  }
  0x49   : > { %v1335_v61 = vrot.slane %v1334_v52, 4  ;;  %v1373_v27 = vrot.slane %v1372_v18, 4  ;;  %v1401_v32 = vrot.slane %v1399_v24, 5  ;;  %v1409_v34 = vshll.u32 %v1088_v16, 16 }
  0x4a   : > { %v1364_v21 = vsel %vm6455_vm3, %v1359_v13, %v1363_v0  ;;  %v1383_v37 = vrot.slane %v1382_v28, 4  ;;  %v1414_v38 = vshrl.u32 %v1089_v25, 16  ;;  %v1417_v39 = vshll.u32 %v1089_v25, 16  ;;  %v6233_v25 = vld [vmem:[%s6435_s17 + $0xa8] sm:$0xff]  }
  0x4b   : > { %v1340_v4 = vsel %vm6455_vm3, %v1335_v61, %v1339_v46  ;;  %v1378_v36 = vsel %vm6455_vm3, %v1373_v27, %v1377_v14  ;;  %v1411_v45 = vrot.slane %v1409_v34, 5  ;;  %v1423_v46 = vshll.u32 %v1090_v30, 16  ;;  %v1097_v14 = vld [vmem:[%s6435_s17 + $0xbc] sm:$0x1] }
  0x4c   : > { %5948 = vmatmul.mubr.msk.bf16.gmra.mxu0 %vm545_vm0, %v5201_v23  ;;  %v5203_v11 = vcombine.low %v1330_v60, %v1340_v4  ;;  %v1393_v23 = vshll.u32 %v1086_v3, 16  ;;  %v1388_v48 = vsel %vm6455_vm3, %v1383_v37, %v1387_v22  ;;  %v1416_v51 = vrot.slane %v1414_v38, 4 }
  0x4d   : > { %5914 = vmatmul.mubr.msk.bf16.gmra.mxu1 %vm545_vm0, %v6226_v17  ;;  %5951 = vmatprep.mubr.msk.bf16.mxu0 %vm545_vm0, %v5202_v50  ;;  %v1354_v17 = vsel %vm6455_vm3, %v1349_v6, %v1353_v55  ;;  %v6231_v50 = vld [vmem:[%s6435_s17 + $0x90] sm:$0xff]   ;;  %v1419_v52 = vrot.slane %v1417_v39, 5  ;;  %v1427_v53 = vshrl.u32 %v1090_v30, 16  ;;  %v5205_v55 = vcombine.low %v1378_v36, %v1388_v48 }
  0x4e   : > { %5917 = vmatprep.mubr.msk.bf16.mxu1 %vm545_vm0, %v6227_v33  ;;  %v5204_v26 = vcombine.low %v1354_v17, %v1364_v21  ;;  %v1395_v31 = vrot.slane %v1393_v23, 5  ;;  %v1403_v33 = vshrl.u32 %v1087_v10, 16  ;;  %v1425_v58 = vrot.slane %v1423_v46, 5  ;;  %v6234_v46 = vld [vmem:[%s6435_s17 + $0xb4] sm:$0xff]  }
  0x4f   : > { %v1420_v60 = vor.u32 %v1419_v52, %v1416_v51  ;;  %v1429_v61 = vrot.slane %v1427_v53, 4  ;;  %v1433_v62 = vshll.u32 %v1091_v35, 16  ;;  %v1438_v7 = vshrl.u32 %v1092_v47, 16  ;;  %v6235_v51 = vld [vmem:[%s6597_s28] sm:$0xff]  }
  0x50   : > { %v1396_v41 = vor.u32 %v1395_v31, %v1392_v29  ;;  %v1405_v42 = vrot.slane %v1403_v33, 4  ;;  %v1441_v2 = vshll.u32 %v1092_v47, 16  ;;  %v1447_v3 = vshll.u32 %v1093_v54, 16 }
  0x51   : > { %v1421_v4 = vrot.slane %v1420_v60, 4  ;;  %v1430_v6 = vor.u32 %v1429_v61, %v1425_v58  ;;  %v1435_v8 = vrot.slane %v1433_v62, 5  ;;  %v1440_v9 = vrot.slane %v1438_v7, 4  ;;  %v6244_v60 = vld [vmem:[%s6609_s8 + $0x24] sm:$0xff]   ;;  %v6246_v61 = vld [vmem:[%s6609_s8 + $0x30] sm:$0xff]   ;;  %v6247_v7 = vld [vmem:[%s6597_s28 + $0x3c] sm:$0xff]  }
  0x52   : > { %v1397_v56 = vrot.slane %v1396_v41, 4  ;;  %v1406_v57 = vor.u32 %v1405_v42, %v1401_v32  ;;  %v1451_v13 = vshrl.u32 %v1093_v54, 16  ;;  %v1457_v18 = vshll.u32 %v1094_v59, 16  ;;  %v6243_v59 = vld [vmem:[%s6597_s28 + $0x24] sm:$0xff]   ;;  %v6245_v62 = vld [vmem:[%s6597_s28 + $0x30] sm:$0xff]  }
  0x53   : > { %v1426_v16 = vsel %vm6455_vm3, %v1421_v4, %v1425_v58  ;;  %v1431_v17 = vrot.slane %v1430_v6, 4  ;;  %v1462_v22 = vshrl.u32 %v1095_v63, 16  ;;  %v1465_v23 = vshll.u32 %v1095_v63, 16  ;;  %v6242_v58 = vld [vmem:[%s6609_s8 + $0x18] sm:$0xff]   ;;  %v6250_v63 = vld [vmem:[%s6609_s8 + $0x48] sm:$0xff]   ;;  %v6253_v6 = vld [vmem:[%s6597_s28 + $0x60] sm:$0xff]  }
  0x54   : > { %5952 = vmatmul.mubr.msk.bf16.gmra.mxu0 %vm545_vm0, %v5203_v11  ;;  %v1402_v0 = vsel %vm6455_vm3, %v1397_v56, %v1401_v32  ;;  %v1407_v1 = vrot.slane %v1406_v57, 4  ;;  %v1443_v11 = vrot.slane %v1441_v2, 5  ;;  %v1453_v21 = vrot.slane %v1451_v13, 4  ;;  %v6238_v56 = vld [vmem:[%s6597_s28 + $0xc] sm:$0xff]   ;;  %v6241_v57 = vld [vmem:[%s6597_s28 + $0x18] sm:$0xff]  }
  0x55   : > { %5918 = vmatmul.mubr.msk.bf16.gmra.mxu1 %vm545_vm0, %v6228_v5  ;;  %5955 = vmatprep.mubr.msk.bf16.mxu0 %vm545_vm0, %v5204_v26  ;;  %v1096_v5 = vld [vmem:[%s6435_s17 + $0xb8] sm:$0xf]  ;;  %v1436_v24 = vsel %vm6455_vm3, %v1431_v17, %v1435_v8  ;;  %v1459_v26 = vrot.slane %v1457_v18, 5  ;;  %v1464_v32 = vrot.slane %v1462_v22, 4  ;;  %v1467_v33 = vrot.slane %v1465_v23, 5  ;;  %v6254_v8 = vld [vmem:[%s6609_s8 + $0x60] sm:$0xff]  }
  0x56   : > { %5921 = vmatprep.mubr.msk.bf16.mxu1 %vm545_vm0, %v6229_v12  ;;  %v1412_v10 = vsel %vm6455_vm3, %v1407_v1, %v1411_v45  ;;  %v1449_v12 = vrot.slane %v1447_v3, 5  ;;  %v1444_v20 = vor.u32 %v1443_v11, %v1440_v9  ;;  %v1471_v27 = vshll.u32 %v1096_v5, 16  ;;  %v6677_v1 = vld [vmem:[%s7877_s4 + $0x40] sm:$0xff]   ;;  %v6251_v2 = vld [vmem:[%s6597_s28 + $0x54] sm:$0xff]   ;;  %v2513_v9 = vld [vmem:[%s6597_s28 + $0x8] sm:$0x1] }
  0x57   : > { %v5206_v15 = vcombine.low %v1402_v0, %v1412_v10  ;;  %v1475_v28 = vshrl.u32 %v1096_v5, 16  ;;  %v5207_v29 = vcombine.low %v1426_v16, %v1436_v24  ;;  %v1481_v36 = vshll.u32 %v1097_v14, 16  ;;  %v6249_v0 = vld [vmem:[%s6597_s28 + $0x48] sm:$0xff]   ;;  %v6252_v3 = vld [vmem:[%s6609_s8 + $0x54] sm:$0xff]   ;;  %v2511_v5 = vld [vmem:[%s6597_s28] sm:$0xf] }
  0x58   : > { %v1445_v30 = vrot.slane %v1444_v20, 4  ;;  %v1454_v31 = vor.u32 %v1453_v21, %v1449_v12  ;;  %v1473_v34 = vrot.slane %v1471_v27, 5  ;;  %v1468_v39 = vor.u32 %v1467_v33, %v1464_v32  ;;  %v2512_v4 = vld [vmem:[%s6597_s28 + $0x4] sm:$0xf]  ;;  %v2514_v10 = vld [vmem:[%s6597_s28 + $0xc] sm:$0xf] }
  0x59   : > { %v1477_v35 = vrot.slane %v1475_v28, 4  ;;  %v1483_v41 = vrot.slane %v1481_v36, 5  ;;  %v2515_v11 = vld [vmem:[%s6597_s28 + $0x10] sm:$0xf]  ;;  %v2560_v13 = vshrl.u32 %v2511_v5, 16  ;;  %v2563_v14 = vshll.u32 %v2511_v5, 16 }
  0x5a   : > { %v1450_v37 = vsel %vm6455_vm3, %v1445_v30, %v1449_v12  ;;  %v1455_v38 = vrot.slane %v1454_v31, 4  ;;  %v1469_v47 = vrot.slane %v1468_v39, 4  ;;  %v2517_v12 = vld [vmem:[%s6597_s28 + $0x18] sm:$0xf]  ;;  %v2573_v16 = vshrl.u32 %v2512_v4, 16  ;;  %v6255_v31 = vld [vmem:[%s6597_s28 + $0x6c] sm:$0xff]  }
  0x5b   : > { %v2579_v17 = vshll.u32 %v2513_v9, 16  ;;  %v2584_v18 = vshrl.u32 %v2514_v10, 16  ;;  %v2593_v20 = vshll.u32 %v2515_v11, 16  ;;  %v2597_v21 = vshrl.u32 %v2515_v11, 16  ;;  %v2518_v22 = vld [vmem:[%s6597_s28 + $0x1c] sm:$0xf] }
  0x5c   : > { %5956 = vmatmul.mubr.msk.bf16.gmra.mxu0 %vm545_vm0, %v5205_v55  ;;  %v1460_v42 = vsel %vm6455_vm3, %v1455_v38, %v1459_v26  ;;  %v1474_v52 = vsel %vm6455_vm3, %v1469_v47, %v1473_v34  ;;  %v6239_v55 = vld [vmem:[%s6609_s8 + $0xc] sm:$0xff]   ;;  %v2608_v23 = vshrl.u32 %v2517_v12, 16  ;;  %v2611_v24 = vshll.u32 %v2517_v12, 16  ;;  %v6258_v32 = vld [vmem:[%s6609_s8 + $0x78] sm:$0xff]   ;;  %v2516_v33 = vld [vmem:[%s6597_s28 + $0x14] sm:$0x1] }
  0x5d   : > { %5922 = vmatmul.mubr.msk.bf16.gmra.mxu1 %vm545_vm0, %v6230_v40  ;;  %5959 = vmatprep.mubr.msk.bf16.mxu0 %vm545_vm0, %v5206_v15  ;;  %v1478_v40 = vor.u32 %v1477_v35, %v1473_v34  ;;  %v5208_v45 = vcombine.low %v1450_v37, %v1460_v42  ;;  %v2569_v15 = vshll.u32 %v2512_v4, 16  ;;  %v6256_v26 = vld [vmem:[%s6609_s8 + $0x6c] sm:$0xff]   ;;  %v2562_v27 = vrot.slane %v2560_v13, 4  ;;  %v2521_v36 = vld [vmem:[%s6597_s28 + $0x28] sm:$0xf]  ;;  %v6257_v47 = vld [vmem:[%s6597_s28 + $0x78] sm:$0xff]  }
  0x5e   : > { %5925 = vmatprep.mubr.msk.bf16.mxu1 %vm545_vm0, %v6231_v50  ;;  %v6236_v50 = vld [vmem:[%s6609_s8] sm:$0xff]   ;;  %v2565_v28 = vrot.slane %v2563_v14, 5  ;;  %v2575_v30 = vrot.slane %v2573_v16, 4  ;;  %v2617_v34 = vshll.u32 %v2518_v22, 16  ;;  %v2621_v35 = vshrl.u32 %v2518_v22, 16  ;;  %v6261_v12 = vld [vmem:[%s6597_s28 + $0x90] sm:$0xff]  }
  0x5f   : > { %v1479_v48 = vrot.slane %v1478_v40, 4  ;;  %v2586_v37 = vrot.slane %v2584_v18, 4  ;;  %v2599_v42 = vrot.slane %v2597_v21, 4  ;;  %v2524_v4 = vld [vmem:[%s6597_s28 + $0x34] sm:$0xf] }
  0x60   : > { %v6262_v13 = vld [vmem:[%s6609_s8 + $0x90] sm:$0xff]   ;;  %v2665_v21 = vshll.u32 %v2524_v4, 16  ;;  %v2526_v22 = vld [vmem:[%s6597_s28 + $0x3c] sm:$0xf] }
  0x61   : > { %v1484_v53 = vsel %vm6455_vm3, %v1479_v48, %v1483_v41  ;;  %v6707_v41 = vrot.slane %v2593_v20, 5  ;;  %v2566_v48 = vor.u32 %v2565_v28, %v2562_v27  ;;  %v2529_v27 = vld [vmem:[%s6597_s28 + $0x48] sm:$0xf] }
  0x62   : > { %v5209_v54 = vcombine.low %v1474_v52, %v1484_v53  ;;  %v2641_v52 = vshll.u32 %v2521_v36, 16  ;;  %v2645_v53 = vshrl.u32 %v2521_v36, 16  ;;  %v2683_v36 = vshll.u32 %v2526_v22, 16 }
  0x64   : > { %5960 = vmatmul.mubr.msk.bf16.gmra.mxu0 %vm545_vm0, %v5207_v29  ;;  %v6701_v29 = vrot.slane %v2569_v15, 5  ;;  %v2647_v5 = vrot.slane %v2645_v53, 4  ;;  %v6266_v53 = vld [vmem:[%s6609_s8 + $0xa8] sm:$0xff]  }
  0x65   : > { %5926 = vmatmul.mubr.msk.bf16.gmra.mxu1 %vm545_vm0, %v6232_v19  ;;  %5963 = vmatprep.mubr.msk.bf16.mxu0 %vm545_vm0, %v5208_v45  ;;  %v2587_v19 = vshll.u32 %v2514_v10, 16  ;;  %v2610_v45 = vrot.slane %v2608_v23, 4 }
  0x66   : > { %5929 = vmatprep.mubr.msk.bf16.mxu1 %vm545_vm0, %v6233_v25  ;;  %v2520_v25 = vld [vmem:[%s6597_s28 + $0x24] sm:$0xf] }
  0x67   : > { %v2589_v38 = vrot.slane %v2587_v19, 5  ;;  %v2632_v39 = vshrl.u32 %v2520_v25, 16  ;;  %v2635_v40 = vshll.u32 %v2520_v25, 16 }
  0x6c   : > { %5964 = vmatmul.mubr.msk.bf16.gmra.mxu0 %vm545_vm0, %v5209_v54  ;;  %v2603_v54 = vshll.u32 %v2516_v33, 16 }
  0x6d   : > { %5930 = vmatmul.mubr.msk.bf16.gmra.mxu1 %vm545_vm0, %v6234_v46  ;;  %6003 = vmatprep.mubr.msk.bf16.mxu0 %vm545_vm0, %v6236_v50  ;;  %v2613_v46 = vrot.slane %v2611_v24, 5  ;;  %v2576_v50 = vor.u32 %v2575_v30, %v6701_v29 }
  0x6e   : > { %5969 = vmatprep.mubr.msk.bf16.mxu1 %vm545_vm0, %v6235_v51  ;;  %v2519_v51 = vld [vmem:[%s6597_s28 + $0x20] sm:$0x1]  ;;  %v2605_v15 = vrot.slane %v2603_v54, 5 }
  0x74   : > { %6004 = vmatmul.mubr.msk.bf16.vlgmr.msra.gmra.mxu0 %vm545_vm0, %v6239_v55  ;;  %v6712_v55 = vrot.slane %v2617_v34, 5 }
  0x75   : > { %5970 = vmatmul.mubr.msk.bf16.vlgmr.msra.gmra.mxu1 %vm545_vm0, %v6238_v56  ;;  %6070 = vmatpush3.bf16.msra.mxu0 %v6558_v44  ;;  %v6248_v44 = vld [vmem:[%s6609_s8 + $0x3c] sm:$0xff]   ;;  %v2623_v56 = vrot.slane %v2621_v35, 4  ;;  %v2680_v35 = vshrl.u32 %v2526_v22, 16 }
  0x76   : > { %6036 = vmatpush3.bf16.msra.mxu1 %v6493_v49  ;;  %5973 = vmatprep.mubr.msk.bf16.mxu1 %vm545_vm0, %v6241_v57  ;;  %v6667_v49 = vld [vmem:[%s7877_s4 + $0x38] sm:$0xff]   ;;  %v2590_v57 = vor.u32 %v2589_v38, %v2586_v37 }
  0x77   : > { %6007 = vmatprep.mubr.msk.bf16.mxu0 %vm545_vm0, %v6242_v58  ;;  %6103 = vmatprep.subr.bf16.mxu1 %v6667_v49  ;;  %v2634_v58 = vrot.slane %v2632_v39, 4  ;;  %v2624_v9 = vor.u32 %v2623_v56, %v6712_v55  ;;  %v2530_v39 = vld [vmem:[%s6597_s28 + $0x4c] sm:$0xf] }
  0x78   : > { %6137 = vmatprep.subr.bf16.mxu0 %v6677_v1  ;;  %v2591_v14 = vrot.slane %v2590_v57, 4 }
  0x79   : > { %v6742_v28 = vrot.slane %v2624_v9, 4 }
  0x7c   : > { %6008 = vmatmul.mubr.msk.bf16.gmra.mxu0 %vm545_vm0, %v6244_v60  ;;  %v2523_v60 = vld [vmem:[%s6597_s28 + $0x30] sm:$0xf] }
  0x7d   : > { %5974 = vmatmul.mubr.msk.bf16.gmra.mxu1 %vm545_vm0, %v6243_v59  ;;  %6011 = vmatprep.mubr.msk.bf16.mxu0 %vm545_vm0, %v6246_v61  ;;  %v2637_v59 = vrot.slane %v2635_v40, 5  ;;  %v2581_v61 = vrot.slane %v2579_v17, 5  ;;  %v2656_v10 = vshrl.u32 %v2523_v60, 16  ;;  %v2659_v11 = vshll.u32 %v2523_v60, 16  ;;  %v6265_v60 = vld [vmem:[%s6597_s28 + $0xa8] sm:$0xff]  }
  0x7e   : > { %5977 = vmatprep.mubr.msk.bf16.mxu1 %vm545_vm0, %v6245_v62  ;;  %v2600_v62 = vor.u32 %v2599_v42, %v6707_v41  ;;  %v2704_v40 = vshrl.u32 %v2529_v27, 16  ;;  %v2707_v42 = vshll.u32 %v2529_v27, 16 }
  0x7f   : > { %v2638_v16 = vor.u32 %v2637_v59, %v2634_v58  ;;  %v2658_v30 = vrot.slane %v2656_v10, 4  ;;  %v2532_v59 = vld [vmem:[%s6597_s28 + $0x54] sm:$0xf] }
  0x80   : > { %v2601_v18 = vrot.slane %v2600_v62, 4  ;;  %v2713_v62 = vshll.u32 %v2530_v39, 16  ;;  %v2728_v9 = vshrl.u32 %v2532_v59, 16  ;;  %v2731_v10 = vshll.u32 %v2532_v59, 16 }
  0x81   : > { %v6745_v33 = vrot.slane %v2638_v16, 4 }
  0x82   : > { %v2606_v54 = vsel %vm6455_vm3, %v2601_v18, %v2605_v15  ;;  %v6784_v16 = vrot.slane %v2713_v62, 5 }
  0x84   : > { %6012 = vmatmul.mubr.msk.bf16.gmra.mxu0 %vm545_vm0, %v6248_v44  ;;  %v2614_v44 = vor.u32 %v2613_v46, %v2610_v45  ;;  %v6264_v45 = vld [vmem:[%s6609_s8 + $0x9c] sm:$0xff]  }
  0x85   : > { %5978 = vmatmul.mubr.msk.bf16.gmra.mxu1 %vm545_vm0, %v6247_v7  ;;  %6015 = vmatprep.mubr.msk.bf16.mxu0 %vm545_vm0, %v6250_v63  ;;  %v2627_v7 = vshll.u32 %v2519_v51, 16  ;;  %v2522_v63 = vld [vmem:[%s6597_s28 + $0x2c] sm:$0x1]  ;;  %v2528_v51 = vld [vmem:[%s6597_s28 + $0x44] sm:$0x1] }
  0x86   : > { %5981 = vmatprep.mubr.msk.bf16.mxu1 %vm545_vm0, %v6249_v0  ;;  %v2567_v0 = vrot.slane %v2566_v48, 4  ;;  %v2651_v17 = vshll.u32 %v2522_v63, 16  ;;  %v6729_v19 = vrot.slane %v2614_v44, 4  ;;  %v2717_v44 = vshrl.u32 %v2530_v39, 16  ;;  %v6269_v39 = vld [vmem:[%s6435_s17 + $0xc] sm:$0xff]  }
  0x87   : > { %v6731_v20 = vrot.slane %v2627_v7, 5  ;;  %v2533_v7 = vld [vmem:[%s6597_s28 + $0x58] sm:$0xf] }
  0x88   : > { %v2572_v23 = vsel %vm6455_vm3, %v2567_v0, %v6701_v29  ;;  %v6747_v34 = vrot.slane %v2651_v17, 5  ;;  %v2525_v29 = vld [vmem:[%s6597_s28 + $0x38] sm:$0x1]  ;;  %v2741_v15 = vshrl.u32 %v2533_v7, 16  ;;  %v2719_v17 = vrot.slane %v2717_v44, 4 }
  0x89   : > { %v2675_v58 = vshll.u32 %v2525_v29, 16 }
  0x8c   : > { %6016 = vmatmul.mubr.msk.bf16.gmra.mxu0 %vm545_vm0, %v6252_v3  ;;  %v6721_v3 = vrot.slane %v2641_v52, 5  ;;  %v6263_v52 = vld [vmem:[%s6597_s28 + $0x9c] sm:$0xff]  }
  0x8d   : > { %5982 = vmatmul.mubr.msk.bf16.gmra.mxu1 %vm545_vm0, %v6251_v2  ;;  %6019 = vmatprep.mubr.msk.bf16.mxu0 %vm545_vm0, %v6254_v8  ;;  %v2577_v2 = vrot.slane %v2576_v50, 4  ;;  %v6260_v8 = vld [vmem:[%s6609_s8 + $0x84] sm:$0xff]   ;;  %v6762_v50 = vrot.slane %v2665_v21, 5 }
  0x8e   : > { %5985 = vmatprep.mubr.msk.bf16.mxu1 %vm545_vm0, %v6253_v6  ;;  %v6259_v6 = vld [vmem:[%s6597_s28 + $0x84] sm:$0xff]   ;;  %v2648_v25 = vor.u32 %v2647_v5, %v6721_v3  ;;  %v2709_v5 = vrot.slane %v2707_v42, 5 }
  0x8f   : > { %v2582_v24 = vsel %vm6455_vm3, %v2577_v2, %v2581_v61  ;;  %v2682_v61 = vrot.slane %v2680_v35, 4  ;;  %v2706_v2 = vrot.slane %v2704_v40, 4  ;;  %v2720_v40 = vor.u32 %v2719_v17, %v6784_v16 }
  0x90   : > { %v6755_v46 = vcombine.low %v2572_v23, %v2582_v24  ;;  %v6760_v48 = vrot.slane %v2648_v25, 4  ;;  %v2534_v24 = vld [vmem:[%s6597_s28 + $0x5c] sm:$0x1]  ;;  %v6268_v25 = vld [vmem:[%s6609_s8 + $0xb4] sm:$0xff]  }
  0x91   : > { %v2747_v42 = vshll.u32 %v2534_v24, 16  ;;  %v6827_v62 = vrot.slane %v2720_v40, 4 }
  0x93   : > { %v6829_v44 = vrot.slane %v2747_v42, 5 }
  0x94   : > { %6020 = vmatmul.mubr.msk.bf16.gmra.mxu0 %vm545_vm0, %v6256_v26  ;;  %v2527_v26 = vld [vmem:[%s6597_s28 + $0x40] sm:$0xf] }
  0x95   : > { %5986 = vmatmul.mubr.msk.bf16.gmra.mxu1 %vm545_vm0, %v6255_v31  ;;  %6023 = vmatprep.mubr.msk.bf16.mxu0 %vm545_vm0, %v6258_v32  ;;  %v2661_v31 = vrot.slane %v2659_v11, 5  ;;  %v2669_v32 = vshrl.u32 %v2524_v4, 16  ;;  %v2689_v37 = vshll.u32 %v2527_v26, 16  ;;  %v2693_v38 = vshrl.u32 %v2527_v26, 16  ;;  %v2535_v4 = vld [vmem:[%s6597_s28 + $0x60] sm:$0xf] }
  0x96   : > { %5989 = vmatprep.mubr.msk.bf16.mxu1 %vm545_vm0, %v6257_v47  ;;  %v2596_v47 = vsel %vm6455_vm3, %v2591_v14, %v6707_v41  ;;  %v2685_v41 = vrot.slane %v2683_v36, 5  ;;  %v2737_v14 = vshll.u32 %v2533_v7, 16  ;;  %v2752_v18 = vshrl.u32 %v2535_v4, 16 }
  0x97   : > { %v2662_v56 = vor.u32 %v2661_v31, %v2658_v30  ;;  %v2671_v57 = vrot.slane %v2669_v32, 4  ;;  %v6772_v63 = vrot.slane %v2689_v37, 5  ;;  %v2695_v0 = vrot.slane %v2693_v38, 4  ;;  %v6267_v32 = vld [vmem:[%s6597_s28 + $0xb4] sm:$0xff]   ;;  %v2536_v38 = vld [vmem:[%s6597_s28 + $0x64] sm:$0xf] }
  0x98   : > { %v2755_v21 = vshll.u32 %v2535_v4, 16  ;;  %v2686_v22 = vor.u32 %v2685_v41, %v2682_v61  ;;  %v2710_v26 = vor.u32 %v2709_v5, %v2706_v2  ;;  %v2730_v30 = vrot.slane %v2728_v9, 4  ;;  %v2540_v2 = vld [vmem:[%s6597_s28 + $0x74] sm:$0x1]  ;;  %v6271_v9 = vld [vmem:[%s6435_s17 + $0x18] sm:$0xff]  }
  0x99   : > { %v2672_v11 = vor.u32 %v2671_v57, %v6762_v50  ;;  %v2696_v23 = vor.u32 %v2695_v0, %v6772_v63  ;;  %v2733_v31 = vrot.slane %v2731_v10, 5  ;;  %v6801_v36 = vrot.slane %v2737_v14, 5  ;;  %v2538_v57 = vld [vmem:[%s6597_s28 + $0x6c] sm:$0xf]  ;;  %v2542_v14 = vld [vmem:[%s6597_s28 + $0x7c] sm:$0xf] }
  0x9a   : > { %v2743_v37 = vrot.slane %v2741_v15, 4  ;;  %v6820_v59 = vrot.slane %v2710_v26, 4  ;;  %v2761_v41 = vshll.u32 %v2536_v38, 16  ;;  %v2779_v5 = vshll.u32 %v2538_v57, 16 }
  0x9b   : > { %v6797_v29 = vrot.slane %v2672_v11, 4  ;;  %v2734_v61 = vor.u32 %v2733_v31, %v2730_v30  ;;  %v6273_v30 = vld [vmem:[%s6435_s17 + $0x24] sm:$0xff]  }
  0x9c   : > { %6024 = vmatmul.mubr.msk.bf16.gmra.mxu0 %vm545_vm0, %v6260_v8  ;;  %v2620_v8 = vsel %vm6455_vm3, %v6729_v19, %v6712_v55  ;;  %v6788_v55 = vrot.slane %v2662_v56, 4  ;;  %v6790_v19 = vrot.slane %v2675_v58, 5  ;;  %v2697_v56 = vrot.slane %v2696_v23, 4  ;;  %v2545_v23 = vld [vmem:[%s6597_s28 + $0x88] sm:$0xf] }
  0x9d   : > { %5990 = vmatmul.mubr.msk.bf16.gmra.mxu1 %vm545_vm0, %v6259_v6  ;;  %6027 = vmatprep.mubr.msk.bf16.mxu0 %vm545_vm0, %v6262_v13  ;;  %v6775_v6 = vcombine.low %v2596_v47, %v2606_v54  ;;  %v2531_v13 = vld [vmem:[%s6597_s28 + $0x50] sm:$0x1]  ;;  %v2754_v47 = vrot.slane %v2752_v18, 4  ;;  %v2687_v54 = vrot.slane %v2686_v22, 4  ;;  %v2654_v58 = vsel %vm6455_vm3, %v6760_v48, %v6747_v34 }
  0x9e   : > { %5993 = vmatprep.mubr.msk.bf16.mxu1 %vm545_vm0, %v6261_v12  ;;  %v2699_v12 = vshll.u32 %v2528_v51, 16  ;;  %v2723_v27 = vshll.u32 %v2531_v13, 16  ;;  %v2757_v51 = vrot.slane %v2755_v21, 5  ;;  %v2776_v48 = vshrl.u32 %v2538_v57, 16  ;;  %v2541_v13 = vld [vmem:[%s6597_s28 + $0x78] sm:$0xf] }
  0x9f   : > { %v2668_v10 = vsel %vm6455_vm3, %v6788_v55, %v6762_v50  ;;  %v6847_v11 = vrot.slane %v2734_v61, 4  ;;  %v2544_v50 = vld [vmem:[%s6597_s28 + $0x84] sm:$0xf]  ;;  %v2692_v21 = vsel %vm6455_vm3, %v2687_v54, %v6772_v63  ;;  %v2781_v24 = vrot.slane %v2779_v5, 5 }
  0xa0   : > { %v6799_v35 = vrot.slane %v2699_v12, 5  ;;  %v2758_v34 = vor.u32 %v2757_v51, %v2754_v47  ;;  %v2778_v22 = vrot.slane %v2776_v48, 4  ;;  %v2800_v26 = vshrl.u32 %v2541_v13, 16 }
  0xa1   : > { %v2813_v63 = vshrl.u32 %v2542_v14, 16  ;;  %v2837_v40 = vshrl.u32 %v2545_v23, 16  ;;  %v2716_v47 = vsel %vm6455_vm3, %v6820_v59, %v6784_v16 }
  0xa2   : > { %v2702_v55 = vsel %vm6455_vm3, %v2697_v56, %v6799_v35  ;;  %v2833_v35 = vshll.u32 %v2545_v23, 16  ;;  %v2782_v56 = vor.u32 %v2781_v24, %v2778_v22  ;;  %v2802_v57 = vrot.slane %v2800_v26, 4 }
  0xa4   : > { %6028 = vmatmul.mubr.msk.bf16.gmra.mxu0 %vm545_vm0, %v6264_v45  ;;  %v2537_v45 = vld [vmem:[%s6597_s28 + $0x68] sm:$0x1] }
  0xa5   : > { %5994 = vmatmul.mubr.msk.bf16.gmra.mxu1 %vm545_vm0, %v6263_v52  ;;  %6031 = vmatprep.mubr.msk.bf16.mxu0 %vm545_vm0, %v6266_v53  ;;  %v2630_v52 = vsel %vm6455_vm3, %v6742_v28, %v6731_v20  ;;  %v2644_v53 = vsel %vm6455_vm3, %v6745_v33, %v6721_v3  ;;  %v2539_v20 = vld [vmem:[%s6597_s28 + $0x70] sm:$0xf]  ;;  %v2744_v28 = vor.u32 %v2743_v37, %v6801_v36  ;;  %v2765_v3 = vshrl.u32 %v2536_v38, 16  ;;  %v2543_v37 = vld [vmem:[%s6597_s28 + $0x80] sm:$0x1] }
  0xa6   : > { %5997 = vmatprep.mubr.msk.bf16.mxu1 %vm545_vm0, %v6265_v60  ;;  %v6822_v60 = vrot.slane %v2723_v27, 5  ;;  %v2771_v33 = vshll.u32 %v2537_v45, 16  ;;  %v5301_v7 = vcombine.low %v2620_v8, %v2630_v52  ;;  %v6833_v0 = vcombine.low %v2644_v53, %v2654_v58  ;;  %v2547_v52 = vld [vmem:[%s6597_s28 + $0x90] sm:$0xf]  ;;  %v2548_v53 = vld [vmem:[%s6597_s28 + $0x94] sm:$0xf] }
  0xa7   : > { %v2785_v4 = vshll.u32 %v2539_v20, 16  ;;  %v2678_v8 = vsel %vm6455_vm3, %v6797_v29, %v6790_v19  ;;  %v2789_v12 = vshrl.u32 %v2539_v20, 16  ;;  %v6851_v15 = vrot.slane %v2744_v28, 4  ;;  %v6275_v20 = vld [vmem:[%s6435_s17 + $0x3c] sm:$0xff]  }
  0xa8   : > { %v2767_v17 = vrot.slane %v2765_v3, 4  ;;  %v6855_v18 = vrot.slane %v2771_v33, 5  ;;  %v6864_v19 = vrot.slane %v2758_v34, 4  ;;  %v2803_v27 = vshll.u32 %v2541_v13, 16 }
  0xa9   : > { %v2791_v31 = vrot.slane %v2789_v12, 4  ;;  %v2809_v29 = vshll.u32 %v2542_v14, 16  ;;  %v2824_v38 = vshrl.u32 %v2544_v50, 16  ;;  %v5303_v42 = vcombine.low %v2668_v10, %v2678_v8 }
  0xaa   : > { %v6872_v45 = vcombine.low %v2692_v21, %v2702_v55  ;;  %v2726_v54 = vsel %vm6455_vm3, %v6827_v62, %v6822_v60  ;;  %v2805_v58 = vrot.slane %v2803_v27, 5  ;;  %v2819_v61 = vshll.u32 %v2543_v37, 16  ;;  %v2546_v62 = vld [vmem:[%s6597_s28 + $0x8c] sm:$0x1] }
  0xab   : > { %v6891_v59 = vrot.slane %v2809_v29, 5  ;;  %v2826_v60 = vrot.slane %v2824_v38, 4  ;;  %v2839_v3 = vrot.slane %v2837_v40, 4  ;;  %v2848_v34 = vshrl.u32 %v2547_v52, 16 }
  0xac   : > { %6032 = vmatmul.mubr.msk.bf16.gmra.mxu0 %vm545_vm0, %v6268_v25  ;;  %v6867_v25 = vrot.slane %v2785_v4, 5  ;;  %v2851_v48 = vshll.u32 %v2547_v52, 16  ;;  %v2857_v5 = vshll.u32 %v2548_v53, 16  ;;  %v2861_v4 = vshrl.u32 %v2548_v53, 16  ;;  %v6277_v52 = vld [vmem:[%s6435_s17 + $0x54] sm:$0xff]  }
  0xad   : > { %5998 = vmatmul.mubr.msk.bf16.gmra.mxu1 %vm545_vm0, %v6267_v32  ;;  %6071 = vmatprep.mubr.msk.bf16.mxu0 %vm545_vm0, %v6269_v39  ;;  %v2795_v32 = vshll.u32 %v2540_v2, 16  ;;  %v2827_v39 = vshll.u32 %v2544_v50, 16  ;;  %v2750_v2 = vsel %vm6455_vm3, %v6851_v15, %v6829_v44  ;;  %v2783_v10 = vrot.slane %v2782_v56, 4  ;;  %v2552_v56 = vld [vmem:[%s6597_s28 + $0xa4] sm:$0x1] }
  0xae   : > { %6037 = vmatprep.mubr.msk.bf16.mxu1 %vm545_vm0, %v6755_v46  ;;  %v6853_v46 = vrot.slane %v2761_v41, 5  ;;  %v2792_v16 = vor.u32 %v2791_v31, %v6867_v25  ;;  %v6896_v41 = vrot.slane %v2833_v35, 5  ;;  %v2806_v12 = vor.u32 %v2805_v58, %v2802_v57  ;;  %v2549_v31 = vld [vmem:[%s6597_s28 + $0x98] sm:$0x1] }
  0xaf   : > { %v2829_v28 = vrot.slane %v2827_v39, 5  ;;  %v2821_v14 = vrot.slane %v2819_v61, 5  ;;  %v2843_v21 = vshll.u32 %v2546_v62, 16  ;;  %v2853_v55 = vrot.slane %v2851_v48, 5  ;;  %v6276_v39 = vld [vmem:[%s6435_s17 + $0x48] sm:$0xff]  }
  0xb0   : > { %v2768_v51 = vor.u32 %v2767_v17, %v6853_v46  ;;  %v2793_v8 = vrot.slane %v2792_v16, 4  ;;  %v2840_v50 = vor.u32 %v2839_v3, %v6896_v41  ;;  %v5305_v22 = vcombine.low %v2716_v47, %v2726_v54  ;;  %v2554_v61 = vld [vmem:[%s6597_s28 + $0xac] sm:$0xf] }
  0xb1   : > { %v2830_v17 = vor.u32 %v2829_v28, %v2826_v60  ;;  %v6921_v24 = vrot.slane %v2857_v5, 5  ;;  %v2863_v26 = vrot.slane %v2861_v4, 4  ;;  %v2807_v27 = vrot.slane %v2806_v12, 4  ;;  %v2556_v60 = vld [vmem:[%s6597_s28 + $0xb4] sm:$0xf] }
  0xb2   : > { %v6898_v33 = vrot.slane %v2768_v51, 4  ;;  %v2841_v37 = vrot.slane %v2840_v50, 4  ;;  %v2845_v38 = vrot.slane %v2843_v21, 5  ;;  %v2788_v40 = vsel %vm6455_vm3, %v2783_v10, %v6867_v25  ;;  %v2553_v51 = vld [vmem:[%s6597_s28 + $0xa8] sm:$0xf] }
  0xb3   : > { %v2864_v53 = vor.u32 %v2863_v26, %v6921_v24  ;;  %v2867_v54 = vshll.u32 %v2549_v31, 16  ;;  %v2905_v4 = vshll.u32 %v2554_v61, 16  ;;  %v5467_v10 = vld [vmem:[%s6435_s17 + $0x10] sm:$0xf]  ;;  %v2923_v50 = vshll.u32 %v2556_v60, 16 }
  0xb4   : > { %6072 = vmatmul.mubr.msk.bf16.vlgmr.msra.gmra.mxu0 %vm545_vm0, %v6271_v9  ;;  %v2550_v9 = vld [vmem:[%s6597_s28 + $0x9c] sm:$0xf]  ;;  %v2774_v35 = vsel %vm6455_vm3, %v6898_v33, %v6855_v18  ;;  %v2812_v18 = vsel %vm6455_vm3, %v2807_v27, %v6891_v59  ;;  %v2891_v33 = vshll.u32 %v2552_v56, 16  ;;  %v2555_v12 = vld [vmem:[%s6597_s28 + $0xb0] sm:$0x1]  ;;  %v4033_v26 = vshrl.u32 %v5467_v10, 16 }
  0xb5   : > { %6038 = vmatmul.mubr.msk.bf16.vlgmr.msra.gmra.mxu1 %vm545_vm0, %v6775_v6  ;;  %6138 = vmatpush3.bf16.msra.mxu0 %v6677_v1  ;;  %v2815_v6 = vrot.slane %v2813_v63, 4  ;;  %v6274_v1 = vld [vmem:[%s6435_s17 + $0x30] sm:$0xff]   ;;  %v2872_v44 = vshrl.u32 %v2550_v9, 16  ;;  %v2875_v15 = vshll.u32 %v2550_v9, 16  ;;  %v2831_v63 = vrot.slane %v2830_v17, 4 }
  0xb6   : > { %6104 = vmatpush3.bf16.msra.mxu1 %v6667_v49  ;;  %6041 = vmatprep.mubr.msk.bf16.mxu1 %vm545_vm0, %v5301_v7  ;;  %v6900_v49 = vrot.slane %v2795_v32, 5  ;;  %v2740_v7 = vsel %vm6455_vm3, %v6847_v11, %v6801_v36  ;;  %v2551_v36 = vld [vmem:[%s6597_s28 + $0xa0] sm:$0xf]  ;;  %v2850_v11 = vrot.slane %v2848_v34, 4  ;;  %v6969_v34 = vrot.slane %v2864_v53, 4 }
  0xb7   : > { %6075 = vmatprep.mubr.msk.bf16.mxu0 %vm545_vm0, %v6273_v30  ;;  %v2816_v13 = vor.u32 %v2815_v6, %v6891_v59  ;;  %v6919_v23 = vcombine.low %v2740_v7, %v2750_v2  ;;  %v2881_v32 = vshll.u32 %v2551_v36, 16  ;;  %v2885_v29 = vshrl.u32 %v2551_v36, 16  ;;  %v6278_v7 = vld [vmem:[%s6435_s17 + $0x60] sm:$0xff]  }
  0xb8   : > { %v2877_v47 = vrot.slane %v2875_v15, 5  ;;  %v2836_v16 = vsel %vm6455_vm3, %v2831_v63, %v6896_v41  ;;  %v2846_v6 = vsel %vm6455_vm3, %v2841_v37, %v2845_v38  ;;  %v6971_v48 = vrot.slane %v2867_v54, 5  ;;  %v5468_v54 = vld [vmem:[%s6435_s17 + $0x14] sm:$0x1] }
  0xb9   : > { %v2817_v30 = vrot.slane %v2816_v13, 4  ;;  %v6949_v57 = vrot.slane %v2881_v32, 5  ;;  %v2887_v58 = vrot.slane %v2885_v29, 4  ;;  %v6975_v2 = vcombine.low %v2836_v16, %v2846_v6  ;;  %v2558_v29 = vld [vmem:[%s6597_s28 + $0xbc] sm:$0x1] }
  0xba   : > { %v2909_v9 = vshrl.u32 %v2554_v61, 16  ;;  %v2920_v17 = vshrl.u32 %v2556_v60, 16  ;;  %v2893_v36 = vrot.slane %v2891_v33, 5  ;;  %v2915_v32 = vshll.u32 %v2555_v12, 16  ;;  %v6280_v61 = vld [vmem:[%s6435_s17 + $0x78] sm:$0xff]  }
  0xbb   : > { %v2822_v25 = vsel %vm6455_vm3, %v2817_v30, %v2821_v14  ;;  %v2888_v5 = vor.u32 %v2887_v58, %v6949_v57  ;;  %v6982_v30 = vrot.slane %v2905_v4, 5  ;;  %v2925_v38 = vrot.slane %v2923_v50, 5  ;;  %v7031_v50 = vld [vmem:[%s6435_s17 + $0x34] sm:$0xf] }
  0xbc   : > { %6076 = vmatmul.mubr.msk.bf16.gmra.mxu0 %vm545_vm0, %v6274_v1  ;;  %v2896_v1 = vshrl.u32 %v2553_v51, 16  ;;  %v6965_v41 = vcombine.low %v2812_v18, %v2822_v25  ;;  %v2911_v31 = vrot.slane %v2909_v9, 4  ;;  %v2922_v37 = vrot.slane %v2920_v17, 4  ;;  %v5475_v17 = vld [vmem:[%s6435_s17 + $0x30] sm:$0xf] }
  0xbd   : > { %6042 = vmatmul.mubr.msk.bf16.gmra.mxu1 %vm545_vm0, %v6833_v0  ;;  %6079 = vmatprep.mubr.msk.bf16.mxu0 %vm545_vm0, %v6275_v20  ;;  %v2764_v0 = vsel %vm6455_vm3, %v6864_v19, %v6853_v46  ;;  %v2798_v46 = vsel %vm6455_vm3, %v2793_v8, %v6900_v49  ;;  %v2854_v19 = vor.u32 %v2853_v55, %v2850_v11  ;;  %v2899_v20 = vshll.u32 %v2553_v51, 16  ;;  %v2557_v49 = vld [vmem:[%s6597_s28 + $0xb8] sm:$0xf]  ;;  %v6279_v8 = vld [vmem:[%s6435_s17 + $0x6c] sm:$0xff]   ;;  %v5472_v51 = vld [vmem:[%s6435_s17 + $0x24] sm:$0xf] }
  0xbe   : > { %6045 = vmatprep.mubr.msk.bf16.mxu1 %vm545_vm0, %v5303_v42  ;;  %v2874_v42 = vrot.slane %v2872_v44, 4  ;;  %v5307_v59 = vcombine.low %v2764_v0, %v2774_v35  ;;  %v6959_v28 = vcombine.low %v2788_v40, %v2798_v46  ;;  %v2898_v13 = vrot.slane %v2896_v1, 4  ;;  %v5470_v35 = vld [vmem:[%s6435_s17 + $0x1c] sm:$0xf]  ;;  %v6281_v1 = vld [vmem:[%s6435_s17 + $0x84] sm:$0xff]  }
  0xbf   : > { %v6967_v62 = vrot.slane %v2854_v19, 4  ;;  %v2901_v14 = vrot.slane %v2899_v20, 5  ;;  %v2929_v11 = vshll.u32 %v2557_v49, 16  ;;  %v2933_v55 = vshrl.u32 %v2557_v49, 16 }
  0xc0   : > { %v2878_v3 = vor.u32 %v2877_v47, %v2874_v42  ;;  %v2889_v27 = vrot.slane %v2888_v5, 4  ;;  %v2870_v40 = vsel %vm6455_vm3, %v6969_v34, %v6971_v48  ;;  %v4035_v53 = vrot.slane %v4033_v26, 4  ;;  %v5471_v48 = vld [vmem:[%s6435_s17 + $0x20] sm:$0x1] }
  0xc1   : > { %v2860_v0 = vsel %vm6455_vm3, %v6967_v62, %v6921_v24  ;;  %v2902_v63 = vor.u32 %v2901_v14, %v2898_v13  ;;  %v6999_v47 = vrot.slane %v2929_v11, 5  ;;  %v2935_v24 = vrot.slane %v2933_v55, 4 }
  0xc2   : > { %v2879_v21 = vrot.slane %v2878_v3, 4  ;;  %v4053_v25 = vshll.u32 %v5470_v35, 16  ;;  %v2912_v16 = vor.u32 %v2911_v31, %v6982_v30  ;;  %v2939_v6 = vshll.u32 %v2558_v29, 16 }
  0xc3   : > { %v7011_v58 = vrot.slane %v2902_v63, 4  ;;  %v2926_v20 = vor.u32 %v2925_v38, %v2922_v37  ;;  %v2936_v60 = vor.u32 %v2935_v24, %v6999_v47  ;;  %v4071_v3 = vshll.u32 %v5472_v51, 16 }
  0xc4   : > { %6080 = vmatmul.mubr.msk.bf16.gmra.mxu0 %vm545_vm0, %v6276_v39  ;;  %v5469_v39 = vld [vmem:[%s6435_s17 + $0x18] sm:$0xf]  ;;  %v2884_v42 = vsel %vm6455_vm3, %v2879_v21, %v6949_v57  ;;  %v4057_v57 = vshrl.u32 %v5470_v35, 16  ;;  %v7017_v33 = vrot.slane %v2915_v32, 5  ;;  %v4039_v34 = vshll.u32 %v5468_v54, 16 }
  0xc5   : > { %6046 = vmatmul.mubr.msk.bf16.gmra.mxu1 %vm545_vm0, %v6872_v45  ;;  %6083 = vmatprep.mubr.msk.bf16.mxu0 %vm545_vm0, %v6277_v52  ;;  %v5466_v45 = vld [vmem:[%s6435_s17 + $0xc] sm:$0xf]  ;;  %v4044_v56 = vshrl.u32 %v5469_v39, 16  ;;  %v4047_v18 = vshll.u32 %v5469_v39, 16  ;;  %v7022_v9 = vrot.slane %v4053_v25, 5  ;;  %v2913_v13 = vrot.slane %v2912_v16, 4 }
  0xc6   : > { %6049 = vmatprep.mubr.msk.bf16.mxu1 %vm545_vm0, %v5305_v22  ;;  %v4020_v44 = vshrl.u32 %v5466_v45, 16  ;;  %v4023_v15 = vshll.u32 %v5466_v45, 16  ;;  %v4029_v22 = vshll.u32 %v5467_v10, 16  ;;  %v4059_v45 = vrot.slane %v4057_v57, 4  ;;  %v5474_v10 = vld [vmem:[%s6435_s17 + $0x2c] sm:$0x1] }
  0xc7   : > { %v4046_v5 = vrot.slane %v4044_v56, 4  ;;  %v4049_v4 = vrot.slane %v4047_v18, 5  ;;  %v2941_v14 = vrot.slane %v2939_v6, 5  ;;  %v2937_v11 = vrot.slane %v2936_v60, 4 }
  0xc8   : > { %v4022_v52 = vrot.slane %v4020_v44, 4  ;;  %v4025_v46 = vrot.slane %v4023_v15, 5  ;;  %v7005_v19 = vrot.slane %v4029_v22, 5  ;;  %v4073_v44 = vrot.slane %v4071_v3, 5 }
  0xc9   : > { %v4041_v26 = vrot.slane %v4039_v34, 5  ;;  %v4060_v63 = vor.u32 %v4059_v45, %v7022_v9  ;;  %v4063_v37 = vshll.u32 %v5471_v48, 16  ;;  %v2908_v39 = vsel %vm6455_vm3, %v7011_v58, %v6982_v30  ;;  %v5478_v30 = vld [vmem:[%s6435_s17 + $0x3c] sm:$0xf] }
  0xca   : > { %v4026_v49 = vor.u32 %v4025_v46, %v4022_v52  ;;  %v4036_v62 = vor.u32 %v4035_v53, %v7005_v19  ;;  %v4087_v35 = vshll.u32 %v5474_v10, 16  ;;  %v4101_v53 = vshll.u32 %v7031_v50, 16 }
  0xcb   : > { %v2942_v56 = vsel %vm6455_vm3, %v2937_v11, %v2941_v14  ;;  %v7080_v6 = vrot.slane %v4060_v63, 4  ;;  %v4105_v3 = vshrl.u32 %v7031_v50, 16  ;;  %v4119_v14 = vshll.u32 %v5478_v30, 16  ;;  %v7122_v11 = vld [vmem:[%s6435_s17 + $0x38] sm:$0x1] }
  0xcc   : > { %6084 = vmatmul.mubr.msk.bf16.gmra.mxu0 %vm545_vm0, %v6278_v7  ;;  %v5473_v7 = vld [vmem:[%s6435_s17 + $0x28] sm:$0xf]  ;;  %v4027_v22 = vrot.slane %v4026_v49, 4  ;;  %v4037_v29 = vrot.slane %v4036_v62, 4 }
  0xcd   : > { %6050 = vmatmul.mubr.msk.bf16.gmra.mxu1 %vm545_vm0, %v6919_v23  ;;  %6087 = vmatprep.mubr.msk.bf16.mxu0 %vm545_vm0, %v6279_v8  ;;  %v2894_v23 = vsel %vm6455_vm3, %v2889_v27, %v2893_v36  ;;  %v7025_v8 = vcombine.low %v2860_v0, %v2870_v40  ;;  %v2927_v36 = vrot.slane %v2926_v20, 4  ;;  %v4077_v27 = vshll.u32 %v5473_v7, 16 }
  0xce   : > { %6053 = vmatprep.mubr.msk.bf16.mxu1 %vm545_vm0, %v5307_v59  ;;  %v4068_v59 = vshrl.u32 %v5472_v51, 16  ;;  %v7027_v12 = vcombine.low %v2884_v42, %v2894_v23  ;;  %v4081_v31 = vshrl.u32 %v5473_v7, 16  ;;  %v4050_v0 = vor.u32 %v4049_v4, %v4046_v5  ;;  %v5479_v23 = vld [vmem:[%s6435_s17 + $0x40] sm:$0xf]  ;;  %v5484_v5 = vld [vmem:[%s6435_s17 + $0x54] sm:$0xf] }
  0xcf   : > { %v4092_v40 = vshrl.u32 %v5475_v17, 16  ;;  %v4095_v42 = vshll.u32 %v5475_v17, 16  ;;  %v2918_v51 = vsel %vm6455_vm3, %v2913_v13, %v7017_v33  ;;  %v2932_v52 = vsel %vm6455_vm3, %v2927_v36, %v6999_v47  ;;  %v5482_v33 = vld [vmem:[%s6435_s17 + $0x4c] sm:$0xf]  ;;  %v5485_v17 = vld [vmem:[%s6435_s17 + $0x58] sm:$0xf] }
  0xd0   : > { %v4070_v55 = vrot.slane %v4068_v59, 4  ;;  %v4032_v18 = vsel %vm6455_vm3, %v4027_v22, %v7005_v19  ;;  %v7071_v25 = vrot.slane %v4077_v27, 5  ;;  %v4083_v57 = vrot.slane %v4081_v31, 4  ;;  %v6284_v36 = vld [vmem:[%s6435_s17 + $0xa8] sm:$0xff]  }
  0xd1   : > { %v4042_v47 = vsel %vm6455_vm3, %v4037_v29, %v4041_v26  ;;  %v7078_v16 = vrot.slane %v4050_v0, 4  ;;  %v7087_v19 = vrot.slane %v4087_v35, 5  ;;  %v7089_v60 = vrot.slane %v4092_v40, 4 }
  0xd2   : > { %v4074_v46 = vor.u32 %v4073_v44, %v4070_v55  ;;  %v7091_v59 = vrot.slane %v4095_v42, 5  ;;  %v7098_v62 = vcombine.low %v2908_v39, %v2918_v51  ;;  %v7100_v34 = vcombine.low %v2932_v52, %v2942_v56  ;;  %v5480_v51 = vld [vmem:[%s6435_s17 + $0x44] sm:$0x1] }
  0xd3   : > { %v7104_v7 = vrot.slane %v4101_v53, 5  ;;  %v7112_v45 = vcombine.low %v4032_v18, %v4042_v47  ;;  %v4084_v10 = vor.u32 %v4083_v57, %v7071_v25  ;;  %v4116_v13 = vshrl.u32 %v5478_v30, 16  ;;  %v5483_v18 = vld [vmem:[%s6435_s17 + $0x50] sm:$0x1] }
  0xd4   : > { %v7033_v21 = vpop.f32.mrf.mxu0  ;;  %6088 = vmatmul.mubr.msk.bf16.gmra.mxu0 %vm545_vm0, %v6280_v61  ;;  %v7082_v61 = vrot.slane %v4063_v37, 5  ;;  %v7102_v48 = vrot.slane %v4074_v46, 4  ;;  %v4125_v55 = vshll.u32 %v5479_v23, 16  ;;  %v4149_v27 = vshll.u32 %v5482_v33, 16  ;;  %v6285_v37 = vld [vmem:[%s6435_s17 + $0xb4] sm:$0xff]  }
  0xd5   : > { %v7036_v15 = vpop.f32.mrf.mxu1  ;;  %6054 = vmatmul.mubr.msk.bf16.gmra.mxu1 %vm545_vm0, %v6959_v28  ;;  %6091 = vmatprep.mubr.msk.bf16.mxu0 %vm545_vm0, %v6281_v1  ;;  %v6282_v28 = vld [vmem:[%s6435_s17 + $0x90] sm:$0xff]   ;;  %v5481_v1 = vld [vmem:[%s6435_s17 + $0x48] sm:$0xf]  ;;  %v4153_v31 = vshrl.u32 %v5482_v33, 16  ;;  %v4164_v29 = vshrl.u32 %v5484_v5, 16  ;;  %v4167_v0 = vshll.u32 %v5484_v5, 16 }
  0xd6   : > { %v7041_v32 = vpop.f32.mrf.mxu0  ;;  %6057 = vmatprep.mubr.msk.bf16.mxu1 %vm545_vm0, %v6965_v41  ;;  %v6283_v41 = vld [vmem:[%s6435_s17 + $0x9c] sm:$0xff]   ;;  %v4140_v44 = vshrl.u32 %v5481_v1, 16  ;;  %v4143_v22 = vshll.u32 %v5481_v1, 16  ;;  %v4173_v39 = vshll.u32 %v5485_v17, 16  ;;  %v4177_v35 = vshrl.u32 %v5485_v17, 16 }
  0xd7   : > { %v7046_v38 = vpop.f32.mrf.mxu1  ;;  %v4085_v42 = vrot.slane %v4084_v10, 4  ;;  %v4118_v52 = vrot.slane %v4116_v13, 4  ;;  %v4121_v46 = vrot.slane %v4119_v14, 5  ;;  %v7137_v30 = vrot.slane %v4125_v55, 5 }
  0xd8   : > { %v7053_v24 = vpop.f32.mrf.mxu0  ;;  %v4142_v57 = vrot.slane %v4140_v44, 4  ;;  %v7142_v1 = vrot.slane %v4149_v27, 5  ;;  %v4169_v33 = vrot.slane %v4167_v0, 5  ;;  %v4056_v10 = vsel %vm6455_vm3, %v7078_v16, %v7022_v9 }
  0xd9   : > { %v7064_v54 = vpop.f32.mrf.mxu1  ;;  %v4066_v13 = vsel %vm6455_vm3, %v7080_v6, %v7082_v61  ;;  %v7156_v14 = vrot.slane %v4173_v39, 5  ;;  %v4179_v17 = vrot.slane %v4177_v35, 4  ;;  %v4080_v9 = vsel %vm6455_vm3, %v7102_v48, %v7071_v25 }
  0xda   : > { %v7074_v58 = vpop.f32.mrf.mxu0  ;;  %v4090_v16 = vsel %vm6455_vm3, %v4085_v42, %v7087_v19  ;;  %v4135_v61 = vshll.u32 %v5480_v51, 16  ;;  %v4159_v25 = vshll.u32 %v5483_v18, 16  ;;  %v6287_v51 = vld [vmem:[%s6398_s10 + $0xc] sm:$0xff]  }
  0xdb   : > { %v7085_v20 = vpop.f32.mrf.mxu1  ;;  %v5490_v18 = vld [vmem:[%s6435_s17 + $0x6c] sm:$0xf] }
  0xdc   : > { %v7095_v49 = vpop.f32.mrf.mxu0  ;;  %6092 = vmatmul.mubr.msk.bf16.gmra.mxu0 %vm545_vm0, %v6282_v28  ;;  %v4107_v28 = vrot.slane %v4105_v3, 4  ;;  %v4166_v3 = vrot.slane %v4164_v29, 4 }
  0xdd   : > { %v7107_v4 = vpop.f32.mrf.mxu1  ;;  %6058 = vmatmul.mubr.msk.bf16.gmra.mxu1 %vm545_vm0, %v6975_v2  ;;  %6095 = vmatprep.mubr.msk.bf16.mxu0 %vm545_vm0, %v6283_v41  ;;  %v4129_v2 = vshrl.u32 %v5479_v23, 16  ;;  %v4111_v41 = vshll.u32 %v7122_v11, 16  ;;  %v4145_v23 = vrot.slane %v4143_v22, 5  ;;  %v6286_v22 = vld [vmem:[%s6435_s17 + $0xc0] sm:$0xff]  }
  0xde   : > { %v7116_v50 = vpop.f32.mrf.mxu0  ;;  %6061 = vmatprep.mubr.msk.bf16.mxu1 %vm545_vm0, %v7025_v8  ;;  %v4098_v8 = vor.u32 %v7091_v59, %v7089_v60  ;;  %v4155_v60 = vrot.slane %v4153_v31, 4  ;;  %v5486_v59 = vld [vmem:[%s6435_s17 + $0x5c] sm:$0x1]  ;;  %v4108_v6 = vor.u32 %v4107_v28, %v7104_v7  ;;  %v4170_v31 = vor.u32 %v4169_v33, %v4166_v3  ;;  %v5488_v28 = vld [vmem:[%s6435_s17 + $0x64] sm:$0xf] }
  0xdf   : > { %v7124_v26 = vpop.f32.mrf.mxu1  ;;  %v4131_v56 = vrot.slane %v4129_v2, 4  ;;  %v4146_v44 = vor.u32 %v4145_v23, %v4142_v57  ;;  %v4183_v29 = vshll.u32 %v5486_v59, 16  ;;  %v4161_v3 = vrot.slane %v4159_v25, 5  ;;  %v5491_v33 = vld [vmem:[%s6435_s17 + $0x70] sm:$0xf] }
  0xe0   : > { %v7126_v63 = vpop.f32.mrf.mxu0  ;;  %v7180_v19 = vrot.slane %v4098_v8, 4  ;;  %v4156_v27 = vor.u32 %v4155_v60, %v7142_v1  ;;  %v7192_v8 = vcombine.low %v4080_v9, %v4090_v16  ;;  %v4215_v25 = vshll.u32 %v5490_v18, 16 }
  0xe1   : > { %v7131_v40 = vpop.f32.mrf.mxu1  ;;  %v4132_v2 = vor.u32 %v4131_v56, %v7137_v30  ;;  %v4137_v56 = vrot.slane %v4135_v61, 5  ;;  %v4147_v59 = vrot.slane %v4146_v44, 4  ;;  %v4201_v61 = vshrl.u32 %v5488_v28, 16 }
  0xe2   : > { %v7135_v53 = vpop.f32.mrf.mxu0  ;;  %v4212_v44 = vshrl.u32 %v5490_v18, 16 }
  0xe3   : > { %v7140_v47 = vpop.f32.mrf.mxu1  ;;  %v4133_v60 = vrot.slane %v4132_v2, 4  ;;  %v5489_v2 = vld [vmem:[%s6435_s17 + $0x68] sm:$0x1] }
  0xe4   : > { %7882 = vst [vmem:[#allocation2_spill] sm:$0xff] %v7140_v47  ;;  %v7145_v5 = vpop.f32.mrf.mxu0  ;;  %6096 = vmatmul.mubr.msk.bf16.gmra.mxu0 %vm545_vm0, %v6284_v36  ;;  %v5487_v36 = vld [vmem:[%s6435_s17 + $0x60] sm:$0xf]  ;;  %v4207_v18 = vshll.u32 %v5489_v2, 16 }
  0xe5   : > { %v7158_v11 = vpop.f32.mrf.mxu1  ;;  %6062 = vmatmul.mubr.msk.bf16.gmra.mxu1 %vm545_vm0, %v7027_v12  ;;  %6099 = vmatprep.mubr.msk.bf16.mxu0 %vm545_vm0, %v6285_v37  ;;  %v4122_v12 = vor.u32 %v4121_v46, %v4118_v52  ;;  %v7185_v37 = vcombine.low %v4056_v10, %v4066_v13  ;;  %v4188_v39 = vshrl.u32 %v5487_v36, 16  ;;  %v4191_v35 = vshll.u32 %v5487_v36, 16 }
  0xe6   : > { %7883 = vst [vmem:[#allocation3_spill] sm:$0xff] %v7158_v11  ;;  %v7172_v55 = vpop.f32.mrf.mxu0  ;;  %6065 = vmatprep.mubr.msk.bf16.mxu1 %vm545_vm0, %v7098_v62  ;;  %v4180_v62 = vor.u32 %v4179_v17, %v7156_v14  ;;  %v4109_v52 = vrot.slane %v4108_v6, 4  ;;  %v4113_v46 = vrot.slane %v4111_v41, 5  ;;  %v4157_v13 = vrot.slane %v4156_v27, 4 }
  0xe7   : > { %v7177_v48 = vpop.f32.mrf.mxu1  ;;  %v4123_v23 = vrot.slane %v4122_v12, 4  ;;  %v4171_v17 = vrot.slane %v4170_v31, 4  ;;  %v4185_v36 = vrot.slane %v4183_v29, 5  ;;  %v4190_v16 = vrot.slane %v4188_v39, 4 }
  0xe8   : > { %7884 = vst [vmem:[#allocation4_spill] sm:$0xff] %v7177_v48  ;;  %v7183_v0 = vpop.f32.mrf.mxu0  ;;  %v4181_v41 = vrot.slane %v4180_v62, 4  ;;  %v4193_v6 = vrot.slane %v4191_v35, 5  ;;  %v4221_v27 = vshll.u32 %v5491_v33, 16  ;;  %v4225_v31 = vshrl.u32 %v5491_v33, 16 }
  0xe9   : > { %v7189_v42 = vpop.f32.mrf.mxu1  ;;  %v4104_v29 = vsel %vm6455_vm3, %v7180_v19, %v7104_v7  ;;  %v4138_v62 = vsel %vm6455_vm3, %v4133_v60, %v4137_v56  ;;  %v4152_v39 = vsel %vm6455_vm3, %v4147_v59, %v7142_v1  ;;  %v4162_v7 = vsel %vm6455_vm3, %v4157_v13, %v4161_v3  ;;  %v5492_v60 = vld [vmem:[%s6435_s17 + $0x74] sm:$0x1]  ;;  %v6289_v13 = vld [vmem:[%s6398_s10 + $0x24] sm:$0xff]  }
  0xea   : > { %7885 = vst [vmem:[#allocation5_spill] sm:$0xff] %v7189_v42  ;;  %v7195_v57 = vpop.f32.mrf.mxu0  ;;  %v4197_v42 = vshll.u32 %v5488_v28, 16  ;;  %v4176_v19 = vsel %vm6455_vm3, %v4171_v17, %v7156_v14  ;;  %v4194_v56 = vor.u32 %v4193_v6, %v4190_v16  ;;  %v4203_v1 = vrot.slane %v4201_v61, 4  ;;  %v5494_v17 = vld [vmem:[%s6435_s17 + $0x7c] sm:$0xf] }
  0xeb   : > { %v7198_v10 = vpop.f32.mrf.mxu1  ;;  %v4214_v59 = vrot.slane %v4212_v44, 4  ;;  %v4217_v3 = vrot.slane %v4215_v25, 5  ;;  %v7245_v14 = vrot.slane %v4221_v27, 5  ;;  %v7253_v6 = vcombine.low %v4152_v39, %v4162_v7  ;;  %v5495_v7 = vld [vmem:[%s6435_s17 + $0x80] sm:$0x1] }
  0xec   : > { %7886 = vst [vmem:[#allocation6_spill] sm:$0xff] %v7198_v10  ;;  %v7200_v9 = vpop.f32.mrf.mxu0  ;;  %6100 = vmatmul.mubr.msk.bf16.gmra.mxu0 %vm545_vm0, %v6286_v22  ;;  %v7234_v35 = vrot.slane %v4197_v42, 5  ;;  %v4227_v42 = vrot.slane %v4225_v31, 4  ;;  %v7260_v25 = vrot.slane %v4207_v18, 5  ;;  %v4231_v27 = vshll.u32 %v5492_v60, 16 }
  0xed   : > { %v7203_v12 = vpop.f32.mrf.mxu1  ;;  %6066 = vmatmul.mubr.msk.bf16.gmra.mxu1 %vm545_vm0, %v7100_v34  ;;  %6139 = vmatprep.mubr.msk.bf16.mxu0 %vm545_vm0, %v7112_v45  ;;  %v4114_v34 = vsel %vm6455_vm3, %v4109_v52, %v4113_v46  ;;  %v4128_v45 = vsel %vm6455_vm3, %v4123_v23, %v7137_v30  ;;  %v5493_v30 = vld [vmem:[%s6435_s17 + $0x78] sm:$0xf]  ;;  %v4186_v46 = vsel %vm6455_vm3, %v4181_v41, %v4185_v36  ;;  %v5496_v31 = vld [vmem:[%s6435_s17 + $0x84] sm:$0xf] }
  0xee   : > { %7887 = vst [vmem:[#allocation7_spill] sm:$0xff] %v7203_v12  ;;  %v7210_v22 = vpop.f32.mrf.mxu0  ;;  %6105 = vmatprep.mubr.msk.bf16.mxu1 %vm545_vm0, %v6287_v51  ;;  %v6288_v52 = vld [vmem:[%s6398_s10 + $0x18] sm:$0xff]   ;;  %v4239_v12 = vshll.u32 %v5493_v30, 16  ;;  %v5519_v41 = vcombine.low %v4104_v29, %v4114_v34  ;;  %v5520_v16 = vcombine.low %v4128_v45, %v4138_v62  ;;  %v7257_v2 = vcombine.low %v4176_v19, %v4186_v46 }
  0xef   : > { %v7224_v28 = vpop.f32.mrf.mxu1  ;;  %v4204_v44 = vor.u32 %v4203_v1, %v7234_v35  ;;  %v7267_v29 = vrot.slane %v4194_v56, 4  ;;  %v4218_v34 = vor.u32 %v4217_v3, %v4214_v59  ;;  %v4245_v45 = vshll.u32 %v5494_v17, 16 }
  0xf0   : > { %7888 = vst [vmem:[#allocation8_spill] sm:$0xff] %v7224_v28  ;;  %v7237_v51 = vpop.f32.mrf.mxu0  ;;  %v4236_v28 = vshrl.u32 %v5493_v30, 16  ;;  %v5497_v30 = vld [vmem:[%s6435_s17 + $0x88] sm:$0xf]  ;;  %v4241_v46 = vrot.slane %v4239_v12, 5  ;;  %v4249_v1 = vshrl.u32 %v5494_v17, 16 }
  0xf1   : > { %v7242_v23 = vpop.f32.mrf.mxu1  ;;  %v4260_v18 = vshrl.u32 %v5496_v31, 16  ;;  %v4269_v56 = vshll.u32 %v5497_v30, 16  ;;  %v4273_v60 = vshrl.u32 %v5497_v30, 16  ;;  %v4255_v30 = vshll.u32 %v5495_v7, 16  ;;  %v7903_v43 = vld [vmem:[#allocation5_spill] sm:$0xff] }
  0xf2   : > { %7889 = vst [vmem:[#allocation9_spill] sm:$0xff] %v7242_v23  ;;  %v7247_v33 = vpop.f32.mrf.mxu0  ;;  %v4238_v19 = vrot.slane %v4236_v28, 4  ;;  %v7281_v28 = vrot.slane %v4218_v34, 4 }
  0xf3   : > { %v7251_v36 = vpop.f32.mrf.mxu1  ;;  %v4262_v48 = vrot.slane %v4260_v18, 4  ;;  %v7293_v11 = vrot.slane %v4269_v56, 5 }
  0xf4   : > { %7890 = vst [vmem:[#allocation10_spill] sm:$0xff] %v7251_v36  ;;  %v5937_v61 = vpop.f32.mrf.mxu0  ;;  %6140 = vmatmul.mubr.msk.bf16.vlgmr.msra.gmra.mxu0 %vm545_vm0, %v7185_v37  ;;  %v4228_v37 = vor.u32 %v4227_v42, %v7245_v14  ;;  %v5499_v36 = vld [vmem:[%s6435_s17 + $0x90] sm:$0xf] }
  0xf5   : > { %v5903_v23 = vpop.f32.mrf.mxu1  ;;  %6106 = vmatmul.mubr.msk.bf16.vlgmr.msra.gmra.mxu1 %vm545_vm0, %v6288_v52  ;;  %6143 = vmatprep.mubr.msk.bf16.mxu0 %vm545_vm0, %v7192_v8  ;;  %v4263_v8 = vshll.u32 %v5496_v31, 16  ;;  %v7285_v31 = vrot.slane %v4245_v45, 5  ;;  %v4287_v18 = vshll.u32 %v5499_v36, 16 }
  0xf6   : > { %v932_v62 = vadd.f32 %v5903_v23, %v7033_v21  ;;  %v1624_v39 = vpop.f32.mrf.mxu0  ;;  %6109 = vmatprep.mubr.msk.bf16.mxu1 %vm545_vm0, %v6289_v13  ;;  %v6290_v21 = vld [vmem:[%s6398_s10 + $0x30] sm:$0xff]   ;;  %v7277_v23 = vrot.slane %v4204_v44, 4  ;;  %v7279_v13 = vrot.slane %v4231_v27, 5  ;;  %v7283_v17 = vrot.slane %v4228_v37, 4  ;;  %v5498_v27 = vld [vmem:[%s6435_s17 + $0x8c] sm:$0x1] }
  0xf7   : > { %v923_v52 = vpop.f32.mrf.mxu1  ;;  %v4251_v44 = vrot.slane %v4249_v1, 4  ;;  %v4265_v34 = vrot.slane %v4263_v8, 5  ;;  %v4275_v37 = vrot.slane %v4273_v60, 4  ;;  %v5500_v1 = vld [vmem:[%s6435_s17 + $0x94] sm:$0xf] }
  0xf8   : > { %v7273_v59 = vadd.f32 %v5937_v61, %v932_v62  ;;  %v924_v3 = vadd.f32 %v923_v52, %v7041_v32  ;;  %v5938_v42 = vpop.f32.mrf.mxu0  ;;  %v6291_v52 = vld [vmem:[%s6398_s10 + $0x3c] sm:$0xff]  }
  0xf9   : > { %v5904_v12 = vpop.f32.mrf.mxu1  ;;  %v4252_v60 = vor.u32 %v4251_v44, %v7285_v31  ;;  %v6292_v44 = vld [vmem:[%s6398_s10 + $0x48] sm:$0xff]  }
  0xfa   : > { %7891 = vst [vmem:[#allocation11_spill] sm:$0xff] %v7273_v59  ;;  %v7288_v61 = vadd.f32 %v1624_v39, %v924_v3  ;;  %v935_v32 = vadd.f32 %v5904_v12, %v7053_v24  ;;  %v1627_v62 = vpop.f32.mrf.mxu0  ;;  %v4242_v59 = vor.u32 %v4241_v46, %v4238_v19  ;;  %v4284_v19 = vshrl.u32 %v5499_v36, 16 }
  0xfb   : > { %v926_v10 = vpop.f32.mrf.mxu1  ;;  %v4279_v3 = vshll.u32 %v5498_v27, 16  ;;  %v4289_v27 = vrot.slane %v4287_v18, 5 }
  0xfc   : > { %7892 = vst [vmem:[#allocation12_spill] sm:$0xff] %v7288_v61  ;;  %v7295_v45 = vadd.f32 %v5938_v42, %v935_v32  ;;  %v927_v7 = vadd.f32 %v926_v10, %v7074_v58  ;;  %v5941_v39 = vpop.f32.mrf.mxu0  ;;  %6144 = vmatmul.mubr.msk.bf16.gmra.mxu0 %vm545_vm0, %v5519_v41  ;;  %v5502_v42 = vld [vmem:[%s6435_s17 + $0x9c] sm:$0xf]  ;;  %v4243_v12 = vrot.slane %v4242_v59, 4  ;;  %v4257_v32 = vrot.slane %v4255_v30, 5 }
  0xfd   : > { %v5907_v46 = vpop.f32.mrf.mxu1  ;;  %6110 = vmatmul.mubr.msk.bf16.gmra.mxu1 %vm545_vm0, %v6290_v21  ;;  %6147 = vmatprep.mubr.msk.bf16.mxu0 %vm545_vm0, %v5520_v16  ;;  %v4266_v10 = vor.u32 %v4265_v34, %v4262_v48  ;;  %v4276_v41 = vor.u32 %v4275_v37, %v7293_v11  ;;  %v4297_v58 = vshrl.u32 %v5500_v1, 16  ;;  %v4311_v59 = vshll.u32 %v5502_v42, 16  ;;  %v6293_v37 = vld [vmem:[%s6398_s10 + $0x54] sm:$0xff]  }
  0xfe   : > { %7893 = vst [vmem:[#allocation13_spill] sm:$0xff] %v7295_v45  ;;  %v7318_v8 = vadd.f32 %v1627_v62, %v927_v7  ;;  %v948_v16 = vadd.f32 %v5907_v46, %v7095_v49  ;;  %v1640_v56 = vpop.f32.mrf.mxu0  ;;  %6113 = vmatprep.mubr.msk.bf16.mxu1 %vm545_vm0, %v6291_v52  ;;  %v4286_v7 = vrot.slane %v4284_v19, 4  ;;  %v4293_v46 = vshll.u32 %v5500_v1, 16  ;;  %v5503_v52 = vld [vmem:[%s6435_s17 + $0xa0] sm:$0xf] }
  0xff   : > { %v939_v21 = vpop.f32.mrf.mxu1  ;;  %v4277_v19 = vrot.slane %v4276_v41, 4  ;;  %v4317_v45 = vshll.u32 %v5503_v52, 16  ;;  %v4321_v61 = vshrl.u32 %v5503_v52, 16  ;;  %v4299_v41 = vrot.slane %v4297_v58, 4  ;;  %v5504_v52 = vld [vmem:[%s6435_s17 + $0xa4] sm:$0x1] }
 0x100   : > { %7894 = vst [vmem:[#allocation14_spill] sm:$0xff] %v7318_v8  ;;  %v7325_v36 = vadd.f32 %v5941_v39, %v948_v16  ;;  %v940_v49 = vadd.f32 %v939_v21, %v7116_v50  ;;  %v5942_v62 = vpop.f32.mrf.mxu0  ;;  %v4308_v8 = vshrl.u32 %v5502_v42, 16  ;;  %v4253_v39 = vrot.slane %v4252_v60, 4 }
 0x101   : > { %v5908_v24 = vpop.f32.mrf.mxu1  ;;  %v4281_v16 = vrot.slane %v4279_v3, 5  ;;  %v4267_v21 = vrot.slane %v4266_v10, 4  ;;  %v4290_v10 = vor.u32 %v4289_v27, %v4286_v7 }
 0x102   : > { %7895 = vst [vmem:[#allocation15_spill] sm:$0xff] %v7325_v36  ;;  %v7330_v30 = vadd.f32 %v1640_v56, %v940_v49  ;;  %v951_v48 = vadd.f32 %v5908_v24, %v7126_v63  ;;  %v1643_v34 = vpop.f32.mrf.mxu0  ;;  %v5501_v36 = vld [vmem:[%s6435_s17 + $0x98] sm:$0x1]  ;;  %v4248_v63 = vsel %vm6455_vm3, %v4243_v12, %v7285_v31  ;;  %v7343_v24 = vrot.slane %v4293_v46, 5 }
 0x103   : > { %v942_v50 = vpop.f32.mrf.mxu1  ;;  %v4310_v60 = vrot.slane %v4308_v8, 4  ;;  %v4258_v31 = vsel %vm6455_vm3, %v4253_v39, %v4257_v32  ;;  %v4303_v12 = vshll.u32 %v5501_v36, 16  ;;  %v4282_v58 = vsel %vm6455_vm3, %v4277_v19, %v4281_v16  ;;  %v5508_v39 = vld [vmem:[%s6435_s17 + $0xb4] sm:$0xf] }
 0x104   : > { %v7335_v47 = vadd.f32 %v5942_v62, %v951_v48  ;;  %v943_v1 = vadd.f32 %v942_v50, %v7135_v53  ;;  %v5945_v18 = vpop.f32.mrf.mxu0  ;;  %6148 = vmatmul.mubr.msk.bf16.gmra.mxu0 %vm545_vm0, %v7253_v6  ;;  %v4313_v53 = vrot.slane %v4311_v59, 5  ;;  %v7359_v8 = vrot.slane %v4317_v45, 5 }
 0x105   : > { %v5911_v56 = vpop.f32.mrf.mxu1  ;;  %6114 = vmatmul.mubr.msk.bf16.gmra.mxu1 %vm545_vm0, %v6292_v44  ;;  %6151 = vmatprep.mubr.msk.bf16.mxu0 %vm545_vm0, %v7257_v2  ;;  %v4272_v2 = vsel %vm6455_vm3, %v4267_v21, %v7293_v11  ;;  %v7896_v32 = vsel %vm6455_vm3, %v7277_v23, %v7260_v25  ;;  %v7897_v11 = vsel %vm6455_vm3, %v7267_v29, %v7234_v35  ;;  %v5505_v25 = vld [vmem:[%s6435_s17 + $0xa8] sm:$0xf]  ;;  %v6294_v44 = vld [vmem:[%s6398_s10 + $0x60] sm:$0xff]   ;;  %v7389_v35 = vrot.slane %v4290_v10, 4 }
 0x106   : > { %v7348_v3 = vadd.f32 %v1643_v34, %v943_v1  ;;  %v964_v6 = vadd.f32 %v5911_v56, %v7145_v5  ;;  %v1656_v42 = vpop.f32.mrf.mxu0  ;;  %6117 = vmatprep.mubr.msk.bf16.mxu1 %vm545_vm0, %v6293_v37  ;;  %v4323_v5 = vrot.slane %v4321_v61, 4  ;;  %v5523_v36 = vcombine.low %v7897_v11, %v7896_v32 }
 0x107   : > { %v955_v49 = vpop.f32.mrf.mxu1  ;;  %v7898_v61 = vsel %vm6455_vm3, %v7283_v17, %v7279_v13  ;;  %v7387_v27 = vcombine.low %v4248_v63, %v4258_v31  ;;  %v4300_v29 = vor.u32 %v4299_v41, %v7343_v24  ;;  %v4314_v59 = vor.u32 %v4313_v53, %v4310_v60  ;;  %v5506_v13 = vld [vmem:[%s6435_s17 + $0xac] sm:$0xf] }
 0x108   : > { %v7361_v62 = vadd.f32 %v5945_v18, %v964_v6  ;;  %v956_v7 = vadd.f32 %v955_v49, %v7172_v55  ;;  %v5946_v46 = vpop.f32.mrf.mxu0  ;;  %v7899_v55 = vsel %vm6455_vm3, %v7281_v28, %v7245_v14  ;;  %v6295_v28 = vld [vmem:[%s6398_s10 + $0x6c] sm:$0xff]   ;;  %v7397_v34 = vcombine.low %v4272_v2, %v4282_v58  ;;  %v5509_v18 = vld [vmem:[%s6435_s17 + $0xb8] sm:$0xf] }
 0x109   : > { %v5524_v45 = vcombine.low %v7899_v55, %v7898_v61  ;;  %v5912_v23 = vpop.f32.mrf.mxu1  ;;  %v7399_v37 = vrot.slane %v4303_v12, 5  ;;  %v4324_v50 = vor.u32 %v4323_v5, %v7359_v8  ;;  %v4327_v21 = vshll.u32 %v5504_v52, 16 }
 0x10a   : > { %v7393_v17 = vadd.f32 %v1656_v42, %v956_v7  ;;  %v967_v48 = vadd.f32 %v5912_v23, %v7183_v0  ;;  %v1659_v14 = vpop.f32.mrf.mxu0  ;;  %v4332_v19 = vshrl.u32 %v5505_v25, 16  ;;  %v4335_v1 = vshll.u32 %v5505_v25, 16  ;;  %v6296_v23 = vld [vmem:[%s6398_s10 + $0x78] sm:$0xff]  }
 0x10b   : > { %v958_v16 = vpop.f32.mrf.mxu1  ;;  %v4341_v0 = vshll.u32 %v5506_v13, 16  ;;  %v4345_v41 = vshrl.u32 %v5506_v13, 16  ;;  %v4301_v53 = vrot.slane %v4300_v29, 4  ;;  %v4315_v6 = vrot.slane %v4314_v59, 4 }
 0x10c   : > { %v7404_v63 = vadd.f32 %v5946_v46, %v967_v48  ;;  %v959_v56 = vadd.f32 %v958_v16, %v7195_v57  ;;  %v5949_v10 = vpop.f32.mrf.mxu0  ;;  %6152 = vmatmul.mubr.msk.bf16.gmra.mxu0 %vm545_vm0, %v5523_v36  ;;  %v4356_v42 = vshrl.u32 %v5508_v39, 16  ;;  %v4359_v31 = vshll.u32 %v5508_v39, 16 }
 0x10d   : > { %v5915_v60 = vpop.f32.mrf.mxu1  ;;  %6118 = vmatmul.mubr.msk.bf16.gmra.mxu1 %vm545_vm0, %v6294_v44  ;;  %6155 = vmatprep.mubr.msk.bf16.mxu0 %vm545_vm0, %v5524_v45  ;;  %v4365_v2 = vshll.u32 %v5509_v18, 16  ;;  %v4369_v58 = vshrl.u32 %v5509_v18, 16  ;;  %v4325_v7 = vrot.slane %v4324_v50, 4  ;;  %v4329_v46 = vrot.slane %v4327_v21, 5  ;;  %v5507_v45 = vld [vmem:[%s6435_s17 + $0xb0] sm:$0x1] }
 0x10e   : > { %v7410_v12 = vadd.f32 %v1659_v14, %v959_v56  ;;  %v980_v49 = vadd.f32 %v5915_v60, %v7200_v9  ;;  %v1672_v57 = vpop.f32.mrf.mxu0  ;;  %6121 = vmatprep.mubr.msk.bf16.mxu1 %vm545_vm0, %v6295_v28  ;;  %v4334_v32 = vrot.slane %v4332_v19, 4  ;;  %v4337_v11 = vrot.slane %v4335_v1, 5  ;;  %v6297_v44 = vld [vmem:[%s6398_s10 + $0x84] sm:$0xff]   ;;  %v5511_v21 = vld [vmem:[%s6435_s17 + $0xc0] sm:$0xf] }
 0x10f   : > { %v971_v5 = vpop.f32.mrf.mxu1  ;;  %v7418_v9 = vrot.slane %v4341_v0, 5  ;;  %v4347_v52 = vrot.slane %v4345_v41, 4  ;;  %v4296_v29 = vsel %vm6455_vm3, %v7389_v35, %v7343_v24  ;;  %v4306_v59 = vsel %vm6455_vm3, %v4301_v53, %v7399_v37  ;;  %v5512_v19 = vld [vmem:[%s6435_s17 + $0xc4] sm:$0xf] }
 0x110   : > { %v7414_v36 = vadd.f32 %v5949_v10, %v980_v49  ;;  %v972_v61 = vadd.f32 %v971_v5, %v7210_v22  ;;  %v5950_v55 = vpop.f32.mrf.mxu0  ;;  %v5510_v22 = vld [vmem:[%s6435_s17 + $0xbc] sm:$0x1]  ;;  %v4358_v13 = vrot.slane %v4356_v42, 4  ;;  %v4361_v48 = vrot.slane %v4359_v31, 5 }
 0x111   : > { %v5916_v25 = vpop.f32.mrf.mxu1  ;;  %v7433_v16 = vrot.slane %v4365_v2, 5  ;;  %v4371_v50 = vrot.slane %v4369_v58, 4  ;;  %v4320_v24 = vsel %vm6455_vm3, %v4315_v6, %v7359_v8  ;;  %v4330_v35 = vsel %vm6455_vm3, %v4325_v7, %v4329_v46 }
 0x112   : > { %v7430_v14 = vadd.f32 %v1672_v57, %v972_v61  ;;  %v983_v28 = vadd.f32 %v5916_v25, %v7237_v51  ;;  %v1675_v39 = vpop.f32.mrf.mxu0  ;;  %v4338_v37 = vor.u32 %v4337_v11, %v4334_v32  ;;  %v4351_v18 = vshll.u32 %v5507_v45, 16  ;;  %v6298_v45 = vld [vmem:[%s6398_s10 + $0x90] sm:$0xff]  }
 0x113   : > { %v974_v1 = vpop.f32.mrf.mxu1  ;;  %v4348_v0 = vor.u32 %v4347_v52, %v7418_v9  ;;  %v4375_v41 = vshll.u32 %v5510_v22, 16  ;;  %v4380_v8 = vshrl.u32 %v5511_v21, 16  ;;  %v4383_v53 = vshll.u32 %v5511_v21, 16 }
 0x114   : > { %v7442_v56 = vadd.f32 %v5950_v55, %v983_v28  ;;  %v975_v51 = vadd.f32 %v974_v1, %v7247_v33  ;;  %v5953_v10 = vpop.f32.mrf.mxu0  ;;  %6156 = vmatmul.mubr.msk.bf16.gmra.mxu0 %vm545_vm0, %v7387_v27  ;;  %v4389_v6 = vshll.u32 %v5512_v19, 16  ;;  %v4393_v42 = vshrl.u32 %v5512_v19, 16 }
 0x115   : > { %v5919_v60 = vpop.f32.mrf.mxu1  ;;  %6122 = vmatmul.mubr.msk.bf16.gmra.mxu1 %vm545_vm0, %v6296_v23  ;;  %6159 = vmatprep.mubr.msk.bf16.mxu0 %vm545_vm0, %v7397_v34  ;;  %v4362_v27 = vor.u32 %v4361_v48, %v4358_v13  ;;  %v4372_v57 = vor.u32 %v4371_v50, %v7433_v16  ;;  %v5527_v58 = vcombine.low %v4296_v29, %v4306_v59  ;;  %v4339_v7 = vrot.slane %v4338_v37, 4  ;;  %v6299_v13 = vld [vmem:[%s6398_s10 + $0x9c] sm:$0xff]  }
 0x116   : > { %v7451_v31 = vadd.f32 %v1675_v39, %v975_v51  ;;  %v996_v33 = vadd.f32 %v5919_v60, %v7036_v15  ;;  %v1688_v49 = vpop.f32.mrf.mxu0  ;;  %6125 = vmatprep.mubr.msk.bf16.mxu1 %vm545_vm0, %v6297_v44  ;;  %v5528_v5 = vcombine.low %v4320_v24, %v4330_v35  ;;  %v4353_v34 = vrot.slane %v4351_v18, 5  ;;  %v5513_v39 = vld [vmem:[%s6435_s17 + $0xc8] sm:$0x1] }
 0x117   : > { %v987_v2 = vpop.f32.mrf.mxu1  ;;  %v4349_v15 = vrot.slane %v4348_v0, 4  ;;  %v4377_v61 = vrot.slane %v4375_v41, 5  ;;  %v4382_v52 = vrot.slane %v4380_v8, 4  ;;  %v4385_v25 = vrot.slane %v4383_v53, 5 }
 0x118   : > { %v7456_v46 = vadd.f32 %v5953_v10, %v996_v33  ;;  %v988_v32 = vadd.f32 %v987_v2, %v7046_v38  ;;  %v5954_v11 = vpop.f32.mrf.mxu0  ;;  %v4391_v23 = vrot.slane %v4389_v6, 5  ;;  %v4395_v44 = vrot.slane %v4393_v42, 4 }
 0x119   : > { %v5920_v55 = vpop.f32.mrf.mxu1  ;;  %v4363_v48 = vrot.slane %v4362_v27, 4  ;;  %v4373_v28 = vrot.slane %v4372_v57, 4  ;;  %v4344_v1 = vsel %vm6455_vm3, %v4339_v7, %v7418_v9  ;;  %v4386_v35 = vor.u32 %v4385_v25, %v4382_v52 }
 0x11a   : > { %v7460_v22 = vadd.f32 %v1688_v49, %v988_v32  ;;  %v999_v29 = vadd.f32 %v5920_v55, %v7064_v54  ;;  %v1691_v59 = vpop.f32.mrf.mxu0  ;;  %v4354_v54 = vsel %vm6455_vm3, %v4349_v15, %v4353_v34  ;;  %v4396_v37 = vor.u32 %v4395_v44, %v4391_v23  ;;  %v7900_v32 = vld [vmem:[#allocation2_spill] sm:$0xff] }
 0x11b   : > { %v990_v38 = vpop.f32.mrf.mxu1  ;;  %v4399_v18 = vshll.u32 %v5513_v39, 16  ;;  %v4368_v9 = vsel %vm6455_vm3, %v4363_v48, %v7433_v16  ;;  %v4378_v0 = vsel %vm6455_vm3, %v4373_v28, %v4377_v61  ;;  %v5529_v6 = vcombine.low %v4344_v1, %v4354_v54  ;;  %v7904_v54 = vld [vmem:[#allocation6_spill] sm:$0xff] }
 0x11c   : > { %v7465_v50 = vadd.f32 %v5954_v11, %v999_v29  ;;  %v991_v21 = vadd.f32 %v990_v38, %v7085_v20  ;;  %v5957_v19 = vpop.f32.mrf.mxu0  ;;  %6160 = vmatmul.mubr.msk.bf16.gmra.mxu0 %vm545_vm0, %v5527_v58  ;;  %v5530_v33 = vcombine.low %v4368_v9, %v4378_v0  ;;  %v4387_v49 = vrot.slane %v4386_v35, 4  ;;  %v6302_v38 = vld [vmem:[%s6398_s10 + $0xc0] sm:$0xff]  }
 0x11d   : > { %v5923_v24 = vpop.f32.mrf.mxu1  ;;  %6126 = vmatmul.mubr.msk.bf16.gmra.mxu1 %vm545_vm0, %v6298_v45  ;;  %6163 = vmatprep.mubr.msk.bf16.mxu0 %vm545_vm0, %v5528_v5  ;;  %v4397_v27 = vrot.slane %v4396_v37, 4  ;;  %v4401_v57 = vrot.slane %v4399_v18, 5  ;;  %v6301_v5 = vld [vmem:[%s6398_s10 + $0xb4] sm:$0xff]   ;;  %v7901_v45 = vld [vmem:[#allocation3_spill] sm:$0xff] }
 0x11e   : > { %v7476_v20 = vadd.f32 %v1691_v59, %v991_v21  ;;  %v1012_v51 = vadd.f32 %v5923_v24, %v7107_v4  ;;  %v1704_v10 = vpop.f32.mrf.mxu0  ;;  %6129 = vmatprep.mubr.msk.bf16.mxu1 %vm545_vm0, %v6299_v13  ;;  %v6300_v4 = vld [vmem:[%s6398_s10 + $0xa8] sm:$0xff]   ;;  %v4392_v61 = vsel %vm6455_vm3, %v4387_v49, %v4391_v23  ;;  %v7902_v59 = vld [vmem:[#allocation4_spill] sm:$0xff]  ;;  %v7907_v49 = vld [vmem:[#allocation9_spill] sm:$0xff] }
 0x11f   : > { %v1003_v41 = vpop.f32.mrf.mxu1 }
 0x120   : > { %v7485_v60 = vadd.f32 %v5957_v19, %v1012_v51  ;;  %v1004_v8 = vadd.f32 %v1003_v41, %v7124_v26  ;;  %v5958_v53 = vpop.f32.mrf.mxu0 }
 0x121   : > { %v5924_v42 = vpop.f32.mrf.mxu1 }
 0x122   : > { %v7489_v2 = vadd.f32 %v1704_v10, %v1004_v8  ;;  %v1015_v16 = vadd.f32 %v5924_v42, %v7131_v40  ;;  %v1707_v58 = vpop.f32.mrf.mxu0  ;;  %v4402_v40 = vsel %vm6455_vm3, %v4397_v27, %v4401_v57  ;;  %v7905_v10 = vld [vmem:[#allocation7_spill] sm:$0xff] }
 0x123   : > { %v1006_v7 = vpop.f32.mrf.mxu1  ;;  %v5531_v28 = vcombine.low %v4392_v61, %v4402_v40 }
 0x124   : > { %v7493_v34 = vadd.f32 %v5958_v53, %v1015_v16  ;;  %v1007_v11 = vadd.f32 %v1006_v7, %v7900_v32  ;;  %v5961_v26 = vpop.f32.mrf.mxu0  ;;  %6164 = vmatmul.mubr.msk.bf16.gmra.mxu0 %vm545_vm0, %v5529_v6  ;;  %v7906_v53 = vld [vmem:[#allocation8_spill] sm:$0xff] }
 0x125   : > { %v5927_v15 = vpop.f32.mrf.mxu1  ;;  %6130 = vmatmul.mubr.msk.bf16.gmra.mxu1 %vm545_vm0, %v6300_v4  ;;  %6167 = vmatprep.mubr.msk.bf16.mxu0 %vm545_vm0, %v5530_v33 }
 0x126   : > { %v7503_v55 = vadd.f32 %v1707_v58, %v1007_v11  ;;  %v1028_v52 = vadd.f32 %v5927_v15, %v7901_v45  ;;  %v1720_v25 = vpop.f32.mrf.mxu0  ;;  %6133 = vmatprep.mubr.msk.bf16.mxu1 %vm545_vm0, %v6301_v5  ;;  %v7908_v5 = vld [vmem:[#allocation10_spill] sm:$0xff]  ;;  %v7909_v15 = vld [vmem:[#allocation11_spill] sm:$0xff] }
 0x127   : > { %v1019_v44 = vpop.f32.mrf.mxu1 }
 0x128   : > { %v7507_v29 = vadd.f32 %v5961_v26, %v1028_v52  ;;  %v1020_v13 = vadd.f32 %v1019_v44, %v7902_v59  ;;  %v5962_v48 = vpop.f32.mrf.mxu0 }
 0x129   : > { %v5928_v39 = vpop.f32.mrf.mxu1 }
 0x12a   : > { %v7511_v23 = vadd.f32 %v1720_v25, %v1020_v13  ;;  %v1031_v21 = vadd.f32 %v5928_v39, %v7903_v43  ;;  %v1723_v19 = vpop.f32.mrf.mxu0  ;;  %v7910_v25 = vld [vmem:[#allocation12_spill] sm:$0xff] }
 0x12b   : > { %v1022_v1 = vpop.f32.mrf.mxu1 }
 0x12c   : > { %v7514_v24 = vadd.f32 %v5962_v48, %v1031_v21  ;;  %v1023_v35 = vadd.f32 %v1022_v1, %v7904_v54  ;;  %v5965_v37 = vpop.f32.mrf.mxu0  ;;  %6168 = vmatmul.mubr.msk.bf16.gmra.mxu0 %vm545_vm0, %v5531_v28  ;;  %v7911_v28 = vld [vmem:[#allocation13_spill] sm:$0xff] }
 0x12d   : > { %v5931_v18 = vpop.f32.mrf.mxu1  ;;  %6134 = vmatmul.mubr.msk.bf16.gmra.mxu1 %vm545_vm0, %v6302_v38 }
 0x12e   : > { %v7519_v51 = vadd.f32 %v1723_v19, %v1023_v35  ;;  %v1044_v9 = vadd.f32 %v5931_v18, %v7905_v10  ;;  %v1736_v0 = vpop.f32.mrf.mxu0  ;;  %v7912_v19 = vld [vmem:[#allocation14_spill] sm:$0xff]  ;;  %v7913_v18 = vld [vmem:[#allocation15_spill] sm:$0xff] }
 0x12f   : > { %v1035_v41 = vpop.f32.mrf.mxu1 }
 0x130   : > { %v7522_v8 = vadd.f32 %v5965_v37, %v1044_v9  ;;  %v1036_v6 = vadd.f32 %v1035_v41, %v7906_v53  ;;  %v5966_v42 = vpop.f32.mrf.mxu0 }
 0x131   : > { %v5932_v4 = vpop.f32.mrf.mxu1 }
 0x132   : > { %v7525_v33 = vadd.f32 %v1736_v0, %v1036_v6  ;;  %v1047_v27 = vadd.f32 %v5932_v4, %v7907_v49  ;;  %v1739_v57 = vpop.f32.mrf.mxu0 }
 0x133   : > { %v1038_v16 = vpop.f32.mrf.mxu1 }
 0x134   : > { %v7528_v58 = vadd.f32 %v5966_v42, %v1047_v27  ;;  %v1039_v7 = vadd.f32 %v1038_v16, %v7908_v5  ;;  %v6005_v32 = vpop.f32.mrf.mxu0 }
 0x135   : > { %v5971_v11 = vpop.f32.mrf.mxu1 }
 0x136   : > { %v7531_v26 = vadd.f32 %v1739_v57, %v1039_v7  ;;  %v2117_v61 = vadd.f32 %v5971_v11, %v7909_v15  ;;  %v2352_v40 = vpop.f32.mrf.mxu0 }
 0x137   : > { %v1988_v45 = vpop.f32.mrf.mxu1 }
 0x138   : > { %v7534_v52 = vadd.f32 %v6005_v32, %v2117_v61  ;;  %v2115_v44 = vadd.f32 %v1988_v45, %v7910_v25  ;;  %v6006_v59 = vpop.f32.mrf.mxu0 }
 0x139   : > { %v5972_v13 = vpop.f32.mrf.mxu1 }
 0x13a   : > { %v7537_v48 = vadd.f32 %v2352_v40, %v2115_v44  ;;  %v2118_v39 = vadd.f32 %v5972_v13, %v7911_v28  ;;  %v2355_v38 = vpop.f32.mrf.mxu0 }
 0x13b   : > { %v1991_v43 = vpop.f32.mrf.mxu1 }
 0x13c   : > { %v7540_v21 = vadd.f32 %v6006_v59, %v2118_v39  ;;  %v2116_v1 = vadd.f32 %v1991_v43, %v7912_v19  ;;  %v6009_v54 = vpop.f32.mrf.mxu0 }
 0x13d   : > { %v5975_v35 = vpop.f32.mrf.mxu1 }
 0x13e   : > { %v7543_v37 = vadd.f32 %v2355_v38, %v2116_v1  ;;  %v2121_v10 = vadd.f32 %v5975_v35, %v7913_v18  ;;  %v2368_v9 = vpop.f32.mrf.mxu0 }
 0x13f   : > { %v2004_v0 = vpop.f32.mrf.mxu1 }
 0x140   : > { %v7546_v41 = vadd.f32 %v6009_v54, %v2121_v10  ;;  %v2119_v53 = vadd.f32 %v2004_v0, %v7330_v30  ;;  %v6010_v6 = vpop.f32.mrf.mxu0 }
 0x141   : > { %v5976_v42 = vpop.f32.mrf.mxu1 }
 0x142   : > { %v7549_v4 = vadd.f32 %v2368_v9, %v2119_v53  ;;  %v2122_v49 = vadd.f32 %v5976_v42, %v7335_v47  ;;  %v2371_v27 = vpop.f32.mrf.mxu0 }
 0x143   : > { %v2007_v57 = vpop.f32.mrf.mxu1 }
 0x144   : > { %v7552_v16 = vadd.f32 %v6010_v6, %v2122_v49  ;;  %v2120_v5 = vadd.f32 %v2007_v57, %v7348_v3  ;;  %v6013_v7 = vpop.f32.mrf.mxu0 }
 0x145   : > { %v5979_v32 = vpop.f32.mrf.mxu1 }
 0x146   : > { %v7555_v11 = vadd.f32 %v2371_v27, %v2120_v5  ;;  %v2125_v15 = vadd.f32 %v5979_v32, %v7361_v62  ;;  %v2384_v61 = vpop.f32.mrf.mxu0 }
 0x147   : > { %v2020_v30 = vpop.f32.mrf.mxu1 }
 0x148   : > { %v7558_v40 = vadd.f32 %v6013_v7, %v2125_v15  ;;  %v2123_v45 = vadd.f32 %v2020_v30, %v7393_v17  ;;  %v6014_v25 = vpop.f32.mrf.mxu0 }
 0x149   : > { %v5980_v47 = vpop.f32.mrf.mxu1 }
 0x14a   : > { %v7561_v44 = vadd.f32 %v2384_v61, %v2123_v45  ;;  %v2126_v59 = vadd.f32 %v5980_v47, %v7404_v63  ;;  %v2387_v13 = vpop.f32.mrf.mxu0 }
 0x14b   : > { %v2023_v3 = vpop.f32.mrf.mxu1 }
 0x14c   : > { %v7564_v28 = vadd.f32 %v6014_v25, %v2126_v59  ;;  %v2124_v39 = vadd.f32 %v2023_v3, %v7410_v12  ;;  %v6017_v38 = vpop.f32.mrf.mxu0 }
 0x14d   : > { %v5983_v62 = vpop.f32.mrf.mxu1 }
 0x14e   : > { %v7567_v43 = vadd.f32 %v2387_v13, %v2124_v39  ;;  %v2129_v19 = vadd.f32 %v5983_v62, %v7414_v36  ;;  %v2400_v1 = vpop.f32.mrf.mxu0 }
 0x14f   : > { %v2036_v17 = vpop.f32.mrf.mxu1 }
 0x150   : > { %v7570_v54 = vadd.f32 %v6017_v38, %v2129_v19  ;;  %v2127_v35 = vadd.f32 %v2036_v17, %v7430_v14  ;;  %v6018_v18 = vpop.f32.mrf.mxu0 }
 0x151   : > { %v5984_v63 = vpop.f32.mrf.mxu1 }
 0x152   : > { %v7573_v10 = vadd.f32 %v2400_v1, %v2127_v35  ;;  %v2130_v9 = vadd.f32 %v5984_v63, %v7442_v56  ;;  %v2403_v0 = vpop.f32.mrf.mxu0 }
 0x153   : > { %v2039_v12 = vpop.f32.mrf.mxu1 }
 0x154   : > { %v7576_v53 = vadd.f32 %v6018_v18, %v2130_v9  ;;  %v2128_v6 = vadd.f32 %v2039_v12, %v7451_v31  ;;  %v6021_v42 = vpop.f32.mrf.mxu0 }
 0x155   : > { %v5987_v36 = vpop.f32.mrf.mxu1 }
 0x156   : > { %v7579_v49 = vadd.f32 %v2403_v0, %v2128_v6  ;;  %v2133_v27 = vadd.f32 %v5987_v36, %v7456_v46  ;;  %v2416_v57 = vpop.f32.mrf.mxu0 }
 0x157   : > { %v2052_v14 = vpop.f32.mrf.mxu1 }
 0x158   : > { %v7582_v5 = vadd.f32 %v6021_v42, %v2133_v27  ;;  %v2131_v7 = vadd.f32 %v2052_v14, %v7460_v22  ;;  %v6022_v32 = vpop.f32.mrf.mxu0 }
 0x159   : > { %v5988_v56 = vpop.f32.mrf.mxu1 }
 0x15a   : > { %v7585_v15 = vadd.f32 %v2416_v57, %v2131_v7  ;;  %v2134_v61 = vadd.f32 %v5988_v56, %v7465_v50  ;;  %v2419_v30 = vpop.f32.mrf.mxu0 }
 0x15b   : > { %v2055_v31 = vpop.f32.mrf.mxu1 }
 0x15c   : > { %v7588_v45 = vadd.f32 %v6022_v32, %v2134_v61  ;;  %v2132_v25 = vadd.f32 %v2055_v31, %v7476_v20  ;;  %v6025_v47 = vpop.f32.mrf.mxu0 }
 0x15d   : > { %v5991_v46 = vpop.f32.mrf.mxu1 }
 0x15e   : > { %v7591_v59 = vadd.f32 %v2419_v30, %v2132_v25  ;;  %v2137_v13 = vadd.f32 %v5991_v46, %v7485_v60  ;;  %v2432_v3 = vpop.f32.mrf.mxu0 }
 0x15f   : > { %v2068_v22 = vpop.f32.mrf.mxu1 }
 0x160   : > { %v7594_v39 = vadd.f32 %v6025_v47, %v2137_v13  ;;  %v2135_v38 = vadd.f32 %v2068_v22, %v7489_v2  ;;  %v6026_v62 = vpop.f32.mrf.mxu0 }
 0x161   : > { %v5992_v50 = vpop.f32.mrf.mxu1 }
 0x162   : > { %v7597_v19 = vadd.f32 %v2432_v3, %v2135_v38  ;;  %v2138_v1 = vadd.f32 %v5992_v50, %v7493_v34  ;;  %v2435_v17 = vpop.f32.mrf.mxu0 }
 0x163   : > { %v2071_v20 = vpop.f32.mrf.mxu1 }
 0x164   : > { %v7600_v35 = vadd.f32 %v6026_v62, %v2138_v1  ;;  %v2136_v18 = vadd.f32 %v2071_v20, %v7503_v55  ;;  %v6029_v63 = vpop.f32.mrf.mxu0 }
 0x165   : > { %v5995_v60 = vpop.f32.mrf.mxu1 }
 0x166   : > { %v7603_v9 = vadd.f32 %v2435_v17, %v2136_v18  ;;  %v2141_v0 = vadd.f32 %v5995_v60, %v7507_v29  ;;  %v2448_v12 = vpop.f32.mrf.mxu0 }
 0x167   : > { %v2084_v2 = vpop.f32.mrf.mxu1 }
 0x168   : > { %v7606_v6 = vadd.f32 %v6029_v63, %v2141_v0  ;;  %v2139_v42 = vadd.f32 %v2084_v2, %v7511_v23  ;;  %v6030_v36 = vpop.f32.mrf.mxu0 }
 0x169   : > { %v5996_v34 = vpop.f32.mrf.mxu1 }
 0x16a   : > { %v7609_v27 = vadd.f32 %v2448_v12, %v2139_v42  ;;  %v2142_v57 = vadd.f32 %v5996_v34, %v7514_v24  ;;  %v2451_v14 = vpop.f32.mrf.mxu0 }
 0x16b   : > { %v2087_v55 = vpop.f32.mrf.mxu1 }
 0x16c   : > { %v7612_v7 = vadd.f32 %v6030_v36, %v2142_v57  ;;  %v2140_v32 = vadd.f32 %v2087_v55, %v7519_v51  ;;  %v6033_v56 = vpop.f32.mrf.mxu0 }
 0x16d   : > { %v5999_v29 = vpop.f32.mrf.mxu1 }
 0x16e   : > { %7914 = vst [vmem:[#allocation2_spill] sm:$0xff] %v7612_v7  ;;  %v7615_v61 = vadd.f32 %v2451_v14, %v2140_v32  ;;  %v2145_v30 = vadd.f32 %v5999_v29, %v7522_v8  ;;  %v2464_v31 = vpop.f32.mrf.mxu0 }
 0x16f   : > { %v2100_v23 = vpop.f32.mrf.mxu1 }
 0x170   : > { %7915 = vst [vmem:[#allocation3_spill] sm:$0xff] %v7615_v61  ;;  %v7618_v25 = vadd.f32 %v6033_v56, %v2145_v30  ;;  %v2143_v47 = vadd.f32 %v2100_v23, %v7525_v33  ;;  %v6034_v46 = vpop.f32.mrf.mxu0 }
 0x171   : > { %v6000_v24 = vpop.f32.mrf.mxu1 }
 0x172   : > { %v7621_v13 = vadd.f32 %v2464_v31, %v2143_v47  ;;  %v2146_v3 = vadd.f32 %v6000_v24, %v7528_v58  ;;  %v2467_v22 = vpop.f32.mrf.mxu0 }
 0x173   : > { %v2103_v51 = vpop.f32.mrf.mxu1 }
 0x174   : > { %v7624_v38 = vadd.f32 %v6034_v46, %v2146_v3  ;;  %v2144_v62 = vadd.f32 %v2103_v51, %v7531_v26  ;;  %v6073_v50 = vpop.f32.mrf.mxu0 }
 0x175   : > { %v6039_v8 = vpop.f32.mrf.mxu1 }
 0x176   : > { %7916 = vst [vmem:[#allocation4_spill] sm:$0xff] %v7624_v38  ;;  %v7627_v1 = vadd.f32 %v2467_v22, %v2144_v62  ;;  %v3211_v17 = vadd.f32 %v6039_v8, %v7534_v52  ;;  %v3448_v20 = vpop.f32.mrf.mxu0 }
 0x177   : > { %v3082_v33 = vpop.f32.mrf.mxu1 }
 0x178   : > { %7917 = vst [vmem:[#allocation5_spill] sm:$0xff] %v7627_v1  ;;  %v7630_v18 = vadd.f32 %v6073_v50, %v3211_v17  ;;  %v3209_v63 = vadd.f32 %v3082_v33, %v7537_v48  ;;  %v7633_v60 = vpop.f32.mrf.mxu0 }
 0x179   : > { %v7635_v58 = vpop.f32.mrf.mxu1 }
 0x17a   : > { %v7637_v0 = vadd.f32 %v3448_v20, %v3209_v63  ;;  %v7639_v12 = vpop.f32.mrf.mxu0 }
 0x17b   : > { %v7641_v26 = vpop.f32.mrf.mxu1 }
 0x17c   : > { %v6077_v2 = vpop.f32.mrf.mxu0 }
 0x17d   : > { %v6043_v42 = vpop.f32.mrf.mxu1 }
 0x17e   : > { %v3215_v52 = vadd.f32 %v6043_v42, %v7546_v41  ;;  %v3464_v36 = vpop.f32.mrf.mxu0 }
 0x17f   : > { %v3098_v34 = vpop.f32.mrf.mxu1 }
 0x180   : > { %v7644_v57 = vadd.f32 %v6077_v2, %v3215_v52  ;;  %v3213_v48 = vadd.f32 %v3098_v34, %v7549_v4  ;;  %v7647_v14 = vpop.f32.mrf.mxu0 }
 0x181   : > { %v7649_v55 = vpop.f32.mrf.mxu1 }
 0x182   : > { %v7651_v32 = vadd.f32 %v3464_v36, %v3213_v48  ;;  %v7653_v56 = vpop.f32.mrf.mxu0 }
 0x183   : > { %v7655_v29 = vpop.f32.mrf.mxu1 }
 0x184   : > { %v6081_v30 = vpop.f32.mrf.mxu0 }
 0x185   : > { %v6047_v31 = vpop.f32.mrf.mxu1 }
 0x186   : > { %v3219_v41 = vadd.f32 %v6047_v31, %v7558_v40  ;;  %v3480_v23 = vpop.f32.mrf.mxu0 }
 0x187   : > { %v3114_v47 = vpop.f32.mrf.mxu1 }
 0x188   : > { %v7658_v46 = vadd.f32 %v6081_v30, %v3219_v41  ;;  %v3217_v4 = vadd.f32 %v3114_v47, %v7561_v44  ;;  %v7661_v24 = vpop.f32.mrf.mxu0 }
 0x189   : > { %v7663_v3 = vpop.f32.mrf.mxu1 }
 0x18a   : > { %v7665_v22 = vadd.f32 %v3480_v23, %v3217_v4  ;;  %v7667_v51 = vpop.f32.mrf.mxu0 }
 0x18b   : > { %v7669_v62 = vpop.f32.mrf.mxu1 }
 0x18c   : > { %v6085_v50 = vpop.f32.mrf.mxu0 }
 0x18d   : > { %v6051_v8 = vpop.f32.mrf.mxu1 }
 0x18e   : > { %v3223_v40 = vadd.f32 %v6051_v8, %v7570_v54  ;;  %v3496_v17 = vpop.f32.mrf.mxu0 }
 0x18f   : > { %v3130_v20 = vpop.f32.mrf.mxu1 }
 0x190   : > { %v7672_v33 = vadd.f32 %v6085_v50, %v3223_v40  ;;  %v3221_v44 = vadd.f32 %v3130_v20, %v7573_v10  ;;  %v7675_v63 = vpop.f32.mrf.mxu0 }
 0x191   : > { %v7677_v2 = vpop.f32.mrf.mxu1 }
 0x192   : > { %v7679_v42 = vadd.f32 %v3496_v17, %v3221_v44  ;;  %v7681_v52 = vpop.f32.mrf.mxu0 }
 0x193   : > { %v7683_v36 = vpop.f32.mrf.mxu1 }
 0x194   : > { %v6089_v34 = vpop.f32.mrf.mxu0 }
 0x195   : > { %v6055_v48 = vpop.f32.mrf.mxu1 }
 0x196   : > { %v3227_v54 = vadd.f32 %v6055_v48, %v7582_v5  ;;  %v3512_v30 = vpop.f32.mrf.mxu0 }
 0x197   : > { %v3146_v31 = vpop.f32.mrf.mxu1 }
 0x198   : > { %v7686_v41 = vadd.f32 %v6089_v34, %v3227_v54  ;;  %v3225_v10 = vadd.f32 %v3146_v31, %v7585_v15  ;;  %v7689_v23 = vpop.f32.mrf.mxu0 }
 0x199   : > { %v7691_v47 = vpop.f32.mrf.mxu1 }
 0x19a   : > { %v7693_v4 = vadd.f32 %v3512_v30, %v3225_v10  ;;  %v7695_v50 = vpop.f32.mrf.mxu0 }
 0x19b   : > { %v7697_v8 = vpop.f32.mrf.mxu1 }
 0x19c   : > { %v6093_v40 = vpop.f32.mrf.mxu0 }
 0x19d   : > { %v6059_v17 = vpop.f32.mrf.mxu1 }
 0x19e   : > { %v3231_v5 = vadd.f32 %v6059_v17, %v7594_v39  ;;  %v3528_v20 = vpop.f32.mrf.mxu0 }
 0x19f   : > { %v3162_v44 = vpop.f32.mrf.mxu1 }
 0x1a0   : > { %v7700_v34 = vadd.f32 %v6093_v40, %v3231_v5  ;;  %v3229_v15 = vadd.f32 %v3162_v44, %v7597_v19  ;;  %v7703_v48 = vpop.f32.mrf.mxu0 }
 0x1a1   : > { %7918 = vst [vmem:[#allocation6_spill] sm:$0xff] %v7703_v48  ;;  %v7705_v54 = vpop.f32.mrf.mxu1 }
 0x1a2   : > { %v7707_v30 = vadd.f32 %v3528_v20, %v3229_v15  ;;  %v7709_v31 = vpop.f32.mrf.mxu0 }
 0x1a3   : > { %7920 = vst [vmem:[#allocation8_spill] sm:$0xff] %v7709_v31  ;;  %v7711_v10 = vpop.f32.mrf.mxu1 }
 0x1a4   : > { %7919 = vst [vmem:[#allocation7_spill] sm:$0xff] %v7707_v30  ;;  %v6097_v1 = vpop.f32.mrf.mxu0 }
 0x1a5   : > { %v6063_v38 = vpop.f32.mrf.mxu1 }
 0x1a6   : > { %v3235_v39 = vadd.f32 %v6063_v38, %v7606_v6  ;;  %v3544_v17 = vpop.f32.mrf.mxu0 }
 0x1a7   : > { %v3178_v61 = vpop.f32.mrf.mxu1 }
 0x1a8   : > { %v7714_v40 = vadd.f32 %v6097_v1, %v3235_v39  ;;  %v3233_v19 = vadd.f32 %v3178_v61, %v7609_v27  ;;  %v7717_v5 = vpop.f32.mrf.mxu0 }
 0x1a9   : > { %v7719_v44 = vpop.f32.mrf.mxu1 }
 0x1aa   : > { %v7721_v20 = vadd.f32 %v3544_v17, %v3233_v19  ;;  %v7723_v15 = vpop.f32.mrf.mxu0 }
 0x1ab   : > { %7922 = vst [vmem:[#allocation10_spill] sm:$0xff] %v7723_v15  ;;  %v7725_v7 = vpop.f32.mrf.mxu1 }
 0x1ac   : > { %7921 = vst [vmem:[#allocation9_spill] sm:$0xff] %v7721_v20  ;;  %v6101_v31 = vpop.f32.mrf.mxu0  ;;  %v3212_v20 = vadd.f32 %v7635_v58, %v7540_v21  ;;  %v7751_v21 = vld [vmem:[%s7878_s5] ss:$0 sm:$0xff] }
 0x1ad   : > { %v6067_v30 = vpop.f32.mrf.mxu1 }
 0x1ae   : > { %v3239_v6 = vadd.f32 %v6067_v30, %v7618_v25  ;;  %v3560_v38 = vpop.f32.mrf.mxu0 }
 0x1af   : > { %v3194_v48 = vpop.f32.mrf.mxu1 }
 0x1b0   : > { %v7728_v1 = vadd.f32 %v6101_v31, %v3239_v6  ;;  %v3237_v27 = vadd.f32 %v3194_v48, %v7621_v13  ;;  %v7731_v61 = vpop.f32.mrf.mxu0  ;;  %v3210_v31 = vadd.f32 %v7641_v26, %v7543_v37 }
 0x1b1   : > { %7924 = vst [vmem:[#allocation12_spill] sm:$0xff] %v7731_v61  ;;  %v7733_v39 = vpop.f32.mrf.mxu1  ;;  %v3578_v61 = vadd.f32 %v7633_v60, %v3212_v20 }
 0x1b2   : > { %7923 = vst [vmem:[#allocation11_spill] sm:$0xff] %v7728_v1  ;;  %v7735_v17 = vadd.f32 %v3560_v38, %v3237_v27  ;;  %v7737_v19 = vpop.f32.mrf.mxu0 }
 0x1b3   : > { %7926 = vst [vmem:[#allocation14_spill] sm:$0xff] %v7737_v19  ;;  %v7739_v15 = vpop.f32.mrf.mxu1 }
 0x1b4   : > { %7925 = vst [vmem:[#allocation13_spill] sm:$0xff] %v7735_v17  ;;  %7927 = vst [vmem:[#allocation15_spill] sm:$0xff] %v7739_v15  ;;  %v6141_v25 = vpop.f32.mrf.mxu0  ;;  %v3576_v17 = vadd.f32 %v7639_v12, %v3210_v31 }
 0x1b5   : > { %v6107_v30 = vpop.f32.mrf.mxu1 }
 0x1b6   : > { %v3941_v13 = vadd.f32 %v6107_v30, %v7630_v18  ;;  %v4542_v48 = vpop.f32.mrf.mxu0 }
 0x1b7   : > { %v3812_v6 = vpop.f32.mrf.mxu1 }
 0x1b8   : > { %v4671_v38 = vadd.f32 %v6141_v25, %v3941_v13  ;;  %v3939_v27 = vadd.f32 %v3812_v6, %v7637_v0  ;;  %v6142_v19 = vpop.f32.mrf.mxu0  ;;  %v3216_v0 = vadd.f32 %v7649_v55, %v7552_v16  ;;  %v3214_v13 = vadd.f32 %v7655_v29, %v7555_v11 }
 0x1b9   : > { %v6108_v58 = vpop.f32.mrf.mxu1 }
 0x1ba   : > { %v4669_v37 = vadd.f32 %v4542_v48, %v3939_v27  ;;  %v3942_v26 = vadd.f32 %v6108_v58, %v3578_v61  ;;  %v4545_v18 = vpop.f32.mrf.mxu0  ;;  %v4710_v1 = vadd.f32 %v7751_v21, %v4671_v38  ;;  %v3582_v11 = vadd.f32 %v7647_v14, %v3216_v0 }
 0x1bb   : > { %v3815_v30 = vpop.f32.mrf.mxu1  ;;  %v3580_v29 = vadd.f32 %v7653_v56, %v3214_v13  ;;  %v3220_v14 = vadd.f32 %v7663_v3, %v7564_v28 }
 0x1bc   : > { %v4672_v60 = vadd.f32 %v6142_v19, %v3942_v26  ;;  %v3940_v20 = vadd.f32 %v3815_v30, %v3576_v17  ;;  %v6145_v25 = vpop.f32.mrf.mxu0  ;;  %v4708_v15 = vadd.f32 %v7751_v21, %v4669_v37  ;;  %v4742_v19 = vmax.f32 %v4710_v1, 0.0 }
 0x1bd   : > { %v6111_v6 = vpop.f32.mrf.mxu1 }
 0x1be   : > { %v4711_v12 = vadd.f32 %v7751_v21, %v4672_v60  ;;  %v4670_v61 = vadd.f32 %v4545_v18, %v3940_v20  ;;  %v3945_v31 = vadd.f32 %v6111_v6, %v7644_v57  ;;  %v4558_v48 = vpop.f32.mrf.mxu0  ;;  %v4740_v1 = vmax.f32 %v4708_v15, 0.0 }
 0x1bf   : > { %v3828_v38 = vpop.f32.mrf.mxu1 }
 0x1c0   : > { %v4743_v17 = vmax.f32 %v4711_v12, 0.0  ;;  %v4709_v27 = vadd.f32 %v7751_v21, %v4670_v61  ;;  %v3943_v16 = vadd.f32 %v3828_v38, %v7651_v32  ;;  %v6146_v55 = vpop.f32.mrf.mxu0  ;;  %v4675_v57 = vadd.f32 %v6145_v25, %v3945_v31 }
 0x1c1   : > { %v6112_v58 = vpop.f32.mrf.mxu1  ;;  %v3586_v38 = vadd.f32 %v7661_v24, %v3220_v14  ;;  %v3224_v24 = vadd.f32 %v7677_v2, %v7576_v53 }
 0x1c2   : > { %v5625_v37 = vpack.c.bf16 %v4743_v17, %v4742_v19  ;;  %v4741_v26 = vmax.f32 %v4709_v27, 0.0  ;;  %v4673_v18 = vadd.f32 %v4558_v48, %v3943_v16  ;;  %v4561_v30 = vpop.f32.mrf.mxu0  ;;  %v3946_v32 = vadd.f32 %v6112_v58, %v3582_v11 }
 0x1c3   : > { %v3831_v60 = vpop.f32.mrf.mxu1  ;;  %v4714_v13 = vadd.f32 %v7751_v21, %v4675_v57  ;;  %v3218_v48 = vadd.f32 %v7669_v62, %v7567_v43  ;;  %v3590_v2 = vadd.f32 %v7675_v63, %v3224_v24 }
 0x1c4   : > { %5697 = vst [vmem:[%s7770_s16 + $0x8] sm:$0xff] %v5625_v37   ;;  %v5620_v56 = vpack.c.bf16 %v4741_v26, %v4740_v1  ;;  %v3944_v20 = vadd.f32 %v3831_v60, %v3580_v29  ;;  %v6149_v0 = vpop.f32.mrf.mxu0  ;;  %v4676_v6 = vadd.f32 %v6146_v55, %v3946_v32  ;;  %v4712_v15 = vadd.f32 %v7751_v21, %v4673_v18 }
 0x1c5   : > { %v6115_v25 = vpop.f32.mrf.mxu1  ;;  %v4746_v55 = vmax.f32 %v4714_v13, 0.0  ;;  %v3584_v62 = vadd.f32 %v7667_v51, %v3218_v48 }
 0x1c6   : > { %5621 = vst [vmem:[%s7770_s16] sm:$0xff] %v5620_v56   ;;  %v4674_v12 = vadd.f32 %v4561_v30, %v3944_v20  ;;  %v3949_v61 = vadd.f32 %v6115_v25, %v7658_v46  ;;  %v4574_v31 = vpop.f32.mrf.mxu0  ;;  %v4715_v28 = vadd.f32 %v7751_v21, %v4676_v6  ;;  %v4744_v46 = vmax.f32 %v4712_v15, 0.0 }
 0x1c7   : > { %v3844_v3 = vpop.f32.mrf.mxu1  ;;  %v3222_v56 = vadd.f32 %v7683_v36, %v7579_v49 }
 0x1c8   : > { %v4713_v19 = vadd.f32 %v7751_v21, %v4674_v12  ;;  %v4679_v17 = vadd.f32 %v6149_v0, %v3949_v61  ;;  %v3947_v27 = vadd.f32 %v3844_v3, %v7665_v22  ;;  %v6150_v16 = vpop.f32.mrf.mxu0  ;;  %v4747_v11 = vmax.f32 %v4715_v28, 0.0 }
 0x1c9   : > { %v6116_v29 = vpop.f32.mrf.mxu1  ;;  %v3588_v48 = vadd.f32 %v7681_v52, %v3222_v56  ;;  %v3226_v52 = vadd.f32 %v7697_v8, %v7591_v59 }
 0x1ca   : > { %v4745_v57 = vmax.f32 %v4713_v19, 0.0  ;;  %v3950_v58 = vadd.f32 %v6116_v29, %v3586_v38  ;;  %v4577_v43 = vpop.f32.mrf.mxu0  ;;  %v5635_v1 = vpack.c.bf16 %v4747_v11, %v4746_v55  ;;  %v4677_v37 = vadd.f32 %v4574_v31, %v3947_v27 }
 0x1cb   : > { %v3847_v26 = vpop.f32.mrf.mxu1  ;;  %v4718_v22 = vadd.f32 %v7751_v21, %v4679_v17  ;;  %v3228_v11 = vadd.f32 %v7691_v47, %v7588_v45 }
 0x1cc   : > { %v5630_v18 = vpack.c.bf16 %v4745_v57, %v4744_v46  ;;  %v4680_v30 = vadd.f32 %v6150_v16, %v3950_v58  ;;  %v6153_v32 = vpop.f32.mrf.mxu0  ;;  %5699 = vst [vmem:[%s7770_s16 + $0x18] sm:$0xff] %v5635_v1   ;;  %v3948_v60 = vadd.f32 %v3847_v26, %v3584_v62  ;;  %v4716_v0 = vadd.f32 %v7751_v21, %v4677_v37 }
 0x1cd   : > { %v6119_v14 = vpop.f32.mrf.mxu1  ;;  %v4750_v25 = vmax.f32 %v4718_v22, 0.0  ;;  %v3594_v8 = vadd.f32 %v7689_v23, %v3228_v11 }
 0x1ce   : > { %5698 = vst [vmem:[%s7770_s16 + $0x10] sm:$0xff] %v5630_v18   ;;  %v4719_v51 = vadd.f32 %v7751_v21, %v4680_v30  ;;  %v3953_v20 = vadd.f32 %v6119_v14, %v7672_v33  ;;  %v4590_v53 = vpop.f32.mrf.mxu0  ;;  %v4678_v13 = vadd.f32 %v4577_v43, %v3948_v60  ;;  %v4748_v38 = vmax.f32 %v4716_v0, 0.0 }
 0x1cf   : > { %v3860_v6 = vpop.f32.mrf.mxu1  ;;  %v3592_v18 = vadd.f32 %v7695_v50, %v3226_v52 }
 0x1d0   : > { %v4751_v15 = vmax.f32 %v4719_v51, 0.0  ;;  %v4683_v12 = vadd.f32 %v6153_v32, %v3953_v20  ;;  %v3951_v61 = vadd.f32 %v3860_v6, %v7679_v42  ;;  %v6154_v31 = vpop.f32.mrf.mxu0  ;;  %v4717_v49 = vadd.f32 %v7751_v21, %v4678_v13 }
 0x1d1   : > { %v6120_v36 = vpop.f32.mrf.mxu1 }
 0x1d2   : > { %v5645_v33 = vpack.c.bf16 %v4751_v15, %v4750_v25  ;;  %v4681_v28 = vadd.f32 %v4590_v53, %v3951_v61  ;;  %v3954_v3 = vadd.f32 %v6120_v36, %v3590_v2  ;;  %v4593_v63 = vpop.f32.mrf.mxu0  ;;  %v4749_v19 = vmax.f32 %v4717_v49, 0.0 }
 0x1d3   : > { %v3863_v17 = vpop.f32.mrf.mxu1  ;;  %v4722_v27 = vadd.f32 %v7751_v21, %v4683_v12  ;;  %v3232_v53 = vadd.f32 %v7705_v54, %v7600_v35  ;;  %v3230_v61 = vadd.f32 %v7711_v10, %v7603_v9  ;;  %v7930_v10 = vld [vmem:[#allocation8_spill] sm:$0xff] }
 0x1d4   : > { %5701 = vst [vmem:[%s7770_s16 + $0x28] sm:$0xff] %v5645_v33   ;;  %v4684_v16 = vadd.f32 %v6154_v31, %v3954_v3  ;;  %v3952_v55 = vadd.f32 %v3863_v17, %v3588_v48  ;;  %v6157_v42 = vpop.f32.mrf.mxu0  ;;  %v5640_v29 = vpack.c.bf16 %v4749_v19, %v4748_v38  ;;  %v4720_v57 = vadd.f32 %v7751_v21, %v4681_v28  ;;  %v7928_v31 = vld [vmem:[#allocation6_spill] sm:$0xff]  ;;  %v7929_v33 = vld [vmem:[#allocation7_spill] sm:$0xff] }
 0x1d5   : > { %v6123_v46 = vpop.f32.mrf.mxu1  ;;  %v4754_v37 = vmax.f32 %v4722_v27, 0.0  ;;  %v3598_v49 = vadd.f32 %v7928_v31, %v3232_v53 }
 0x1d6   : > { %v4723_v58 = vadd.f32 %v7751_v21, %v4684_v16  ;;  %v4682_v43 = vadd.f32 %v4593_v63, %v3952_v55  ;;  %v3957_v62 = vadd.f32 %v6123_v46, %v7686_v41  ;;  %v4606_v24 = vpop.f32.mrf.mxu0  ;;  %5700 = vst [vmem:[%s7770_s16 + $0x20] sm:$0xff] %v5640_v29   ;;  %v4752_v32 = vmax.f32 %v4720_v57, 0.0  ;;  %v7931_v55 = vld [vmem:[#allocation2_spill] sm:$0xff] }
 0x1d7   : > { %v3876_v1 = vpop.f32.mrf.mxu1  ;;  %v3596_v16 = vadd.f32 %v7930_v10, %v3230_v61  ;;  %v7936_v61 = vld [vmem:[#allocation5_spill] sm:$0xff] }
 0x1d8   : > { %v4755_v26 = vmax.f32 %v4723_v58, 0.0  ;;  %v4721_v45 = vadd.f32 %v7751_v21, %v4682_v43  ;;  %v3955_v47 = vadd.f32 %v3876_v1, %v7693_v4  ;;  %v6158_v59 = vpop.f32.mrf.mxu0  ;;  %v4687_v22 = vadd.f32 %v6157_v42, %v3957_v62  ;;  %v7932_v1 = vld [vmem:[#allocation3_spill] sm:$0xff] }
 0x1d9   : > { %v6124_v30 = vpop.f32.mrf.mxu1  ;;  %v3236_v42 = vadd.f32 %v7719_v44, %v7931_v55 }
 0x1da   : > { %v5655_v41 = vpack.c.bf16 %v4755_v26, %v4754_v37  ;;  %v4753_v60 = vmax.f32 %v4721_v45, 0.0  ;;  %v4685_v14 = vadd.f32 %v4606_v24, %v3955_v47  ;;  %v4609_v56 = vpop.f32.mrf.mxu0  ;;  %v3958_v51 = vadd.f32 %v6124_v30, %v3594_v8 }
 0x1db   : > { %v3879_v20 = vpop.f32.mrf.mxu1  ;;  %v4726_v23 = vadd.f32 %v7751_v21, %v4687_v22  ;;  %v3234_v37 = vadd.f32 %v7725_v7, %v7932_v1  ;;  %v3602_v47 = vadd.f32 %v7717_v5, %v3236_v42 }
 0x1dc   : > { %5703 = vst [vmem:[%s7770_s16 + $0x38] sm:$0xff] %v5655_v41   ;;  %v5650_v4 = vpack.c.bf16 %v4753_v60, %v4752_v32  ;;  %v3956_v2 = vadd.f32 %v3879_v20, %v3592_v18  ;;  %v6161_v0 = vpop.f32.mrf.mxu0  ;;  %v4688_v50 = vadd.f32 %v6158_v59, %v3958_v51  ;;  %v4724_v6 = vadd.f32 %v7751_v21, %v4685_v14  ;;  %v7933_v41 = vld [vmem:[#allocation9_spill] sm:$0xff]  ;;  %v7934_v51 = vld [vmem:[#allocation10_spill] sm:$0xff] }
 0x1dd   : > { %v6127_v13 = vpop.f32.mrf.mxu1  ;;  %v4758_v63 = vmax.f32 %v4726_v23, 0.0  ;;  %v3600_v20 = vadd.f32 %v7934_v51, %v3234_v37 }
 0x1de   : > { %5702 = vst [vmem:[%s7770_s16 + $0x30] sm:$0xff] %v5650_v4   ;;  %v4686_v25 = vadd.f32 %v4609_v56, %v3956_v2  ;;  %v3961_v15 = vadd.f32 %v6127_v13, %v7700_v34  ;;  %v4622_v12 = vpop.f32.mrf.mxu0  ;;  %v4727_v35 = vadd.f32 %v7751_v21, %v4688_v50  ;;  %v4756_v34 = vmax.f32 %v4724_v6, 0.0 }
 0x1df   : > { %v3892_v54 = vpop.f32.mrf.mxu1 }
 0x1e0   : > { %v4725_v36 = vadd.f32 %v7751_v21, %v4686_v25  ;;  %v4691_v48 = vadd.f32 %v6161_v0, %v3961_v15  ;;  %v3959_v28 = vadd.f32 %v3892_v54, %v7929_v33  ;;  %v6162_v3 = vpop.f32.mrf.mxu0  ;;  %v4759_v38 = vmax.f32 %v4727_v35, 0.0  ;;  %v7935_v15 = vld [vmem:[#allocation4_spill] sm:$0xff]  ;;  %v7937_v35 = vld [vmem:[#allocation15_spill] sm:$0xff] }
 0x1e1   : > { %v6128_v19 = vpop.f32.mrf.mxu1  ;;  %v3238_v54 = vadd.f32 %v7937_v35, %v7936_v61 }
 0x1e2   : > { %v4757_v17 = vmax.f32 %v4725_v36, 0.0  ;;  %v3962_v27 = vadd.f32 %v6128_v19, %v3598_v49  ;;  %v4625_v9 = vpop.f32.mrf.mxu0  ;;  %v5665_v11 = vpack.c.bf16 %v4759_v38, %v4758_v63  ;;  %v4689_v52 = vadd.f32 %v4622_v12, %v3959_v28  ;;  %v7938_v28 = vld [vmem:[#allocation11_spill] sm:$0xff] }
 0x1e3   : > { %v3895_v29 = vpop.f32.mrf.mxu1  ;;  %v4730_v57 = vadd.f32 %v7751_v21, %v4691_v48  ;;  %v3240_v12 = vadd.f32 %v7733_v39, %v7935_v15 }
 0x1e4   : > { %v5660_v46 = vpack.c.bf16 %v4757_v17, %v4756_v34  ;;  %v4692_v58 = vadd.f32 %v6162_v3, %v3962_v27  ;;  %v6165_v43 = vpop.f32.mrf.mxu0  ;;  %5705 = vst [vmem:[%s7770_s16 + $0x48] sm:$0xff] %v5665_v11   ;;  %v3960_v62 = vadd.f32 %v3895_v29, %v3596_v16  ;;  %v4728_v59 = vadd.f32 %v7751_v21, %v4689_v52  ;;  %v7939_v17 = vld [vmem:[#allocation13_spill] sm:$0xff]  ;;  %v7941_v16 = vld [vmem:[#allocation14_spill] sm:$0xff] }
 0x1e5   : > { %v6131_v24 = vpop.f32.mrf.mxu1  ;;  %v4762_v22 = vmax.f32 %v4730_v57, 0.0  ;;  %v3604_v55 = vadd.f32 %v7941_v16, %v3238_v54 }
 0x1e6   : > { %5704 = vst [vmem:[%s7770_s16 + $0x40] sm:$0xff] %v5660_v46   ;;  %v4731_v26 = vadd.f32 %v7751_v21, %v4692_v58  ;;  %v3965_v45 = vadd.f32 %v6131_v24, %v7714_v40  ;;  %v4638_v44 = vpop.f32.mrf.mxu0  ;;  %v4690_v8 = vadd.f32 %v4625_v9, %v3960_v62  ;;  %v4760_v2 = vmax.f32 %v4728_v59, 0.0  ;;  %v7940_v9 = vld [vmem:[#allocation12_spill] sm:$0xff] }
 0x1e7   : > { %v3908_v18 = vpop.f32.mrf.mxu1  ;;  %v3606_v10 = vadd.f32 %v7940_v9, %v3240_v12 }
 0x1e8   : > { %v4763_v30 = vmax.f32 %v4731_v26, 0.0  ;;  %v4695_v32 = vadd.f32 %v6165_v43, %v3965_v45  ;;  %v3963_v60 = vadd.f32 %v3908_v18, %v7933_v41  ;;  %v6166_v14 = vpop.f32.mrf.mxu0  ;;  %v4729_v7 = vadd.f32 %v7751_v21, %v4690_v8 }
 0x1e9   : > { %v6132_v56 = vpop.f32.mrf.mxu1 }
 0x1ea   : > { %v5675_v40 = vpack.c.bf16 %v4763_v30, %v4762_v22  ;;  %v4693_v53 = vadd.f32 %v4638_v44, %v3963_v60  ;;  %v3966_v4 = vadd.f32 %v6132_v56, %v3602_v47  ;;  %v4641_v5 = vpop.f32.mrf.mxu0  ;;  %v4761_v0 = vmax.f32 %v4729_v7, 0.0 }
 0x1eb   : > { %v3911_v23 = vpop.f32.mrf.mxu1  ;;  %v4734_v50 = vadd.f32 %v7751_v21, %v4695_v32 }
 0x1ec   : > { %5707 = vst [vmem:[%s7770_s16 + $0x58] sm:$0xff] %v5675_v40   ;;  %v4696_v13 = vadd.f32 %v6166_v14, %v3966_v4  ;;  %v3964_v6 = vadd.f32 %v3911_v23, %v3600_v20  ;;  %v6169_v25 = vpop.f32.mrf.mxu0  ;;  %v5670_v31 = vpack.c.bf16 %v4761_v0, %v4760_v2  ;;  %v4732_v36 = vadd.f32 %v7751_v21, %v4693_v53 }
 0x1ed   : > { %v6135_v49 = vpop.f32.mrf.mxu1  ;;  %v4766_v19 = vmax.f32 %v4734_v50, 0.0 }
 0x1ee   : > { %v4735_v48 = vadd.f32 %v7751_v21, %v4696_v13  ;;  %v4694_v33 = vadd.f32 %v4641_v5, %v3964_v6  ;;  %v3969_v3 = vadd.f32 %v6135_v49, %v7938_v28  ;;  %v4654_v63 = vpop.f32.mrf.mxu0  ;;  %5706 = vst [vmem:[%s7770_s16 + $0x50] sm:$0xff] %v5670_v31   ;;  %v4764_v29 = vmax.f32 %v4732_v36, 0.0 }
 0x1ef   : > { %v3924_v38 = vpop.f32.mrf.mxu1 }
 0x1f0   : > { %v4767_v34 = vmax.f32 %v4735_v48, 0.0  ;;  %v4733_v39 = vadd.f32 %v7751_v21, %v4694_v33  ;;  %v3967_v27 = vadd.f32 %v3924_v38, %v7939_v17  ;;  %v4699_v42 = vadd.f32 %v6169_v25, %v3969_v3  ;;  %v6170_v52 = vpop.f32.mrf.mxu0 }
 0x1f1   : > { %v6136_v11 = vpop.f32.mrf.mxu1 }
 0x1f2   : > { %v5685_v46 = vpack.c.bf16 %v4767_v34, %v4766_v19  ;;  %v4765_v57 = vmax.f32 %v4733_v39, 0.0  ;;  %v4697_v58 = vadd.f32 %v4654_v63, %v3967_v27  ;;  %v3970_v43 = vadd.f32 %v6136_v11, %v3606_v10  ;;  %v4657_v45 = vpop.f32.mrf.mxu0 }
 0x1f3   : > { %v3927_v62 = vpop.f32.mrf.mxu1  ;;  %v4738_v37 = vadd.f32 %v7751_v21, %v4699_v42 }
 0x1f4   : > { %5709 = vst [vmem:[%s7770_s16 + $0x68] sm:$0xff] %v5685_v46   ;;  %v5680_v24 = vpack.c.bf16 %v4765_v57, %v4764_v29  ;;  %v3968_v1 = vadd.f32 %v3927_v62, %v3604_v55  ;;  %v4700_v26 = vadd.f32 %v6170_v52, %v3970_v43  ;;  %v4736_v44 = vadd.f32 %v7751_v21, %v4697_v58 }
 0x1f5   : > { %v4770_v18 = vmax.f32 %v4738_v37, 0.0 }
 0x1f6   : > { %5708 = vst [vmem:[%s7770_s16 + $0x60] sm:$0xff] %v5680_v24   ;;  %v4698_v47 = vadd.f32 %v4657_v45, %v3968_v1  ;;  %v4739_v59 = vadd.f32 %v7751_v21, %v4700_v26  ;;  %v4768_v30 = vmax.f32 %v4736_v44, 0.0 }
 0x1f8   : > { %v4737_v8 = vadd.f32 %v7751_v21, %v4698_v47  ;;  %v4771_v22 = vmax.f32 %v4739_v59, 0.0 }
 0x1fa   : > { %v4769_v32 = vmax.f32 %v4737_v8, 0.0  ;;  %v5695_v41 = vpack.c.bf16 %v4771_v22, %v4770_v18 }
 0x1fc   : > { %v5690_v60 = vpack.c.bf16 %v4769_v32, %v4768_v30  ;;  %5711 = vst [vmem:[%s7770_s16 + $0x78] sm:$0xff] %v5695_v41  }
 0x1fe   : > { %5710 = vst [vmem:[%s7770_s16 + $0x70] sm:$0xff] %v5690_v60  }
 0x1ff PF: > { %s16_s23 = sadd.s32 1, %s6325_s23   ;;  %s7942_s21 = smov %s6321_s22 }
 0x200   : > { %p13_p5 = scmp.ge.s32.totalorder %s16_s23, 4   ;;  %s7943_s22 = smov %s7945_s24 }
 0x202   :  { %15 = sbr.rel (!%p13_p5) target bundleno = 2 (0x2), region = 103 }

</bundles_post_ra>
